<compile_context>
chip_gen: v7x
topology: tpu7x:2x2x1
jax: 0.10.0
libtpu: 0.0.40
codegen_flags: <defaults>
</compile_context>

<pallas_src>
import functools

import jax
import jax.numpy as jnp
from jax import lax
from jax.experimental import pallas as pl
from jax.experimental.pallas import tpu as pltpu


def _round_up(x, m):
    return (x + m - 1) // m * m


# -----------------------------------------------------------------------------
# Pallas kernels
# -----------------------------------------------------------------------------
def _conv_bn_relu_kernel(p_ref, w_ref, o_ref):
    """Fused (im2col-matmul) conv + training-mode BatchNorm (gamma=1, beta=0) + ReLU.

    p_ref: (M, Kp) bf16 patches, M = B*Ho*Wo (one row per output pixel), Kp = pad128(K)
    w_ref: (Kp, Np) bf16 weights, Np = pad128(Cout)
    o_ref: (M, Np)  f32 output (extra columns are zero and sliced off by the wrapper)

    Per-column mean/var over the M rows == BatchNorm2d batch statistics over
    (N, H, W).  Stats are computed in one pass (sum / sum-of-squares) in f32.
    """
    y = jnp.dot(p_ref[...], w_ref[...], preferred_element_type=jnp.float32)
    m = jnp.float32(y.shape[0])
    s = jnp.sum(y, axis=0, keepdims=True)
    ss = jnp.sum(y * y, axis=0, keepdims=True)
    mean = s / m
    var = jnp.maximum(ss / m - mean * mean, 0.0)      # biased var, like torch BN (train)
    inv = lax.rsqrt(var + 1e-5)
    o_ref[...] = jnp.maximum((y - mean) * inv, 0.0)


def _fused_conv_bn_relu_matmul(patches, wmat):
    """patches: (M, K) f32, wmat: (K, N) f32 -> (M, N) f32 (BN+ReLU applied)."""
    M, K = patches.shape
    _, N = wmat.shape
    Kp = _round_up(K, 128)
    Np = _round_up(N, 128)
    # bf16 MXU operands (f32 accumulation inside the kernel); zero-pad K and N so the
    # contraction and output stores are 128-lane aligned / lane-dense.
    p = jnp.pad(patches.astype(jnp.bfloat16), ((0, 0), (0, Kp - K)))
    w = jnp.pad(wmat.astype(jnp.bfloat16), ((0, Kp - K), (0, Np - N)))
    out = pl.pallas_call(
        _conv_bn_relu_kernel,
        out_shape=jax.ShapeDtypeStruct((M, Np), jnp.float32),
        in_specs=[
            pl.BlockSpec(memory_space=pltpu.MemorySpace.VMEM),
            pl.BlockSpec(memory_space=pltpu.MemorySpace.VMEM),
        ],
        out_specs=pl.BlockSpec(memory_space=pltpu.MemorySpace.VMEM),
        compiler_params=pltpu.CompilerParams(vmem_limit_bytes=32 * 1024 * 1024),
    )(p, w)
    # TODO(synk): for large spectrograms, grid over M with a two-pass (stats, normalize)
    # structure so BN statistics stay global while tiles fit 64 MiB VMEM (v7x).
    return out[:, :N]


def _lstm_stack_kernel(x_ref, wih0_ref, whh0_ref, b0_ref,
                       wih1_ref, whh1_ref, b1_ref, o_ref,
                       seq_sc, xp_sc, h_sc, c_sc, *, B):
    """2-layer LSTM over time-major flattened data, fused into one kernel.

    x_ref : (T*B, H)  input sequence, row t*B + b is (time t, batch b)
    wihK  : (H, 4H)   weight_ih_l{K}.T
    whhK  : (H, 4H)   weight_hh_l{K}.T
    bK    : (1, 4H)   b_ih_l{K} + b_hh_l{K}
    o_ref : (T*B, H)  layer-2 hidden-state outputs
    seq_sc: (T*B, H)  scratch — layer-1 hidden sequence (stays in VMEM)
    xp_sc : (T*B, 4H) scratch — precomputed input projection for all timesteps
    h_sc, c_sc: (B, H) recurrent state scratch
    Gate order matches PyTorch: i, f, g, o.  Zero initial (h, c) per layer.
    """
    TB, H = x_ref.shape
    T = TB // B

    def run_layer(inp_ref, wih_ref, whh_ref, b_ref, out_ref):
        # Hoist the input-to-hidden projection (and the bias broadcast) off the serial
        # critical path: one (T*B, H) @ (H, 4H) matmul instead of T tiny MXU pushes.
        xp_sc[...] = (
            jnp.dot(inp_ref[...], wih_ref[...], preferred_element_type=jnp.float32)
            + b_ref[...]
        )
        h_sc[...] = jnp.zeros_like(h_sc)
        c_sc[...] = jnp.zeros_like(c_sc)

        def step(t, carry):
            row = t * B
            gates = xp_sc[pl.ds(row, B)] + jnp.dot(
                h_sc[...], whh_ref[...], preferred_element_type=jnp.float32
            )                                           # (B, 4H)
            i_g = jax.nn.sigmoid(gates[:, 0 * H:1 * H])
            f_g = jax.nn.sigmoid(gates[:, 1 * H:2 * H])
            g_g = jnp.tanh(gates[:, 2 * H:3 * H])
            o_g = jax.nn.sigmoid(gates[:, 3 * H:4 * H])
            c_new = f_g * c_sc[...] + i_g * g_g
            h_new = o_g * jnp.tanh(c_new)
            c_sc[...] = c_new
            h_sc[...] = h_new
            out_ref[pl.ds(row, B)] = h_new
            return carry

        # T is small & static: fully unroll so the scheduler can overlap MXU/VPU/EUP work.
        lax.fori_loop(0, T, step, 0, unroll=True)

    run_layer(x_ref, wih0_ref, whh0_ref, b0_ref, seq_sc)   # layer 0 -> VMEM scratch
    run_layer(seq_sc, wih1_ref, whh1_ref, b1_ref, o_ref)   # layer 1 -> output


def _lstm_stack(x_tb_h, lstm_params, *, T, B):
    """Run the 2-layer LSTM as one fused Pallas kernel. x_tb_h: (T*B, H) f32."""
    H = x_tb_h.shape[1]
    (wih0, whh0, b0), (wih1, whh1, b1) = lstm_params
    kernel = functools.partial(_lstm_stack_kernel, B=B)
    return pl.pallas_call(
        kernel,
        out_shape=jax.ShapeDtypeStruct((T * B, H), jnp.float32),
        in_specs=[pl.BlockSpec(memory_space=pltpu.MemorySpace.VMEM)] * 7,
        out_specs=pl.BlockSpec(memory_space=pltpu.MemorySpace.VMEM),
        scratch_shapes=[
            pltpu.VMEM((T * B, H), jnp.float32),       # layer-1 hidden sequence
            pltpu.VMEM((T * B, 4 * H), jnp.float32),   # input projection
            pltpu.VMEM((B, H), jnp.float32),           # h state
            pltpu.VMEM((B, H), jnp.float32),           # c state
        ],
        compiler_params=pltpu.CompilerParams(vmem_limit_bytes=32 * 1024 * 1024),
    )(x_tb_h, wih0, whh0, b0, wih1, whh1, b1)


# -----------------------------------------------------------------------------
# Glue: im2col, conv / transposed-conv wrappers (NCHW), encoder / decoder
# -----------------------------------------------------------------------------
def _im2col(x, kH, kW, sH, sW, pH, pW):
    """x: (B, C, H, W) -> patches (B*Ho*Wo, C*kH*kW), column ordering (c, i, j)."""
    # TODO(synk): fuse im2col into the conv kernel (strided VMEM slices) to avoid
    # reading the input kH*kW times through XLA for large inputs.
    x = jnp.pad(x, ((0, 0), (0, 0), (pH, pH), (pW, pW)))
    B, C, H, W = x.shape
    Ho = (H - kH) // sH + 1
    Wo = (W - kW) // sW + 1
    cols = []
    for i in range(kH):
        for j in range(kW):
            cols.append(x[:, :, i:i + sH * Ho:sH, j:j + sW * Wo:sW])  # (B,C,Ho,Wo)
    patches = jnp.stack(cols, axis=-1)                # (B, C, Ho, Wo, kH*kW)
    patches = patches.transpose(0, 2, 3, 1, 4)        # (B, Ho, Wo, C, kH*kW)
    return patches.reshape(B * Ho * Wo, C * kH * kW), (B, Ho, Wo)


def conv2d_bn_relu(x, w, stride, padding):
    """Conv2d(bias=False) + BN(train) + ReLU.  w: (Cout, Cin, kH, kW) (PyTorch)."""
    Cout, Cin, kH, kW = w.shape
    patches, (B, Ho, Wo) = _im2col(x, kH, kW, stride[0], stride[1], padding[0], padding[1])
    wmat = w.reshape(Cout, Cin * kH * kW).T           # (K, Cout)
    y = _fused_conv_bn_relu_matmul(patches, wmat)     # (B*Ho*Wo, Cout)
    return y.reshape(B, Ho, Wo, Cout).transpose(0, 3, 1, 2)


def convtranspose2d_bn_relu(x, w, stride, padding, out_padding):
    """ConvTranspose2d(bias=False) + BN(train) + ReLU.  w: (Cin, Cout, kH, kW)."""
    # out_padding MUST be static Python ints (it drives jnp.pad widths).
    Cin, Cout, kH, kW = w.shape
    sH, sW = stride
    pH, pW = padding
    opH, opW = int(out_padding[0]), int(out_padding[1])
    B, C, H, W = x.shape
    # zero-dilate by stride, pad by (k-1-p) each side plus output_padding at the end
    # TODO(synk): sub-pixel decomposition (sW stride-1 convs + interleave) would avoid
    # multiplying against the inserted zeros for large decoder layers.
    xd = jnp.zeros((B, C, (H - 1) * sH + 1, (W - 1) * sW + 1), x.dtype)
    xd = xd.at[:, :, ::sH, ::sW].set(x)
    xd = jnp.pad(xd, ((0, 0), (0, 0),
                      (kH - 1 - pH, kH - 1 - pH + opH),
                      (kW - 1 - pW, kW - 1 - pW + opW)))
    patches, (B, Ho, Wo) = _im2col(xd, kH, kW, 1, 1, 0, 0)
    # equivalent stride-1 conv weight: flip spatially, swap channel roles
    w_eff = w[:, :, ::-1, ::-1].transpose(0, 2, 3, 1).reshape(Cin * kH * kW, Cout)
    y = _fused_conv_bn_relu_matmul(patches, w_eff)
    return y.reshape(B, Ho, Wo, Cout).transpose(0, 3, 1, 2)


def crn_forward(x, params, *, dec_opads, kernel_size=(2, 5), stride=(1, 2), padding=(1, 0)):
    # ---------------- Encoder ----------------
    encs = []
    h = x
    for w in params["enc_ws"]:
        h = jnp.pad(h, ((0, 0), (0, 0), (1, 0), (0, 0)))   # F.pad(x, (0,0,1,0))
        h = conv2d_bn_relu(h, w, stride, padding)
        encs.append(h)

    # ---------------- Processor (2-layer LSTM, one fused kernel) ----------------
    z = encs[-1]
    B, C, T, Wf = z.shape
    # Same raw memory reinterpretation as torch.reshape on the contiguous NCHW tensor.
    z = z.reshape(B, T, -1)                      # (B, T, hidden)
    zt = jnp.transpose(z, (1, 0, 2)).reshape(T * B, -1)   # time-major flattened
    zt = _lstm_stack(zt, params["lstm"], T=T, B=B)
    z = zt.reshape(T, B, -1).transpose(1, 0, 2)  # (B, T, hidden)
    h = z.reshape(B, C, T, -1)                   # raw reinterpretation back to NCHW

    # ---------------- Decoder ----------------
    for li, (w, opad) in enumerate(zip(params["dec_ws"], dec_opads)):
        enc = encs[len(encs) - 1 - li]
        h = jnp.concatenate([h, enc], axis=1)
        h = h[:, :, :-1, :]
        h = convtranspose2d_bn_relu(h, w, stride, padding, opad)
    return h


# -----------------------------------------------------------------------------
# Static decoder output_padding schedule (kept out of the traced params pytree)
# -----------------------------------------------------------------------------
def decoder_out_paddings(decoder_channels):
    n = len(decoder_channels)
    return tuple((0, 0) if i < n - 3 else (0, 1) for i in range(n - 1))


# -----------------------------------------------------------------------------
# Deterministic parameter initialisation (synthetic; matches module shapes)
# -----------------------------------------------------------------------------
def init_params(key, encoder_channels, decoder_channels, kernel_size, hidden_dim):
    kH, kW = kernel_size
    params = {"enc_ws": [], "dec_ws": [], "lstm": []}
    n_enc = len(encoder_channels) - 1
    n_dec = len(decoder_channels) - 1
    keys = jax.random.split(key, n_enc + n_dec + 2 * 3)
    ki = 0

    # Conv2d weights: kaiming-normal style (fan_out = Cout*kH*kW)
    for i in range(n_enc):
        cin, cout = encoder_channels[i], encoder_channels[i + 1]
        std = (2.0 / (cout * kH * kW)) ** 0.5
        params["enc_ws"].append(
            std * jax.random.normal(keys[ki], (cout, cin, kH, kW), jnp.float32))
        ki += 1

    # ConvTranspose2d weights: shape (Cin, Cout, kH, kW)
    for i in range(n_dec):
        cin, cout = 2 * decoder_channels[i], decoder_channels[i + 1]
        std = (2.0 / (cin * kH * kW)) ** 0.5
        params["dec_ws"].append(
            std * jax.random.normal(keys[ki], (cin, cout, kH, kW), jnp.float32))
        ki += 1

    # 2-layer LSTM: weight_ih/weight_hh stored transposed as (H, 4H), biases combined.
    H = hidden_dim
    bound = 1.0 / (H ** 0.5)
    for _ in range(2):
        wih = jax.random.uniform(keys[ki], (H, 4 * H), jnp.float32, -bound, bound); ki += 1
        whh = jax.random.uniform(keys[ki], (H, 4 * H), jnp.float32, -bound, bound); ki += 1
        b = jax.random.uniform(keys[ki], (1, 4 * H), jnp.float32, -bound, bound); ki += 1
        params["lstm"].append((wih, whh, b))
    return params


# -----------------------------------------------------------------------------
# Main
# -----------------------------------------------------------------------------
if __name__ == "__main__":
    # Small config consistent with the module's shape constraints
    # (hidden_dim must equal C_last * W_last of the encoder output).
    encoder_channels = [1, 8, 16, 16]
    decoder_channels = [16, 16, 8, 1]
    kernel_size = (2, 5)
    stride = (1, 2)
    padding = (1, 0)
    hidden_dim = 16

    key = jax.random.PRNGKey(0)
    kx, kp = jax.random.split(key)

    # Input spectrogram-like tensor, NCHW: (batch=2, chan=1, frames=8, freq=32)
    x = jax.random.normal(kx, (2, 1, 8, 32), jnp.float32)
    params = init_params(kp, encoder_channels, decoder_channels, kernel_size, hidden_dim)
    dec_opads = decoder_out_paddings(decoder_channels)   # static, NOT part of the pytree

    fwd = jax.jit(functools.partial(crn_forward, dec_opads=dec_opads,
                                    kernel_size=kernel_size,
                                    stride=stride, padding=padding))
    out = fwd(x, params)
    out = jax.block_until_ready(out)

    assert out.shape == (2, 1, 8, 32), out.shape
    assert bool(jnp.all(jnp.isfinite(out)))
    # TODO(synk): the `inference()` method (torchaudio I/O + STDCT/overlap-add) is
    # host-side pre/post-processing, not part of the forward pass, and is not ported.
    print("KERNEL_OK")
</pallas_src>

<mosaic_0001>
module attributes {stable_mosaic.version = 11 : i64} {
  func.func @_conv_bn_relu_kernel(%arg0: memref<280x128xbf16, #tpu.memory_space<vmem>>, %arg1: memref<128x128xbf16, #tpu.memory_space<vmem>>, %arg2: memref<280x128xf32, #tpu.memory_space<vmem>>) attributes {dimension_semantics = [], scalar_prefetch = 0 : i64, scratch_operands = 0 : i64, tpu.core_type = #tpu.core_type<tc>} {
    %c0 = arith.constant 0 : index
    %c0_0 = arith.constant 0 : index
    %0 = vector.load %arg0[%c0, %c0_0] : memref<280x128xbf16, #tpu.memory_space<vmem>>, vector<280x128xbf16>
    %c0_1 = arith.constant 0 : index
    %c0_2 = arith.constant 0 : index
    %1 = vector.load %arg1[%c0_1, %c0_2] : memref<128x128xbf16, #tpu.memory_space<vmem>>, vector<128x128xbf16>
    %cst = arith.constant dense<0.000000e+00> : vector<280x128xf32>
    %2 = tpu.matmul %0, %1, %cst {dimension_numbers = #tpu.dot_dimension_numbers<[1], [0], [0], [1], [0, 0, 1, 1], [], []>} : vector<280x128xbf16>, vector<128x128xbf16>, vector<280x128xf32> -> vector<280x128xf32>
    %cst_3 = arith.constant dense<0.000000e+00> : vector<128xf32>
    %3 = vector.multi_reduction <add>, %2, %cst_3 [0] : vector<280x128xf32> to vector<128xf32>
    %4 = vector.shape_cast %3 : vector<128xf32> to vector<1x128xf32>
    %5 = arith.mulf %2, %2 : vector<280x128xf32>
    %cst_4 = arith.constant dense<0.000000e+00> : vector<128xf32>
    %6 = vector.multi_reduction <add>, %5, %cst_4 [0] : vector<280x128xf32> to vector<128xf32>
    %7 = vector.shape_cast %6 : vector<128xf32> to vector<1x128xf32>
    %cst_5 = arith.constant 2.800000e+02 : f32
    %8 = vector.broadcast %cst_5 : f32 to vector<1x128xf32>
    %9 = arith.divf %4, %8 : vector<1x128xf32>
    %cst_6 = arith.constant 2.800000e+02 : f32
    %10 = vector.broadcast %cst_6 : f32 to vector<1x128xf32>
    %11 = arith.divf %7, %10 : vector<1x128xf32>
    %12 = arith.mulf %9, %9 : vector<1x128xf32>
    %13 = arith.subf %11, %12 : vector<1x128xf32>
    %cst_7 = arith.constant 0.000000e+00 : f32
    %14 = vector.broadcast %cst_7 : f32 to vector<1x128xf32>
    %15 = arith.maximumf %13, %14 : vector<1x128xf32>
    %cst_8 = arith.constant 9.99999974E-6 : f32
    %16 = vector.broadcast %cst_8 : f32 to vector<1x128xf32>
    %17 = arith.addf %15, %16 : vector<1x128xf32>
    %18 = math.rsqrt %17 : vector<1x128xf32>
    %19 = vector.broadcast %9 : vector<1x128xf32> to vector<280x128xf32>
    %20 = arith.subf %2, %19 : vector<280x128xf32>
    %21 = vector.broadcast %18 : vector<1x128xf32> to vector<280x128xf32>
    %22 = arith.mulf %20, %21 : vector<280x128xf32>
    %cst_9 = arith.constant 0.000000e+00 : f32
    %23 = vector.broadcast %cst_9 : f32 to vector<280x128xf32>
    %24 = arith.maximumf %22, %23 : vector<280x128xf32>
    %c0_10 = arith.constant 0 : index
    %c0_11 = arith.constant 0 : index
    %25 = vector.load %arg2[%c0_10, %c0_11] : memref<280x128xf32, #tpu.memory_space<vmem>>, vector<280x128xf32>
    tpu.vector_store %arg2[%c0_10, %c0_11], %24 {strides = array<i32>} : memref<280x128xf32, #tpu.memory_space<vmem>>, vector<280x128xf32>,
    return
  }
}

module attributes {stable_mosaic.version = 11 : i64} {
  func.func @_conv_bn_relu_kernel(%arg0: memref<120x128xbf16, #tpu.memory_space<vmem>>, %arg1: memref<128x128xbf16, #tpu.memory_space<vmem>>, %arg2: memref<120x128xf32, #tpu.memory_space<vmem>>) attributes {dimension_semantics = [], scalar_prefetch = 0 : i64, scratch_operands = 0 : i64, tpu.core_type = #tpu.core_type<tc>} {
    %c0 = arith.constant 0 : index
    %c0_0 = arith.constant 0 : index
    %0 = vector.load %arg0[%c0, %c0_0] : memref<120x128xbf16, #tpu.memory_space<vmem>>, vector<120x128xbf16>
    %c0_1 = arith.constant 0 : index
    %c0_2 = arith.constant 0 : index
    %1 = vector.load %arg1[%c0_1, %c0_2] : memref<128x128xbf16, #tpu.memory_space<vmem>>, vector<128x128xbf16>
    %cst = arith.constant dense<0.000000e+00> : vector<120x128xf32>
    %2 = tpu.matmul %0, %1, %cst {dimension_numbers = #tpu.dot_dimension_numbers<[1], [0], [0], [1], [0, 0, 1, 1], [], []>} : vector<120x128xbf16>, vector<128x128xbf16>, vector<120x128xf32> -> vector<120x128xf32>
    %cst_3 = arith.constant dense<0.000000e+00> : vector<128xf32>
    %3 = vector.multi_reduction <add>, %2, %cst_3 [0] : vector<120x128xf32> to vector<128xf32>
    %4 = vector.shape_cast %3 : vector<128xf32> to vector<1x128xf32>
    %5 = arith.mulf %2, %2 : vector<120x128xf32>
    %cst_4 = arith.constant dense<0.000000e+00> : vector<128xf32>
    %6 = vector.multi_reduction <add>, %5, %cst_4 [0] : vector<120x128xf32> to vector<128xf32>
    %7 = vector.shape_cast %6 : vector<128xf32> to vector<1x128xf32>
    %cst_5 = arith.constant 1.200000e+02 : f32
    %8 = vector.broadcast %cst_5 : f32 to vector<1x128xf32>
    %9 = arith.divf %4, %8 : vector<1x128xf32>
    %cst_6 = arith.constant 1.200000e+02 : f32
    %10 = vector.broadcast %cst_6 : f32 to vector<1x128xf32>
    %11 = arith.divf %7, %10 : vector<1x128xf32>
    %12 = arith.mulf %9, %9 : vector<1x128xf32>
    %13 = arith.subf %11, %12 : vector<1x128xf32>
    %cst_7 = arith.constant 0.000000e+00 : f32
    %14 = vector.broadcast %cst_7 : f32 to vector<1x128xf32>
    %15 = arith.maximumf %13, %14 : vector<1x128xf32>
    %cst_8 = arith.constant 9.99999974E-6 : f32
    %16 = vector.broadcast %cst_8 : f32 to vector<1x128xf32>
    %17 = arith.addf %15, %16 : vector<1x128xf32>
    %18 = math.rsqrt %17 : vector<1x128xf32>
    %19 = vector.broadcast %9 : vector<1x128xf32> to vector<120x128xf32>
    %20 = arith.subf %2, %19 : vector<120x128xf32>
    %21 = vector.broadcast %18 : vector<1x128xf32> to vector<120x128xf32>
    %22 = arith.mulf %20, %21 : vector<120x128xf32>
    %cst_9 = arith.constant 0.000000e+00 : f32
    %23 = vector.broadcast %cst_9 : f32 to vector<120x128xf32>
    %24 = arith.maximumf %22, %23 : vector<120x128xf32>
    %c0_10 = arith.constant 0 : index
    %c0_11 = arith.constant 0 : index
    %25 = vector.load %arg2[%c0_10, %c0_11] : memref<120x128xf32, #tpu.memory_space<vmem>>, vector<120x128xf32>
    tpu.vector_store %arg2[%c0_10, %c0_11], %24 {strides = array<i32>} : memref<120x128xf32, #tpu.memory_space<vmem>>, vector<120x128xf32>,
    return
  }
}

module attributes {stable_mosaic.version = 11 : i64} {
  func.func @_conv_bn_relu_kernel(%arg0: memref<28x256xbf16, #tpu.memory_space<vmem>>, %arg1: memref<256x128xbf16, #tpu.memory_space<vmem>>, %arg2: memref<28x128xf32, #tpu.memory_space<vmem>>) attributes {dimension_semantics = [], scalar_prefetch = 0 : i64, scratch_operands = 0 : i64, tpu.core_type = #tpu.core_type<tc>} {
    %c0 = arith.constant 0 : index
    %c0_0 = arith.constant 0 : index
    %0 = vector.load %arg0[%c0, %c0_0] : memref<28x256xbf16, #tpu.memory_space<vmem>>, vector<28x256xbf16>
    %c0_1 = arith.constant 0 : index
    %c0_2 = arith.constant 0 : index
    %1 = vector.load %arg1[%c0_1, %c0_2] : memref<256x128xbf16, #tpu.memory_space<vmem>>, vector<256x128xbf16>
    %cst = arith.constant dense<0.000000e+00> : vector<28x128xf32>
    %2 = tpu.matmul %0, %1, %cst {dimension_numbers = #tpu.dot_dimension_numbers<[1], [0], [0], [1], [0, 0, 1, 1], [], []>} : vector<28x256xbf16>, vector<256x128xbf16>, vector<28x128xf32> -> vector<28x128xf32>
    %cst_3 = arith.constant dense<0.000000e+00> : vector<128xf32>
    %3 = vector.multi_reduction <add>, %2, %cst_3 [0] : vector<28x128xf32> to vector<128xf32>
    %4 = vector.shape_cast %3 : vector<128xf32> to vector<1x128xf32>
    %5 = arith.mulf %2, %2 : vector<28x128xf32>
    %cst_4 = arith.constant dense<0.000000e+00> : vector<128xf32>
    %6 = vector.multi_reduction <add>, %5, %cst_4 [0] : vector<28x128xf32> to vector<128xf32>
    %7 = vector.shape_cast %6 : vector<128xf32> to vector<1x128xf32>
    %cst_5 = arith.constant 2.800000e+01 : f32
    %8 = vector.broadcast %cst_5 : f32 to vector<1x128xf32>
    %9 = arith.divf %4, %8 : vector<1x128xf32>
    %cst_6 = arith.constant 2.800000e+01 : f32
    %10 = vector.broadcast %cst_6 : f32 to vector<1x128xf32>
    %11 = arith.divf %7, %10 : vector<1x128xf32>
    %12 = arith.mulf %9, %9 : vector<1x128xf32>
    %13 = arith.subf %11, %12 : vector<1x128xf32>
    %cst_7 = arith.constant 0.000000e+00 : f32
    %14 = vector.broadcast %cst_7 : f32 to vector<1x128xf32>
    %15 = arith.maximumf %13, %14 : vector<1x128xf32>
    %cst_8 = arith.constant 9.99999974E-6 : f32
    %16 = vector.broadcast %cst_8 : f32 to vector<1x128xf32>
    %17 = arith.addf %15, %16 : vector<1x128xf32>
    %18 = math.rsqrt %17 : vector<1x128xf32>
    %19 = vector.broadcast %9 : vector<1x128xf32> to vector<28x128xf32>
    %20 = arith.subf %2, %19 : vector<28x128xf32>
    %21 = vector.broadcast %18 : vector<1x128xf32> to vector<28x128xf32>
    %22 = arith.mulf %20, %21 : vector<28x128xf32>
    %cst_9 = arith.constant 0.000000e+00 : f32
    %23 = vector.broadcast %cst_9 : f32 to vector<28x128xf32>
    %24 = arith.maximumf %22, %23 : vector<28x128xf32>
    %c0_10 = arith.constant 0 : index
    %c0_11 = arith.constant 0 : index
    %25 = vector.load %arg2[%c0_10, %c0_11] : memref<28x128xf32, #tpu.memory_space<vmem>>, vector<28x128xf32>
    tpu.vector_store %arg2[%c0_10, %c0_11], %24 {strides = array<i32>} : memref<28x128xf32, #tpu.memory_space<vmem>>, vector<28x128xf32>,
    return
  }
}

module attributes {stable_mosaic.version = 11 : i64} {
  func.func @_lstm_stack_kernel(%arg0: memref<28x16xf32, #tpu.memory_space<vmem>>, %arg1: memref<16x64xf32, #tpu.memory_space<vmem>>, %arg2: memref<16x64xf32, #tpu.memory_space<vmem>>, %arg3: memref<1x64xf32, #tpu.memory_space<vmem>>, %arg4: memref<16x64xf32, #tpu.memory_space<vmem>>, %arg5: memref<16x64xf32, #tpu.memory_space<vmem>>, %arg6: memref<1x64xf32, #tpu.memory_space<vmem>>, %arg7: memref<28x16xf32, #tpu.memory_space<vmem>>, %arg8: memref<28x16xf32, #tpu.memory_space<vmem>>, %arg9: memref<28x64xf32, #tpu.memory_space<vmem>>, %arg10: memref<2x16xf32, #tpu.memory_space<vmem>>, %arg11: memref<2x16xf32, #tpu.memory_space<vmem>>) attributes {dimension_semantics = [], scalar_prefetch = 0 : i64, scratch_operands = 4 : i64, tpu.core_type = #tpu.core_type<tc>} {
    %c0 = arith.constant 0 : index
    %c0_0 = arith.constant 0 : index
    %0 = vector.load %arg0[%c0, %c0_0] : memref<28x16xf32, #tpu.memory_space<vmem>>, vector<28x16xf32>
    %c0_1 = arith.constant 0 : index
    %c0_2 = arith.constant 0 : index
    %1 = vector.load %arg1[%c0_1, %c0_2] : memref<16x64xf32, #tpu.memory_space<vmem>>, vector<16x64xf32>
    %cst = arith.constant dense<0.000000e+00> : vector<28x64xf32>
    %2 = tpu.matmul %0, %1, %cst {dimension_numbers = #tpu.dot_dimension_numbers<[1], [0], [0], [1], [0, 0, 1, 1], [], []>} : vector<28x16xf32>, vector<16x64xf32>, vector<28x64xf32> -> vector<28x64xf32>
    %c0_3 = arith.constant 0 : index
    %c0_4 = arith.constant 0 : index
    %3 = vector.load %arg3[%c0_3, %c0_4] : memref<1x64xf32, #tpu.memory_space<vmem>>, vector<1x64xf32>
    %4 = vector.broadcast %3 : vector<1x64xf32> to vector<28x64xf32>
    %5 = arith.addf %2, %4 : vector<28x64xf32>
    %c0_5 = arith.constant 0 : index
    %c0_6 = arith.constant 0 : index
    %6 = vector.load %arg9[%c0_5, %c0_6] : memref<28x64xf32, #tpu.memory_space<vmem>>, vector<28x64xf32>
    tpu.vector_store %arg9[%c0_5, %c0_6], %5 {strides = array<i32>} : memref<28x64xf32, #tpu.memory_space<vmem>>, vector<28x64xf32>,
    %cst_7 = arith.constant 0.000000e+00 : f32
    %7 = vector.broadcast %cst_7 : f32 to vector<2x16xf32>
    %c0_8 = arith.constant 0 : index
    %c0_9 = arith.constant 0 : index
    %8 = vector.load %arg10[%c0_8, %c0_9] : memref<2x16xf32, #tpu.memory_space<vmem>>, vector<2x16xf32>
    tpu.vector_store %arg10[%c0_8, %c0_9], %7 {strides = array<i32>} : memref<2x16xf32, #tpu.memory_space<vmem>>, vector<2x16xf32>,
    %cst_10 = arith.constant 0.000000e+00 : f32
    %9 = vector.broadcast %cst_10 : f32 to vector<2x16xf32>
    %c0_11 = arith.constant 0 : index
    %c0_12 = arith.constant 0 : index
    %10 = vector.load %arg11[%c0_11, %c0_12] : memref<2x16xf32, #tpu.memory_space<vmem>>, vector<2x16xf32>
    tpu.vector_store %arg11[%c0_11, %c0_12], %9 {strides = array<i32>} : memref<2x16xf32, #tpu.memory_space<vmem>>, vector<2x16xf32>,
    %c0_i32 = arith.constant 0 : i32
    %c2_i32 = arith.constant 2 : i32
    %11 = arith.muli %c0_i32, %c2_i32 : i32
    %12 = arith.index_cast %11 : i32 to index
    %c0_13 = arith.constant 0 : index
    %13 = vector.load %arg9[%12, %c0_13] : memref<28x64xf32, #tpu.memory_space<vmem>>, vector<2x64xf32>
    %c0_14 = arith.constant 0 : index
    %c0_15 = arith.constant 0 : index
    %14 = vector.load %arg10[%c0_14, %c0_15] : memref<2x16xf32, #tpu.memory_space<vmem>>, vector<2x16xf32>
    %c0_16 = arith.constant 0 : index
    %c0_17 = arith.constant 0 : index
    %15 = vector.load %arg2[%c0_16, %c0_17] : memref<16x64xf32, #tpu.memory_space<vmem>>, vector<16x64xf32>
    %cst_18 = arith.constant dense<0.000000e+00> : vector<2x64xf32>
    %16 = tpu.matmul %14, %15, %cst_18 {dimension_numbers = #tpu.dot_dimension_numbers<[1], [0], [0], [1], [0, 0, 1, 1], [], []>} : vector<2x16xf32>, vector<16x64xf32>, vector<2x64xf32> -> vector<2x64xf32>
    %17 = arith.addf %13, %16 : vector<2x64xf32>
    %18 = vector.extract_strided_slice %17 {offsets = [0, 0], sizes = [2, 16], strides = [1, 1]} : vector<2x64xf32> to vector<2x16xf32>
    %19 = arith.negf %18 : vector<2x16xf32>
    %20 = math.exp %19 : vector<2x16xf32>
    %cst_19 = arith.constant 1.000000e+00 : f32
    %21 = vector.broadcast %cst_19 : f32 to vector<2x16xf32>
    %22 = arith.addf %21, %20 : vector<2x16xf32>
    %23 = arith.divf %21, %22 : vector<2x16xf32>
    %24 = vector.extract_strided_slice %17 {offsets = [0, 16], sizes = [2, 16], strides = [1, 1]} : vector<2x64xf32> to vector<2x16xf32>
    %25 = arith.negf %24 : vector<2x16xf32>
    %26 = math.exp %25 : vector<2x16xf32>
    %cst_20 = arith.constant 1.000000e+00 : f32
    %27 = vector.broadcast %cst_20 : f32 to vector<2x16xf32>
    %28 = arith.addf %27, %26 : vector<2x16xf32>
    %29 = arith.divf %27, %28 : vector<2x16xf32>
    %30 = vector.extract_strided_slice %17 {offsets = [0, 32], sizes = [2, 16], strides = [1, 1]} : vector<2x64xf32> to vector<2x16xf32>
    %31 = math.tanh %30 : vector<2x16xf32>
    %32 = vector.extract_strided_slice %17 {offsets = [0, 48], sizes = [2, 16], strides = [1, 1]} : vector<2x64xf32> to vector<2x16xf32>
    %33 = arith.negf %32 : vector<2x16xf32>
    %34 = math.exp %33 : vector<2x16xf32>
    %cst_21 = arith.constant 1.000000e+00 : f32
    %35 = vector.broadcast %cst_21 : f32 to vector<2x16xf32>
    %36 = arith.addf %35, %34 : vector<2x16xf32>
    %37 = arith.divf %35, %36 : vector<2x16xf32>
    %c0_22 = arith.constant 0 : index
    %c0_23 = arith.constant 0 : index
    %38 = vector.load %arg11[%c0_22, %c0_23] : memref<2x16xf32, #tpu.memory_space<vmem>>, vector<2x16xf32>
    %39 = arith.mulf %29, %38 : vector<2x16xf32>
    %40 = arith.mulf %23, %31 : vector<2x16xf32>
    %41 = arith.addf %39, %40 : vector<2x16xf32>
    %42 = math.tanh %41 : vector<2x16xf32>
    %43 = arith.mulf %37, %42 : vector<2x16xf32>
    %c0_24 = arith.constant 0 : index
    %c0_25 = arith.constant 0 : index
    %44 = vector.load %arg11[%c0_24, %c0_25] : memref<2x16xf32, #tpu.memory_space<vmem>>, vector<2x16xf32>
    tpu.vector_store %arg11[%c0_24, %c0_25], %41 {strides = array<i32>} : memref<2x16xf32, #tpu.memory_space<vmem>>, vector<2x16xf32>,
    %c0_26 = arith.constant 0 : index
    %c0_27 = arith.constant 0 : index
    %45 = vector.load %arg10[%c0_26, %c0_27] : memref<2x16xf32, #tpu.memory_space<vmem>>, vector<2x16xf32>
    tpu.vector_store %arg10[%c0_26, %c0_27], %43 {strides = array<i32>} : memref<2x16xf32, #tpu.memory_space<vmem>>, vector<2x16xf32>,
    %46 = arith.index_cast %11 : i32 to index
    %c0_28 = arith.constant 0 : index
    %47 = vector.load %arg8[%46, %c0_28] : memref<28x16xf32, #tpu.memory_space<vmem>>, vector<2x16xf32>
    tpu.vector_store %arg8[%46, %c0_28], %43 {strides = array<i32>} : memref<28x16xf32, #tpu.memory_space<vmem>>, vector<2x16xf32>,
    %c1_i32 = arith.constant 1 : i32
    %c2_i32_29 = arith.constant 2 : i32
    %48 = arith.muli %c1_i32, %c2_i32_29 : i32
    %49 = arith.index_cast %48 : i32 to index
    %c0_30 = arith.constant 0 : index
    %50 = vector.load %arg9[%49, %c0_30] : memref<28x64xf32, #tpu.memory_space<vmem>>, vector<2x64xf32>
    %c0_31 = arith.constant 0 : index
    %c0_32 = arith.constant 0 : index
    %51 = vector.load %arg10[%c0_31, %c0_32] : memref<2x16xf32, #tpu.memory_space<vmem>>, vector<2x16xf32>
    %c0_33 = arith.constant 0 : index
    %c0_34 = arith.constant 0 : index
    %52 = vector.load %arg2[%c0_33, %c0_34] : memref<16x64xf32, #tpu.memory_space<vmem>>, vector<16x64xf32>
    %cst_35 = arith.constant dense<0.000000e+00> : vector<2x64xf32>
    %53 = tpu.matmul %51, %52, %cst_35 {dimension_numbers = #tpu.dot_dimension_numbers<[1], [0], [0], [1], [0, 0, 1, 1], [], []>} : vector<2x16xf32>, vector<16x64xf32>, vector<2x64xf32> -> vector<2x64xf32>
    %54 = arith.addf %50, %53 : vector<2x64xf32>
    %55 = vector.extract_strided_slice %54 {offsets = [0, 0], sizes = [2, 16], strides = [1, 1]} : vector<2x64xf32> to vector<2x16xf32>
    %56 = arith.negf %55 : vector<2x16xf32>
    %57 = math.exp %56 : vector<2x16xf32>
    %cst_36 = arith.constant 1.000000e+00 : f32
    %58 = vector.broadcast %cst_36 : f32 to vector<2x16xf32>
    %59 = arith.addf %58, %57 : vector<2x16xf32>
    %60 = arith.divf %58, %59 : vector<2x16xf32>
    %61 = vector.extract_strided_slice %54 {offsets = [0, 16], sizes = [2, 16], strides = [1, 1]} : vector<2x64xf32> to vector<2x16xf32>
    %62 = arith.negf %61 : vector<2x16xf32>
    %63 = math.exp %62 : vector<2x16xf32>
    %cst_37 = arith.constant 1.000000e+00 : f32
    %64 = vector.broadcast %cst_37 : f32 to vector<2x16xf32>
    %65 = arith.addf %64, %63 : vector<2x16xf32>
    %66 = arith.divf %64, %65 : vector<2x16xf32>
    %67 = vector.extract_strided_slice %54 {offsets = [0, 32], sizes = [2, 16], strides = [1, 1]} : vector<2x64xf32> to vector<2x16xf32>
    %68 = math.tanh %67 : vector<2x16xf32>
    %69 = vector.extract_strided_slice %54 {offsets = [0, 48], sizes = [2, 16], strides = [1, 1]} : vector<2x64xf32> to vector<2x16xf32>
    %70 = arith.negf %69 : vector<2x16xf32>
    %71 = math.exp %70 : vector<2x16xf32>
    %cst_38 = arith.constant 1.000000e+00 : f32
    %72 = vector.broadcast %cst_38 : f32 to vector<2x16xf32>
    %73 = arith.addf %72, %71 : vector<2x16xf32>
    %74 = arith.divf %72, %73 : vector<2x16xf32>
    %c0_39 = arith.constant 0 : index
    %c0_40 = arith.constant 0 : index
    %75 = vector.load %arg11[%c0_39, %c0_40] : memref<2x16xf32, #tpu.memory_space<vmem>>, vector<2x16xf32>
    %76 = arith.mulf %66, %75 : vector<2x16xf32>
    %77 = arith.mulf %60, %68 : vector<2x16xf32>
    %78 = arith.addf %76, %77 : vector<2x16xf32>
    %79 = math.tanh %78 : vector<2x16xf32>
    %80 = arith.mulf %74, %79 : vector<2x16xf32>
    %c0_41 = arith.constant 0 : index
    %c0_42 = arith.constant 0 : index
    %81 = vector.load %arg11[%c0_41, %c0_42] : memref<2x16xf32, #tpu.memory_space<vmem>>, vector<2x16xf32>
    tpu.vector_store %arg11[%c0_41, %c0_42], %78 {strides = array<i32>} : memref<2x16xf32, #tpu.memory_space<vmem>>, vector<2x16xf32>,
    %c0_43 = arith.constant 0 : index
    %c0_44 = arith.constant 0 : index
    %82 = vector.load %arg10[%c0_43, %c0_44] : memref<2x16xf32, #tpu.memory_space<vmem>>, vector<2x16xf32>
    tpu.vector_store %arg10[%c0_43, %c0_44], %80 {strides = array<i32>} : memref<2x16xf32, #tpu.memory_space<vmem>>, vector<2x16xf32>,
    %83 = arith.index_cast %48 : i32 to index
    %c0_45 = arith.constant 0 : index
    %84 = vector.load %arg8[%83, %c0_45] : memref<28x16xf32, #tpu.memory_space<vmem>>, vector<2x16xf32>
    tpu.vector_store %arg8[%83, %c0_45], %80 {strides = array<i32>} : memref<28x16xf32, #tpu.memory_space<vmem>>, vector<2x16xf32>,
    %c2_i32_46 = arith.constant 2 : i32
    %c2_i32_47 = arith.constant 2 : i32
    %85 = arith.muli %c2_i32_46, %c2_i32_47 : i32
    %86 = arith.index_cast %85 : i32 to index
    %c0_48 = arith.constant 0 : index
    %87 = vector.load %arg9[%86, %c0_48] : memref<28x64xf32, #tpu.memory_space<vmem>>, vector<2x64xf32>
    %c0_49 = arith.constant 0 : index
    %c0_50 = arith.constant 0 : index
    %88 = vector.load %arg10[%c0_49, %c0_50] : memref<2x16xf32, #tpu.memory_space<vmem>>, vector<2x16xf32>
    %c0_51 = arith.constant 0 : index
    %c0_52 = arith.constant 0 : index
    %89 = vector.load %arg2[%c0_51, %c0_52] : memref<16x64xf32, #tpu.memory_space<vmem>>, vector<16x64xf32>
    %cst_53 = arith.constant dense<0.000000e+00> : vector<2x64xf32>
    %90 = tpu.matmul %88, %89, %cst_53 {dimension_numbers = #tpu.dot_dimension_numbers<[1], [0], [0], [1], [0, 0, 1, 1], [], []>} : vector<2x16xf32>, vector<16x64xf32>, vector<2x64xf32> -> vector<2x64xf32>
    %91 = arith.addf %87, %90 : vector<2x64xf32>
    %92 = vector.extract_strided_slice %91 {offsets = [0, 0], sizes = [2, 16], strides = [1, 1]} : vector<2x64xf32> to vector<2x16xf32>
    %93 = arith.negf %92 : vector<2x16xf32>
    %94 = math.exp %93 : vector<2x16xf32>
    %cst_54 = arith.constant 1.000000e+00 : f32
    %95 = vector.broadcast %cst_54 : f32 to vector<2x16xf32>
    %96 = arith.addf %95, %94 : vector<2x16xf32>
    %97 = arith.divf %95, %96 : vector<2x16xf32>
    %98 = vector.extract_strided_slice %91 {offsets = [0, 16], sizes = [2, 16], strides = [1, 1]} : vector<2x64xf32> to vector<2x16xf32>
    %99 = arith.negf %98 : vector<2x16xf32>
    %100 = math.exp %99 : vector<2x16xf32>
    %cst_55 = arith.constant 1.000000e+00 : f32
    %101 = vector.broadcast %cst_55 : f32 to vector<2x16xf32>
    %102 = arith.addf %101, %100 : vector<2x16xf32>
    %103 = arith.divf %101, %102 : vector<2x16xf32>
    %104 = vector.extract_strided_slice %91 {offsets = [0, 32], sizes = [2, 16], strides = [1, 1]} : vector<2x64xf32> to vector<2x16xf32>
    %105 = math.tanh %104 : vector<2x16xf32>
    %106 = vector.extract_strided_slice %91 {offsets = [0, 48], sizes = [2, 16], strides = [1, 1]} : vector<2x64xf32> to vector<2x16xf32>
    %107 = arith.negf %106 : vector<2x16xf32>
    %108 = math.exp %107 : vector<2x16xf32>
    %cst_56 = arith.constant 1.000000e+00 : f32
    %109 = vector.broadcast %cst_56 : f32 to vector<2x16xf32>
    %110 = arith.addf %109, %108 : vector<2x16xf32>
    %111 = arith.divf %109, %110 : vector<2x16xf32>
    %c0_57 = arith.constant 0 : index
    %c0_58 = arith.constant 0 : index
    %112 = vector.load %arg11[%c0_57, %c0_58] : memref<2x16xf32, #tpu.memory_space<vmem>>, vector<2x16xf32>
    %113 = arith.mulf %103, %112 : vector<2x16xf32>
    %114 = arith.mulf %97, %105 : vector<2x16xf32>
    %115 = arith.addf %113, %114 : vector<2x16xf32>
    %116 = math.tanh %115 : vector<2x16xf32>
    %117 = arith.mulf %111, %116 : vector<2x16xf32>
    %c0_59 = arith.constant 0 : index
    %c0_60 = arith.constant 0 : index
    %118 = vector.load %arg11[%c0_59, %c0_60] : memref<2x16xf32, #tpu.memory_space<vmem>>, vector<2x16xf32>
    tpu.vector_store %arg11[%c0_59, %c0_60], %115 {strides = array<i32>} : memref<2x16xf32, #tpu.memory_space<vmem>>, vector<2x16xf32>,
    %c0_61 = arith.constant 0 : index
    %c0_62 = arith.constant 0 : index
    %119 = vector.load %arg10[%c0_61, %c0_62] : memref<2x16xf32, #tpu.memory_space<vmem>>, vector<2x16xf32>
    tpu.vector_store %arg10[%c0_61, %c0_62], %117 {strides = array<i32>} : memref<2x16xf32, #tpu.memory_space<vmem>>, vector<2x16xf32>,
    %120 = arith.index_cast %85 : i32 to index
    %c0_63 = arith.constant 0 : index
    %121 = vector.load %arg8[%120, %c0_63] : memref<28x16xf32, #tpu.memory_space<vmem>>, vector<2x16xf32>
    tpu.vector_store %arg8[%120, %c0_63], %117 {strides = array<i32>} : memref<28x16xf32, #tpu.memory_space<vmem>>, vector<2x16xf32>,
    %c3_i32 = arith.constant 3 : i32
    %c2_i32_64 = arith.constant 2 : i32
    %122 = arith.muli %c3_i32, %c2_i32_64 : i32
    %123 = arith.index_cast %122 : i32 to index
    %c0_65 = arith.constant 0 : index
    %124 = vector.load %arg9[%123, %c0_65] : memref<28x64xf32, #tpu.memory_space<vmem>>, vector<2x64xf32>
    %c0_66 = arith.constant 0 : index
    %c0_67 = arith.constant 0 : index
    %125 = vector.load %arg10[%c0_66, %c0_67] : memref<2x16xf32, #tpu.memory_space<vmem>>, vector<2x16xf32>
    %c0_68 = arith.constant 0 : index
    %c0_69 = arith.constant 0 : index
    %126 = vector.load %arg2[%c0_68, %c0_69] : memref<16x64xf32, #tpu.memory_space<vmem>>, vector<16x64xf32>
    %cst_70 = arith.constant dense<0.000000e+00> : vector<2x64xf32>
    %127 = tpu.matmul %125, %126, %cst_70 {dimension_numbers = #tpu.dot_dimension_numbers<[1], [0], [0], [1], [0, 0, 1, 1], [], []>} : vector<2x16xf32>, vector<16x64xf32>, vector<2x64xf32> -> vector<2x64xf32>
    %128 = arith.addf %124, %127 : vector<2x64xf32>
    %129 = vector.extract_strided_slice %128 {offsets = [0, 0], sizes = [2, 16], strides = [1, 1]} : vector<2x64xf32> to vector<2x16xf32>
    %130 = arith.negf %129 : vector<2x16xf32>
    %131 = math.exp %130 : vector<2x16xf32>
    %cst_71 = arith.constant 1.000000e+00 : f32
    %132 = vector.broadcast %cst_71 : f32 to vector<2x16xf32>
    %133 = arith.addf %132, %131 : vector<2x16xf32>
    %134 = arith.divf %132, %133 : vector<2x16xf32>
    %135 = vector.extract_strided_slice %128 {offsets = [0, 16], sizes = [2, 16], strides = [1, 1]} : vector<2x64xf32> to vector<2x16xf32>
    %136 = arith.negf %135 : vector<2x16xf32>
    %137 = math.exp %136 : vector<2x16xf32>
    %cst_72 = arith.constant 1.000000e+00 : f32
    %138 = vector.broadcast %cst_72 : f32 to vector<2x16xf32>
    %139 = arith.addf %138, %137 : vector<2x16xf32>
    %140 = arith.divf %138, %139 : vector<2x16xf32>
    %141 = vector.extract_strided_slice %128 {offsets = [0, 32], sizes = [2, 16], strides = [1, 1]} : vector<2x64xf32> to vector<2x16xf32>
    %142 = math.tanh %141 : vector<2x16xf32>
    %143 = vector.extract_strided_slice %128 {offsets = [0, 48], sizes = [2, 16], strides = [1, 1]} : vector<2x64xf32> to vector<2x16xf32>
    %144 = arith.negf %143 : vector<2x16xf32>
    %145 = math.exp %144 : vector<2x16xf32>
    %cst_73 = arith.constant 1.000000e+00 : f32
    %146 = vector.broadcast %cst_73 : f32 to vector<2x16xf32>
    %147 = arith.addf %146, %145 : vector<2x16xf32>
    %148 = arith.divf %146, %147 : vector<2x16xf32>
    %c0_74 = arith.constant 0 : index
    %c0_75 = arith.constant 0 : index
    %149 = vector.load %arg11[%c0_74, %c0_75] : memref<2x16xf32, #tpu.memory_space<vmem>>, vector<2x16xf32>
    %150 = arith.mulf %140, %149 : vector<2x16xf32>
    %151 = arith.mulf %134, %142 : vector<2x16xf32>
    %152 = arith.addf %150, %151 : vector<2x16xf32>
    %153 = math.tanh %152 : vector<2x16xf32>
    %154 = arith.mulf %148, %153 : vector<2x16xf32>
    %c0_76 = arith.constant 0 : index
    %c0_77 = arith.constant 0 : index
    %155 = vector.load %arg11[%c0_76, %c0_77] : memref<2x16xf32, #tpu.memory_space<vmem>>, vector<2x16xf32>
    tpu.vector_store %arg11[%c0_76, %c0_77], %152 {strides = array<i32>} : memref<2x16xf32, #tpu.memory_space<vmem>>, vector<2x16xf32>,
    %c0_78 = arith.constant 0 : index
    %c0_79 = arith.constant 0 : index
    %156 = vector.load %arg10[%c0_78, %c0_79] : memref<2x16xf32, #tpu.memory_space<vmem>>, vector<2x16xf32>
    tpu.vector_store %arg10[%c0_78, %c0_79], %154 {strides = array<i32>} : memref<2x16xf32, #tpu.memory_space<vmem>>, vector<2x16xf32>,
    %157 = arith.index_cast %122 : i32 to index
    %c0_80 = arith.constant 0 : index
    %158 = vector.load %arg8[%157, %c0_80] : memref<28x16xf32, #tpu.memory_space<vmem>>, vector<2x16xf32>
    tpu.vector_store %arg8[%157, %c0_80], %154 {strides = array<i32>} : memref<28x16xf32, #tpu.memory_space<vmem>>, vector<2x16xf32>,
    %c4_i32 = arith.constant 4 : i32
    %c2_i32_81 = arith.constant 2 : i32
    %159 = arith.muli %c4_i32, %c2_i32_81 : i32
    %160 = arith.index_cast %159 : i32 to index
    %c0_82 = arith.constant 0 : index
    %161 = vector.load %arg9[%160, %c0_82] : memref<28x64xf32, #tpu.memory_space<vmem>>, vector<2x64xf32>
    %c0_83 = arith.constant 0 : index
    %c0_84 = arith.constant 0 : index
    %162 = vector.load %arg10[%c0_83, %c0_84] : memref<2x16xf32, #tpu.memory_space<vmem>>, vector<2x16xf32>
    %c0_85 = arith.constant 0 : index
    %c0_86 = arith.constant 0 : index
    %163 = vector.load %arg2[%c0_85, %c0_86] : memref<16x64xf32, #tpu.memory_space<vmem>>, vector<16x64xf32>
    %cst_87 = arith.constant dense<0.000000e+00> : vector<2x64xf32>
    %164 = tpu.matmul %162, %163, %cst_87 {dimension_numbers = #tpu.dot_dimension_numbers<[1], [0], [0], [1], [0, 0, 1, 1], [], []>} : vector<2x16xf32>, vector<16x64xf32>, vector<2x64xf32> -> vector<2x64xf32>
    %165 = arith.addf %161, %164 : vector<2x64xf32>
    %166 = vector.extract_strided_slice %165 {offsets = [0, 0], sizes = [2, 16], strides = [1, 1]} : vector<2x64xf32> to vector<2x16xf32>
    %167 = arith.negf %166 : vector<2x16xf32>
    %168 = math.exp %167 : vector<2x16xf32>
    %cst_88 = arith.constant 1.000000e+00 : f32
    %169 = vector.broadcast %cst_88 : f32 to vector<2x16xf32>
    %170 = arith.addf %169, %168 : vector<2x16xf32>
    %171 = arith.divf %169, %170 : vector<2x16xf32>
    %172 = vector.extract_strided_slice %165 {offsets = [0, 16], sizes = [2, 16], strides = [1, 1]} : vector<2x64xf32> to vector<2x16xf32>
    %173 = arith.negf %172 : vector<2x16xf32>
    %174 = math.exp %173 : vector<2x16xf32>
    %cst_89 = arith.constant 1.000000e+00 : f32
    %175 = vector.broadcast %cst_89 : f32 to vector<2x16xf32>
    %176 = arith.addf %175, %174 : vector<2x16xf32>
    %177 = arith.divf %175, %176 : vector<2x16xf32>
    %178 = vector.extract_strided_slice %165 {offsets = [0, 32], sizes = [2, 16], strides = [1, 1]} : vector<2x64xf32> to vector<2x16xf32>
    %179 = math.tanh %178 : vector<2x16xf32>
    %180 = vector.extract_strided_slice %165 {offsets = [0, 48], sizes = [2, 16], strides = [1, 1]} : vector<2x64xf32> to vector<2x16xf32>
    %181 = arith.negf %180 : vector<2x16xf32>
    %182 = math.exp %181 : vector<2x16xf32>
    %cst_90 = arith.constant 1.000000e+00 : f32
    %183 = vector.broadcast %cst_90 : f32 to vector<2x16xf32>
    %184 = arith.addf %183, %182 : vector<2x16xf32>
    %185 = arith.divf %183, %184 : vector<2x16xf32>
    %c0_91 = arith.constant 0 : index
    %c0_92 = arith.constant 0 : index
    %186 = vector.load %arg11[%c0_91, %c0_92] : memref<2x16xf32, #tpu.memory_space<vmem>>, vector<2x16xf32>
    %187 = arith.mulf %177, %186 : vector<2x16xf32>
    %188 = arith.mulf %171, %179 : vector<2x16xf32>
    %189 = arith.addf %187, %188 : vector<2x16xf32>
    %190 = math.tanh %189 : vector<2x16xf32>
    %191 = arith.mulf %185, %190 : vector<2x16xf32>
    %c0_93 = arith.constant 0 : index
    %c0_94 = arith.constant 0 : index
    %192 = vector.load %arg11[%c0_93, %c0_94] : memref<2x16xf32, #tpu.memory_space<vmem>>, vector<2x16xf32>
    tpu.vector_store %arg11[%c0_93, %c0_94], %189 {strides = array<i32>} : memref<2x16xf32, #tpu.memory_space<vmem>>, vector<2x16xf32>,
    %c0_95 = arith.constant 0 : index
    %c0_96 = arith.constant 0 : index
    %193 = vector.load %arg10[%c0_95, %c0_96] : memref<2x16xf32, #tpu.memory_space<vmem>>, vector<2x16xf32>
    tpu.vector_store %arg10[%c0_95, %c0_96], %191 {strides = array<i32>} : memref<2x16xf32, #tpu.memory_space<vmem>>, vector<2x16xf32>,
    %194 = arith.index_cast %159 : i32 to index
    %c0_97 = arith.constant 0 : index
    %195 = vector.load %arg8[%194, %c0_97] : memref<28x16xf32, #tpu.memory_space<vmem>>, vector<2x16xf32>
    tpu.vector_store %arg8[%194, %c0_97], %191 {strides = array<i32>} : memref<28x16xf32, #tpu.memory_space<vmem>>, vector<2x16xf32>,
    %c5_i32 = arith.constant 5 : i32
    %c2_i32_98 = arith.constant 2 : i32
    %196 = arith.muli %c5_i32, %c2_i32_98 : i32
    %197 = arith.index_cast %196 : i32 to index
    %c0_99 = arith.constant 0 : index
    %198 = vector.load %arg9[%197, %c0_99] : memref<28x64xf32, #tpu.memory_space<vmem>>, vector<2x64xf32>
    %c0_100 = arith.constant 0 : index
    %c0_101 = arith.constant 0 : index
    %199 = vector.load %arg10[%c0_100, %c0_101] : memref<2x16xf32, #tpu.memory_space<vmem>>, vector<2x16xf32>
    %c0_102 = arith.constant 0 : index
    %c0_103 = arith.constant 0 : index
    %200 = vector.load %arg2[%c0_102, %c0_103] : memref<16x64xf32, #tpu.memory_space<vmem>>, vector<16x64xf32>
    %cst_104 = arith.constant dense<0.000000e+00> : vector<2x64xf32>
    %201 = tpu.matmul %199, %200, %cst_104 {dimension_numbers = #tpu.dot_dimension_numbers<[1], [0], [0], [1], [0, 0, 1, 1], [], []>} : vector<2x16xf32>, vector<16x64xf32>, vector<2x64xf32> -> vector<2x64xf32>
    %202 = arith.addf %198, %201 : vector<2x64xf32>
    %203 = vector.extract_strided_slice %202 {offsets = [0, 0], sizes = [2, 16], strides = [1, 1]} : vector<2x64xf32> to vector<2x16xf32>
    %204 = arith.negf %203 : vector<2x16xf32>
    %205 = math.exp %204 : vector<2x16xf32>
    %cst_105 = arith.constant 1.000000e+00 : f32
    %206 = vector.broadcast %cst_105 : f32 to vector<2x16xf32>
    %207 = arith.addf %206, %205 : vector<2x16xf32>
    %208 = arith.divf %206, %207 : vector<2x16xf32>
    %209 = vector.extract_strided_slice %202 {offsets = [0, 16], sizes = [2, 16], strides = [1, 1]} : vector<2x64xf32> to vector<2x16xf32>
    %210 = arith.negf %209 : vector<2x16xf32>
    %211 = math.exp %210 : vector<2x16xf32>
    %cst_106 = arith.constant 1.000000e+00 : f32
    %212 = vector.broadcast %cst_106 : f32 to vector<2x16xf32>
    %213 = arith.addf %212, %211 : vector<2x16xf32>
    %214 = arith.divf %212, %213 : vector<2x16xf32>
    %215 = vector.extract_strided_slice %202 {offsets = [0, 32], sizes = [2, 16], strides = [1, 1]} : vector<2x64xf32> to vector<2x16xf32>
    %216 = math.tanh %215 : vector<2x16xf32>
    %217 = vector.extract_strided_slice %202 {offsets = [0, 48], sizes = [2, 16], strides = [1, 1]} : vector<2x64xf32> to vector<2x16xf32>
    %218 = arith.negf %217 : vector<2x16xf32>
    %219 = math.exp %218 : vector<2x16xf32>
    %cst_107 = arith.constant 1.000000e+00 : f32
    %220 = vector.broadcast %cst_107 : f32 to vector<2x16xf32>
    %221 = arith.addf %220, %219 : vector<2x16xf32>
    %222 = arith.divf %220, %221 : vector<2x16xf32>
    %c0_108 = arith.constant 0 : index
    %c0_109 = arith.constant 0 : index
    %223 = vector.load %arg11[%c0_108, %c0_109] : memref<2x16xf32, #tpu.memory_space<vmem>>, vector<2x16xf32>
    %224 = arith.mulf %214, %223 : vector<2x16xf32>
    %225 = arith.mulf %208, %216 : vector<2x16xf32>
    %226 = arith.addf %224, %225 : vector<2x16xf32>
    %227 = math.tanh %226 : vector<2x16xf32>
    %228 = arith.mulf %222, %227 : vector<2x16xf32>
    %c0_110 = arith.constant 0 : index
    %c0_111 = arith.constant 0 : index
    %229 = vector.load %arg11[%c0_110, %c0_111] : memref<2x16xf32, #tpu.memory_space<vmem>>, vector<2x16xf32>
    tpu.vector_store %arg11[%c0_110, %c0_111], %226 {strides = array<i32>} : memref<2x16xf32, #tpu.memory_space<vmem>>, vector<2x16xf32>,
    %c0_112 = arith.constant 0 : index
    %c0_113 = arith.constant 0 : index
    %230 = vector.load %arg10[%c0_112, %c0_113] : memref<2x16xf32, #tpu.memory_space<vmem>>, vector<2x16xf32>
    tpu.vector_store %arg10[%c0_112, %c0_113], %228 {strides = array<i32>} : memref<2x16xf32, #tpu.memory_space<vmem>>, vector<2x16xf32>,
    %231 = arith.index_cast %196 : i32 to index
    %c0_114 = arith.constant 0 : index
    %232 = vector.load %arg8[%231, %c0_114] : memref<28x16xf32, #tpu.memory_space<vmem>>, vector<2x16xf32>
    tpu.vector_store %arg8[%231, %c0_114], %228 {strides = array<i32>} : memref<28x16xf32, #tpu.memory_space<vmem>>, vector<2x16xf32>,
    %c6_i32 = arith.constant 6 : i32
    %c2_i32_115 = arith.constant 2 : i32
    %233 = arith.muli %c6_i32, %c2_i32_115 : i32
    %234 = arith.index_cast %233 : i32 to index
    %c0_116 = arith.constant 0 : index
    %235 = vector.load %arg9[%234, %c0_116] : memref<28x64xf32, #tpu.memory_space<vmem>>, vector<2x64xf32>
    %c0_117 = arith.constant 0 : index
    %c0_118 = arith.constant 0 : index
    %236 = vector.load %arg10[%c0_117, %c0_118] : memref<2x16xf32, #tpu.memory_space<vmem>>, vector<2x16xf32>
    %c0_119 = arith.constant 0 : index
    %c0_120 = arith.constant 0 : index
    %237 = vector.load %arg2[%c0_119, %c0_120] : memref<16x64xf32, #tpu.memory_space<vmem>>, vector<16x64xf32>
    %cst_121 = arith.constant dense<0.000000e+00> : vector<2x64xf32>
    %238 = tpu.matmul %236, %237, %cst_121 {dimension_numbers = #tpu.dot_dimension_numbers<[1], [0], [0], [1], [0, 0, 1, 1], [], []>} : vector<2x16xf32>, vector<16x64xf32>, vector<2x64xf32> -> vector<2x64xf32>
    %239 = arith.addf %235, %238 : vector<2x64xf32>
    %240 = vector.extract_strided_slice %239 {offsets = [0, 0], sizes = [2, 16], strides = [1, 1]} : vector<2x64xf32> to vector<2x16xf32>
    %241 = arith.negf %240 : vector<2x16xf32>
    %242 = math.exp %241 : vector<2x16xf32>
    %cst_122 = arith.constant 1.000000e+00 : f32
    %243 = vector.broadcast %cst_122 : f32 to vector<2x16xf32>
    %244 = arith.addf %243, %242 : vector<2x16xf32>
    %245 = arith.divf %243, %244 : vector<2x16xf32>
    %246 = vector.extract_strided_slice %239 {offsets = [0, 16], sizes = [2, 16], strides = [1, 1]} : vector<2x64xf32> to vector<2x16xf32>
    %247 = arith.negf %246 : vector<2x16xf32>
    %248 = math.exp %247 : vector<2x16xf32>
    %cst_123 = arith.constant 1.000000e+00 : f32
    %249 = vector.broadcast %cst_123 : f32 to vector<2x16xf32>
    %250 = arith.addf %249, %248 : vector<2x16xf32>
    %251 = arith.divf %249, %250 : vector<2x16xf32>
    %252 = vector.extract_strided_slice %239 {offsets = [0, 32], sizes = [2, 16], strides = [1, 1]} : vector<2x64xf32> to vector<2x16xf32>
    %253 = math.tanh %252 : vector<2x16xf32>
    %254 = vector.extract_strided_slice %239 {offsets = [0, 48], sizes = [2, 16], strides = [1, 1]} : vector<2x64xf32> to vector<2x16xf32>
    %255 = arith.negf %254 : vector<2x16xf32>
    %256 = math.exp %255 : vector<2x16xf32>
    %cst_124 = arith.constant 1.000000e+00 : f32
    %257 = vector.broadcast %cst_124 : f32 to vector<2x16xf32>
    %258 = arith.addf %257, %256 : vector<2x16xf32>
    %259 = arith.divf %257, %258 : vector<2x16xf32>
    %c0_125 = arith.constant 0 : index
    %c0_126 = arith.constant 0 : index
    %260 = vector.load %arg11[%c0_125, %c0_126] : memref<2x16xf32, #tpu.memory_space<vmem>>, vector<2x16xf32>
    %261 = arith.mulf %251, %260 : vector<2x16xf32>
    %262 = arith.mulf %245, %253 : vector<2x16xf32>
    %263 = arith.addf %261, %262 : vector<2x16xf32>
    %264 = math.tanh %263 : vector<2x16xf32>
    %265 = arith.mulf %259, %264 : vector<2x16xf32>
    %c0_127 = arith.constant 0 : index
    %c0_128 = arith.constant 0 : index
    %266 = vector.load %arg11[%c0_127, %c0_128] : memref<2x16xf32, #tpu.memory_space<vmem>>, vector<2x16xf32>
    tpu.vector_store %arg11[%c0_127, %c0_128], %263 {strides = array<i32>} : memref<2x16xf32, #tpu.memory_space<vmem>>, vector<2x16xf32>,
    %c0_129 = arith.constant 0 : index
    %c0_130 = arith.constant 0 : index
    %267 = vector.load %arg10[%c0_129, %c0_130] : memref<2x16xf32, #tpu.memory_space<vmem>>, vector<2x16xf32>
    tpu.vector_store %arg10[%c0_129, %c0_130], %265 {strides = array<i32>} : memref<2x16xf32, #tpu.memory_space<vmem>>, vector<2x16xf32>,
    %268 = arith.index_cast %233 : i32 to index
    %c0_131 = arith.constant 0 : index
    %269 = vector.load %arg8[%268, %c0_131] : memref<28x16xf32, #tpu.memory_space<vmem>>, vector<2x16xf32>
    tpu.vector_store %arg8[%268, %c0_131], %265 {strides = array<i32>} : memref<28x16xf32, #tpu.memory_space<vmem>>, vector<2x16xf32>,
    %c7_i32 = arith.constant 7 : i32
    %c2_i32_132 = arith.constant 2 : i32
    %270 = arith.muli %c7_i32, %c2_i32_132 : i32
    %271 = arith.index_cast %270 : i32 to index
    %c0_133 = arith.constant 0 : index
    %272 = vector.load %arg9[%271, %c0_133] : memref<28x64xf32, #tpu.memory_space<vmem>>, vector<2x64xf32>
    %c0_134 = arith.constant 0 : index
    %c0_135 = arith.constant 0 : index
    %273 = vector.load %arg10[%c0_134, %c0_135] : memref<2x16xf32, #tpu.memory_space<vmem>>, vector<2x16xf32>
    %c0_136 = arith.constant 0 : index
    %c0_137 = arith.constant 0 : index
    %274 = vector.load %arg2[%c0_136, %c0_137] : memref<16x64xf32, #tpu.memory_space<vmem>>, vector<16x64xf32>
    %cst_138 = arith.constant dense<0.000000e+00> : vector<2x64xf32>
    %275 = tpu.matmul %273, %274, %cst_138 {dimension_numbers = #tpu.dot_dimension_numbers<[1], [0], [0], [1], [0, 0, 1, 1], [], []>} : vector<2x16xf32>, vector<16x64xf32>, vector<2x64xf32> -> vector<2x64xf32>
    %276 = arith.addf %272, %275 : vector<2x64xf32>
    %277 = vector.extract_strided_slice %276 {offsets = [0, 0], sizes = [2, 16], strides = [1, 1]} : vector<2x64xf32> to vector<2x16xf32>
    %278 = arith.negf %277 : vector<2x16xf32>
    %279 = math.exp %278 : vector<2x16xf32>
    %cst_139 = arith.constant 1.000000e+00 : f32
    %280 = vector.broadcast %cst_139 : f32 to vector<2x16xf32>
    %281 = arith.addf %280, %279 : vector<2x16xf32>
    %282 = arith.divf %280, %281 : vector<2x16xf32>
    %283 = vector.extract_strided_slice %276 {offsets = [0, 16], sizes = [2, 16], strides = [1, 1]} : vector<2x64xf32> to vector<2x16xf32>
    %284 = arith.negf %283 : vector<2x16xf32>
    %285 = math.exp %284 : vector<2x16xf32>
    %cst_140 = arith.constant 1.000000e+00 : f32
    %286 = vector.broadcast %cst_140 : f32 to vector<2x16xf32>
    %287 = arith.addf %286, %285 : vector<2x16xf32>
    %288 = arith.divf %286, %287 : vector<2x16xf32>
    %289 = vector.extract_strided_slice %276 {offsets = [0, 32], sizes = [2, 16], strides = [1, 1]} : vector<2x64xf32> to vector<2x16xf32>
    %290 = math.tanh %289 : vector<2x16xf32>
    %291 = vector.extract_strided_slice %276 {offsets = [0, 48], sizes = [2, 16], strides = [1, 1]} : vector<2x64xf32> to vector<2x16xf32>
    %292 = arith.negf %291 : vector<2x16xf32>
    %293 = math.exp %292 : vector<2x16xf32>
    %cst_141 = arith.constant 1.000000e+00 : f32
    %294 = vector.broadcast %cst_141 : f32 to vector<2x16xf32>
    %295 = arith.addf %294, %293 : vector<2x16xf32>
    %296 = arith.divf %294, %295 : vector<2x16xf32>
    %c0_142 = arith.constant 0 : index
    %c0_143 = arith.constant 0 : index
    %297 = vector.load %arg11[%c0_142, %c0_143] : memref<2x16xf32, #tpu.memory_space<vmem>>, vector<2x16xf32>
    %298 = arith.mulf %288, %297 : vector<2x16xf32>
    %299 = arith.mulf %282, %290 : vector<2x16xf32>
    %300 = arith.addf %298, %299 : vector<2x16xf32>
    %301 = math.tanh %300 : vector<2x16xf32>
    %302 = arith.mulf %296, %301 : vector<2x16xf32>
    %c0_144 = arith.constant 0 : index
    %c0_145 = arith.constant 0 : index
    %303 = vector.load %arg11[%c0_144, %c0_145] : memref<2x16xf32, #tpu.memory_space<vmem>>, vector<2x16xf32>
    tpu.vector_store %arg11[%c0_144, %c0_145], %300 {strides = array<i32>} : memref<2x16xf32, #tpu.memory_space<vmem>>, vector<2x16xf32>,
    %c0_146 = arith.constant 0 : index
    %c0_147 = arith.constant 0 : index
    %304 = vector.load %arg10[%c0_146, %c0_147] : memref<2x16xf32, #tpu.memory_space<vmem>>, vector<2x16xf32>
    tpu.vector_store %arg10[%c0_146, %c0_147], %302 {strides = array<i32>} : memref<2x16xf32, #tpu.memory_space<vmem>>, vector<2x16xf32>,
    %305 = arith.index_cast %270 : i32 to index
    %c0_148 = arith.constant 0 : index
    %306 = vector.load %arg8[%305, %c0_148] : memref<28x16xf32, #tpu.memory_space<vmem>>, vector<2x16xf32>
    tpu.vector_store %arg8[%305, %c0_148], %302 {strides = array<i32>} : memref<28x16xf32, #tpu.memory_space<vmem>>, vector<2x16xf32>,
    %c8_i32 = arith.constant 8 : i32
    %c2_i32_149 = arith.constant 2 : i32
    %307 = arith.muli %c8_i32, %c2_i32_149 : i32
    %308 = arith.index_cast %307 : i32 to index
    %c0_150 = arith.constant 0 : index
    %309 = vector.load %arg9[%308, %c0_150] : memref<28x64xf32, #tpu.memory_space<vmem>>, vector<2x64xf32>
    %c0_151 = arith.constant 0 : index
    %c0_152 = arith.constant 0 : index
    %310 = vector.load %arg10[%c0_151, %c0_152] : memref<2x16xf32, #tpu.memory_space<vmem>>, vector<2x16xf32>
    %c0_153 = arith.constant 0 : index
    %c0_154 = arith.constant 0 : index
    %311 = vector.load %arg2[%c0_153, %c0_154] : memref<16x64xf32, #tpu.memory_space<vmem>>, vector<16x64xf32>
    %cst_155 = arith.constant dense<0.000000e+00> : vector<2x64xf32>
    %312 = tpu.matmul %310, %311, %cst_155 {dimension_numbers = #tpu.dot_dimension_numbers<[1], [0], [0], [1], [0, 0, 1, 1], [], []>} : vector<2x16xf32>, vector<16x64xf32>, vector<2x64xf32> -> vector<2x64xf32>
    %313 = arith.addf %309, %312 : vector<2x64xf32>
    %314 = vector.extract_strided_slice %313 {offsets = [0, 0], sizes = [2, 16], strides = [1, 1]} : vector<2x64xf32> to vector<2x16xf32>
    %315 = arith.negf %314 : vector<2x16xf32>
    %316 = math.exp %315 : vector<2x16xf32>
    %cst_156 = arith.constant 1.000000e+00 : f32
    %317 = vector.broadcast %cst_156 : f32 to vector<2x16xf32>
    %318 = arith.addf %317, %316 : vector<2x16xf32>
    %319 = arith.divf %317, %318 : vector<2x16xf32>
    %320 = vector.extract_strided_slice %313 {offsets = [0, 16], sizes = [2, 16], strides = [1, 1]} : vector<2x64xf32> to vector<2x16xf32>
    %321 = arith.negf %320 : vector<2x16xf32>
    %322 = math.exp %321 : vector<2x16xf32>
    %cst_157 = arith.constant 1.000000e+00 : f32
    %323 = vector.broadcast %cst_157 : f32 to vector<2x16xf32>
    %324 = arith.addf %323, %322 : vector<2x16xf32>
    %325 = arith.divf %323, %324 : vector<2x16xf32>
    %326 = vector.extract_strided_slice %313 {offsets = [0, 32], sizes = [2, 16], strides = [1, 1]} : vector<2x64xf32> to vector<2x16xf32>
    %327 = math.tanh %326 : vector<2x16xf32>
    %328 = vector.extract_strided_slice %313 {offsets = [0, 48], sizes = [2, 16], strides = [1, 1]} : vector<2x64xf32> to vector<2x16xf32>
    %329 = arith.negf %328 : vector<2x16xf32>
    %330 = math.exp %329 : vector<2x16xf32>
    %cst_158 = arith.constant 1.000000e+00 : f32
    %331 = vector.broadcast %cst_158 : f32 to vector<2x16xf32>
    %332 = arith.addf %331, %330 : vector<2x16xf32>
    %333 = arith.divf %331, %332 : vector<2x16xf32>
    %c0_159 = arith.constant 0 : index
    %c0_160 = arith.constant 0 : index
    %334 = vector.load %arg11[%c0_159, %c0_160] : memref<2x16xf32, #tpu.memory_space<vmem>>, vector<2x16xf32>
    %335 = arith.mulf %325, %334 : vector<2x16xf32>
    %336 = arith.mulf %319, %327 : vector<2x16xf32>
    %337 = arith.addf %335, %336 : vector<2x16xf32>
    %338 = math.tanh %337 : vector<2x16xf32>
    %339 = arith.mulf %333, %338 : vector<2x16xf32>
    %c0_161 = arith.constant 0 : index
    %c0_162 = arith.constant 0 : index
    %340 = vector.load %arg11[%c0_161, %c0_162] : memref<2x16xf32, #tpu.memory_space<vmem>>, vector<2x16xf32>
    tpu.vector_store %arg11[%c0_161, %c0_162], %337 {strides = array<i32>} : memref<2x16xf32, #tpu.memory_space<vmem>>, vector<2x16xf32>,
    %c0_163 = arith.constant 0 : index
    %c0_164 = arith.constant 0 : index
    %341 = vector.load %arg10[%c0_163, %c0_164] : memref<2x16xf32, #tpu.memory_space<vmem>>, vector<2x16xf32>
    tpu.vector_store %arg10[%c0_163, %c0_164], %339 {strides = array<i32>} : memref<2x16xf32, #tpu.memory_space<vmem>>, vector<2x16xf32>,
    %342 = arith.index_cast %307 : i32 to index
    %c0_165 = arith.constant 0 : index
    %343 = vector.load %arg8[%342, %c0_165] : memref<28x16xf32, #tpu.memory_space<vmem>>, vector<2x16xf32>
    tpu.vector_store %arg8[%342, %c0_165], %339 {strides = array<i32>} : memref<28x16xf32, #tpu.memory_space<vmem>>, vector<2x16xf32>,
    %c9_i32 = arith.constant 9 : i32
    %c2_i32_166 = arith.constant 2 : i32
    %344 = arith.muli %c9_i32, %c2_i32_166 : i32
    %345 = arith.index_cast %344 : i32 to index
    %c0_167 = arith.constant 0 : index
    %346 = vector.load %arg9[%345, %c0_167] : memref<28x64xf32, #tpu.memory_space<vmem>>, vector<2x64xf32>
    %c0_168 = arith.constant 0 : index
    %c0_169 = arith.constant 0 : index
    %347 = vector.load %arg10[%c0_168, %c0_169] : memref<2x16xf32, #tpu.memory_space<vmem>>, vector<2x16xf32>
    %c0_170 = arith.constant 0 : index
    %c0_171 = arith.constant 0 : index
    %348 = vector.load %arg2[%c0_170, %c0_171] : memref<16x64xf32, #tpu.memory_space<vmem>>, vector<16x64xf32>
    %cst_172 = arith.constant dense<0.000000e+00> : vector<2x64xf32>
    %349 = tpu.matmul %347, %348, %cst_172 {dimension_numbers = #tpu.dot_dimension_numbers<[1], [0], [0], [1], [0, 0, 1, 1], [], []>} : vector<2x16xf32>, vector<16x64xf32>, vector<2x64xf32> -> vector<2x64xf32>
    %350 = arith.addf %346, %349 : vector<2x64xf32>
    %351 = vector.extract_strided_slice %350 {offsets = [0, 0], sizes = [2, 16], strides = [1, 1]} : vector<2x64xf32> to vector<2x16xf32>
    %352 = arith.negf %351 : vector<2x16xf32>
    %353 = math.exp %352 : vector<2x16xf32>
    %cst_173 = arith.constant 1.000000e+00 : f32
    %354 = vector.broadcast %cst_173 : f32 to vector<2x16xf32>
    %355 = arith.addf %354, %353 : vector<2x16xf32>
    %356 = arith.divf %354, %355 : vector<2x16xf32>
    %357 = vector.extract_strided_slice %350 {offsets = [0, 16], sizes = [2, 16], strides = [1, 1]} : vector<2x64xf32> to vector<2x16xf32>
    %358 = arith.negf %357 : vector<2x16xf32>
    %359 = math.exp %358 : vector<2x16xf32>
    %cst_174 = arith.constant 1.000000e+00 : f32
    %360 = vector.broadcast %cst_174 : f32 to vector<2x16xf32>
    %361 = arith.addf %360, %359 : vector<2x16xf32>
    %362 = arith.divf %360, %361 : vector<2x16xf32>
    %363 = vector.extract_strided_slice %350 {offsets = [0, 32], sizes = [2, 16], strides = [1, 1]} : vector<2x64xf32> to vector<2x16xf32>
    %364 = math.tanh %363 : vector<2x16xf32>
    %365 = vector.extract_strided_slice %350 {offsets = [0, 48], sizes = [2, 16], strides = [1, 1]} : vector<2x64xf32> to vector<2x16xf32>
    %366 = arith.negf %365 : vector<2x16xf32>
    %367 = math.exp %366 : vector<2x16xf32>
    %cst_175 = arith.constant 1.000000e+00 : f32
    %368 = vector.broadcast %cst_175 : f32 to vector<2x16xf32>
    %369 = arith.addf %368, %367 : vector<2x16xf32>
    %370 = arith.divf %368, %369 : vector<2x16xf32>
    %c0_176 = arith.constant 0 : index
    %c0_177 = arith.constant 0 : index
    %371 = vector.load %arg11[%c0_176, %c0_177] : memref<2x16xf32, #tpu.memory_space<vmem>>, vector<2x16xf32>
    %372 = arith.mulf %362, %371 : vector<2x16xf32>
    %373 = arith.mulf %356, %364 : vector<2x16xf32>
    %374 = arith.addf %372, %373 : vector<2x16xf32>
    %375 = math.tanh %374 : vector<2x16xf32>
    %376 = arith.mulf %370, %375 : vector<2x16xf32>
    %c0_178 = arith.constant 0 : index
    %c0_179 = arith.constant 0 : index
    %377 = vector.load %arg11[%c0_178, %c0_179] : memref<2x16xf32, #tpu.memory_space<vmem>>, vector<2x16xf32>
    tpu.vector_store %arg11[%c0_178, %c0_179], %374 {strides = array<i32>} : memref<2x16xf32, #tpu.memory_space<vmem>>, vector<2x16xf32>,
    %c0_180 = arith.constant 0 : index
    %c0_181 = arith.constant 0 : index
    %378 = vector.load %arg10[%c0_180, %c0_181] : memref<2x16xf32, #tpu.memory_space<vmem>>, vector<2x16xf32>
    tpu.vector_store %arg10[%c0_180, %c0_181], %376 {strides = array<i32>} : memref<2x16xf32, #tpu.memory_space<vmem>>, vector<2x16xf32>,
    %379 = arith.index_cast %344 : i32 to index
    %c0_182 = arith.constant 0 : index
    %380 = vector.load %arg8[%379, %c0_182] : memref<28x16xf32, #tpu.memory_space<vmem>>, vector<2x16xf32>
    tpu.vector_store %arg8[%379, %c0_182], %376 {strides = array<i32>} : memref<28x16xf32, #tpu.memory_space<vmem>>, vector<2x16xf32>,
    %c10_i32 = arith.constant 10 : i32
    %c2_i32_183 = arith.constant 2 : i32
    %381 = arith.muli %c10_i32, %c2_i32_183 : i32
    %382 = arith.index_cast %381 : i32 to index
    %c0_184 = arith.constant 0 : index
    %383 = vector.load %arg9[%382, %c0_184] : memref<28x64xf32, #tpu.memory_space<vmem>>, vector<2x64xf32>
    %c0_185 = arith.constant 0 : index
    %c0_186 = arith.constant 0 : index
    %384 = vector.load %arg10[%c0_185, %c0_186] : memref<2x16xf32, #tpu.memory_space<vmem>>, vector<2x16xf32>
    %c0_187 = arith.constant 0 : index
    %c0_188 = arith.constant 0 : index
    %385 = vector.load %arg2[%c0_187, %c0_188] : memref<16x64xf32, #tpu.memory_space<vmem>>, vector<16x64xf32>
    %cst_189 = arith.constant dense<0.000000e+00> : vector<2x64xf32>
    %386 = tpu.matmul %384, %385, %cst_189 {dimension_numbers = #tpu.dot_dimension_numbers<[1], [0], [0], [1], [0, 0, 1, 1], [], []>} : vector<2x16xf32>, vector<16x64xf32>, vector<2x64xf32> -> vector<2x64xf32>
    %387 = arith.addf %383, %386 : vector<2x64xf32>
    %388 = vector.extract_strided_slice %387 {offsets = [0, 0], sizes = [2, 16], strides = [1, 1]} : vector<2x64xf32> to vector<2x16xf32>
    %389 = arith.negf %388 : vector<2x16xf32>
    %390 = math.exp %389 : vector<2x16xf32>
    %cst_190 = arith.constant 1.000000e+00 : f32
    %391 = vector.broadcast %cst_190 : f32 to vector<2x16xf32>
    %392 = arith.addf %391, %390 : vector<2x16xf32>
    %393 = arith.divf %391, %392 : vector<2x16xf32>
    %394 = vector.extract_strided_slice %387 {offsets = [0, 16], sizes = [2, 16], strides = [1, 1]} : vector<2x64xf32> to vector<2x16xf32>
    %395 = arith.negf %394 : vector<2x16xf32>
    %396 = math.exp %395 : vector<2x16xf32>
    %cst_191 = arith.constant 1.000000e+00 : f32
    %397 = vector.broadcast %cst_191 : f32 to vector<2x16xf32>
    %398 = arith.addf %397, %396 : vector<2x16xf32>
    %399 = arith.divf %397, %398 : vector<2x16xf32>
    %400 = vector.extract_strided_slice %387 {offsets = [0, 32], sizes = [2, 16], strides = [1, 1]} : vector<2x64xf32> to vector<2x16xf32>
    %401 = math.tanh %400 : vector<2x16xf32>
    %402 = vector.extract_strided_slice %387 {offsets = [0, 48], sizes = [2, 16], strides = [1, 1]} : vector<2x64xf32> to vector<2x16xf32>
    %403 = arith.negf %402 : vector<2x16xf32>
    %404 = math.exp %403 : vector<2x16xf32>
    %cst_192 = arith.constant 1.000000e+00 : f32
    %405 = vector.broadcast %cst_192 : f32 to vector<2x16xf32>
    %406 = arith.addf %405, %404 : vector<2x16xf32>
    %407 = arith.divf %405, %406 : vector<2x16xf32>
    %c0_193 = arith.constant 0 : index
    %c0_194 = arith.constant 0 : index
    %408 = vector.load %arg11[%c0_193, %c0_194] : memref<2x16xf32, #tpu.memory_space<vmem>>, vector<2x16xf32>
    %409 = arith.mulf %399, %408 : vector<2x16xf32>
    %410 = arith.mulf %393, %401 : vector<2x16xf32>
    %411 = arith.addf %409, %410 : vector<2x16xf32>
    %412 = math.tanh %411 : vector<2x16xf32>
    %413 = arith.mulf %407, %412 : vector<2x16xf32>
    %c0_195 = arith.constant 0 : index
    %c0_196 = arith.constant 0 : index
    %414 = vector.load %arg11[%c0_195, %c0_196] : memref<2x16xf32, #tpu.memory_space<vmem>>, vector<2x16xf32>
    tpu.vector_store %arg11[%c0_195, %c0_196], %411 {strides = array<i32>} : memref<2x16xf32, #tpu.memory_space<vmem>>, vector<2x16xf32>,
    %c0_197 = arith.constant 0 : index
    %c0_198 = arith.constant 0 : index
    %415 = vector.load %arg10[%c0_197, %c0_198] : memref<2x16xf32, #tpu.memory_space<vmem>>, vector<2x16xf32>
    tpu.vector_store %arg10[%c0_197, %c0_198], %413 {strides = array<i32>} : memref<2x16xf32, #tpu.memory_space<vmem>>, vector<2x16xf32>,
    %416 = arith.index_cast %381 : i32 to index
    %c0_199 = arith.constant 0 : index
    %417 = vector.load %arg8[%416, %c0_199] : memref<28x16xf32, #tpu.memory_space<vmem>>, vector<2x16xf32>
    tpu.vector_store %arg8[%416, %c0_199], %413 {strides = array<i32>} : memref<28x16xf32, #tpu.memory_space<vmem>>, vector<2x16xf32>,
    %c11_i32 = arith.constant 11 : i32
    %c2_i32_200 = arith.constant 2 : i32
    %418 = arith.muli %c11_i32, %c2_i32_200 : i32
    %419 = arith.index_cast %418 : i32 to index
    %c0_201 = arith.constant 0 : index
    %420 = vector.load %arg9[%419, %c0_201] : memref<28x64xf32, #tpu.memory_space<vmem>>, vector<2x64xf32>
    %c0_202 = arith.constant 0 : index
    %c0_203 = arith.constant 0 : index
    %421 = vector.load %arg10[%c0_202, %c0_203] : memref<2x16xf32, #tpu.memory_space<vmem>>, vector<2x16xf32>
    %c0_204 = arith.constant 0 : index
    %c0_205 = arith.constant 0 : index
    %422 = vector.load %arg2[%c0_204, %c0_205] : memref<16x64xf32, #tpu.memory_space<vmem>>, vector<16x64xf32>
    %cst_206 = arith.constant dense<0.000000e+00> : vector<2x64xf32>
    %423 = tpu.matmul %421, %422, %cst_206 {dimension_numbers = #tpu.dot_dimension_numbers<[1], [0], [0], [1], [0, 0, 1, 1], [], []>} : vector<2x16xf32>, vector<16x64xf32>, vector<2x64xf32> -> vector<2x64xf32>
    %424 = arith.addf %420, %423 : vector<2x64xf32>
    %425 = vector.extract_strided_slice %424 {offsets = [0, 0], sizes = [2, 16], strides = [1, 1]} : vector<2x64xf32> to vector<2x16xf32>
    %426 = arith.negf %425 : vector<2x16xf32>
    %427 = math.exp %426 : vector<2x16xf32>
    %cst_207 = arith.constant 1.000000e+00 : f32
    %428 = vector.broadcast %cst_207 : f32 to vector<2x16xf32>
    %429 = arith.addf %428, %427 : vector<2x16xf32>
    %430 = arith.divf %428, %429 : vector<2x16xf32>
    %431 = vector.extract_strided_slice %424 {offsets = [0, 16], sizes = [2, 16], strides = [1, 1]} : vector<2x64xf32> to vector<2x16xf32>
    %432 = arith.negf %431 : vector<2x16xf32>
    %433 = math.exp %432 : vector<2x16xf32>
    %cst_208 = arith.constant 1.000000e+00 : f32
    %434 = vector.broadcast %cst_208 : f32 to vector<2x16xf32>
    %435 = arith.addf %434, %433 : vector<2x16xf32>
    %436 = arith.divf %434, %435 : vector<2x16xf32>
    %437 = vector.extract_strided_slice %424 {offsets = [0, 32], sizes = [2, 16], strides = [1, 1]} : vector<2x64xf32> to vector<2x16xf32>
    %438 = math.tanh %437 : vector<2x16xf32>
    %439 = vector.extract_strided_slice %424 {offsets = [0, 48], sizes = [2, 16], strides = [1, 1]} : vector<2x64xf32> to vector<2x16xf32>
    %440 = arith.negf %439 : vector<2x16xf32>
    %441 = math.exp %440 : vector<2x16xf32>
    %cst_209 = arith.constant 1.000000e+00 : f32
    %442 = vector.broadcast %cst_209 : f32 to vector<2x16xf32>
    %443 = arith.addf %442, %441 : vector<2x16xf32>
    %444 = arith.divf %442, %443 : vector<2x16xf32>
    %c0_210 = arith.constant 0 : index
    %c0_211 = arith.constant 0 : index
    %445 = vector.load %arg11[%c0_210, %c0_211] : memref<2x16xf32, #tpu.memory_space<vmem>>, vector<2x16xf32>
    %446 = arith.mulf %436, %445 : vector<2x16xf32>
    %447 = arith.mulf %430, %438 : vector<2x16xf32>
    %448 = arith.addf %446, %447 : vector<2x16xf32>
    %449 = math.tanh %448 : vector<2x16xf32>
    %450 = arith.mulf %444, %449 : vector<2x16xf32>
    %c0_212 = arith.constant 0 : index
    %c0_213 = arith.constant 0 : index
    %451 = vector.load %arg11[%c0_212, %c0_213] : memref<2x16xf32, #tpu.memory_space<vmem>>, vector<2x16xf32>
    tpu.vector_store %arg11[%c0_212, %c0_213], %448 {strides = array<i32>} : memref<2x16xf32, #tpu.memory_space<vmem>>, vector<2x16xf32>,
    %c0_214 = arith.constant 0 : index
    %c0_215 = arith.constant 0 : index
    %452 = vector.load %arg10[%c0_214, %c0_215] : memref<2x16xf32, #tpu.memory_space<vmem>>, vector<2x16xf32>
    tpu.vector_store %arg10[%c0_214, %c0_215], %450 {strides = array<i32>} : memref<2x16xf32, #tpu.memory_space<vmem>>, vector<2x16xf32>,
    %453 = arith.index_cast %418 : i32 to index
    %c0_216 = arith.constant 0 : index
    %454 = vector.load %arg8[%453, %c0_216] : memref<28x16xf32, #tpu.memory_space<vmem>>, vector<2x16xf32>
    tpu.vector_store %arg8[%453, %c0_216], %450 {strides = array<i32>} : memref<28x16xf32, #tpu.memory_space<vmem>>, vector<2x16xf32>,
    %c12_i32 = arith.constant 12 : i32
    %c2_i32_217 = arith.constant 2 : i32
    %455 = arith.muli %c12_i32, %c2_i32_217 : i32
    %456 = arith.index_cast %455 : i32 to index
    %c0_218 = arith.constant 0 : index
    %457 = vector.load %arg9[%456, %c0_218] : memref<28x64xf32, #tpu.memory_space<vmem>>, vector<2x64xf32>
    %c0_219 = arith.constant 0 : index
    %c0_220 = arith.constant 0 : index
    %458 = vector.load %arg10[%c0_219, %c0_220] : memref<2x16xf32, #tpu.memory_space<vmem>>, vector<2x16xf32>
    %c0_221 = arith.constant 0 : index
    %c0_222 = arith.constant 0 : index
    %459 = vector.load %arg2[%c0_221, %c0_222] : memref<16x64xf32, #tpu.memory_space<vmem>>, vector<16x64xf32>
    %cst_223 = arith.constant dense<0.000000e+00> : vector<2x64xf32>
    %460 = tpu.matmul %458, %459, %cst_223 {dimension_numbers = #tpu.dot_dimension_numbers<[1], [0], [0], [1], [0, 0, 1, 1], [], []>} : vector<2x16xf32>, vector<16x64xf32>, vector<2x64xf32> -> vector<2x64xf32>
    %461 = arith.addf %457, %460 : vector<2x64xf32>
    %462 = vector.extract_strided_slice %461 {offsets = [0, 0], sizes = [2, 16], strides = [1, 1]} : vector<2x64xf32> to vector<2x16xf32>
    %463 = arith.negf %462 : vector<2x16xf32>
    %464 = math.exp %463 : vector<2x16xf32>
    %cst_224 = arith.constant 1.000000e+00 : f32
    %465 = vector.broadcast %cst_224 : f32 to vector<2x16xf32>
    %466 = arith.addf %465, %464 : vector<2x16xf32>
    %467 = arith.divf %465, %466 : vector<2x16xf32>
    %468 = vector.extract_strided_slice %461 {offsets = [0, 16], sizes = [2, 16], strides = [1, 1]} : vector<2x64xf32> to vector<2x16xf32>
    %469 = arith.negf %468 : vector<2x16xf32>
    %470 = math.exp %469 : vector<2x16xf32>
    %cst_225 = arith.constant 1.000000e+00 : f32
    %471 = vector.broadcast %cst_225 : f32 to vector<2x16xf32>
    %472 = arith.addf %471, %470 : vector<2x16xf32>
    %473 = arith.divf %471, %472 : vector<2x16xf32>
    %474 = vector.extract_strided_slice %461 {offsets = [0, 32], sizes = [2, 16], strides = [1, 1]} : vector<2x64xf32> to vector<2x16xf32>
    %475 = math.tanh %474 : vector<2x16xf32>
    %476 = vector.extract_strided_slice %461 {offsets = [0, 48], sizes = [2, 16], strides = [1, 1]} : vector<2x64xf32> to vector<2x16xf32>
    %477 = arith.negf %476 : vector<2x16xf32>
    %478 = math.exp %477 : vector<2x16xf32>
    %cst_226 = arith.constant 1.000000e+00 : f32
    %479 = vector.broadcast %cst_226 : f32 to vector<2x16xf32>
    %480 = arith.addf %479, %478 : vector<2x16xf32>
    %481 = arith.divf %479, %480 : vector<2x16xf32>
    %c0_227 = arith.constant 0 : index
    %c0_228 = arith.constant 0 : index
    %482 = vector.load %arg11[%c0_227, %c0_228] : memref<2x16xf32, #tpu.memory_space<vmem>>, vector<2x16xf32>
    %483 = arith.mulf %473, %482 : vector<2x16xf32>
    %484 = arith.mulf %467, %475 : vector<2x16xf32>
    %485 = arith.addf %483, %484 : vector<2x16xf32>
    %486 = math.tanh %485 : vector<2x16xf32>
    %487 = arith.mulf %481, %486 : vector<2x16xf32>
    %c0_229 = arith.constant 0 : index
    %c0_230 = arith.constant 0 : index
    %488 = vector.load %arg11[%c0_229, %c0_230] : memref<2x16xf32, #tpu.memory_space<vmem>>, vector<2x16xf32>
    tpu.vector_store %arg11[%c0_229, %c0_230], %485 {strides = array<i32>} : memref<2x16xf32, #tpu.memory_space<vmem>>, vector<2x16xf32>,
    %c0_231 = arith.constant 0 : index
    %c0_232 = arith.constant 0 : index
    %489 = vector.load %arg10[%c0_231, %c0_232] : memref<2x16xf32, #tpu.memory_space<vmem>>, vector<2x16xf32>
    tpu.vector_store %arg10[%c0_231, %c0_232], %487 {strides = array<i32>} : memref<2x16xf32, #tpu.memory_space<vmem>>, vector<2x16xf32>,
    %490 = arith.index_cast %455 : i32 to index
    %c0_233 = arith.constant 0 : index
    %491 = vector.load %arg8[%490, %c0_233] : memref<28x16xf32, #tpu.memory_space<vmem>>, vector<2x16xf32>
    tpu.vector_store %arg8[%490, %c0_233], %487 {strides = array<i32>} : memref<28x16xf32, #tpu.memory_space<vmem>>, vector<2x16xf32>,
    %c13_i32 = arith.constant 13 : i32
    %c2_i32_234 = arith.constant 2 : i32
    %492 = arith.muli %c13_i32, %c2_i32_234 : i32
    %493 = arith.index_cast %492 : i32 to index
    %c0_235 = arith.constant 0 : index
    %494 = vector.load %arg9[%493, %c0_235] : memref<28x64xf32, #tpu.memory_space<vmem>>, vector<2x64xf32>
    %c0_236 = arith.constant 0 : index
    %c0_237 = arith.constant 0 : index
    %495 = vector.load %arg10[%c0_236, %c0_237] : memref<2x16xf32, #tpu.memory_space<vmem>>, vector<2x16xf32>
    %c0_238 = arith.constant 0 : index
    %c0_239 = arith.constant 0 : index
    %496 = vector.load %arg2[%c0_238, %c0_239] : memref<16x64xf32, #tpu.memory_space<vmem>>, vector<16x64xf32>
    %cst_240 = arith.constant dense<0.000000e+00> : vector<2x64xf32>
    %497 = tpu.matmul %495, %496, %cst_240 {dimension_numbers = #tpu.dot_dimension_numbers<[1], [0], [0], [1], [0, 0, 1, 1], [], []>} : vector<2x16xf32>, vector<16x64xf32>, vector<2x64xf32> -> vector<2x64xf32>
    %498 = arith.addf %494, %497 : vector<2x64xf32>
    %499 = vector.extract_strided_slice %498 {offsets = [0, 0], sizes = [2, 16], strides = [1, 1]} : vector<2x64xf32> to vector<2x16xf32>
    %500 = arith.negf %499 : vector<2x16xf32>
    %501 = math.exp %500 : vector<2x16xf32>
    %cst_241 = arith.constant 1.000000e+00 : f32
    %502 = vector.broadcast %cst_241 : f32 to vector<2x16xf32>
    %503 = arith.addf %502, %501 : vector<2x16xf32>
    %504 = arith.divf %502, %503 : vector<2x16xf32>
    %505 = vector.extract_strided_slice %498 {offsets = [0, 16], sizes = [2, 16], strides = [1, 1]} : vector<2x64xf32> to vector<2x16xf32>
    %506 = arith.negf %505 : vector<2x16xf32>
    %507 = math.exp %506 : vector<2x16xf32>
    %cst_242 = arith.constant 1.000000e+00 : f32
    %508 = vector.broadcast %cst_242 : f32 to vector<2x16xf32>
    %509 = arith.addf %508, %507 : vector<2x16xf32>
    %510 = arith.divf %508, %509 : vector<2x16xf32>
    %511 = vector.extract_strided_slice %498 {offsets = [0, 32], sizes = [2, 16], strides = [1, 1]} : vector<2x64xf32> to vector<2x16xf32>
    %512 = math.tanh %511 : vector<2x16xf32>
    %513 = vector.extract_strided_slice %498 {offsets = [0, 48], sizes = [2, 16], strides = [1, 1]} : vector<2x64xf32> to vector<2x16xf32>
    %514 = arith.negf %513 : vector<2x16xf32>
    %515 = math.exp %514 : vector<2x16xf32>
    %cst_243 = arith.constant 1.000000e+00 : f32
    %516 = vector.broadcast %cst_243 : f32 to vector<2x16xf32>
    %517 = arith.addf %516, %515 : vector<2x16xf32>
    %518 = arith.divf %516, %517 : vector<2x16xf32>
    %c0_244 = arith.constant 0 : index
    %c0_245 = arith.constant 0 : index
    %519 = vector.load %arg11[%c0_244, %c0_245] : memref<2x16xf32, #tpu.memory_space<vmem>>, vector<2x16xf32>
    %520 = arith.mulf %510, %519 : vector<2x16xf32>
    %521 = arith.mulf %504, %512 : vector<2x16xf32>
    %522 = arith.addf %520, %521 : vector<2x16xf32>
    %523 = math.tanh %522 : vector<2x16xf32>
    %524 = arith.mulf %518, %523 : vector<2x16xf32>
    %c0_246 = arith.constant 0 : index
    %c0_247 = arith.constant 0 : index
    %525 = vector.load %arg11[%c0_246, %c0_247] : memref<2x16xf32, #tpu.memory_space<vmem>>, vector<2x16xf32>
    tpu.vector_store %arg11[%c0_246, %c0_247], %522 {strides = array<i32>} : memref<2x16xf32, #tpu.memory_space<vmem>>, vector<2x16xf32>,
    %c0_248 = arith.constant 0 : index
    %c0_249 = arith.constant 0 : index
    %526 = vector.load %arg10[%c0_248, %c0_249] : memref<2x16xf32, #tpu.memory_space<vmem>>, vector<2x16xf32>
    tpu.vector_store %arg10[%c0_248, %c0_249], %524 {strides = array<i32>} : memref<2x16xf32, #tpu.memory_space<vmem>>, vector<2x16xf32>,
    %527 = arith.index_cast %492 : i32 to index
    %c0_250 = arith.constant 0 : index
    %528 = vector.load %arg8[%527, %c0_250] : memref<28x16xf32, #tpu.memory_space<vmem>>, vector<2x16xf32>
    tpu.vector_store %arg8[%527, %c0_250], %524 {strides = array<i32>} : memref<28x16xf32, #tpu.memory_space<vmem>>, vector<2x16xf32>,
    %c14_i32 = arith.constant 14 : i32
    %c0_251 = arith.constant 0 : index
    %c0_252 = arith.constant 0 : index
    %529 = vector.load %arg8[%c0_251, %c0_252] : memref<28x16xf32, #tpu.memory_space<vmem>>, vector<28x16xf32>
    %c0_253 = arith.constant 0 : index
    %c0_254 = arith.constant 0 : index
    %530 = vector.load %arg4[%c0_253, %c0_254] : memref<16x64xf32, #tpu.memory_space<vmem>>, vector<16x64xf32>
    %cst_255 = arith.constant dense<0.000000e+00> : vector<28x64xf32>
    %531 = tpu.matmul %529, %530, %cst_255 {dimension_numbers = #tpu.dot_dimension_numbers<[1], [0], [0], [1], [0, 0, 1, 1], [], []>} : vector<28x16xf32>, vector<16x64xf32>, vector<28x64xf32> -> vector<28x64xf32>
    %c0_256 = arith.constant 0 : index
    %c0_257 = arith.constant 0 : index
    %532 = vector.load %arg6[%c0_256, %c0_257] : memref<1x64xf32, #tpu.memory_space<vmem>>, vector<1x64xf32>
    %533 = vector.broadcast %532 : vector<1x64xf32> to vector<28x64xf32>
    %534 = arith.addf %531, %533 : vector<28x64xf32>
    %c0_258 = arith.constant 0 : index
    %c0_259 = arith.constant 0 : index
    %535 = vector.load %arg9[%c0_258, %c0_259] : memref<28x64xf32, #tpu.memory_space<vmem>>, vector<28x64xf32>
    tpu.vector_store %arg9[%c0_258, %c0_259], %534 {strides = array<i32>} : memref<28x64xf32, #tpu.memory_space<vmem>>, vector<28x64xf32>,
    %cst_260 = arith.constant 0.000000e+00 : f32
    %536 = vector.broadcast %cst_260 : f32 to vector<2x16xf32>
    %c0_261 = arith.constant 0 : index
    %c0_262 = arith.constant 0 : index
    %537 = vector.load %arg10[%c0_261, %c0_262] : memref<2x16xf32, #tpu.memory_space<vmem>>, vector<2x16xf32>
    tpu.vector_store %arg10[%c0_261, %c0_262], %536 {strides = array<i32>} : memref<2x16xf32, #tpu.memory_space<vmem>>, vector<2x16xf32>,
    %cst_263 = arith.constant 0.000000e+00 : f32
    %538 = vector.broadcast %cst_263 : f32 to vector<2x16xf32>
    %c0_264 = arith.constant 0 : index
    %c0_265 = arith.constant 0 : index
    %539 = vector.load %arg11[%c0_264, %c0_265] : memref<2x16xf32, #tpu.memory_space<vmem>>, vector<2x16xf32>
    tpu.vector_store %arg11[%c0_264, %c0_265], %538 {strides = array<i32>} : memref<2x16xf32, #tpu.memory_space<vmem>>, vector<2x16xf32>,
    %c0_i32_266 = arith.constant 0 : i32
    %c2_i32_267 = arith.constant 2 : i32
    %540 = arith.muli %c0_i32_266, %c2_i32_267 : i32
    %541 = arith.index_cast %540 : i32 to index
    %c0_268 = arith.constant 0 : index
    %542 = vector.load %arg9[%541, %c0_268] : memref<28x64xf32, #tpu.memory_space<vmem>>, vector<2x64xf32>
    %c0_269 = arith.constant 0 : index
    %c0_270 = arith.constant 0 : index
    %543 = vector.load %arg10[%c0_269, %c0_270] : memref<2x16xf32, #tpu.memory_space<vmem>>, vector<2x16xf32>
    %c0_271 = arith.constant 0 : index
    %c0_272 = arith.constant 0 : index
    %544 = vector.load %arg5[%c0_271, %c0_272] : memref<16x64xf32, #tpu.memory_space<vmem>>, vector<16x64xf32>
    %cst_273 = arith.constant dense<0.000000e+00> : vector<2x64xf32>
    %545 = tpu.matmul %543, %544, %cst_273 {dimension_numbers = #tpu.dot_dimension_numbers<[1], [0], [0], [1], [0, 0, 1, 1], [], []>} : vector<2x16xf32>, vector<16x64xf32>, vector<2x64xf32> -> vector<2x64xf32>
    %546 = arith.addf %542, %545 : vector<2x64xf32>
    %547 = vector.extract_strided_slice %546 {offsets = [0, 0], sizes = [2, 16], strides = [1, 1]} : vector<2x64xf32> to vector<2x16xf32>
    %548 = arith.negf %547 : vector<2x16xf32>
    %549 = math.exp %548 : vector<2x16xf32>
    %cst_274 = arith.constant 1.000000e+00 : f32
    %550 = vector.broadcast %cst_274 : f32 to vector<2x16xf32>
    %551 = arith.addf %550, %549 : vector<2x16xf32>
    %552 = arith.divf %550, %551 : vector<2x16xf32>
    %553 = vector.extract_strided_slice %546 {offsets = [0, 16], sizes = [2, 16], strides = [1, 1]} : vector<2x64xf32> to vector<2x16xf32>
    %554 = arith.negf %553 : vector<2x16xf32>
    %555 = math.exp %554 : vector<2x16xf32>
    %cst_275 = arith.constant 1.000000e+00 : f32
    %556 = vector.broadcast %cst_275 : f32 to vector<2x16xf32>
    %557 = arith.addf %556, %555 : vector<2x16xf32>
    %558 = arith.divf %556, %557 : vector<2x16xf32>
    %559 = vector.extract_strided_slice %546 {offsets = [0, 32], sizes = [2, 16], strides = [1, 1]} : vector<2x64xf32> to vector<2x16xf32>
    %560 = math.tanh %559 : vector<2x16xf32>
    %561 = vector.extract_strided_slice %546 {offsets = [0, 48], sizes = [2, 16], strides = [1, 1]} : vector<2x64xf32> to vector<2x16xf32>
    %562 = arith.negf %561 : vector<2x16xf32>
    %563 = math.exp %562 : vector<2x16xf32>
    %cst_276 = arith.constant 1.000000e+00 : f32
    %564 = vector.broadcast %cst_276 : f32 to vector<2x16xf32>
    %565 = arith.addf %564, %563 : vector<2x16xf32>
    %566 = arith.divf %564, %565 : vector<2x16xf32>
    %c0_277 = arith.constant 0 : index
    %c0_278 = arith.constant 0 : index
    %567 = vector.load %arg11[%c0_277, %c0_278] : memref<2x16xf32, #tpu.memory_space<vmem>>, vector<2x16xf32>
    %568 = arith.mulf %558, %567 : vector<2x16xf32>
    %569 = arith.mulf %552, %560 : vector<2x16xf32>
    %570 = arith.addf %568, %569 : vector<2x16xf32>
    %571 = math.tanh %570 : vector<2x16xf32>
    %572 = arith.mulf %566, %571 : vector<2x16xf32>
    %c0_279 = arith.constant 0 : index
    %c0_280 = arith.constant 0 : index
    %573 = vector.load %arg11[%c0_279, %c0_280] : memref<2x16xf32, #tpu.memory_space<vmem>>, vector<2x16xf32>
    tpu.vector_store %arg11[%c0_279, %c0_280], %570 {strides = array<i32>} : memref<2x16xf32, #tpu.memory_space<vmem>>, vector<2x16xf32>,
    %c0_281 = arith.constant 0 : index
    %c0_282 = arith.constant 0 : index
    %574 = vector.load %arg10[%c0_281, %c0_282] : memref<2x16xf32, #tpu.memory_space<vmem>>, vector<2x16xf32>
    tpu.vector_store %arg10[%c0_281, %c0_282], %572 {strides = array<i32>} : memref<2x16xf32, #tpu.memory_space<vmem>>, vector<2x16xf32>,
    %575 = arith.index_cast %540 : i32 to index
    %c0_283 = arith.constant 0 : index
    %576 = vector.load %arg7[%575, %c0_283] : memref<28x16xf32, #tpu.memory_space<vmem>>, vector<2x16xf32>
    tpu.vector_store %arg7[%575, %c0_283], %572 {strides = array<i32>} : memref<28x16xf32, #tpu.memory_space<vmem>>, vector<2x16xf32>,
    %c1_i32_284 = arith.constant 1 : i32
    %c2_i32_285 = arith.constant 2 : i32
    %577 = arith.muli %c1_i32_284, %c2_i32_285 : i32
    %578 = arith.index_cast %577 : i32 to index
    %c0_286 = arith.constant 0 : index
    %579 = vector.load %arg9[%578, %c0_286] : memref<28x64xf32, #tpu.memory_space<vmem>>, vector<2x64xf32>
    %c0_287 = arith.constant 0 : index
    %c0_288 = arith.constant 0 : index
    %580 = vector.load %arg10[%c0_287, %c0_288] : memref<2x16xf32, #tpu.memory_space<vmem>>, vector<2x16xf32>
    %c0_289 = arith.constant 0 : index
    %c0_290 = arith.constant 0 : index
    %581 = vector.load %arg5[%c0_289, %c0_290] : memref<16x64xf32, #tpu.memory_space<vmem>>, vector<16x64xf32>
    %cst_291 = arith.constant dense<0.000000e+00> : vector<2x64xf32>
    %582 = tpu.matmul %580, %581, %cst_291 {dimension_numbers = #tpu.dot_dimension_numbers<[1], [0], [0], [1], [0, 0, 1, 1], [], []>} : vector<2x16xf32>, vector<16x64xf32>, vector<2x64xf32> -> vector<2x64xf32>
    %583 = arith.addf %579, %582 : vector<2x64xf32>
    %584 = vector.extract_strided_slice %583 {offsets = [0, 0], sizes = [2, 16], strides = [1, 1]} : vector<2x64xf32> to vector<2x16xf32>
    %585 = arith.negf %584 : vector<2x16xf32>
    %586 = math.exp %585 : vector<2x16xf32>
    %cst_292 = arith.constant 1.000000e+00 : f32
    %587 = vector.broadcast %cst_292 : f32 to vector<2x16xf32>
    %588 = arith.addf %587, %586 : vector<2x16xf32>
    %589 = arith.divf %587, %588 : vector<2x16xf32>
    %590 = vector.extract_strided_slice %583 {offsets = [0, 16], sizes = [2, 16], strides = [1, 1]} : vector<2x64xf32> to vector<2x16xf32>
    %591 = arith.negf %590 : vector<2x16xf32>
    %592 = math.exp %591 : vector<2x16xf32>
    %cst_293 = arith.constant 1.000000e+00 : f32
    %593 = vector.broadcast %cst_293 : f32 to vector<2x16xf32>
    %594 = arith.addf %593, %592 : vector<2x16xf32>
    %595 = arith.divf %593, %594 : vector<2x16xf32>
    %596 = vector.extract_strided_slice %583 {offsets = [0, 32], sizes = [2, 16], strides = [1, 1]} : vector<2x64xf32> to vector<2x16xf32>
    %597 = math.tanh %596 : vector<2x16xf32>
    %598 = vector.extract_strided_slice %583 {offsets = [0, 48], sizes = [2, 16], strides = [1, 1]} : vector<2x64xf32> to vector<2x16xf32>
    %599 = arith.negf %598 : vector<2x16xf32>
    %600 = math.exp %599 : vector<2x16xf32>
    %cst_294 = arith.constant 1.000000e+00 : f32
    %601 = vector.broadcast %cst_294 : f32 to vector<2x16xf32>
    %602 = arith.addf %601, %600 : vector<2x16xf32>
    %603 = arith.divf %601, %602 : vector<2x16xf32>
    %c0_295 = arith.constant 0 : index
    %c0_296 = arith.constant 0 : index
    %604 = vector.load %arg11[%c0_295, %c0_296] : memref<2x16xf32, #tpu.memory_space<vmem>>, vector<2x16xf32>
    %605 = arith.mulf %595, %604 : vector<2x16xf32>
    %606 = arith.mulf %589, %597 : vector<2x16xf32>
    %607 = arith.addf %605, %606 : vector<2x16xf32>
    %608 = math.tanh %607 : vector<2x16xf32>
    %609 = arith.mulf %603, %608 : vector<2x16xf32>
    %c0_297 = arith.constant 0 : index
    %c0_298 = arith.constant 0 : index
    %610 = vector.load %arg11[%c0_297, %c0_298] : memref<2x16xf32, #tpu.memory_space<vmem>>, vector<2x16xf32>
    tpu.vector_store %arg11[%c0_297, %c0_298], %607 {strides = array<i32>} : memref<2x16xf32, #tpu.memory_space<vmem>>, vector<2x16xf32>,
    %c0_299 = arith.constant 0 : index
    %c0_300 = arith.constant 0 : index
    %611 = vector.load %arg10[%c0_299, %c0_300] : memref<2x16xf32, #tpu.memory_space<vmem>>, vector<2x16xf32>
    tpu.vector_store %arg10[%c0_299, %c0_300], %609 {strides = array<i32>} : memref<2x16xf32, #tpu.memory_space<vmem>>, vector<2x16xf32>,
    %612 = arith.index_cast %577 : i32 to index
    %c0_301 = arith.constant 0 : index
    %613 = vector.load %arg7[%612, %c0_301] : memref<28x16xf32, #tpu.memory_space<vmem>>, vector<2x16xf32>
    tpu.vector_store %arg7[%612, %c0_301], %609 {strides = array<i32>} : memref<28x16xf32, #tpu.memory_space<vmem>>, vector<2x16xf32>,
    %c2_i32_302 = arith.constant 2 : i32
    %c2_i32_303 = arith.constant 2 : i32
    %614 = arith.muli %c2_i32_302, %c2_i32_303 : i32
    %615 = arith.index_cast %614 : i32 to index
    %c0_304 = arith.constant 0 : index
    %616 = vector.load %arg9[%615, %c0_304] : memref<28x64xf32, #tpu.memory_space<vmem>>, vector<2x64xf32>
    %c0_305 = arith.constant 0 : index
    %c0_306 = arith.constant 0 : index
    %617 = vector.load %arg10[%c0_305, %c0_306] : memref<2x16xf32, #tpu.memory_space<vmem>>, vector<2x16xf32>
    %c0_307 = arith.constant 0 : index
    %c0_308 = arith.constant 0 : index
    %618 = vector.load %arg5[%c0_307, %c0_308] : memref<16x64xf32, #tpu.memory_space<vmem>>, vector<16x64xf32>
    %cst_309 = arith.constant dense<0.000000e+00> : vector<2x64xf32>
    %619 = tpu.matmul %617, %618, %cst_309 {dimension_numbers = #tpu.dot_dimension_numbers<[1], [0], [0], [1], [0, 0, 1, 1], [], []>} : vector<2x16xf32>, vector<16x64xf32>, vector<2x64xf32> -> vector<2x64xf32>
    %620 = arith.addf %616, %619 : vector<2x64xf32>
    %621 = vector.extract_strided_slice %620 {offsets = [0, 0], sizes = [2, 16], strides = [1, 1]} : vector<2x64xf32> to vector<2x16xf32>
    %622 = arith.negf %621 : vector<2x16xf32>
    %623 = math.exp %622 : vector<2x16xf32>
    %cst_310 = arith.constant 1.000000e+00 : f32
    %624 = vector.broadcast %cst_310 : f32 to vector<2x16xf32>
    %625 = arith.addf %624, %623 : vector<2x16xf32>
    %626 = arith.divf %624, %625 : vector<2x16xf32>
    %627 = vector.extract_strided_slice %620 {offsets = [0, 16], sizes = [2, 16], strides = [1, 1]} : vector<2x64xf32> to vector<2x16xf32>
    %628 = arith.negf %627 : vector<2x16xf32>
    %629 = math.exp %628 : vector<2x16xf32>
    %cst_311 = arith.constant 1.000000e+00 : f32
    %630 = vector.broadcast %cst_311 : f32 to vector<2x16xf32>
    %631 = arith.addf %630, %629 : vector<2x16xf32>
    %632 = arith.divf %630, %631 : vector<2x16xf32>
    %633 = vector.extract_strided_slice %620 {offsets = [0, 32], sizes = [2, 16], strides = [1, 1]} : vector<2x64xf32> to vector<2x16xf32>
    %634 = math.tanh %633 : vector<2x16xf32>
    %635 = vector.extract_strided_slice %620 {offsets = [0, 48], sizes = [2, 16], strides = [1, 1]} : vector<2x64xf32> to vector<2x16xf32>
    %636 = arith.negf %635 : vector<2x16xf32>
    %637 = math.exp %636 : vector<2x16xf32>
    %cst_312 = arith.constant 1.000000e+00 : f32
    %638 = vector.broadcast %cst_312 : f32 to vector<2x16xf32>
    %639 = arith.addf %638, %637 : vector<2x16xf32>
    %640 = arith.divf %638, %639 : vector<2x16xf32>
    %c0_313 = arith.constant 0 : index
    %c0_314 = arith.constant 0 : index
    %641 = vector.load %arg11[%c0_313, %c0_314] : memref<2x16xf32, #tpu.memory_space<vmem>>, vector<2x16xf32>
    %642 = arith.mulf %632, %641 : vector<2x16xf32>
    %643 = arith.mulf %626, %634 : vector<2x16xf32>
    %644 = arith.addf %642, %643 : vector<2x16xf32>
    %645 = math.tanh %644 : vector<2x16xf32>
    %646 = arith.mulf %640, %645 : vector<2x16xf32>
    %c0_315 = arith.constant 0 : index
    %c0_316 = arith.constant 0 : index
    %647 = vector.load %arg11[%c0_315, %c0_316] : memref<2x16xf32, #tpu.memory_space<vmem>>, vector<2x16xf32>
    tpu.vector_store %arg11[%c0_315, %c0_316], %644 {strides = array<i32>} : memref<2x16xf32, #tpu.memory_space<vmem>>, vector<2x16xf32>,
    %c0_317 = arith.constant 0 : index
    %c0_318 = arith.constant 0 : index
    %648 = vector.load %arg10[%c0_317, %c0_318] : memref<2x16xf32, #tpu.memory_space<vmem>>, vector<2x16xf32>
    tpu.vector_store %arg10[%c0_317, %c0_318], %646 {strides = array<i32>} : memref<2x16xf32, #tpu.memory_space<vmem>>, vector<2x16xf32>,
    %649 = arith.index_cast %614 : i32 to index
    %c0_319 = arith.constant 0 : index
    %650 = vector.load %arg7[%649, %c0_319] : memref<28x16xf32, #tpu.memory_space<vmem>>, vector<2x16xf32>
    tpu.vector_store %arg7[%649, %c0_319], %646 {strides = array<i32>} : memref<28x16xf32, #tpu.memory_space<vmem>>, vector<2x16xf32>,
    %c3_i32_320 = arith.constant 3 : i32
    %c2_i32_321 = arith.constant 2 : i32
    %651 = arith.muli %c3_i32_320, %c2_i32_321 : i32
    %652 = arith.index_cast %651 : i32 to index
    %c0_322 = arith.constant 0 : index
    %653 = vector.load %arg9[%652, %c0_322] : memref<28x64xf32, #tpu.memory_space<vmem>>, vector<2x64xf32>
    %c0_323 = arith.constant 0 : index
    %c0_324 = arith.constant 0 : index
    %654 = vector.load %arg10[%c0_323, %c0_324] : memref<2x16xf32, #tpu.memory_space<vmem>>, vector<2x16xf32>
    %c0_325 = arith.constant 0 : index
    %c0_326 = arith.constant 0 : index
    %655 = vector.load %arg5[%c0_325, %c0_326] : memref<16x64xf32, #tpu.memory_space<vmem>>, vector<16x64xf32>
    %cst_327 = arith.constant dense<0.000000e+00> : vector<2x64xf32>
    %656 = tpu.matmul %654, %655, %cst_327 {dimension_numbers = #tpu.dot_dimension_numbers<[1], [0], [0], [1], [0, 0, 1, 1], [], []>} : vector<2x16xf32>, vector<16x64xf32>, vector<2x64xf32> -> vector<2x64xf32>
    %657 = arith.addf %653, %656 : vector<2x64xf32>
    %658 = vector.extract_strided_slice %657 {offsets = [0, 0], sizes = [2, 16], strides = [1, 1]} : vector<2x64xf32> to vector<2x16xf32>
    %659 = arith.negf %658 : vector<2x16xf32>
    %660 = math.exp %659 : vector<2x16xf32>
    %cst_328 = arith.constant 1.000000e+00 : f32
    %661 = vector.broadcast %cst_328 : f32 to vector<2x16xf32>
    %662 = arith.addf %661, %660 : vector<2x16xf32>
    %663 = arith.divf %661, %662 : vector<2x16xf32>
    %664 = vector.extract_strided_slice %657 {offsets = [0, 16], sizes = [2, 16], strides = [1, 1]} : vector<2x64xf32> to vector<2x16xf32>
    %665 = arith.negf %664 : vector<2x16xf32>
    %666 = math.exp %665 : vector<2x16xf32>
    %cst_329 = arith.constant 1.000000e+00 : f32
    %667 = vector.broadcast %cst_329 : f32 to vector<2x16xf32>
    %668 = arith.addf %667, %666 : vector<2x16xf32>
    %669 = arith.divf %667, %668 : vector<2x16xf32>
    %670 = vector.extract_strided_slice %657 {offsets = [0, 32], sizes = [2, 16], strides = [1, 1]} : vector<2x64xf32> to vector<2x16xf32>
    %671 = math.tanh %670 : vector<2x16xf32>
    %672 = vector.extract_strided_slice %657 {offsets = [0, 48], sizes = [2, 16], strides = [1, 1]} : vector<2x64xf32> to vector<2x16xf32>
    %673 = arith.negf %672 : vector<2x16xf32>
    %674 = math.exp %673 : vector<2x16xf32>
    %cst_330 = arith.constant 1.000000e+00 : f32
    %675 = vector.broadcast %cst_330 : f32 to vector<2x16xf32>
    %676 = arith.addf %675, %674 : vector<2x16xf32>
    %677 = arith.divf %675, %676 : vector<2x16xf32>
    %c0_331 = arith.constant 0 : index
    %c0_332 = arith.constant 0 : index
    %678 = vector.load %arg11[%c0_331, %c0_332] : memref<2x16xf32, #tpu.memory_space<vmem>>, vector<2x16xf32>
    %679 = arith.mulf %669, %678 : vector<2x16xf32>
    %680 = arith.mulf %663, %671 : vector<2x16xf32>
    %681 = arith.addf %679, %680 : vector<2x16xf32>
    %682 = math.tanh %681 : vector<2x16xf32>
    %683 = arith.mulf %677, %682 : vector<2x16xf32>
    %c0_333 = arith.constant 0 : index
    %c0_334 = arith.constant 0 : index
    %684 = vector.load %arg11[%c0_333, %c0_334] : memref<2x16xf32, #tpu.memory_space<vmem>>, vector<2x16xf32>
    tpu.vector_store %arg11[%c0_333, %c0_334], %681 {strides = array<i32>} : memref<2x16xf32, #tpu.memory_space<vmem>>, vector<2x16xf32>,
    %c0_335 = arith.constant 0 : index
    %c0_336 = arith.constant 0 : index
    %685 = vector.load %arg10[%c0_335, %c0_336] : memref<2x16xf32, #tpu.memory_space<vmem>>, vector<2x16xf32>
    tpu.vector_store %arg10[%c0_335, %c0_336], %683 {strides = array<i32>} : memref<2x16xf32, #tpu.memory_space<vmem>>, vector<2x16xf32>,
    %686 = arith.index_cast %651 : i32 to index
    %c0_337 = arith.constant 0 : index
    %687 = vector.load %arg7[%686, %c0_337] : memref<28x16xf32, #tpu.memory_space<vmem>>, vector<2x16xf32>
    tpu.vector_store %arg7[%686, %c0_337], %683 {strides = array<i32>} : memref<28x16xf32, #tpu.memory_space<vmem>>, vector<2x16xf32>,
    %c4_i32_338 = arith.constant 4 : i32
    %c2_i32_339 = arith.constant 2 : i32
    %688 = arith.muli %c4_i32_338, %c2_i32_339 : i32
    %689 = arith.index_cast %688 : i32 to index
    %c0_340 = arith.constant 0 : index
    %690 = vector.load %arg9[%689, %c0_340] : memref<28x64xf32, #tpu.memory_space<vmem>>, vector<2x64xf32>
    %c0_341 = arith.constant 0 : index
    %c0_342 = arith.constant 0 : index
    %691 = vector.load %arg10[%c0_341, %c0_342] : memref<2x16xf32, #tpu.memory_space<vmem>>, vector<2x16xf32>
    %c0_343 = arith.constant 0 : index
    %c0_344 = arith.constant 0 : index
    %692 = vector.load %arg5[%c0_343, %c0_344] : memref<16x64xf32, #tpu.memory_space<vmem>>, vector<16x64xf32>
    %cst_345 = arith.constant dense<0.000000e+00> : vector<2x64xf32>
    %693 = tpu.matmul %691, %692, %cst_345 {dimension_numbers = #tpu.dot_dimension_numbers<[1], [0], [0], [1], [0, 0, 1, 1], [], []>} : vector<2x16xf32>, vector<16x64xf32>, vector<2x64xf32> -> vector<2x64xf32>
    %694 = arith.addf %690, %693 : vector<2x64xf32>
    %695 = vector.extract_strided_slice %694 {offsets = [0, 0], sizes = [2, 16], strides = [1, 1]} : vector<2x64xf32> to vector<2x16xf32>
    %696 = arith.negf %695 : vector<2x16xf32>
    %697 = math.exp %696 : vector<2x16xf32>
    %cst_346 = arith.constant 1.000000e+00 : f32
    %698 = vector.broadcast %cst_346 : f32 to vector<2x16xf32>
    %699 = arith.addf %698, %697 : vector<2x16xf32>
    %700 = arith.divf %698, %699 : vector<2x16xf32>
    %701 = vector.extract_strided_slice %694 {offsets = [0, 16], sizes = [2, 16], strides = [1, 1]} : vector<2x64xf32> to vector<2x16xf32>
    %702 = arith.negf %701 : vector<2x16xf32>
    %703 = math.exp %702 : vector<2x16xf32>
    %cst_347 = arith.constant 1.000000e+00 : f32
    %704 = vector.broadcast %cst_347 : f32 to vector<2x16xf32>
    %705 = arith.addf %704, %703 : vector<2x16xf32>
    %706 = arith.divf %704, %705 : vector<2x16xf32>
    %707 = vector.extract_strided_slice %694 {offsets = [0, 32], sizes = [2, 16], strides = [1, 1]} : vector<2x64xf32> to vector<2x16xf32>
    %708 = math.tanh %707 : vector<2x16xf32>
    %709 = vector.extract_strided_slice %694 {offsets = [0, 48], sizes = [2, 16], strides = [1, 1]} : vector<2x64xf32> to vector<2x16xf32>
    %710 = arith.negf %709 : vector<2x16xf32>
    %711 = math.exp %710 : vector<2x16xf32>
    %cst_348 = arith.constant 1.000000e+00 : f32
    %712 = vector.broadcast %cst_348 : f32 to vector<2x16xf32>
    %713 = arith.addf %712, %711 : vector<2x16xf32>
    %714 = arith.divf %712, %713 : vector<2x16xf32>
    %c0_349 = arith.constant 0 : index
    %c0_350 = arith.constant 0 : index
    %715 = vector.load %arg11[%c0_349, %c0_350] : memref<2x16xf32, #tpu.memory_space<vmem>>, vector<2x16xf32>
    %716 = arith.mulf %706, %715 : vector<2x16xf32>
    %717 = arith.mulf %700, %708 : vector<2x16xf32>
    %718 = arith.addf %716, %717 : vector<2x16xf32>
    %719 = math.tanh %718 : vector<2x16xf32>
    %720 = arith.mulf %714, %719 : vector<2x16xf32>
    %c0_351 = arith.constant 0 : index
    %c0_352 = arith.constant 0 : index
    %721 = vector.load %arg11[%c0_351, %c0_352] : memref<2x16xf32, #tpu.memory_space<vmem>>, vector<2x16xf32>
    tpu.vector_store %arg11[%c0_351, %c0_352], %718 {strides = array<i32>} : memref<2x16xf32, #tpu.memory_space<vmem>>, vector<2x16xf32>,
    %c0_353 = arith.constant 0 : index
    %c0_354 = arith.constant 0 : index
    %722 = vector.load %arg10[%c0_353, %c0_354] : memref<2x16xf32, #tpu.memory_space<vmem>>, vector<2x16xf32>
    tpu.vector_store %arg10[%c0_353, %c0_354], %720 {strides = array<i32>} : memref<2x16xf32, #tpu.memory_space<vmem>>, vector<2x16xf32>,
    %723 = arith.index_cast %688 : i32 to index
    %c0_355 = arith.constant 0 : index
    %724 = vector.load %arg7[%723, %c0_355] : memref<28x16xf32, #tpu.memory_space<vmem>>, vector<2x16xf32>
    tpu.vector_store %arg7[%723, %c0_355], %720 {strides = array<i32>} : memref<28x16xf32, #tpu.memory_space<vmem>>, vector<2x16xf32>,
    %c5_i32_356 = arith.constant 5 : i32
    %c2_i32_357 = arith.constant 2 : i32
    %725 = arith.muli %c5_i32_356, %c2_i32_357 : i32
    %726 = arith.index_cast %725 : i32 to index
    %c0_358 = arith.constant 0 : index
    %727 = vector.load %arg9[%726, %c0_358] : memref<28x64xf32, #tpu.memory_space<vmem>>, vector<2x64xf32>
    %c0_359 = arith.constant 0 : index
    %c0_360 = arith.constant 0 : index
    %728 = vector.load %arg10[%c0_359, %c0_360] : memref<2x16xf32, #tpu.memory_space<vmem>>, vector<2x16xf32>
    %c0_361 = arith.constant 0 : index
    %c0_362 = arith.constant 0 : index
    %729 = vector.load %arg5[%c0_361, %c0_362] : memref<16x64xf32, #tpu.memory_space<vmem>>, vector<16x64xf32>
    %cst_363 = arith.constant dense<0.000000e+00> : vector<2x64xf32>
    %730 = tpu.matmul %728, %729, %cst_363 {dimension_numbers = #tpu.dot_dimension_numbers<[1], [0], [0], [1], [0, 0, 1, 1], [], []>} : vector<2x16xf32>, vector<16x64xf32>, vector<2x64xf32> -> vector<2x64xf32>
    %731 = arith.addf %727, %730 : vector<2x64xf32>
    %732 = vector.extract_strided_slice %731 {offsets = [0, 0], sizes = [2, 16], strides = [1, 1]} : vector<2x64xf32> to vector<2x16xf32>
    %733 = arith.negf %732 : vector<2x16xf32>
    %734 = math.exp %733 : vector<2x16xf32>
    %cst_364 = arith.constant 1.000000e+00 : f32
    %735 = vector.broadcast %cst_364 : f32 to vector<2x16xf32>
    %736 = arith.addf %735, %734 : vector<2x16xf32>
    %737 = arith.divf %735, %736 : vector<2x16xf32>
    %738 = vector.extract_strided_slice %731 {offsets = [0, 16], sizes = [2, 16], strides = [1, 1]} : vector<2x64xf32> to vector<2x16xf32>
    %739 = arith.negf %738 : vector<2x16xf32>
    %740 = math.exp %739 : vector<2x16xf32>
    %cst_365 = arith.constant 1.000000e+00 : f32
    %741 = vector.broadcast %cst_365 : f32 to vector<2x16xf32>
    %742 = arith.addf %741, %740 : vector<2x16xf32>
    %743 = arith.divf %741, %742 : vector<2x16xf32>
    %744 = vector.extract_strided_slice %731 {offsets = [0, 32], sizes = [2, 16], strides = [1, 1]} : vector<2x64xf32> to vector<2x16xf32>
    %745 = math.tanh %744 : vector<2x16xf32>
    %746 = vector.extract_strided_slice %731 {offsets = [0, 48], sizes = [2, 16], strides = [1, 1]} : vector<2x64xf32> to vector<2x16xf32>
    %747 = arith.negf %746 : vector<2x16xf32>
    %748 = math.exp %747 : vector<2x16xf32>
    %cst_366 = arith.constant 1.000000e+00 : f32
    %749 = vector.broadcast %cst_366 : f32 to vector<2x16xf32>
    %750 = arith.addf %749, %748 : vector<2x16xf32>
    %751 = arith.divf %749, %750 : vector<2x16xf32>
    %c0_367 = arith.constant 0 : index
    %c0_368 = arith.constant 0 : index
    %752 = vector.load %arg11[%c0_367, %c0_368] : memref<2x16xf32, #tpu.memory_space<vmem>>, vector<2x16xf32>
    %753 = arith.mulf %743, %752 : vector<2x16xf32>
    %754 = arith.mulf %737, %745 : vector<2x16xf32>
    %755 = arith.addf %753, %754 : vector<2x16xf32>
    %756 = math.tanh %755 : vector<2x16xf32>
    %757 = arith.mulf %751, %756 : vector<2x16xf32>
    %c0_369 = arith.constant 0 : index
    %c0_370 = arith.constant 0 : index
    %758 = vector.load %arg11[%c0_369, %c0_370] : memref<2x16xf32, #tpu.memory_space<vmem>>, vector<2x16xf32>
    tpu.vector_store %arg11[%c0_369, %c0_370], %755 {strides = array<i32>} : memref<2x16xf32, #tpu.memory_space<vmem>>, vector<2x16xf32>,
    %c0_371 = arith.constant 0 : index
    %c0_372 = arith.constant 0 : index
    %759 = vector.load %arg10[%c0_371, %c0_372] : memref<2x16xf32, #tpu.memory_space<vmem>>, vector<2x16xf32>
    tpu.vector_store %arg10[%c0_371, %c0_372], %757 {strides = array<i32>} : memref<2x16xf32, #tpu.memory_space<vmem>>, vector<2x16xf32>,
    %760 = arith.index_cast %725 : i32 to index
    %c0_373 = arith.constant 0 : index
    %761 = vector.load %arg7[%760, %c0_373] : memref<28x16xf32, #tpu.memory_space<vmem>>, vector<2x16xf32>
    tpu.vector_store %arg7[%760, %c0_373], %757 {strides = array<i32>} : memref<28x16xf32, #tpu.memory_space<vmem>>, vector<2x16xf32>,
    %c6_i32_374 = arith.constant 6 : i32
    %c2_i32_375 = arith.constant 2 : i32
    %762 = arith.muli %c6_i32_374, %c2_i32_375 : i32
    %763 = arith.index_cast %762 : i32 to index
    %c0_376 = arith.constant 0 : index
    %764 = vector.load %arg9[%763, %c0_376] : memref<28x64xf32, #tpu.memory_space<vmem>>, vector<2x64xf32>
    %c0_377 = arith.constant 0 : index
    %c0_378 = arith.constant 0 : index
    %765 = vector.load %arg10[%c0_377, %c0_378] : memref<2x16xf32, #tpu.memory_space<vmem>>, vector<2x16xf32>
    %c0_379 = arith.constant 0 : index
    %c0_380 = arith.constant 0 : index
    %766 = vector.load %arg5[%c0_379, %c0_380] : memref<16x64xf32, #tpu.memory_space<vmem>>, vector<16x64xf32>
    %cst_381 = arith.constant dense<0.000000e+00> : vector<2x64xf32>
    %767 = tpu.matmul %765, %766, %cst_381 {dimension_numbers = #tpu.dot_dimension_numbers<[1], [0], [0], [1], [0, 0, 1, 1], [], []>} : vector<2x16xf32>, vector<16x64xf32>, vector<2x64xf32> -> vector<2x64xf32>
    %768 = arith.addf %764, %767 : vector<2x64xf32>
    %769 = vector.extract_strided_slice %768 {offsets = [0, 0], sizes = [2, 16], strides = [1, 1]} : vector<2x64xf32> to vector<2x16xf32>
    %770 = arith.negf %769 : vector<2x16xf32>
    %771 = math.exp %770 : vector<2x16xf32>
    %cst_382 = arith.constant 1.000000e+00 : f32
    %772 = vector.broadcast %cst_382 : f32 to vector<2x16xf32>
    %773 = arith.addf %772, %771 : vector<2x16xf32>
    %774 = arith.divf %772, %773 : vector<2x16xf32>
    %775 = vector.extract_strided_slice %768 {offsets = [0, 16], sizes = [2, 16], strides = [1, 1]} : vector<2x64xf32> to vector<2x16xf32>
    %776 = arith.negf %775 : vector<2x16xf32>
    %777 = math.exp %776 : vector<2x16xf32>
    %cst_383 = arith.constant 1.000000e+00 : f32
    %778 = vector.broadcast %cst_383 : f32 to vector<2x16xf32>
    %779 = arith.addf %778, %777 : vector<2x16xf32>
    %780 = arith.divf %778, %779 : vector<2x16xf32>
    %781 = vector.extract_strided_slice %768 {offsets = [0, 32], sizes = [2, 16], strides = [1, 1]} : vector<2x64xf32> to vector<2x16xf32>
    %782 = math.tanh %781 : vector<2x16xf32>
    %783 = vector.extract_strided_slice %768 {offsets = [0, 48], sizes = [2, 16], strides = [1, 1]} : vector<2x64xf32> to vector<2x16xf32>
    %784 = arith.negf %783 : vector<2x16xf32>
    %785 = math.exp %784 : vector<2x16xf32>
    %cst_384 = arith.constant 1.000000e+00 : f32
    %786 = vector.broadcast %cst_384 : f32 to vector<2x16xf32>
    %787 = arith.addf %786, %785 : vector<2x16xf32>
    %788 = arith.divf %786, %787 : vector<2x16xf32>
    %c0_385 = arith.constant 0 : index
    %c0_386 = arith.constant 0 : index
    %789 = vector.load %arg11[%c0_385, %c0_386] : memref<2x16xf32, #tpu.memory_space<vmem>>, vector<2x16xf32>
    %790 = arith.mulf %780, %789 : vector<2x16xf32>
    %791 = arith.mulf %774, %782 : vector<2x16xf32>
    %792 = arith.addf %790, %791 : vector<2x16xf32>
    %793 = math.tanh %792 : vector<2x16xf32>
    %794 = arith.mulf %788, %793 : vector<2x16xf32>
    %c0_387 = arith.constant 0 : index
    %c0_388 = arith.constant 0 : index
    %795 = vector.load %arg11[%c0_387, %c0_388] : memref<2x16xf32, #tpu.memory_space<vmem>>, vector<2x16xf32>
    tpu.vector_store %arg11[%c0_387, %c0_388], %792 {strides = array<i32>} : memref<2x16xf32, #tpu.memory_space<vmem>>, vector<2x16xf32>,
    %c0_389 = arith.constant 0 : index
    %c0_390 = arith.constant 0 : index
    %796 = vector.load %arg10[%c0_389, %c0_390] : memref<2x16xf32, #tpu.memory_space<vmem>>, vector<2x16xf32>
    tpu.vector_store %arg10[%c0_389, %c0_390], %794 {strides = array<i32>} : memref<2x16xf32, #tpu.memory_space<vmem>>, vector<2x16xf32>,
    %797 = arith.index_cast %762 : i32 to index
    %c0_391 = arith.constant 0 : index
    %798 = vector.load %arg7[%797, %c0_391] : memref<28x16xf32, #tpu.memory_space<vmem>>, vector<2x16xf32>
    tpu.vector_store %arg7[%797, %c0_391], %794 {strides = array<i32>} : memref<28x16xf32, #tpu.memory_space<vmem>>, vector<2x16xf32>,
    %c7_i32_392 = arith.constant 7 : i32
    %c2_i32_393 = arith.constant 2 : i32
    %799 = arith.muli %c7_i32_392, %c2_i32_393 : i32
    %800 = arith.index_cast %799 : i32 to index
    %c0_394 = arith.constant 0 : index
    %801 = vector.load %arg9[%800, %c0_394] : memref<28x64xf32, #tpu.memory_space<vmem>>, vector<2x64xf32>
    %c0_395 = arith.constant 0 : index
    %c0_396 = arith.constant 0 : index
    %802 = vector.load %arg10[%c0_395, %c0_396] : memref<2x16xf32, #tpu.memory_space<vmem>>, vector<2x16xf32>
    %c0_397 = arith.constant 0 : index
    %c0_398 = arith.constant 0 : index
    %803 = vector.load %arg5[%c0_397, %c0_398] : memref<16x64xf32, #tpu.memory_space<vmem>>, vector<16x64xf32>
    %cst_399 = arith.constant dense<0.000000e+00> : vector<2x64xf32>
    %804 = tpu.matmul %802, %803, %cst_399 {dimension_numbers = #tpu.dot_dimension_numbers<[1], [0], [0], [1], [0, 0, 1, 1], [], []>} : vector<2x16xf32>, vector<16x64xf32>, vector<2x64xf32> -> vector<2x64xf32>
    %805 = arith.addf %801, %804 : vector<2x64xf32>
    %806 = vector.extract_strided_slice %805 {offsets = [0, 0], sizes = [2, 16], strides = [1, 1]} : vector<2x64xf32> to vector<2x16xf32>
    %807 = arith.negf %806 : vector<2x16xf32>
    %808 = math.exp %807 : vector<2x16xf32>
    %cst_400 = arith.constant 1.000000e+00 : f32
    %809 = vector.broadcast %cst_400 : f32 to vector<2x16xf32>
    %810 = arith.addf %809, %808 : vector<2x16xf32>
    %811 = arith.divf %809, %810 : vector<2x16xf32>
    %812 = vector.extract_strided_slice %805 {offsets = [0, 16], sizes = [2, 16], strides = [1, 1]} : vector<2x64xf32> to vector<2x16xf32>
    %813 = arith.negf %812 : vector<2x16xf32>
    %814 = math.exp %813 : vector<2x16xf32>
    %cst_401 = arith.constant 1.000000e+00 : f32
    %815 = vector.broadcast %cst_401 : f32 to vector<2x16xf32>
    %816 = arith.addf %815, %814 : vector<2x16xf32>
    %817 = arith.divf %815, %816 : vector<2x16xf32>
    %818 = vector.extract_strided_slice %805 {offsets = [0, 32], sizes = [2, 16], strides = [1, 1]} : vector<2x64xf32> to vector<2x16xf32>
    %819 = math.tanh %818 : vector<2x16xf32>
    %820 = vector.extract_strided_slice %805 {offsets = [0, 48], sizes = [2, 16], strides = [1, 1]} : vector<2x64xf32> to vector<2x16xf32>
    %821 = arith.negf %820 : vector<2x16xf32>
    %822 = math.exp %821 : vector<2x16xf32>
    %cst_402 = arith.constant 1.000000e+00 : f32
    %823 = vector.broadcast %cst_402 : f32 to vector<2x16xf32>
    %824 = arith.addf %823, %822 : vector<2x16xf32>
    %825 = arith.divf %823, %824 : vector<2x16xf32>
    %c0_403 = arith.constant 0 : index
    %c0_404 = arith.constant 0 : index
    %826 = vector.load %arg11[%c0_403, %c0_404] : memref<2x16xf32, #tpu.memory_space<vmem>>, vector<2x16xf32>
    %827 = arith.mulf %817, %826 : vector<2x16xf32>
    %828 = arith.mulf %811, %819 : vector<2x16xf32>
    %829 = arith.addf %827, %828 : vector<2x16xf32>
    %830 = math.tanh %829 : vector<2x16xf32>
    %831 = arith.mulf %825, %830 : vector<2x16xf32>
    %c0_405 = arith.constant 0 : index
    %c0_406 = arith.constant 0 : index
    %832 = vector.load %arg11[%c0_405, %c0_406] : memref<2x16xf32, #tpu.memory_space<vmem>>, vector<2x16xf32>
    tpu.vector_store %arg11[%c0_405, %c0_406], %829 {strides = array<i32>} : memref<2x16xf32, #tpu.memory_space<vmem>>, vector<2x16xf32>,
    %c0_407 = arith.constant 0 : index
    %c0_408 = arith.constant 0 : index
    %833 = vector.load %arg10[%c0_407, %c0_408] : memref<2x16xf32, #tpu.memory_space<vmem>>, vector<2x16xf32>
    tpu.vector_store %arg10[%c0_407, %c0_408], %831 {strides = array<i32>} : memref<2x16xf32, #tpu.memory_space<vmem>>, vector<2x16xf32>,
    %834 = arith.index_cast %799 : i32 to index
    %c0_409 = arith.constant 0 : index
    %835 = vector.load %arg7[%834, %c0_409] : memref<28x16xf32, #tpu.memory_space<vmem>>, vector<2x16xf32>
    tpu.vector_store %arg7[%834, %c0_409], %831 {strides = array<i32>} : memref<28x16xf32, #tpu.memory_space<vmem>>, vector<2x16xf32>,
    %c8_i32_410 = arith.constant 8 : i32
    %c2_i32_411 = arith.constant 2 : i32
    %836 = arith.muli %c8_i32_410, %c2_i32_411 : i32
    %837 = arith.index_cast %836 : i32 to index
    %c0_412 = arith.constant 0 : index
    %838 = vector.load %arg9[%837, %c0_412] : memref<28x64xf32, #tpu.memory_space<vmem>>, vector<2x64xf32>
    %c0_413 = arith.constant 0 : index
    %c0_414 = arith.constant 0 : index
    %839 = vector.load %arg10[%c0_413, %c0_414] : memref<2x16xf32, #tpu.memory_space<vmem>>, vector<2x16xf32>
    %c0_415 = arith.constant 0 : index
    %c0_416 = arith.constant 0 : index
    %840 = vector.load %arg5[%c0_415, %c0_416] : memref<16x64xf32, #tpu.memory_space<vmem>>, vector<16x64xf32>
    %cst_417 = arith.constant dense<0.000000e+00> : vector<2x64xf32>
    %841 = tpu.matmul %839, %840, %cst_417 {dimension_numbers = #tpu.dot_dimension_numbers<[1], [0], [0], [1], [0, 0, 1, 1], [], []>} : vector<2x16xf32>, vector<16x64xf32>, vector<2x64xf32> -> vector<2x64xf32>
    %842 = arith.addf %838, %841 : vector<2x64xf32>
    %843 = vector.extract_strided_slice %842 {offsets = [0, 0], sizes = [2, 16], strides = [1, 1]} : vector<2x64xf32> to vector<2x16xf32>
    %844 = arith.negf %843 : vector<2x16xf32>
    %845 = math.exp %844 : vector<2x16xf32>
    %cst_418 = arith.constant 1.000000e+00 : f32
    %846 = vector.broadcast %cst_418 : f32 to vector<2x16xf32>
    %847 = arith.addf %846, %845 : vector<2x16xf32>
    %848 = arith.divf %846, %847 : vector<2x16xf32>
    %849 = vector.extract_strided_slice %842 {offsets = [0, 16], sizes = [2, 16], strides = [1, 1]} : vector<2x64xf32> to vector<2x16xf32>
    %850 = arith.negf %849 : vector<2x16xf32>
    %851 = math.exp %850 : vector<2x16xf32>
    %cst_419 = arith.constant 1.000000e+00 : f32
    %852 = vector.broadcast %cst_419 : f32 to vector<2x16xf32>
    %853 = arith.addf %852, %851 : vector<2x16xf32>
    %854 = arith.divf %852, %853 : vector<2x16xf32>
    %855 = vector.extract_strided_slice %842 {offsets = [0, 32], sizes = [2, 16], strides = [1, 1]} : vector<2x64xf32> to vector<2x16xf32>
    %856 = math.tanh %855 : vector<2x16xf32>
    %857 = vector.extract_strided_slice %842 {offsets = [0, 48], sizes = [2, 16], strides = [1, 1]} : vector<2x64xf32> to vector<2x16xf32>
    %858 = arith.negf %857 : vector<2x16xf32>
    %859 = math.exp %858 : vector<2x16xf32>
    %cst_420 = arith.constant 1.000000e+00 : f32
    %860 = vector.broadcast %cst_420 : f32 to vector<2x16xf32>
    %861 = arith.addf %860, %859 : vector<2x16xf32>
    %862 = arith.divf %860, %861 : vector<2x16xf32>
    %c0_421 = arith.constant 0 : index
    %c0_422 = arith.constant 0 : index
    %863 = vector.load %arg11[%c0_421, %c0_422] : memref<2x16xf32, #tpu.memory_space<vmem>>, vector<2x16xf32>
    %864 = arith.mulf %854, %863 : vector<2x16xf32>
    %865 = arith.mulf %848, %856 : vector<2x16xf32>
    %866 = arith.addf %864, %865 : vector<2x16xf32>
    %867 = math.tanh %866 : vector<2x16xf32>
    %868 = arith.mulf %862, %867 : vector<2x16xf32>
    %c0_423 = arith.constant 0 : index
    %c0_424 = arith.constant 0 : index
    %869 = vector.load %arg11[%c0_423, %c0_424] : memref<2x16xf32, #tpu.memory_space<vmem>>, vector<2x16xf32>
    tpu.vector_store %arg11[%c0_423, %c0_424], %866 {strides = array<i32>} : memref<2x16xf32, #tpu.memory_space<vmem>>, vector<2x16xf32>,
    %c0_425 = arith.constant 0 : index
    %c0_426 = arith.constant 0 : index
    %870 = vector.load %arg10[%c0_425, %c0_426] : memref<2x16xf32, #tpu.memory_space<vmem>>, vector<2x16xf32>
    tpu.vector_store %arg10[%c0_425, %c0_426], %868 {strides = array<i32>} : memref<2x16xf32, #tpu.memory_space<vmem>>, vector<2x16xf32>,
    %871 = arith.index_cast %836 : i32 to index
    %c0_427 = arith.constant 0 : index
    %872 = vector.load %arg7[%871, %c0_427] : memref<28x16xf32, #tpu.memory_space<vmem>>, vector<2x16xf32>
    tpu.vector_store %arg7[%871, %c0_427], %868 {strides = array<i32>} : memref<28x16xf32, #tpu.memory_space<vmem>>, vector<2x16xf32>,
    %c9_i32_428 = arith.constant 9 : i32
    %c2_i32_429 = arith.constant 2 : i32
    %873 = arith.muli %c9_i32_428, %c2_i32_429 : i32
    %874 = arith.index_cast %873 : i32 to index
    %c0_430 = arith.constant 0 : index
    %875 = vector.load %arg9[%874, %c0_430] : memref<28x64xf32, #tpu.memory_space<vmem>>, vector<2x64xf32>
    %c0_431 = arith.constant 0 : index
    %c0_432 = arith.constant 0 : index
    %876 = vector.load %arg10[%c0_431, %c0_432] : memref<2x16xf32, #tpu.memory_space<vmem>>, vector<2x16xf32>
    %c0_433 = arith.constant 0 : index
    %c0_434 = arith.constant 0 : index
    %877 = vector.load %arg5[%c0_433, %c0_434] : memref<16x64xf32, #tpu.memory_space<vmem>>, vector<16x64xf32>
    %cst_435 = arith.constant dense<0.000000e+00> : vector<2x64xf32>
    %878 = tpu.matmul %876, %877, %cst_435 {dimension_numbers = #tpu.dot_dimension_numbers<[1], [0], [0], [1], [0, 0, 1, 1], [], []>} : vector<2x16xf32>, vector<16x64xf32>, vector<2x64xf32> -> vector<2x64xf32>
    %879 = arith.addf %875, %878 : vector<2x64xf32>
    %880 = vector.extract_strided_slice %879 {offsets = [0, 0], sizes = [2, 16], strides = [1, 1]} : vector<2x64xf32> to vector<2x16xf32>
    %881 = arith.negf %880 : vector<2x16xf32>
    %882 = math.exp %881 : vector<2x16xf32>
    %cst_436 = arith.constant 1.000000e+00 : f32
    %883 = vector.broadcast %cst_436 : f32 to vector<2x16xf32>
    %884 = arith.addf %883, %882 : vector<2x16xf32>
    %885 = arith.divf %883, %884 : vector<2x16xf32>
    %886 = vector.extract_strided_slice %879 {offsets = [0, 16], sizes = [2, 16], strides = [1, 1]} : vector<2x64xf32> to vector<2x16xf32>
    %887 = arith.negf %886 : vector<2x16xf32>
    %888 = math.exp %887 : vector<2x16xf32>
    %cst_437 = arith.constant 1.000000e+00 : f32
    %889 = vector.broadcast %cst_437 : f32 to vector<2x16xf32>
    %890 = arith.addf %889, %888 : vector<2x16xf32>
    %891 = arith.divf %889, %890 : vector<2x16xf32>
    %892 = vector.extract_strided_slice %879 {offsets = [0, 32], sizes = [2, 16], strides = [1, 1]} : vector<2x64xf32> to vector<2x16xf32>
    %893 = math.tanh %892 : vector<2x16xf32>
    %894 = vector.extract_strided_slice %879 {offsets = [0, 48], sizes = [2, 16], strides = [1, 1]} : vector<2x64xf32> to vector<2x16xf32>
    %895 = arith.negf %894 : vector<2x16xf32>
    %896 = math.exp %895 : vector<2x16xf32>
    %cst_438 = arith.constant 1.000000e+00 : f32
    %897 = vector.broadcast %cst_438 : f32 to vector<2x16xf32>
    %898 = arith.addf %897, %896 : vector<2x16xf32>
    %899 = arith.divf %897, %898 : vector<2x16xf32>
    %c0_439 = arith.constant 0 : index
    %c0_440 = arith.constant 0 : index
    %900 = vector.load %arg11[%c0_439, %c0_440] : memref<2x16xf32, #tpu.memory_space<vmem>>, vector<2x16xf32>
    %901 = arith.mulf %891, %900 : vector<2x16xf32>
    %902 = arith.mulf %885, %893 : vector<2x16xf32>
    %903 = arith.addf %901, %902 : vector<2x16xf32>
    %904 = math.tanh %903 : vector<2x16xf32>
    %905 = arith.mulf %899, %904 : vector<2x16xf32>
    %c0_441 = arith.constant 0 : index
    %c0_442 = arith.constant 0 : index
    %906 = vector.load %arg11[%c0_441, %c0_442] : memref<2x16xf32, #tpu.memory_space<vmem>>, vector<2x16xf32>
    tpu.vector_store %arg11[%c0_441, %c0_442], %903 {strides = array<i32>} : memref<2x16xf32, #tpu.memory_space<vmem>>, vector<2x16xf32>,
    %c0_443 = arith.constant 0 : index
    %c0_444 = arith.constant 0 : index
    %907 = vector.load %arg10[%c0_443, %c0_444] : memref<2x16xf32, #tpu.memory_space<vmem>>, vector<2x16xf32>
    tpu.vector_store %arg10[%c0_443, %c0_444], %905 {strides = array<i32>} : memref<2x16xf32, #tpu.memory_space<vmem>>, vector<2x16xf32>,
    %908 = arith.index_cast %873 : i32 to index
    %c0_445 = arith.constant 0 : index
    %909 = vector.load %arg7[%908, %c0_445] : memref<28x16xf32, #tpu.memory_space<vmem>>, vector<2x16xf32>
    tpu.vector_store %arg7[%908, %c0_445], %905 {strides = array<i32>} : memref<28x16xf32, #tpu.memory_space<vmem>>, vector<2x16xf32>,
    %c10_i32_446 = arith.constant 10 : i32
    %c2_i32_447 = arith.constant 2 : i32
    %910 = arith.muli %c10_i32_446, %c2_i32_447 : i32
    %911 = arith.index_cast %910 : i32 to index
    %c0_448 = arith.constant 0 : index
    %912 = vector.load %arg9[%911, %c0_448] : memref<28x64xf32, #tpu.memory_space<vmem>>, vector<2x64xf32>
    %c0_449 = arith.constant 0 : index
    %c0_450 = arith.constant 0 : index
    %913 = vector.load %arg10[%c0_449, %c0_450] : memref<2x16xf32, #tpu.memory_space<vmem>>, vector<2x16xf32>
    %c0_451 = arith.constant 0 : index
    %c0_452 = arith.constant 0 : index
    %914 = vector.load %arg5[%c0_451, %c0_452] : memref<16x64xf32, #tpu.memory_space<vmem>>, vector<16x64xf32>
    %cst_453 = arith.constant dense<0.000000e+00> : vector<2x64xf32>
    %915 = tpu.matmul %913, %914, %cst_453 {dimension_numbers = #tpu.dot_dimension_numbers<[1], [0], [0], [1], [0, 0, 1, 1], [], []>} : vector<2x16xf32>, vector<16x64xf32>, vector<2x64xf32> -> vector<2x64xf32>
    %916 = arith.addf %912, %915 : vector<2x64xf32>
    %917 = vector.extract_strided_slice %916 {offsets = [0, 0], sizes = [2, 16], strides = [1, 1]} : vector<2x64xf32> to vector<2x16xf32>
    %918 = arith.negf %917 : vector<2x16xf32>
    %919 = math.exp %918 : vector<2x16xf32>
    %cst_454 = arith.constant 1.000000e+00 : f32
    %920 = vector.broadcast %cst_454 : f32 to vector<2x16xf32>
    %921 = arith.addf %920, %919 : vector<2x16xf32>
    %922 = arith.divf %920, %921 : vector<2x16xf32>
    %923 = vector.extract_strided_slice %916 {offsets = [0, 16], sizes = [2, 16], strides = [1, 1]} : vector<2x64xf32> to vector<2x16xf32>
    %924 = arith.negf %923 : vector<2x16xf32>
    %925 = math.exp %924 : vector<2x16xf32>
    %cst_455 = arith.constant 1.000000e+00 : f32
    %926 = vector.broadcast %cst_455 : f32 to vector<2x16xf32>
    %927 = arith.addf %926, %925 : vector<2x16xf32>
    %928 = arith.divf %926, %927 : vector<2x16xf32>
    %929 = vector.extract_strided_slice %916 {offsets = [0, 32], sizes = [2, 16], strides = [1, 1]} : vector<2x64xf32> to vector<2x16xf32>
    %930 = math.tanh %929 : vector<2x16xf32>
    %931 = vector.extract_strided_slice %916 {offsets = [0, 48], sizes = [2, 16], strides = [1, 1]} : vector<2x64xf32> to vector<2x16xf32>
    %932 = arith.negf %931 : vector<2x16xf32>
    %933 = math.exp %932 : vector<2x16xf32>
    %cst_456 = arith.constant 1.000000e+00 : f32
    %934 = vector.broadcast %cst_456 : f32 to vector<2x16xf32>
    %935 = arith.addf %934, %933 : vector<2x16xf32>
    %936 = arith.divf %934, %935 : vector<2x16xf32>
    %c0_457 = arith.constant 0 : index
    %c0_458 = arith.constant 0 : index
    %937 = vector.load %arg11[%c0_457, %c0_458] : memref<2x16xf32, #tpu.memory_space<vmem>>, vector<2x16xf32>
    %938 = arith.mulf %928, %937 : vector<2x16xf32>
    %939 = arith.mulf %922, %930 : vector<2x16xf32>
    %940 = arith.addf %938, %939 : vector<2x16xf32>
    %941 = math.tanh %940 : vector<2x16xf32>
    %942 = arith.mulf %936, %941 : vector<2x16xf32>
    %c0_459 = arith.constant 0 : index
    %c0_460 = arith.constant 0 : index
    %943 = vector.load %arg11[%c0_459, %c0_460] : memref<2x16xf32, #tpu.memory_space<vmem>>, vector<2x16xf32>
    tpu.vector_store %arg11[%c0_459, %c0_460], %940 {strides = array<i32>} : memref<2x16xf32, #tpu.memory_space<vmem>>, vector<2x16xf32>,
    %c0_461 = arith.constant 0 : index
    %c0_462 = arith.constant 0 : index
    %944 = vector.load %arg10[%c0_461, %c0_462] : memref<2x16xf32, #tpu.memory_space<vmem>>, vector<2x16xf32>
    tpu.vector_store %arg10[%c0_461, %c0_462], %942 {strides = array<i32>} : memref<2x16xf32, #tpu.memory_space<vmem>>, vector<2x16xf32>,
    %945 = arith.index_cast %910 : i32 to index
    %c0_463 = arith.constant 0 : index
    %946 = vector.load %arg7[%945, %c0_463] : memref<28x16xf32, #tpu.memory_space<vmem>>, vector<2x16xf32>
    tpu.vector_store %arg7[%945, %c0_463], %942 {strides = array<i32>} : memref<28x16xf32, #tpu.memory_space<vmem>>, vector<2x16xf32>,
    %c11_i32_464 = arith.constant 11 : i32
    %c2_i32_465 = arith.constant 2 : i32
    %947 = arith.muli %c11_i32_464, %c2_i32_465 : i32
    %948 = arith.index_cast %947 : i32 to index
    %c0_466 = arith.constant 0 : index
    %949 = vector.load %arg9[%948, %c0_466] : memref<28x64xf32, #tpu.memory_space<vmem>>, vector<2x64xf32>
    %c0_467 = arith.constant 0 : index
    %c0_468 = arith.constant 0 : index
    %950 = vector.load %arg10[%c0_467, %c0_468] : memref<2x16xf32, #tpu.memory_space<vmem>>, vector<2x16xf32>
    %c0_469 = arith.constant 0 : index
    %c0_470 = arith.constant 0 : index
    %951 = vector.load %arg5[%c0_469, %c0_470] : memref<16x64xf32, #tpu.memory_space<vmem>>, vector<16x64xf32>
    %cst_471 = arith.constant dense<0.000000e+00> : vector<2x64xf32>
    %952 = tpu.matmul %950, %951, %cst_471 {dimension_numbers = #tpu.dot_dimension_numbers<[1], [0], [0], [1], [0, 0, 1, 1], [], []>} : vector<2x16xf32>, vector<16x64xf32>, vector<2x64xf32> -> vector<2x64xf32>
    %953 = arith.addf %949, %952 : vector<2x64xf32>
    %954 = vector.extract_strided_slice %953 {offsets = [0, 0], sizes = [2, 16], strides = [1, 1]} : vector<2x64xf32> to vector<2x16xf32>
    %955 = arith.negf %954 : vector<2x16xf32>
    %956 = math.exp %955 : vector<2x16xf32>
    %cst_472 = arith.constant 1.000000e+00 : f32
    %957 = vector.broadcast %cst_472 : f32 to vector<2x16xf32>
    %958 = arith.addf %957, %956 : vector<2x16xf32>
    %959 = arith.divf %957, %958 : vector<2x16xf32>
    %960 = vector.extract_strided_slice %953 {offsets = [0, 16], sizes = [2, 16], strides = [1, 1]} : vector<2x64xf32> to vector<2x16xf32>
    %961 = arith.negf %960 : vector<2x16xf32>
    %962 = math.exp %961 : vector<2x16xf32>
    %cst_473 = arith.constant 1.000000e+00 : f32
    %963 = vector.broadcast %cst_473 : f32 to vector<2x16xf32>
    %964 = arith.addf %963, %962 : vector<2x16xf32>
    %965 = arith.divf %963, %964 : vector<2x16xf32>
    %966 = vector.extract_strided_slice %953 {offsets = [0, 32], sizes = [2, 16], strides = [1, 1]} : vector<2x64xf32> to vector<2x16xf32>
    %967 = math.tanh %966 : vector<2x16xf32>
    %968 = vector.extract_strided_slice %953 {offsets = [0, 48], sizes = [2, 16], strides = [1, 1]} : vector<2x64xf32> to vector<2x16xf32>
    %969 = arith.negf %968 : vector<2x16xf32>
    %970 = math.exp %969 : vector<2x16xf32>
    %cst_474 = arith.constant 1.000000e+00 : f32
    %971 = vector.broadcast %cst_474 : f32 to vector<2x16xf32>
    %972 = arith.addf %971, %970 : vector<2x16xf32>
    %973 = arith.divf %971, %972 : vector<2x16xf32>
    %c0_475 = arith.constant 0 : index
    %c0_476 = arith.constant 0 : index
    %974 = vector.load %arg11[%c0_475, %c0_476] : memref<2x16xf32, #tpu.memory_space<vmem>>, vector<2x16xf32>
    %975 = arith.mulf %965, %974 : vector<2x16xf32>
    %976 = arith.mulf %959, %967 : vector<2x16xf32>
    %977 = arith.addf %975, %976 : vector<2x16xf32>
    %978 = math.tanh %977 : vector<2x16xf32>
    %979 = arith.mulf %973, %978 : vector<2x16xf32>
    %c0_477 = arith.constant 0 : index
    %c0_478 = arith.constant 0 : index
    %980 = vector.load %arg11[%c0_477, %c0_478] : memref<2x16xf32, #tpu.memory_space<vmem>>, vector<2x16xf32>
    tpu.vector_store %arg11[%c0_477, %c0_478], %977 {strides = array<i32>} : memref<2x16xf32, #tpu.memory_space<vmem>>, vector<2x16xf32>,
    %c0_479 = arith.constant 0 : index
    %c0_480 = arith.constant 0 : index
    %981 = vector.load %arg10[%c0_479, %c0_480] : memref<2x16xf32, #tpu.memory_space<vmem>>, vector<2x16xf32>
    tpu.vector_store %arg10[%c0_479, %c0_480], %979 {strides = array<i32>} : memref<2x16xf32, #tpu.memory_space<vmem>>, vector<2x16xf32>,
    %982 = arith.index_cast %947 : i32 to index
    %c0_481 = arith.constant 0 : index
    %983 = vector.load %arg7[%982, %c0_481] : memref<28x16xf32, #tpu.memory_space<vmem>>, vector<2x16xf32>
    tpu.vector_store %arg7[%982, %c0_481], %979 {strides = array<i32>} : memref<28x16xf32, #tpu.memory_space<vmem>>, vector<2x16xf32>,
    %c12_i32_482 = arith.constant 12 : i32
    %c2_i32_483 = arith.constant 2 : i32
    %984 = arith.muli %c12_i32_482, %c2_i32_483 : i32
    %985 = arith.index_cast %984 : i32 to index
    %c0_484 = arith.constant 0 : index
    %986 = vector.load %arg9[%985, %c0_484] : memref<28x64xf32, #tpu.memory_space<vmem>>, vector<2x64xf32>
    %c0_485 = arith.constant 0 : index
    %c0_486 = arith.constant 0 : index
    %987 = vector.load %arg10[%c0_485, %c0_486] : memref<2x16xf32, #tpu.memory_space<vmem>>, vector<2x16xf32>
    %c0_487 = arith.constant 0 : index
    %c0_488 = arith.constant 0 : index
    %988 = vector.load %arg5[%c0_487, %c0_488] : memref<16x64xf32, #tpu.memory_space<vmem>>, vector<16x64xf32>
    %cst_489 = arith.constant dense<0.000000e+00> : vector<2x64xf32>
    %989 = tpu.matmul %987, %988, %cst_489 {dimension_numbers = #tpu.dot_dimension_numbers<[1], [0], [0], [1], [0, 0, 1, 1], [], []>} : vector<2x16xf32>, vector<16x64xf32>, vector<2x64xf32> -> vector<2x64xf32>
    %990 = arith.addf %986, %989 : vector<2x64xf32>
    %991 = vector.extract_strided_slice %990 {offsets = [0, 0], sizes = [2, 16], strides = [1, 1]} : vector<2x64xf32> to vector<2x16xf32>
    %992 = arith.negf %991 : vector<2x16xf32>
    %993 = math.exp %992 : vector<2x16xf32>
    %cst_490 = arith.constant 1.000000e+00 : f32
    %994 = vector.broadcast %cst_490 : f32 to vector<2x16xf32>
    %995 = arith.addf %994, %993 : vector<2x16xf32>
    %996 = arith.divf %994, %995 : vector<2x16xf32>
    %997 = vector.extract_strided_slice %990 {offsets = [0, 16], sizes = [2, 16], strides = [1, 1]} : vector<2x64xf32> to vector<2x16xf32>
    %998 = arith.negf %997 : vector<2x16xf32>
    %999 = math.exp %998 : vector<2x16xf32>
    %cst_491 = arith.constant 1.000000e+00 : f32
    %1000 = vector.broadcast %cst_491 : f32 to vector<2x16xf32>
    %1001 = arith.addf %1000, %999 : vector<2x16xf32>
    %1002 = arith.divf %1000, %1001 : vector<2x16xf32>
    %1003 = vector.extract_strided_slice %990 {offsets = [0, 32], sizes = [2, 16], strides = [1, 1]} : vector<2x64xf32> to vector<2x16xf32>
    %1004 = math.tanh %1003 : vector<2x16xf32>
    %1005 = vector.extract_strided_slice %990 {offsets = [0, 48], sizes = [2, 16], strides = [1, 1]} : vector<2x64xf32> to vector<2x16xf32>
    %1006 = arith.negf %1005 : vector<2x16xf32>
    %1007 = math.exp %1006 : vector<2x16xf32>
    %cst_492 = arith.constant 1.000000e+00 : f32
    %1008 = vector.broadcast %cst_492 : f32 to vector<2x16xf32>
    %1009 = arith.addf %1008, %1007 : vector<2x16xf32>
    %1010 = arith.divf %1008, %1009 : vector<2x16xf32>
    %c0_493 = arith.constant 0 : index
    %c0_494 = arith.constant 0 : index
    %1011 = vector.load %arg11[%c0_493, %c0_494] : memref<2x16xf32, #tpu.memory_space<vmem>>, vector<2x16xf32>
    %1012 = arith.mulf %1002, %1011 : vector<2x16xf32>
    %1013 = arith.mulf %996, %1004 : vector<2x16xf32>
    %1014 = arith.addf %1012, %1013 : vector<2x16xf32>
    %1015 = math.tanh %1014 : vector<2x16xf32>
    %1016 = arith.mulf %1010, %1015 : vector<2x16xf32>
    %c0_495 = arith.constant 0 : index
    %c0_496 = arith.constant 0 : index
    %1017 = vector.load %arg11[%c0_495, %c0_496] : memref<2x16xf32, #tpu.memory_space<vmem>>, vector<2x16xf32>
    tpu.vector_store %arg11[%c0_495, %c0_496], %1014 {strides = array<i32>} : memref<2x16xf32, #tpu.memory_space<vmem>>, vector<2x16xf32>,
    %c0_497 = arith.constant 0 : index
    %c0_498 = arith.constant 0 : index
    %1018 = vector.load %arg10[%c0_497, %c0_498] : memref<2x16xf32, #tpu.memory_space<vmem>>, vector<2x16xf32>
    tpu.vector_store %arg10[%c0_497, %c0_498], %1016 {strides = array<i32>} : memref<2x16xf32, #tpu.memory_space<vmem>>, vector<2x16xf32>,
    %1019 = arith.index_cast %984 : i32 to index
    %c0_499 = arith.constant 0 : index
    %1020 = vector.load %arg7[%1019, %c0_499] : memref<28x16xf32, #tpu.memory_space<vmem>>, vector<2x16xf32>
    tpu.vector_store %arg7[%1019, %c0_499], %1016 {strides = array<i32>} : memref<28x16xf32, #tpu.memory_space<vmem>>, vector<2x16xf32>,
    %c13_i32_500 = arith.constant 13 : i32
    %c2_i32_501 = arith.constant 2 : i32
    %1021 = arith.muli %c13_i32_500, %c2_i32_501 : i32
    %1022 = arith.index_cast %1021 : i32 to index
    %c0_502 = arith.constant 0 : index
    %1023 = vector.load %arg9[%1022, %c0_502] : memref<28x64xf32, #tpu.memory_space<vmem>>, vector<2x64xf32>
    %c0_503 = arith.constant 0 : index
    %c0_504 = arith.constant 0 : index
    %1024 = vector.load %arg10[%c0_503, %c0_504] : memref<2x16xf32, #tpu.memory_space<vmem>>, vector<2x16xf32>
    %c0_505 = arith.constant 0 : index
    %c0_506 = arith.constant 0 : index
    %1025 = vector.load %arg5[%c0_505, %c0_506] : memref<16x64xf32, #tpu.memory_space<vmem>>, vector<16x64xf32>
    %cst_507 = arith.constant dense<0.000000e+00> : vector<2x64xf32>
    %1026 = tpu.matmul %1024, %1025, %cst_507 {dimension_numbers = #tpu.dot_dimension_numbers<[1], [0], [0], [1], [0, 0, 1, 1], [], []>} : vector<2x16xf32>, vector<16x64xf32>, vector<2x64xf32> -> vector<2x64xf32>
    %1027 = arith.addf %1023, %1026 : vector<2x64xf32>
    %1028 = vector.extract_strided_slice %1027 {offsets = [0, 0], sizes = [2, 16], strides = [1, 1]} : vector<2x64xf32> to vector<2x16xf32>
    %1029 = arith.negf %1028 : vector<2x16xf32>
    %1030 = math.exp %1029 : vector<2x16xf32>
    %cst_508 = arith.constant 1.000000e+00 : f32
    %1031 = vector.broadcast %cst_508 : f32 to vector<2x16xf32>
    %1032 = arith.addf %1031, %1030 : vector<2x16xf32>
    %1033 = arith.divf %1031, %1032 : vector<2x16xf32>
    %1034 = vector.extract_strided_slice %1027 {offsets = [0, 16], sizes = [2, 16], strides = [1, 1]} : vector<2x64xf32> to vector<2x16xf32>
    %1035 = arith.negf %1034 : vector<2x16xf32>
    %1036 = math.exp %1035 : vector<2x16xf32>
    %cst_509 = arith.constant 1.000000e+00 : f32
    %1037 = vector.broadcast %cst_509 : f32 to vector<2x16xf32>
    %1038 = arith.addf %1037, %1036 : vector<2x16xf32>
    %1039 = arith.divf %1037, %1038 : vector<2x16xf32>
    %1040 = vector.extract_strided_slice %1027 {offsets = [0, 32], sizes = [2, 16], strides = [1, 1]} : vector<2x64xf32> to vector<2x16xf32>
    %1041 = math.tanh %1040 : vector<2x16xf32>
    %1042 = vector.extract_strided_slice %1027 {offsets = [0, 48], sizes = [2, 16], strides = [1, 1]} : vector<2x64xf32> to vector<2x16xf32>
    %1043 = arith.negf %1042 : vector<2x16xf32>
    %1044 = math.exp %1043 : vector<2x16xf32>
    %cst_510 = arith.constant 1.000000e+00 : f32
    %1045 = vector.broadcast %cst_510 : f32 to vector<2x16xf32>
    %1046 = arith.addf %1045, %1044 : vector<2x16xf32>
    %1047 = arith.divf %1045, %1046 : vector<2x16xf32>
    %c0_511 = arith.constant 0 : index
    %c0_512 = arith.constant 0 : index
    %1048 = vector.load %arg11[%c0_511, %c0_512] : memref<2x16xf32, #tpu.memory_space<vmem>>, vector<2x16xf32>
    %1049 = arith.mulf %1039, %1048 : vector<2x16xf32>
    %1050 = arith.mulf %1033, %1041 : vector<2x16xf32>
    %1051 = arith.addf %1049, %1050 : vector<2x16xf32>
    %1052 = math.tanh %1051 : vector<2x16xf32>
    %1053 = arith.mulf %1047, %1052 : vector<2x16xf32>
    %c0_513 = arith.constant 0 : index
    %c0_514 = arith.constant 0 : index
    %1054 = vector.load %arg11[%c0_513, %c0_514] : memref<2x16xf32, #tpu.memory_space<vmem>>, vector<2x16xf32>
    tpu.vector_store %arg11[%c0_513, %c0_514], %1051 {strides = array<i32>} : memref<2x16xf32, #tpu.memory_space<vmem>>, vector<2x16xf32>,
    %c0_515 = arith.constant 0 : index
    %c0_516 = arith.constant 0 : index
    %1055 = vector.load %arg10[%c0_515, %c0_516] : memref<2x16xf32, #tpu.memory_space<vmem>>, vector<2x16xf32>
    tpu.vector_store %arg10[%c0_515, %c0_516], %1053 {strides = array<i32>} : memref<2x16xf32, #tpu.memory_space<vmem>>, vector<2x16xf32>,
    %1056 = arith.index_cast %1021 : i32 to index
    %c0_517 = arith.constant 0 : index
    %1057 = vector.load %arg7[%1056, %c0_517] : memref<28x16xf32, #tpu.memory_space<vmem>>, vector<2x16xf32>
    tpu.vector_store %arg7[%1056, %c0_517], %1053 {strides = array<i32>} : memref<28x16xf32, #tpu.memory_space<vmem>>, vector<2x16xf32>,
    %c14_i32_518 = arith.constant 14 : i32
    return
  }
}

module attributes {stable_mosaic.version = 11 : i64} {
  func.func @_conv_bn_relu_kernel(%arg0: memref<120x384xbf16, #tpu.memory_space<vmem>>, %arg1: memref<384x128xbf16, #tpu.memory_space<vmem>>, %arg2: memref<120x128xf32, #tpu.memory_space<vmem>>) attributes {dimension_semantics = [], scalar_prefetch = 0 : i64, scratch_operands = 0 : i64, tpu.core_type = #tpu.core_type<tc>} {
    %c0 = arith.constant 0 : index
    %c0_0 = arith.constant 0 : index
    %0 = vector.load %arg0[%c0, %c0_0] : memref<120x384xbf16, #tpu.memory_space<vmem>>, vector<120x384xbf16>
    %c0_1 = arith.constant 0 : index
    %c0_2 = arith.constant 0 : index
    %1 = vector.load %arg1[%c0_1, %c0_2] : memref<384x128xbf16, #tpu.memory_space<vmem>>, vector<384x128xbf16>
    %cst = arith.constant dense<0.000000e+00> : vector<120x128xf32>
    %2 = tpu.matmul %0, %1, %cst {dimension_numbers = #tpu.dot_dimension_numbers<[1], [0], [0], [1], [0, 0, 1, 1], [], []>} : vector<120x384xbf16>, vector<384x128xbf16>, vector<120x128xf32> -> vector<120x128xf32>
    %cst_3 = arith.constant dense<0.000000e+00> : vector<128xf32>
    %3 = vector.multi_reduction <add>, %2, %cst_3 [0] : vector<120x128xf32> to vector<128xf32>
    %4 = vector.shape_cast %3 : vector<128xf32> to vector<1x128xf32>
    %5 = arith.mulf %2, %2 : vector<120x128xf32>
    %cst_4 = arith.constant dense<0.000000e+00> : vector<128xf32>
    %6 = vector.multi_reduction <add>, %5, %cst_4 [0] : vector<120x128xf32> to vector<128xf32>
    %7 = vector.shape_cast %6 : vector<128xf32> to vector<1x128xf32>
    %cst_5 = arith.constant 1.200000e+02 : f32
    %8 = vector.broadcast %cst_5 : f32 to vector<1x128xf32>
    %9 = arith.divf %4, %8 : vector<1x128xf32>
    %cst_6 = arith.constant 1.200000e+02 : f32
    %10 = vector.broadcast %cst_6 : f32 to vector<1x128xf32>
    %11 = arith.divf %7, %10 : vector<1x128xf32>
    %12 = arith.mulf %9, %9 : vector<1x128xf32>
    %13 = arith.subf %11, %12 : vector<1x128xf32>
    %cst_7 = arith.constant 0.000000e+00 : f32
    %14 = vector.broadcast %cst_7 : f32 to vector<1x128xf32>
    %15 = arith.maximumf %13, %14 : vector<1x128xf32>
    %cst_8 = arith.constant 9.99999974E-6 : f32
    %16 = vector.broadcast %cst_8 : f32 to vector<1x128xf32>
    %17 = arith.addf %15, %16 : vector<1x128xf32>
    %18 = math.rsqrt %17 : vector<1x128xf32>
    %19 = vector.broadcast %9 : vector<1x128xf32> to vector<120x128xf32>
    %20 = arith.subf %2, %19 : vector<120x128xf32>
    %21 = vector.broadcast %18 : vector<1x128xf32> to vector<120x128xf32>
    %22 = arith.mulf %20, %21 : vector<120x128xf32>
    %cst_9 = arith.constant 0.000000e+00 : f32
    %23 = vector.broadcast %cst_9 : f32 to vector<120x128xf32>
    %24 = arith.maximumf %22, %23 : vector<120x128xf32>
    %c0_10 = arith.constant 0 : index
    %c0_11 = arith.constant 0 : index
    %25 = vector.load %arg2[%c0_10, %c0_11] : memref<120x128xf32, #tpu.memory_space<vmem>>, vector<120x128xf32>
    tpu.vector_store %arg2[%c0_10, %c0_11], %24 {strides = array<i32>} : memref<120x128xf32, #tpu.memory_space<vmem>>, vector<120x128xf32>,
    return
  }
}

module attributes {stable_mosaic.version = 11 : i64} {
  func.func @_conv_bn_relu_kernel(%arg0: memref<280x384xbf16, #tpu.memory_space<vmem>>, %arg1: memref<384x128xbf16, #tpu.memory_space<vmem>>, %arg2: memref<280x128xf32, #tpu.memory_space<vmem>>) attributes {dimension_semantics = [], scalar_prefetch = 0 : i64, scratch_operands = 0 : i64, tpu.core_type = #tpu.core_type<tc>} {
    %c0 = arith.constant 0 : index
    %c0_0 = arith.constant 0 : index
    %0 = vector.load %arg0[%c0, %c0_0] : memref<280x384xbf16, #tpu.memory_space<vmem>>, vector<280x384xbf16>
    %c0_1 = arith.constant 0 : index
    %c0_2 = arith.constant 0 : index
    %1 = vector.load %arg1[%c0_1, %c0_2] : memref<384x128xbf16, #tpu.memory_space<vmem>>, vector<384x128xbf16>
    %cst = arith.constant dense<0.000000e+00> : vector<280x128xf32>
    %2 = tpu.matmul %0, %1, %cst {dimension_numbers = #tpu.dot_dimension_numbers<[1], [0], [0], [1], [0, 0, 1, 1], [], []>} : vector<280x384xbf16>, vector<384x128xbf16>, vector<280x128xf32> -> vector<280x128xf32>
    %cst_3 = arith.constant dense<0.000000e+00> : vector<128xf32>
    %3 = vector.multi_reduction <add>, %2, %cst_3 [0] : vector<280x128xf32> to vector<128xf32>
    %4 = vector.shape_cast %3 : vector<128xf32> to vector<1x128xf32>
    %5 = arith.mulf %2, %2 : vector<280x128xf32>
    %cst_4 = arith.constant dense<0.000000e+00> : vector<128xf32>
    %6 = vector.multi_reduction <add>, %5, %cst_4 [0] : vector<280x128xf32> to vector<128xf32>
    %7 = vector.shape_cast %6 : vector<128xf32> to vector<1x128xf32>
    %cst_5 = arith.constant 2.800000e+02 : f32
    %8 = vector.broadcast %cst_5 : f32 to vector<1x128xf32>
    %9 = arith.divf %4, %8 : vector<1x128xf32>
    %cst_6 = arith.constant 2.800000e+02 : f32
    %10 = vector.broadcast %cst_6 : f32 to vector<1x128xf32>
    %11 = arith.divf %7, %10 : vector<1x128xf32>
    %12 = arith.mulf %9, %9 : vector<1x128xf32>
    %13 = arith.subf %11, %12 : vector<1x128xf32>
    %cst_7 = arith.constant 0.000000e+00 : f32
    %14 = vector.broadcast %cst_7 : f32 to vector<1x128xf32>
    %15 = arith.maximumf %13, %14 : vector<1x128xf32>
    %cst_8 = arith.constant 9.99999974E-6 : f32
    %16 = vector.broadcast %cst_8 : f32 to vector<1x128xf32>
    %17 = arith.addf %15, %16 : vector<1x128xf32>
    %18 = math.rsqrt %17 : vector<1x128xf32>
    %19 = vector.broadcast %9 : vector<1x128xf32> to vector<280x128xf32>
    %20 = arith.subf %2, %19 : vector<280x128xf32>
    %21 = vector.broadcast %18 : vector<1x128xf32> to vector<280x128xf32>
    %22 = arith.mulf %20, %21 : vector<280x128xf32>
    %cst_9 = arith.constant 0.000000e+00 : f32
    %23 = vector.broadcast %cst_9 : f32 to vector<280x128xf32>
    %24 = arith.maximumf %22, %23 : vector<280x128xf32>
    %c0_10 = arith.constant 0 : index
    %c0_11 = arith.constant 0 : index
    %25 = vector.load %arg2[%c0_10, %c0_11] : memref<280x128xf32, #tpu.memory_space<vmem>>, vector<280x128xf32>
    tpu.vector_store %arg2[%c0_10, %c0_11], %24 {strides = array<i32>} : memref<280x128xf32, #tpu.memory_space<vmem>>, vector<280x128xf32>,
    return
  }
}

module attributes {stable_mosaic.version = 11 : i64} {
  func.func @_conv_bn_relu_kernel(%arg0: memref<512x256xbf16, #tpu.memory_space<vmem>>, %arg1: memref<256x128xbf16, #tpu.memory_space<vmem>>, %arg2: memref<512x128xf32, #tpu.memory_space<vmem>>) attributes {dimension_semantics = [], scalar_prefetch = 0 : i64, scratch_operands = 0 : i64, tpu.core_type = #tpu.core_type<tc>} {
    %c0 = arith.constant 0 : index
    %c0_0 = arith.constant 0 : index
    %0 = vector.load %arg0[%c0, %c0_0] : memref<512x256xbf16, #tpu.memory_space<vmem>>, vector<512x256xbf16>
    %c0_1 = arith.constant 0 : index
    %c0_2 = arith.constant 0 : index
    %1 = vector.load %arg1[%c0_1, %c0_2] : memref<256x128xbf16, #tpu.memory_space<vmem>>, vector<256x128xbf16>
    %cst = arith.constant dense<0.000000e+00> : vector<512x128xf32>
    %2 = tpu.matmul %0, %1, %cst {dimension_numbers = #tpu.dot_dimension_numbers<[1], [0], [0], [1], [0, 0, 1, 1], [], []>} : vector<512x256xbf16>, vector<256x128xbf16>, vector<512x128xf32> -> vector<512x128xf32>
    %cst_3 = arith.constant dense<0.000000e+00> : vector<128xf32>
    %3 = vector.multi_reduction <add>, %2, %cst_3 [0] : vector<512x128xf32> to vector<128xf32>
    %4 = vector.shape_cast %3 : vector<128xf32> to vector<1x128xf32>
    %5 = arith.mulf %2, %2 : vector<512x128xf32>
    %cst_4 = arith.constant dense<0.000000e+00> : vector<128xf32>
    %6 = vector.multi_reduction <add>, %5, %cst_4 [0] : vector<512x128xf32> to vector<128xf32>
    %7 = vector.shape_cast %6 : vector<128xf32> to vector<1x128xf32>
    %cst_5 = arith.constant 5.120000e+02 : f32
    %8 = vector.broadcast %cst_5 : f32 to vector<1x128xf32>
    %9 = arith.divf %4, %8 : vector<1x128xf32>
    %cst_6 = arith.constant 5.120000e+02 : f32
    %10 = vector.broadcast %cst_6 : f32 to vector<1x128xf32>
    %11 = arith.divf %7, %10 : vector<1x128xf32>
    %12 = arith.mulf %9, %9 : vector<1x128xf32>
    %13 = arith.subf %11, %12 : vector<1x128xf32>
    %cst_7 = arith.constant 0.000000e+00 : f32
    %14 = vector.broadcast %cst_7 : f32 to vector<1x128xf32>
    %15 = arith.maximumf %13, %14 : vector<1x128xf32>
    %cst_8 = arith.constant 9.99999974E-6 : f32
    %16 = vector.broadcast %cst_8 : f32 to vector<1x128xf32>
    %17 = arith.addf %15, %16 : vector<1x128xf32>
    %18 = math.rsqrt %17 : vector<1x128xf32>
    %19 = vector.broadcast %9 : vector<1x128xf32> to vector<512x128xf32>
    %20 = arith.subf %2, %19 : vector<512x128xf32>
    %21 = vector.broadcast %18 : vector<1x128xf32> to vector<512x128xf32>
    %22 = arith.mulf %20, %21 : vector<512x128xf32>
    %cst_9 = arith.constant 0.000000e+00 : f32
    %23 = vector.broadcast %cst_9 : f32 to vector<512x128xf32>
    %24 = arith.maximumf %22, %23 : vector<512x128xf32>
    %c0_10 = arith.constant 0 : index
    %c0_11 = arith.constant 0 : index
    %25 = vector.load %arg2[%c0_10, %c0_11] : memref<512x128xf32, #tpu.memory_space<vmem>>, vector<512x128xf32>
    tpu.vector_store %arg2[%c0_10, %c0_11], %24 {strides = array<i32>} : memref<512x128xf32, #tpu.memory_space<vmem>>, vector<512x128xf32>,
    return
  }
}

</mosaic_0001>

<bundles_post_ra>
// kernel: crn_forward.7
= control target key start
LH: loop header
LB: loop body
LE: loop exit
PB: predicated region body
PF: predicated region fallthrough
CT: control target
= control target key end

     0   :  { %s1309_s1 = inlined_call_operand.vmem [shape: bf16[128,128], index: 1, kind: input, shape index: {}]   ;;  %s1310_s0 = inlined_call_operand.vmem [shape: bf16[280,128], index: 0, kind: input, shape index: {}]   ;;  %s1311_s2 = inlined_call_operand.vmem [shape: f32[280,128], index: 2, kind: output, shape index: {}]  }
   0x1   :  { %v780_v0 = vld [vmem:[%s1309_s1] sm:$0xff]   ;;  %v781_v1 = vld [vmem:[%s1309_s1 + $0x8] sm:$0xff]   ;;  %v782_v2 = vld [vmem:[%s1309_s1 + $0x10] sm:$0xff]  }
   0x2   :  { %712 = vmatprep.subr.bf16.mxu0 %v780_v0  ;;  %764 = vmatprep.subr.bf16.mxu1 %v780_v0  ;;  %v783_v3 = vld [vmem:[%s1309_s1 + $0x18] sm:$0xff]   ;;  %v788_v4 = vld [vmem:[%s1310_s0] sm:$0xff]   ;;  %v785_v6 = vld [vmem:[%s1309_s1 + $0x28] sm:$0xff]  }
   0x3   :  { %713 = vmatpush3.bf16.msra.mxu0 %v780_v0  ;;  %772 = vmatpush3.bf16.msra.mxu1 %v780_v0  ;;  %v784_v5 = vld [vmem:[%s1309_s1 + $0x20] sm:$0xff]   ;;  %v798_v7 = vld [vmem:[%s1310_s0 + $0x50] sm:$0xff]   ;;  %v787_v9 = vld [vmem:[%s1309_s1 + $0x38] sm:$0xff]  }
   0x4   :  { %714 = vmatprep.subr.bf16.mxu0 %v781_v1  ;;  %765 = vmatprep.subr.bf16.mxu1 %v781_v1  ;;  %v786_v8 = vld [vmem:[%s1309_s1 + $0x30] sm:$0xff]   ;;  %v789_v10 = vld [vmem:[%s1310_s0 + $0x8] sm:$0xff]   ;;  %v799_v11 = vld [vmem:[%s1310_s0 + $0x58] sm:$0xff]  }
   0x5   :  { %728 = vmatprep.mubr.bf16.mxu0 %v788_v4  ;;  %748 = vmatprep.mubr.bf16.mxu1 %v798_v7  ;;  %v790_v12 = vld [vmem:[%s1310_s0 + $0x10] sm:$0xff]   ;;  %v800_v13 = vld [vmem:[%s1310_s0 + $0x60] sm:$0xff]   ;;  %v791_v14 = vld [vmem:[%s1310_s0 + $0x18] sm:$0xff]  }
   0x6   :  { %v801_v15 = vld [vmem:[%s1310_s0 + $0x68] sm:$0xff]   ;;  %v792_v16 = vld [vmem:[%s1310_s0 + $0x20] sm:$0xff]   ;;  %v802_v17 = vld [vmem:[%s1310_s0 + $0x70] sm:$0xff]  }
   0x7   :  { %715 = vmatpush3.bf16.msra.mxu0 %v781_v1  ;;  %773 = vmatpush3.bf16.msra.mxu1 %v781_v1  ;;  %v793_v18 = vld [vmem:[%s1310_s0 + $0x28] sm:$0xff]   ;;  %v803_v19 = vld [vmem:[%s1310_s0 + $0x78] sm:$0xff]   ;;  %v794_v20 = vld [vmem:[%s1310_s0 + $0x30] sm:$0xff]  }
   0x8   :  { %716 = vmatprep.subr.bf16.mxu0 %v782_v2  ;;  %766 = vmatprep.subr.bf16.mxu1 %v782_v2  ;;  %v804_v21 = vld [vmem:[%s1310_s0 + $0x80] sm:$0xff]   ;;  %v795_v22 = vld [vmem:[%s1310_s0 + $0x38] sm:$0xff]   ;;  %v805_v23 = vld [vmem:[%s1310_s0 + $0x88] ss:$0 sps:$4 sm:$0xff]  }
   0x9   :  { %v796_v24 = vld [vmem:[%s1310_s0 + $0x40] sm:$0xff]   ;;  %v797_v25 = vld [vmem:[%s1310_s0 + $0x48] sm:$0xff]  }
   0xb   :  { %717 = vmatpush3.bf16.msra.mxu0 %v782_v2  ;;  %774 = vmatpush3.bf16.msra.mxu1 %v782_v2 }
   0xc   :  { %718 = vmatprep.subr.bf16.mxu0 %v783_v3  ;;  %767 = vmatprep.subr.bf16.mxu1 %v783_v3 }
   0xf   :  { %719 = vmatpush3.bf16.msra.mxu0 %v783_v3  ;;  %775 = vmatpush3.bf16.msra.mxu1 %v783_v3 }
  0x10   :  { %720 = vmatprep.subr.bf16.mxu0 %v784_v5  ;;  %768 = vmatprep.subr.bf16.mxu1 %v784_v5 }
  0x13   :  { %721 = vmatpush3.bf16.msra.mxu0 %v784_v5  ;;  %776 = vmatpush3.bf16.msra.mxu1 %v784_v5 }
  0x14   :  { %722 = vmatprep.subr.bf16.mxu0 %v785_v6  ;;  %769 = vmatprep.subr.bf16.mxu1 %v785_v6 }
  0x17   :  { %723 = vmatpush3.bf16.msra.mxu0 %v785_v6  ;;  %777 = vmatpush3.bf16.msra.mxu1 %v785_v6 }
  0x18   :  { %724 = vmatprep.subr.bf16.mxu0 %v786_v8  ;;  %770 = vmatprep.subr.bf16.mxu1 %v786_v8 }
  0x1b   :  { %725 = vmatpush3.bf16.msra.mxu0 %v786_v8  ;;  %778 = vmatpush3.bf16.msra.mxu1 %v786_v8 }
  0x1c   :  { %726 = vmatprep.subr.bf16.mxu0 %v787_v9  ;;  %771 = vmatprep.subr.bf16.mxu1 %v787_v9 }
  0x1f   :  { %727 = vmatpush3.bf16.msra.mxu0 %v787_v9  ;;  %779 = vmatpush3.bf16.msra.mxu1 %v787_v9 }
  0x22   :  { %729 = vmatmul.mubr.bf16.vlgmr.msra.gmra.mrb[0].mxu0 %v789_v10  ;;  %749 = vmatmul.mubr.bf16.vlgmr.msra.gmra.mrb[0].mxu1 %v799_v11 }
  0x23   :  { %732 = vmatprep.mubr.bf16.mxu0 %v790_v12  ;;  %752 = vmatprep.mubr.bf16.mxu1 %v800_v13 }
  0x2a   :  { %733 = vmatmul.mubr.bf16.gmra.mrb[4].mxu0 %v791_v14  ;;  %753 = vmatmul.mubr.bf16.gmra.mrb[4].mxu1 %v801_v15 }
  0x2b   :  { %736 = vmatprep.mubr.bf16.mxu0 %v792_v16  ;;  %756 = vmatprep.mubr.bf16.mxu1 %v802_v17 }
  0x32   :  { %737 = vmatmul.mubr.bf16.gmra.mrb[8].mxu0 %v793_v18  ;;  %757 = vmatmul.mubr.bf16.gmra.mrb[8].mxu1 %v803_v19 }
  0x33   :  { %740 = vmatprep.mubr.bf16.mxu0 %v794_v20  ;;  %760 = vmatprep.mubr.bf16.mxu1 %v804_v21 }
  0x3a   :  { %741 = vmatmul.mubr.bf16.gmra.mrb[12].mxu0 %v795_v22  ;;  %761 = vmatmul.mubr.bf16.gmra.mrb[12].mxu1 %v805_v23 }
  0x3b   :  { %744 = vmatprep.mubr.bf16.mxu0 %v796_v24 }
  0x42   :  { %745 = vmatmul.mubr.bf16.gmra.mrb[16].mxu0 %v797_v25 }
  0xf5   :  { %v901_v26 = vpop.f32.mrb[0].mxu0  ;;  %v903_v27 = vpop.f32.mrb[0].mxu1 }
  0xf6   :  { %v905_v28 = vpop.f32.mrb[1].mxu0  ;;  %v907_v29 = vpop.f32.mrb[1].mxu1  ;;  %v435_v37 = vmul.f32 %v901_v26, %v901_v26 }
  0xf7   :  { %v909_v30 = vpop.f32.mrb[2].mxu0  ;;  %v911_v31 = vpop.f32.mrb[2].mxu1  ;;  %v433_v34 = vmul.f32 %v905_v28, %v905_v28 }
  0xf8   :  { %v913_v32 = vpop.f32.mrb[3].mxu0  ;;  %v915_v33 = vpop.f32.mrb[3].mxu1  ;;  %v436_v40 = vmul.f32 %v909_v30, %v909_v30 }
  0xf9   :  { %v393_v35 = vadd.f32 %v913_v32, %v905_v28  ;;  %v434_v36 = vmul.f32 %v913_v32, %v913_v32 }
  0xfb   :  { %v394_v38 = vadd.f32 %v901_v26, %v393_v35  ;;  %v468_v39 = vadd.f32 %v434_v36, %v433_v34 }
  0xfd   :  { %v469_v41 = vadd.f32 %v468_v39, %v435_v37  ;;  %v928_v42 = vpop.f32.mrb[4].mxu0  ;;  %v395_v43 = vadd.f32 %v909_v30, %v394_v38  ;;  %v931_v44 = vpop.f32.mrb[4].mxu1 }
  0xfe   :  { %v933_v45 = vpop.f32.mrb[5].mxu0  ;;  %v935_v46 = vpop.f32.mrb[5].mxu1  ;;  %v439_v57 = vmul.f32 %v928_v42, %v928_v42 }
  0xff   :  { %v396_v47 = vadd.f32 %v395_v43, %v933_v45  ;;  %v437_v48 = vmul.f32 %v933_v45, %v933_v45  ;;  %v470_v49 = vadd.f32 %v469_v41, %v436_v40  ;;  %v940_v50 = vpop.f32.mrb[6].mxu0  ;;  %v942_v51 = vpop.f32.mrb[6].mxu1 }
 0x100   :  { %v944_v52 = vpop.f32.mrb[7].mxu0  ;;  %v946_v53 = vpop.f32.mrb[7].mxu1  ;;  %v440_v60 = vmul.f32 %v940_v50, %v940_v50 }
 0x101   :  { %v471_v54 = vadd.f32 %v470_v49, %v437_v48  ;;  %v397_v55 = vadd.f32 %v396_v47, %v944_v52  ;;  %v438_v56 = vmul.f32 %v944_v52, %v944_v52 }
 0x103   :  { %v398_v58 = vadd.f32 %v928_v42, %v397_v55  ;;  %v472_v59 = vadd.f32 %v471_v54, %v438_v56 }
 0x105   :  { %v473_v61 = vadd.f32 %v472_v59, %v439_v57  ;;  %v956_v62 = vpop.f32.mrb[8].mxu0  ;;  %v399_v63 = vadd.f32 %v940_v50, %v398_v58  ;;  %v959_v0 = vpop.f32.mrb[8].mxu1 }
 0x106   :  { %v961_v1 = vpop.f32.mrb[9].mxu0  ;;  %v963_v2 = vpop.f32.mrb[9].mxu1  ;;  %v443_v13 = vmul.f32 %v956_v62, %v956_v62 }
 0x107   :  { %v400_v3 = vadd.f32 %v399_v63, %v961_v1  ;;  %v441_v4 = vmul.f32 %v961_v1, %v961_v1  ;;  %v474_v5 = vadd.f32 %v473_v61, %v440_v60  ;;  %v968_v6 = vpop.f32.mrb[10].mxu0  ;;  %v970_v7 = vpop.f32.mrb[10].mxu1 }
 0x108   :  { %v972_v8 = vpop.f32.mrb[11].mxu0  ;;  %v974_v9 = vpop.f32.mrb[11].mxu1  ;;  %v444_v16 = vmul.f32 %v968_v6, %v968_v6 }
 0x109   :  { %v475_v10 = vadd.f32 %v474_v5, %v441_v4  ;;  %v401_v11 = vadd.f32 %v400_v3, %v972_v8  ;;  %v442_v12 = vmul.f32 %v972_v8, %v972_v8 }
 0x10b   :  { %v402_v14 = vadd.f32 %v956_v62, %v401_v11  ;;  %v476_v15 = vadd.f32 %v475_v10, %v442_v12 }
 0x10d   :  { %v477_v17 = vadd.f32 %v476_v15, %v443_v13  ;;  %v984_v18 = vpop.f32.mrb[12].mxu0  ;;  %v403_v19 = vadd.f32 %v968_v6, %v402_v14  ;;  %v987_v20 = vpop.f32.mrb[12].mxu1  ;;  %v453_v15 = vmul.f32 %v907_v29, %v907_v29 }
 0x10e   :  { %v989_v21 = vpop.f32.mrb[13].mxu0  ;;  %v991_v22 = vpop.f32.mrb[13].mxu1  ;;  %v447_v41 = vmul.f32 %v984_v18, %v984_v18 }
 0x10f   :  { %v404_v23 = vadd.f32 %v403_v19, %v989_v21  ;;  %v445_v24 = vmul.f32 %v989_v21, %v989_v21  ;;  %v478_v25 = vadd.f32 %v477_v17, %v444_v16  ;;  %v996_v34 = vpop.f32.mrb[14].mxu0  ;;  %v763_v35 = vpop.f32.mrb[14].mxu1 }
 0x110   :  { %v998_v36 = vpop.f32.mrb[15].mxu0  ;;  %v1000_v37 = vpop.f32.mrb[15].mxu1  ;;  %v448_v48 = vmul.f32 %v996_v34, %v996_v34 }
 0x111   :  { %v479_v38 = vadd.f32 %v478_v25, %v445_v24  ;;  %v405_v39 = vadd.f32 %v404_v23, %v998_v36  ;;  %v446_v40 = vmul.f32 %v998_v36, %v998_v36  ;;  %v454_v24 = vmul.f32 %v915_v33, %v915_v33 }
 0x112   :  { %v455_v25 = vmul.f32 %v903_v27, %v903_v27 }
 0x113   :  { %v406_v43 = vadd.f32 %v984_v18, %v405_v39  ;;  %v480_v47 = vadd.f32 %v479_v38, %v446_v40  ;;  %v456_v39 = vmul.f32 %v911_v31, %v911_v31 }
 0x115   :  { %v481_v49 = vadd.f32 %v480_v47, %v447_v41  ;;  %v1010_v54 = vpop.f32.mrb[16].mxu0  ;;  %v407_v55 = vadd.f32 %v996_v34, %v406_v43  ;;  %v457_v43 = vmul.f32 %v935_v46, %v935_v46 }
 0x116   :  { %v1013_v56 = vpop.f32.mrb[17].mxu0  ;;  %v451_v5 = vmul.f32 %v1010_v54, %v1010_v54 }
 0x117   :  { %v408_v57 = vadd.f32 %v407_v55, %v1013_v56  ;;  %v449_v58 = vmul.f32 %v1013_v56, %v1013_v56  ;;  %v482_v59 = vadd.f32 %v481_v49, %v448_v48  ;;  %v1018_v60 = vpop.f32.mrb[18].mxu0 }
 0x118   :  { %v1020_v61 = vpop.f32.mrb[19].mxu0  ;;  %v452_v12 = vmul.f32 %v1018_v60, %v1018_v60 }
 0x119   :  { %v483_v63 = vadd.f32 %v482_v59, %v449_v58  ;;  %v409_v3 = vadd.f32 %v408_v57, %v1020_v61  ;;  %v450_v4 = vmul.f32 %v1020_v61, %v1020_v61  ;;  %v458_v57 = vmul.f32 %v946_v53, %v946_v53 }
 0x11a   :  { %v459_v58 = vmul.f32 %v931_v44, %v931_v44 }
 0x11b   :  { %v410_v10 = vadd.f32 %v1010_v54, %v409_v3  ;;  %v484_v11 = vadd.f32 %v483_v63, %v450_v4  ;;  %v460_v3 = vmul.f32 %v942_v51, %v942_v51 }
 0x11d   :  { %v485_v13 = vadd.f32 %v484_v11, %v451_v5  ;;  %v411_v14 = vadd.f32 %v1018_v60, %v410_v10  ;;  %v461_v10 = vmul.f32 %v963_v2, %v963_v2 }
 0x11f   :  { %v412_v16 = vadd.f32 %v411_v14, %v907_v29  ;;  %v486_v17 = vadd.f32 %v485_v13, %v452_v12 }
 0x121   :  { %v487_v19 = vadd.f32 %v486_v17, %v453_v15  ;;  %v413_v23 = vadd.f32 %v412_v16, %v915_v33  ;;  %v462_v15 = vmul.f32 %v974_v9, %v974_v9  ;;  %v463_v16 = vmul.f32 %v959_v0, %v959_v0 }
 0x123   :  { %v414_v35 = vadd.f32 %v903_v27, %v413_v23  ;;  %v488_v38 = vadd.f32 %v487_v19, %v454_v24  ;;  %v464_v23 = vmul.f32 %v970_v7, %v970_v7 }
 0x125   :  { %v489_v40 = vadd.f32 %v488_v38, %v455_v25  ;;  %v415_v41 = vadd.f32 %v911_v31, %v414_v35  ;;  %v465_v35 = vmul.f32 %v991_v22, %v991_v22 }
 0x127   :  { %v416_v47 = vadd.f32 %v415_v41, %v935_v46  ;;  %v490_v48 = vadd.f32 %v489_v40, %v456_v39 }
 0x129   :  { %v491_v49 = vadd.f32 %v490_v48, %v457_v43  ;;  %v417_v55 = vadd.f32 %v416_v47, %v946_v53  ;;  %v466_v43 = vmul.f32 %v1000_v37, %v1000_v37  ;;  %v467_v47 = vmul.f32 %v987_v20, %v987_v20 }
 0x12b   :  { %v418_v59 = vadd.f32 %v931_v44, %v417_v55  ;;  %v492_v63 = vadd.f32 %v491_v49, %v458_v57 }
 0x12d   :  { %v493_v4 = vadd.f32 %v492_v63, %v459_v58  ;;  %v419_v5 = vadd.f32 %v942_v51, %v418_v59 }
 0x12f   :  { %v420_v11 = vadd.f32 %v419_v5, %v963_v2  ;;  %v494_v12 = vadd.f32 %v493_v4, %v460_v3 }
 0x131   :  { %v495_v13 = vadd.f32 %v494_v12, %v461_v10  ;;  %v421_v14 = vadd.f32 %v420_v11, %v974_v9 }
 0x133   :  { %v422_v17 = vadd.f32 %v959_v0, %v421_v14  ;;  %v496_v19 = vadd.f32 %v495_v13, %v462_v15 }
 0x135   :  { %v497_v24 = vadd.f32 %v496_v19, %v463_v16  ;;  %v423_v25 = vadd.f32 %v970_v7, %v422_v17 }
 0x137   :  { %v424_v38 = vadd.f32 %v423_v25, %v991_v22  ;;  %v498_v39 = vadd.f32 %v497_v24, %v464_v23 }
 0x139   :  { %v499_v40 = vadd.f32 %v498_v39, %v465_v35  ;;  %v425_v41 = vadd.f32 %v424_v38, %v1000_v37 }
 0x13b   :  { %v426_v48 = vadd.f32 %v987_v20, %v425_v41  ;;  %v500_v49 = vadd.f32 %v499_v40, %v466_v43 }
 0x13d   :  { %v427_v55 = vrot.slane %v426_v48, 4  ;;  %v501_v57 = vadd.f32 %v500_v49, %v467_v47 }
 0x13f   :  { %v428_v58 = vadd.f32 %v427_v55, %v426_v48  ;;  %v502_v59 = vrot.slane %v501_v57, 4 }
 0x141   :  { %v429_v63 = vrot.slane %v428_v58, 2  ;;  %v503_v3 = vadd.f32 %v502_v59, %v501_v57 }
 0x143   :  { %v430_v4 = vadd.f32 %v429_v63, %v428_v58  ;;  %v504_v5 = vrot.slane %v503_v3, 2 }
 0x145   :  { %v431_v10 = vrot.slane %v430_v4, 1  ;;  %v505_v11 = vadd.f32 %v504_v5, %v503_v3 }
 0x147   :  { %v432_v12 = vadd.f32 %v431_v10, %v430_v4  ;;  %v506_v13 = vrot.slane %v505_v11, 1 }
 0x149   :  { %v507_v14 = vadd.f32 %v506_v13, %v505_v11  ;;  %v1076_v15 = vmul.f32 0.0035714286, %v432_v12 }
 0x14b   :  { %v510_v16 = vmul.f32 0.0035714286, %v507_v14  ;;  %v511_v17 = vmul.f32 %v1076_v15, %v1076_v15  ;;  %v516_v19 = vsub.f32 %v905_v28, %v1076_v15  ;;  %v517_v23 = vsub.f32 %v913_v32, %v1076_v15 }
 0x14c   :  { %v518_v24 = vsub.f32 %v901_v26, %v1076_v15  ;;  %v519_v25 = vsub.f32 %v909_v30, %v1076_v15  ;;  %v520_v35 = vsub.f32 %v933_v45, %v1076_v15  ;;  %v521_v38 = vsub.f32 %v944_v52, %v1076_v15 }
 0x14d   :  { %v512_v39 = vsub.f32 %v510_v16, %v511_v17  ;;  %v522_v40 = vsub.f32 %v928_v42, %v1076_v15  ;;  %v523_v28 = vsub.f32 %v940_v50, %v1076_v15  ;;  %v524_v32 = vsub.f32 %v961_v1, %v1076_v15 }
 0x14e   :  { %v525_v26 = vsub.f32 %v972_v8, %v1076_v15  ;;  %v526_v30 = vsub.f32 %v956_v62, %v1076_v15  ;;  %v527_v45 = vsub.f32 %v968_v6, %v1076_v15  ;;  %v528_v52 = vsub.f32 %v989_v21, %v1076_v15 }
 0x14f   :  { %v513_v41 = vmax.f32 %v512_v39, 0.0  ;;  %v529_v42 = vsub.f32 %v998_v36, %v1076_v15  ;;  %v530_v50 = vsub.f32 %v984_v18, %v1076_v15  ;;  %v531_v1 = vsub.f32 %v996_v34, %v1076_v15 }
 0x150   :  { %v532_v8 = vsub.f32 %v1013_v56, %v1076_v15  ;;  %v533_v62 = vsub.f32 %v1020_v61, %v1076_v15  ;;  %v534_v6 = vsub.f32 %v1010_v54, %v1076_v15  ;;  %v535_v21 = vsub.f32 %v1018_v60, %v1076_v15 }
 0x151   :  { %v514_v43 = vadd.f32 1e-05, %v513_v41  ;;  %v536_v36 = vsub.f32 %v907_v29, %v1076_v15  ;;  %v537_v18 = vsub.f32 %v915_v33, %v1076_v15  ;;  %v538_v34 = vsub.f32 %v903_v27, %v1076_v15 }
 0x152   :  { %v539_v56 = vsub.f32 %v911_v31, %v1076_v15  ;;  %v540_v61 = vsub.f32 %v935_v46, %v1076_v15  ;;  %v541_v54 = vsub.f32 %v946_v53, %v1076_v15  ;;  %v542_v60 = vsub.f32 %v931_v44, %v1076_v15 }
 0x153   :  { %806 = vrsqrt.f32 %v514_v43  ;;  %v543_v29 = vsub.f32 %v942_v51, %v1076_v15  ;;  %v544_v33 = vsub.f32 %v963_v2, %v1076_v15  ;;  %v545_v27 = vsub.f32 %v974_v9, %v1076_v15 }
 0x154   :  { %v546_v31 = vsub.f32 %v959_v0, %v1076_v15  ;;  %v547_v46 = vsub.f32 %v970_v7, %v1076_v15  ;;  %v548_v53 = vsub.f32 %v991_v22, %v1076_v15  ;;  %v549_v44 = vsub.f32 %v1000_v37, %v1076_v15 }
 0x155   :  { %v550_v51 = vsub.f32 %v987_v20, %v1076_v15 }
 0x15d   :  { %v807_v47 = vpop.eup %806 }
 0x15e   :  { %v551_v2 = vmul.f32 %v807_v47, %v516_v19  ;;  %v552_v48 = vmul.f32 %v807_v47, %v517_v23  ;;  %v553_v49 = vmul.f32 %v807_v47, %v518_v24  ;;  %v554_v9 = vmul.f32 %v807_v47, %v519_v25 }
 0x15f   :  { %v555_v55 = vmul.f32 %v807_v47, %v520_v35  ;;  %v556_v57 = vmul.f32 %v807_v47, %v521_v38  ;;  %v557_v0 = vmul.f32 %v807_v47, %v522_v40  ;;  %v558_v58 = vmul.f32 %v807_v47, %v523_v28 }
 0x160   :  { %v559_v59 = vmul.f32 %v807_v47, %v524_v32  ;;  %v560_v7 = vmul.f32 %v807_v47, %v525_v26  ;;  %v561_v63 = vmul.f32 %v807_v47, %v526_v30  ;;  %v562_v3 = vmul.f32 %v807_v47, %v527_v45 }
 0x161   :  { %v563_v22 = vmul.f32 %v807_v47, %v528_v52  ;;  %v564_v4 = vmul.f32 %v807_v47, %v529_v42  ;;  %v565_v5 = vmul.f32 %v807_v47, %v530_v50  ;;  %v566_v37 = vmul.f32 %v807_v47, %v531_v1 }
 0x162   :  { %v567_v10 = vmul.f32 %v807_v47, %v532_v8  ;;  %v1150_v11 = vmul.f32 %v807_v47, %v533_v62  ;;  %v1152_v20 = vmul.f32 %v807_v47, %v534_v6  ;;  %v1154_v12 = vmul.f32 %v807_v47, %v535_v21 }
 0x163   :  { %v1156_v13 = vmul.f32 %v807_v47, %v536_v36  ;;  %v1158_v14 = vmul.f32 %v807_v47, %v537_v18  ;;  %v1160_v15 = vmul.f32 %v807_v47, %v538_v34  ;;  %v1162_v16 = vmul.f32 %v807_v47, %v539_v56 }
 0x164   :  { %v1164_v17 = vmul.f32 %v807_v47, %v540_v61  ;;  %v1166_v19 = vmul.f32 %v807_v47, %v541_v54  ;;  %v1168_v23 = vmul.f32 %v807_v47, %v542_v60  ;;  %v1170_v24 = vmul.f32 %v807_v47, %v543_v29 }
 0x165   :  { %v1172_v25 = vmul.f32 %v807_v47, %v544_v33  ;;  %v1174_v35 = vmul.f32 %v807_v47, %v545_v27  ;;  %v1176_v38 = vmul.f32 %v807_v47, %v546_v31  ;;  %v1178_v39 = vmul.f32 %v807_v47, %v547_v46 }
 0x166   :  { %v1180_v40 = vmul.f32 %v807_v47, %v548_v53  ;;  %v1182_v28 = vmul.f32 %v807_v47, %v549_v44  ;;  %v1184_v32 = vmul.f32 %v807_v47, %v550_v51  ;;  %v586_v26 = vmax.f32 %v551_v2, 0.0 }
 0x167   :  { %v587_v30 = vmax.f32 %v552_v48, 0.0  ;;  %v588_v45 = vmax.f32 %v553_v49, 0.0  ;;  %v589_v52 = vmax.f32 %v554_v9, 0.0  ;;  %v590_v41 = vmax.f32 %v555_v55, 0.0 }
 0x168   :  { %v591_v42 = vmax.f32 %v556_v57, 0.0  ;;  %v592_v50 = vmax.f32 %v557_v0, 0.0  ;;  %v593_v1 = vmax.f32 %v558_v58, 0.0  ;;  %v594_v8 = vmax.f32 %v559_v59, 0.0  ;;  %621 = vst [vmem:[%s1311_s2] sm:$0xff] %v586_v26 }
 0x169   :  { %v595_v62 = vmax.f32 %v560_v7, 0.0  ;;  %v596_v6 = vmax.f32 %v561_v63, 0.0  ;;  %v597_v21 = vmax.f32 %v562_v3, 0.0  ;;  %v598_v43 = vmax.f32 %v563_v22, 0.0  ;;  %622 = vst [vmem:[%s1311_s2 + $0x8] sm:$0xff] %v587_v30  ;;  %623 = vst [vmem:[%s1311_s2 + $0x10] sm:$0xff] %v588_v45 }
 0x16a   :  { %624 = vst [vmem:[%s1311_s2 + $0x18] sm:$0xff] %v589_v52  ;;  %625 = vst [vmem:[%s1311_s2 + $0x20] sm:$0xff] %v590_v41  ;;  %v599_v36 = vmax.f32 %v564_v4, 0.0  ;;  %v600_v18 = vmax.f32 %v565_v5, 0.0  ;;  %v601_v34 = vmax.f32 %v566_v37, 0.0  ;;  %v602_v56 = vmax.f32 %v567_v10, 0.0 }
 0x16b   :  { %626 = vst [vmem:[%s1311_s2 + $0x28] sm:$0xff] %v591_v42  ;;  %627 = vst [vmem:[%s1311_s2 + $0x30] sm:$0xff] %v592_v50  ;;  %v603_v61 = vmax.f32 %v1150_v11, 0.0  ;;  %v604_v54 = vmax.f32 %v1152_v20, 0.0  ;;  %v605_v60 = vmax.f32 %v1154_v12, 0.0  ;;  %v606_v29 = vmax.f32 %v1156_v13, 0.0 }
 0x16c   :  { %628 = vst [vmem:[%s1311_s2 + $0x38] sm:$0xff] %v593_v1  ;;  %629 = vst [vmem:[%s1311_s2 + $0x40] sm:$0xff] %v594_v8  ;;  %v607_v33 = vmax.f32 %v1158_v14, 0.0  ;;  %v608_v27 = vmax.f32 %v1160_v15, 0.0  ;;  %v609_v31 = vmax.f32 %v1162_v16, 0.0  ;;  %v610_v46 = vmax.f32 %v1164_v17, 0.0 }
 0x16d   :  { %630 = vst [vmem:[%s1311_s2 + $0x48] sm:$0xff] %v595_v62  ;;  %631 = vst [vmem:[%s1311_s2 + $0x50] sm:$0xff] %v596_v6  ;;  %v611_v53 = vmax.f32 %v1166_v19, 0.0  ;;  %v612_v44 = vmax.f32 %v1168_v23, 0.0  ;;  %v613_v51 = vmax.f32 %v1170_v24, 0.0  ;;  %v614_v47 = vmax.f32 %v1172_v25, 0.0 }
 0x16e   :  { %632 = vst [vmem:[%s1311_s2 + $0x58] sm:$0xff] %v597_v21  ;;  %633 = vst [vmem:[%s1311_s2 + $0x60] sm:$0xff] %v598_v43  ;;  %v615_v2 = vmax.f32 %v1174_v35, 0.0  ;;  %v616_v48 = vmax.f32 %v1176_v38, 0.0  ;;  %v617_v49 = vmax.f32 %v1178_v39, 0.0  ;;  %v618_v9 = vmax.f32 %v1180_v40, 0.0 }
 0x16f   :  { %634 = vst [vmem:[%s1311_s2 + $0x68] sm:$0xff] %v599_v36  ;;  %635 = vst [vmem:[%s1311_s2 + $0x70] sm:$0xff] %v600_v18  ;;  %v619_v55 = vmax.f32 %v1182_v28, 0.0  ;;  %v620_v57 = vmax.f32 %v1184_v32, 0.0 }
 0x170   :  { %636 = vst [vmem:[%s1311_s2 + $0x78] sm:$0xff] %v601_v34  ;;  %637 = vst [vmem:[%s1311_s2 + $0x80] sm:$0xff] %v602_v56 }
 0x171   :  { %638 = vst [vmem:[%s1311_s2 + $0x88] sm:$0xff] %v603_v61  ;;  %639 = vst [vmem:[%s1311_s2 + $0x90] sm:$0xff] %v604_v54 }
 0x172   :  { %640 = vst [vmem:[%s1311_s2 + $0x98] sm:$0xff] %v605_v60  ;;  %641 = vst [vmem:[%s1311_s2 + $0xa0] sm:$0xff] %v606_v29 }
 0x173   :  { %642 = vst [vmem:[%s1311_s2 + $0xa8] sm:$0xff] %v607_v33  ;;  %643 = vst [vmem:[%s1311_s2 + $0xb0] sm:$0xff] %v608_v27 }
 0x174   :  { %644 = vst [vmem:[%s1311_s2 + $0xb8] sm:$0xff] %v609_v31  ;;  %645 = vst [vmem:[%s1311_s2 + $0xc0] sm:$0xff] %v610_v46 }
 0x175   :  { %646 = vst [vmem:[%s1311_s2 + $0xc8] sm:$0xff] %v611_v53  ;;  %647 = vst [vmem:[%s1311_s2 + $0xd0] sm:$0xff] %v612_v44 }
 0x176   :  { %648 = vst [vmem:[%s1311_s2 + $0xd8] sm:$0xff] %v613_v51  ;;  %649 = vst [vmem:[%s1311_s2 + $0xe0] sm:$0xff] %v614_v47 }
 0x177   :  { %650 = vst [vmem:[%s1311_s2 + $0xe8] sm:$0xff] %v615_v2  ;;  %651 = vst [vmem:[%s1311_s2 + $0xf0] sm:$0xff] %v616_v48 }
 0x178   :  { %652 = vst [vmem:[%s1311_s2 + $0xf8] sm:$0xff] %v617_v49  ;;  %653 = vst [vmem:[%s1311_s2 + $0x100] sm:$0xff] %v618_v9 }
 0x179   :  { %654 = vst [vmem:[%s1311_s2 + $0x108] sm:$0xff] %v619_v55  ;;  %655 = vst [vmem:[%s1311_s2 + $0x110] sm:$0xff] %v620_v57 }

// kernel: crn_forward.8
= control target key start
LH: loop header
LB: loop body
LE: loop exit
PB: predicated region body
PF: predicated region fallthrough
CT: control target
= control target key end

     0   :  { %s656_s1 = inlined_call_operand.vmem [shape: bf16[128,128], index: 1, kind: input, shape index: {}]   ;;  %s657_s0 = inlined_call_operand.vmem [shape: bf16[120,128], index: 0, kind: input, shape index: {}]   ;;  %s658_s2 = inlined_call_operand.vmem [shape: f32[120,128], index: 2, kind: output, shape index: {}]  }
   0x1   :  { %v440_v0 = vld [vmem:[%s656_s1] sm:$0xff]   ;;  %v441_v1 = vld [vmem:[%s656_s1 + $0x8] sm:$0xff]   ;;  %v442_v2 = vld [vmem:[%s656_s1 + $0x10] sm:$0xff]  }
   0x2   :  { %392 = vmatprep.subr.bf16.mxu0 %v440_v0  ;;  %424 = vmatprep.subr.bf16.mxu1 %v440_v0  ;;  %v443_v3 = vld [vmem:[%s656_s1 + $0x18] sm:$0xff]   ;;  %v448_v4 = vld [vmem:[%s657_s0] sm:$0xff]   ;;  %v445_v7 = vld [vmem:[%s656_s1 + $0x28] sm:$0xff]  }
   0x3   :  { %393 = vmatpush3.bf16.msra.mxu0 %v440_v0  ;;  %432 = vmatpush3.bf16.msra.mxu1 %v440_v0  ;;  %v444_v5 = vld [vmem:[%s656_s1 + $0x20] sm:$0xff]   ;;  %v446_v8 = vld [vmem:[%s656_s1 + $0x30] sm:$0xff]   ;;  %v447_v9 = vld [vmem:[%s656_s1 + $0x38] sm:$0xff]  }
   0x4   :  { %394 = vmatprep.subr.bf16.mxu0 %v441_v1  ;;  %425 = vmatprep.subr.bf16.mxu1 %v441_v1  ;;  %v452_v6 = vld [vmem:[%s657_s0 + $0x20] sm:$0xff]   ;;  %v449_v10 = vld [vmem:[%s657_s0 + $0x8] sm:$0xff]   ;;  %v450_v12 = vld [vmem:[%s657_s0 + $0x10] sm:$0xff]  }
   0x5   :  { %408 = vmatprep.mubr.bf16.mxu0 %v448_v4  ;;  %416 = vmatprep.mubr.bf16.mxu1 %v452_v6  ;;  %v453_v11 = vld [vmem:[%s657_s0 + $0x28] sm:$0xff]   ;;  %v454_v13 = vld [vmem:[%s657_s0 + $0x30] sm:$0xff]   ;;  %v451_v14 = vld [vmem:[%s657_s0 + $0x18] sm:$0xff]  }
   0x6   :  { %v455_v15 = vld [vmem:[%s657_s0 + $0x38] ss:$0 sps:$4 sm:$0xff]  }
   0x7   :  { %395 = vmatpush3.bf16.msra.mxu0 %v441_v1  ;;  %433 = vmatpush3.bf16.msra.mxu1 %v441_v1 }
   0x8   :  { %396 = vmatprep.subr.bf16.mxu0 %v442_v2  ;;  %426 = vmatprep.subr.bf16.mxu1 %v442_v2 }
   0xb   :  { %397 = vmatpush3.bf16.msra.mxu0 %v442_v2  ;;  %434 = vmatpush3.bf16.msra.mxu1 %v442_v2 }
   0xc   :  { %398 = vmatprep.subr.bf16.mxu0 %v443_v3  ;;  %427 = vmatprep.subr.bf16.mxu1 %v443_v3 }
   0xf   :  { %399 = vmatpush3.bf16.msra.mxu0 %v443_v3  ;;  %435 = vmatpush3.bf16.msra.mxu1 %v443_v3 }
  0x10   :  { %400 = vmatprep.subr.bf16.mxu0 %v444_v5  ;;  %428 = vmatprep.subr.bf16.mxu1 %v444_v5 }
  0x13   :  { %401 = vmatpush3.bf16.msra.mxu0 %v444_v5  ;;  %436 = vmatpush3.bf16.msra.mxu1 %v444_v5 }
  0x14   :  { %402 = vmatprep.subr.bf16.mxu0 %v445_v7  ;;  %429 = vmatprep.subr.bf16.mxu1 %v445_v7 }
  0x17   :  { %403 = vmatpush3.bf16.msra.mxu0 %v445_v7  ;;  %437 = vmatpush3.bf16.msra.mxu1 %v445_v7 }
  0x18   :  { %404 = vmatprep.subr.bf16.mxu0 %v446_v8  ;;  %430 = vmatprep.subr.bf16.mxu1 %v446_v8 }
  0x1b   :  { %405 = vmatpush3.bf16.msra.mxu0 %v446_v8  ;;  %438 = vmatpush3.bf16.msra.mxu1 %v446_v8 }
  0x1c   :  { %406 = vmatprep.subr.bf16.mxu0 %v447_v9  ;;  %431 = vmatprep.subr.bf16.mxu1 %v447_v9 }
  0x1f   :  { %407 = vmatpush3.bf16.msra.mxu0 %v447_v9  ;;  %439 = vmatpush3.bf16.msra.mxu1 %v447_v9 }
  0x22   :  { %409 = vmatmul.mubr.bf16.vlgmr.msra.gmra.mrb[0].mxu0 %v449_v10  ;;  %417 = vmatmul.mubr.bf16.vlgmr.msra.gmra.mrb[0].mxu1 %v453_v11 }
  0x23   :  { %412 = vmatprep.mubr.bf16.mxu0 %v450_v12  ;;  %420 = vmatprep.mubr.bf16.mxu1 %v454_v13 }
  0x2a   :  { %413 = vmatmul.mubr.bf16.gmra.mrb[4].mxu0 %v451_v14  ;;  %421 = vmatmul.mubr.bf16.gmra.mrb[4].mxu1 %v455_v15 }
  0xf5   :  { %v521_v16 = vpop.f32.mrb[0].mxu0  ;;  %v523_v17 = vpop.f32.mrb[0].mxu1 }
  0xf6   :  { %v525_v18 = vpop.f32.mrb[1].mxu0  ;;  %v527_v19 = vpop.f32.mrb[1].mxu1  ;;  %v255_v27 = vmul.f32 %v521_v16, %v521_v16  ;;  %v263_v59 = vmul.f32 %v523_v17, %v523_v17 }
  0xf7   :  { %v529_v20 = vpop.f32.mrb[2].mxu0  ;;  %v531_v21 = vpop.f32.mrb[2].mxu1  ;;  %v253_v24 = vmul.f32 %v525_v18, %v525_v18  ;;  %v261_v53 = vmul.f32 %v527_v19, %v527_v19 }
  0xf8   :  { %v533_v22 = vpop.f32.mrb[3].mxu0  ;;  %v535_v23 = vpop.f32.mrb[3].mxu1  ;;  %v256_v30 = vmul.f32 %v529_v20, %v529_v20  ;;  %v264_v62 = vmul.f32 %v531_v21, %v531_v21 }
  0xf9   :  { %v233_v25 = vadd.f32 %v533_v22, %v525_v18  ;;  %v254_v26 = vmul.f32 %v533_v22, %v533_v22  ;;  %v262_v58 = vmul.f32 %v535_v23, %v535_v23 }
  0xfb   :  { %v234_v28 = vadd.f32 %v521_v16, %v233_v25  ;;  %v268_v29 = vadd.f32 %v254_v26, %v253_v24 }
  0xfd   :  { %v269_v31 = vadd.f32 %v268_v29, %v255_v27  ;;  %v548_v32 = vpop.f32.mrb[4].mxu0  ;;  %v235_v33 = vadd.f32 %v529_v20, %v234_v28  ;;  %v551_v34 = vpop.f32.mrb[4].mxu1 }
  0xfe   :  { %v553_v35 = vpop.f32.mrb[5].mxu0  ;;  %v555_v36 = vpop.f32.mrb[5].mxu1  ;;  %v259_v47 = vmul.f32 %v548_v32, %v548_v32  ;;  %v267_v7 = vmul.f32 %v551_v34, %v551_v34 }
  0xff   :  { %v236_v37 = vadd.f32 %v235_v33, %v553_v35  ;;  %v257_v38 = vmul.f32 %v553_v35, %v553_v35  ;;  %v270_v39 = vadd.f32 %v269_v31, %v256_v30  ;;  %v560_v40 = vpop.f32.mrb[6].mxu0  ;;  %v423_v41 = vpop.f32.mrb[6].mxu1  ;;  %v265_v1 = vmul.f32 %v555_v36, %v555_v36 }
 0x100   :  { %v562_v42 = vpop.f32.mrb[7].mxu0  ;;  %v564_v43 = vpop.f32.mrb[7].mxu1  ;;  %v260_v50 = vmul.f32 %v560_v40, %v560_v40 }
 0x101   :  { %v271_v44 = vadd.f32 %v270_v39, %v257_v38  ;;  %v237_v45 = vadd.f32 %v236_v37, %v562_v42  ;;  %v258_v46 = vmul.f32 %v562_v42, %v562_v42  ;;  %v266_v6 = vmul.f32 %v564_v43, %v564_v43 }
 0x103   :  { %v238_v48 = vadd.f32 %v548_v32, %v237_v45  ;;  %v272_v49 = vadd.f32 %v271_v44, %v258_v46 }
 0x105   :  { %v273_v51 = vadd.f32 %v272_v49, %v259_v47  ;;  %v239_v52 = vadd.f32 %v560_v40, %v238_v48 }
 0x107   :  { %v240_v54 = vadd.f32 %v239_v52, %v527_v19  ;;  %v274_v55 = vadd.f32 %v273_v51, %v260_v50 }
 0x109   :  { %v275_v56 = vadd.f32 %v274_v55, %v261_v53  ;;  %v241_v57 = vadd.f32 %v240_v54, %v535_v23 }
 0x10b   :  { %v242_v60 = vadd.f32 %v523_v17, %v241_v57  ;;  %v276_v61 = vadd.f32 %v275_v56, %v262_v58 }
 0x10d   :  { %v277_v63 = vadd.f32 %v276_v61, %v263_v59  ;;  %v243_v0 = vadd.f32 %v531_v21, %v242_v60 }
 0x10f   :  { %v244_v2 = vadd.f32 %v243_v0, %v555_v36  ;;  %v278_v3 = vadd.f32 %v277_v63, %v264_v62 }
 0x111   :  { %v279_v4 = vadd.f32 %v278_v3, %v265_v1  ;;  %v245_v5 = vadd.f32 %v244_v2, %v564_v43 }
 0x113   :  { %v246_v8 = vadd.f32 %v551_v34, %v245_v5  ;;  %v280_v9 = vadd.f32 %v279_v4, %v266_v6 }
 0x115   :  { %v247_v10 = vrot.slane %v246_v8, 4  ;;  %v281_v11 = vadd.f32 %v280_v9, %v267_v7 }
 0x117   :  { %v248_v12 = vadd.f32 %v247_v10, %v246_v8  ;;  %v282_v13 = vrot.slane %v281_v11, 4 }
 0x119   :  { %v249_v14 = vrot.slane %v248_v12, 2  ;;  %v283_v15 = vadd.f32 %v282_v13, %v281_v11 }
 0x11b   :  { %v250_v24 = vadd.f32 %v249_v14, %v248_v12  ;;  %v284_v25 = vrot.slane %v283_v15, 2 }
 0x11d   :  { %v251_v26 = vrot.slane %v250_v24, 1  ;;  %v285_v27 = vadd.f32 %v284_v25, %v283_v15 }
 0x11f   :  { %v252_v28 = vadd.f32 %v251_v26, %v250_v24  ;;  %v286_v29 = vrot.slane %v285_v27, 1 }
 0x121   :  { %v287_v30 = vadd.f32 %v286_v29, %v285_v27  ;;  %v289_v31 = vmul.f32 0.008333334, %v252_v28 }
 0x123   :  { %v290_v33 = vmul.f32 0.008333334, %v287_v30  ;;  %v291_v37 = vmul.f32 %v289_v31, %v289_v31  ;;  %v296_v38 = vsub.f32 %v525_v18, %v289_v31  ;;  %v297_v39 = vsub.f32 %v533_v22, %v289_v31 }
 0x124   :  { %v298_v41 = vsub.f32 %v521_v16, %v289_v31  ;;  %v299_v44 = vsub.f32 %v529_v20, %v289_v31  ;;  %v300_v45 = vsub.f32 %v553_v35, %v289_v31  ;;  %v301_v46 = vsub.f32 %v562_v42, %v289_v31 }
 0x125   :  { %v292_v47 = vsub.f32 %v290_v33, %v291_v37  ;;  %v302_v48 = vsub.f32 %v548_v32, %v289_v31  ;;  %v303_v49 = vsub.f32 %v560_v40, %v289_v31  ;;  %v304_v50 = vsub.f32 %v527_v19, %v289_v31 }
 0x126   :  { %v305_v51 = vsub.f32 %v535_v23, %v289_v31  ;;  %v306_v18 = vsub.f32 %v523_v17, %v289_v31  ;;  %v307_v22 = vsub.f32 %v531_v21, %v289_v31  ;;  %v308_v16 = vsub.f32 %v555_v36, %v289_v31 }
 0x127   :  { %v293_v20 = vmax.f32 %v292_v47, 0.0  ;;  %v309_v35 = vsub.f32 %v564_v43, %v289_v31  ;;  %v310_v42 = vsub.f32 %v551_v34, %v289_v31 }
 0x129   :  { %v294_v52 = vadd.f32 1e-05, %v293_v20 }
 0x12b   :  { %456 = vrsqrt.f32 %v294_v52 }
 0x135   :  { %v457_v32 = vpop.eup %456 }
 0x136   :  { %v311_v53 = vmul.f32 %v457_v32, %v296_v38  ;;  %v312_v40 = vmul.f32 %v457_v32, %v297_v39  ;;  %v313_v54 = vmul.f32 %v457_v32, %v298_v41  ;;  %v314_v19 = vmul.f32 %v457_v32, %v299_v44 }
 0x137   :  { %v315_v55 = vmul.f32 %v457_v32, %v300_v45  ;;  %v316_v23 = vmul.f32 %v457_v32, %v301_v46  ;;  %v317_v56 = vmul.f32 %v457_v32, %v302_v48  ;;  %v318_v17 = vmul.f32 %v457_v32, %v303_v49 }
 0x138   :  { %v319_v57 = vmul.f32 %v457_v32, %v304_v50  ;;  %v320_v21 = vmul.f32 %v457_v32, %v305_v51  ;;  %v321_v58 = vmul.f32 %v457_v32, %v306_v18  ;;  %v322_v36 = vmul.f32 %v457_v32, %v307_v22 }
 0x139   :  { %v323_v59 = vmul.f32 %v457_v32, %v308_v16  ;;  %v324_v60 = vmul.f32 %v457_v32, %v309_v35  ;;  %v325_v43 = vmul.f32 %v457_v32, %v310_v42  ;;  %v326_v61 = vmax.f32 %v311_v53, 0.0 }
 0x13a   :  { %v327_v34 = vmax.f32 %v312_v40, 0.0  ;;  %v328_v62 = vmax.f32 %v313_v54, 0.0  ;;  %v329_v63 = vmax.f32 %v314_v19, 0.0  ;;  %v330_v0 = vmax.f32 %v315_v55, 0.0 }
 0x13b   :  { %v331_v1 = vmax.f32 %v316_v23, 0.0  ;;  %v332_v2 = vmax.f32 %v317_v56, 0.0  ;;  %v333_v3 = vmax.f32 %v318_v17, 0.0  ;;  %v334_v4 = vmax.f32 %v319_v57, 0.0  ;;  %341 = vst [vmem:[%s658_s2] sm:$0xff] %v326_v61 }
 0x13c   :  { %v335_v5 = vmax.f32 %v320_v21, 0.0  ;;  %v336_v6 = vmax.f32 %v321_v58, 0.0  ;;  %v337_v7 = vmax.f32 %v322_v36, 0.0  ;;  %v338_v8 = vmax.f32 %v323_v59, 0.0  ;;  %342 = vst [vmem:[%s658_s2 + $0x8] sm:$0xff] %v327_v34  ;;  %343 = vst [vmem:[%s658_s2 + $0x10] sm:$0xff] %v328_v62 }
 0x13d   :  { %344 = vst [vmem:[%s658_s2 + $0x18] sm:$0xff] %v329_v63  ;;  %345 = vst [vmem:[%s658_s2 + $0x20] sm:$0xff] %v330_v0  ;;  %v339_v9 = vmax.f32 %v324_v60, 0.0  ;;  %v340_v10 = vmax.f32 %v325_v43, 0.0 }
 0x13e   :  { %346 = vst [vmem:[%s658_s2 + $0x28] sm:$0xff] %v331_v1  ;;  %347 = vst [vmem:[%s658_s2 + $0x30] sm:$0xff] %v332_v2 }
 0x13f   :  { %348 = vst [vmem:[%s658_s2 + $0x38] sm:$0xff] %v333_v3  ;;  %349 = vst [vmem:[%s658_s2 + $0x40] sm:$0xff] %v334_v4 }
 0x140   :  { %350 = vst [vmem:[%s658_s2 + $0x48] sm:$0xff] %v335_v5  ;;  %351 = vst [vmem:[%s658_s2 + $0x50] sm:$0xff] %v336_v6 }
 0x141   :  { %352 = vst [vmem:[%s658_s2 + $0x58] sm:$0xff] %v337_v7  ;;  %353 = vst [vmem:[%s658_s2 + $0x60] sm:$0xff] %v338_v8 }
 0x142   :  { %354 = vst [vmem:[%s658_s2 + $0x68] sm:$0xff] %v339_v9  ;;  %355 = vst [vmem:[%s658_s2 + $0x70] sm:$0xff] %v340_v10 }

// kernel: crn_forward.9
= control target key start
LH: loop header
LB: loop body
LE: loop exit
PB: predicated region body
PF: predicated region fallthrough
CT: control target
= control target key end

     0   :  { %vm215_vm0 = vcmask 1043456   ;;  %s441_s1 = inlined_call_operand.vmem [shape: bf16[256,128], index: 1, kind: input, shape index: {}]   ;;  %s442_s0 = inlined_call_operand.vmem [shape: bf16[28,256], index: 0, kind: input, shape index: {}]   ;;  %s443_s2 = inlined_call_operand.vmem [shape: f32[28,128], index: 2, kind: output, shape index: {}]  }
   0x1   :  { %v330_v0 = vld [vmem:[%s441_s1 + $0x40] sm:$0xff]   ;;  %v332_v2 = vld [vmem:[%s441_s1 + $0x48] sm:$0xff]   ;;  %v334_v4 = vld [vmem:[%s441_s1 + $0x50] sm:$0xff]  }
   0x2   :  { %v331_v1 = vld [vmem:[%s441_s1] sm:$0xff]   ;;  %286 = vmatprep.subr.bf16.mxu0 %v330_v0  ;;  %314 = vmatprep.subr.bf16.mxu1 %v330_v0  ;;  %v333_v3 = vld [vmem:[%s441_s1 + $0x8] sm:$0xff]   ;;  %v335_v5 = vld [vmem:[%s441_s1 + $0x10] sm:$0xff]  }
   0x3   :  { %287 = vmatpush3.bf16.msra.mxu0 %v331_v1  ;;  %322 = vmatpush3.bf16.msra.mxu1 %v331_v1  ;;  %v336_v6 = vld [vmem:[%s441_s1 + $0x58] sm:$0xff]   ;;  %v338_v8 = vld [vmem:[%s441_s1 + $0x60] sm:$0xff]   ;;  %v340_v10 = vld [vmem:[%s441_s1 + $0x68] sm:$0xff]  }
   0x4   :  { %288 = vmatprep.subr.bf16.mxu0 %v332_v2  ;;  %315 = vmatprep.subr.bf16.mxu1 %v332_v2  ;;  %v337_v7 = vld [vmem:[%s441_s1 + $0x18] sm:$0xff]   ;;  %v339_v9 = vld [vmem:[%s441_s1 + $0x20] sm:$0xff]   ;;  %v341_v13 = vld [vmem:[%s441_s1 + $0x28] sm:$0xff]  }
   0x5   :  { %v348_v11 = vld [vmem:[%s442_s0 + $0x4] ss:$8 sps:$4 sm:$0xff]   ;;  %v351_v12 = vld [vmem:[%s442_s0 + $0x14] ss:$8 sps:$4 sm:$0x3f]  }
   0x6   :  { %v342_v14 = vld [vmem:[%s441_s1 + $0x70] sm:$0xff]   ;;  %196 = vmatprep.mubr.bf16.mxu0 %v348_v11  ;;  %204 = vmatprep.mubr.bf16.mxu1 %v351_v12  ;;  %v344_v16 = vld [vmem:[%s441_s1 + $0x78] sm:$0xff]   ;;  %v346_v18 = vld [vmem:[%s442_s0] ss:$8 sps:$4 sm:$0xff]  }
   0x7   :  { %289 = vmatpush3.bf16.msra.mxu0 %v333_v3  ;;  %323 = vmatpush3.bf16.msra.mxu1 %v333_v3  ;;  %v343_v15 = vld [vmem:[%s441_s1 + $0x30] sm:$0xff]   ;;  %v345_v17 = vld [vmem:[%s441_s1 + $0x38] sm:$0xff]  }
   0x8   :  { %290 = vmatprep.subr.bf16.mxu0 %v334_v4  ;;  %316 = vmatprep.subr.bf16.mxu1 %v334_v4  ;;  %v349_v19 = vld [vmem:[%s442_s0 + $0x10] ss:$8 sps:$4 sm:$0x3f]  }
   0xb   :  { %291 = vmatpush3.bf16.msra.mxu0 %v335_v5  ;;  %324 = vmatpush3.bf16.msra.mxu1 %v335_v5 }
   0xc   :  { %292 = vmatprep.subr.bf16.mxu0 %v336_v6  ;;  %317 = vmatprep.subr.bf16.mxu1 %v336_v6 }
   0xf   :  { %293 = vmatpush3.bf16.msra.mxu0 %v337_v7  ;;  %325 = vmatpush3.bf16.msra.mxu1 %v337_v7 }
  0x10   :  { %294 = vmatprep.subr.bf16.mxu0 %v338_v8  ;;  %318 = vmatprep.subr.bf16.mxu1 %v338_v8 }
  0x13   :  { %295 = vmatpush3.bf16.msra.mxu0 %v339_v9  ;;  %326 = vmatpush3.bf16.msra.mxu1 %v339_v9 }
  0x14   :  { %296 = vmatprep.subr.bf16.mxu0 %v340_v10  ;;  %319 = vmatprep.subr.bf16.mxu1 %v340_v10 }
  0x17   :  { %297 = vmatpush3.bf16.msra.mxu0 %v341_v13  ;;  %327 = vmatpush3.bf16.msra.mxu1 %v341_v13 }
  0x18   :  { %298 = vmatprep.subr.bf16.mxu0 %v342_v14  ;;  %320 = vmatprep.subr.bf16.mxu1 %v342_v14 }
  0x1b   :  { %299 = vmatpush3.bf16.msra.mxu0 %v343_v15  ;;  %328 = vmatpush3.bf16.msra.mxu1 %v343_v15 }
  0x1c   :  { %300 = vmatprep.subr.bf16.mxu0 %v344_v16  ;;  %321 = vmatprep.subr.bf16.mxu1 %v344_v16 }
  0x1f   :  { %301 = vmatpush3.bf16.msra.mxu0 %v345_v17  ;;  %329 = vmatpush3.bf16.msra.mxu1 %v345_v17 }
  0x22   :  { %197 = vmatmul.mubr.bf16.vlgmr.msra.gmra.mrb[0].mxu0 %v346_v18  ;;  %205 = vmatmul.mubr.bf16.vlgmr.msra.gmra.mrb[0].mxu1 %v349_v19 }
  0xf5   :  { %v302_v20 = vpop.f32.mrb[0].mxu0  ;;  %v308_v21 = vpop.f32.mrb[0].mxu1 }
  0xf6   :  { %v303_v22 = vpop.f32.mrb[1].mxu0  ;;  %v309_v23 = vpop.f32.mrb[1].mxu1 }
  0xf7   :  { %v304_v24 = vadd.f32 %v303_v22, %v302_v20  ;;  %v310_v25 = vadd.f32 %v309_v23, %v308_v21  ;;  %v305_v26 = vpop.f32.mrb[2].mxu0  ;;  %v311_v27 = vpop.f32.mrb[2].mxu1 }
  0xf8   :  { %v306_v28 = vpop.f32.mrb[3].mxu0  ;;  %v312_v29 = vpop.f32.mrb[3].mxu1 }
  0xf9   :  { %v307_v30 = vadd.f32 %v306_v28, %v305_v26  ;;  %v313_v31 = vadd.f32 %v312_v29, %v311_v27  ;;  %v224_v32 = vmul.f32 %v304_v24, %v304_v24  ;;  %v226_v36 = vmul.f32 %v310_v25, %v310_v25 }
  0xfb   :  { %v213_v33 = vadd.f32 %v307_v30, %v304_v24  ;;  %v225_v34 = vmul.f32 %v307_v30, %v307_v30  ;;  %v227_v35 = vmul.f32 %v313_v31, %v313_v31  ;;  %v216_v39 = vsel %vm215_vm0, %v313_v31, 0.0 }
  0xfd   :  { %v214_v37 = vadd.f32 %v310_v25, %v213_v33  ;;  %v228_v38 = vadd.f32 %v225_v34, %v224_v32  ;;  %v230_v42 = vsel %vm215_vm0, %v227_v35, 0.0 }
  0xff   :  { %v229_v40 = vadd.f32 %v228_v38, %v226_v36  ;;  %v217_v41 = vadd.f32 %v216_v39, %v214_v37 }
 0x101   :  { %v218_v43 = vrot.slane %v217_v41, 4  ;;  %v231_v44 = vadd.f32 %v230_v42, %v229_v40 }
 0x103   :  { %v219_v45 = vadd.f32 %v218_v43, %v217_v41  ;;  %v232_v46 = vrot.slane %v231_v44, 4 }
 0x105   :  { %v220_v47 = vrot.slane %v219_v45, 2  ;;  %v233_v48 = vadd.f32 %v232_v46, %v231_v44 }
 0x107   :  { %v221_v49 = vadd.f32 %v220_v47, %v219_v45  ;;  %v234_v50 = vrot.slane %v233_v48, 2 }
 0x109   :  { %v222_v51 = vrot.slane %v221_v49, 1  ;;  %v235_v52 = vadd.f32 %v234_v50, %v233_v48 }
 0x10b   :  { %v223_v53 = vadd.f32 %v222_v51, %v221_v49  ;;  %v236_v54 = vrot.slane %v235_v52, 1 }
 0x10d   :  { %v237_v55 = vadd.f32 %v236_v54, %v235_v52  ;;  %v239_v56 = vmul.f32 0.035714287, %v223_v53 }
 0x10f   :  { %v240_v57 = vmul.f32 0.035714287, %v237_v55  ;;  %v241_v58 = vmul.f32 %v239_v56, %v239_v56  ;;  %v246_v59 = vsub.f32 %v304_v24, %v239_v56  ;;  %v247_v60 = vsub.f32 %v307_v30, %v239_v56 }
 0x110   :  { %v248_v61 = vsub.f32 %v310_v25, %v239_v56  ;;  %v249_v62 = vsub.f32 %v313_v31, %v239_v56 }
 0x111   :  { %v242_v63 = vsub.f32 %v240_v57, %v241_v58 }
 0x113   :  { %v243_v0 = vmax.f32 %v242_v63, 0.0 }
 0x115   :  { %v244_v1 = vadd.f32 1e-05, %v243_v0 }
 0x117   :  { %352 = vrsqrt.f32 %v244_v1 }
 0x121   :  { %v353_v2 = vpop.eup %352 }
 0x122   :  { %v250_v3 = vmul.f32 %v353_v2, %v246_v59  ;;  %v251_v4 = vmul.f32 %v353_v2, %v247_v60  ;;  %v252_v5 = vmul.f32 %v353_v2, %v248_v61  ;;  %v253_v6 = vmul.f32 %v353_v2, %v249_v62 }
 0x124   :  { %v254_v7 = vmax.f32 %v250_v3, 0.0  ;;  %v255_v8 = vmax.f32 %v251_v4, 0.0  ;;  %v256_v9 = vmax.f32 %v252_v5, 0.0  ;;  %v257_v10 = vmax.f32 %v253_v6, 0.0 }
 0x126   :  { %258 = vst [vmem:[%s443_s2] sm:$0xff] %v254_v7  ;;  %259 = vst [vmem:[%s443_s2 + $0x8] sm:$0xff] %v255_v8 }
 0x127   :  { %260 = vst [vmem:[%s443_s2 + $0x10] sm:$0xff] %v256_v9  ;;  %261 = vst [vmem:[%s443_s2 + $0x18] sm:$0xf] %v257_v10 }

// kernel: crn_forward.11
= control target key start
LH: loop header
LB: loop body
LE: loop exit
PB: predicated region body
PF: predicated region fallthrough
CT: control target
= control target key end

     0   :  { %s1178_s1 = inlined_call_operand.vmem [shape: bf16[384,128], index: 1, kind: input, shape index: {}]   ;;  %s1179_s0 = inlined_call_operand.vmem [shape: bf16[120,384], index: 0, kind: input, shape index: {}]   ;;  %s1180_s2 = inlined_call_operand.vmem [shape: f32[120,128], index: 2, kind: output, shape index: {}]  }
   0x1   :  { %v836_v0 = vld [vmem:[%s1178_s1 + $0x40] sm:$0xff]   ;;  %v839_v3 = vld [vmem:[%s1178_s1 + $0x48] sm:$0xff]   ;;  %v842_v6 = vld [vmem:[%s1178_s1 + $0x50] sm:$0xff]  }
   0x2   :  { %v837_v1 = vld [vmem:[%s1178_s1] sm:$0xff]   ;;  %724 = vmatprep.subr.bf16.mxu0 %v836_v0  ;;  %v840_v4 = vld [vmem:[%s1178_s1 + $0x8] sm:$0xff]   ;;  %v843_v7 = vld [vmem:[%s1178_s1 + $0x10] sm:$0xff]  }
   0x3   :  { %v838_v2 = vld [vmem:[%s1178_s1 + $0x80] sm:$0xff]   ;;  %725 = vmatpush3.bf16.msra.mxu0 %v837_v1  ;;  %v841_v5 = vld [vmem:[%s1178_s1 + $0x88] sm:$0xff]   ;;  %v844_v8 = vld [vmem:[%s1178_s1 + $0x90] sm:$0xff]  }
   0x4   :  { %804 = vmatprep.subr.bf16.mxu1 %v838_v2  ;;  %726 = vmatprep.subr.bf16.mxu0 %v839_v3  ;;  %v845_v9 = vld [vmem:[%s1178_s1 + $0x58] sm:$0xff]   ;;  %v848_v12 = vld [vmem:[%s1178_s1 + $0x60] sm:$0xff]   ;;  %v851_v15 = vld [vmem:[%s1178_s1 + $0x68] sm:$0xff]  }
   0x5   :  { %805 = vmatpush3.bf16.msra.mxu1 %v838_v2  ;;  %v846_v10 = vld [vmem:[%s1178_s1 + $0x18] sm:$0xff]   ;;  %v850_v13 = vld [vmem:[%s1178_s1 + $0xa0] sm:$0xff]   ;;  %v853_v16 = vld [vmem:[%s1178_s1 + $0xa8] sm:$0xff]  }
   0x6   :  { %806 = vmatprep.subr.bf16.mxu1 %v841_v5  ;;  %v847_v11 = vld [vmem:[%s1178_s1 + $0x98] sm:$0xff]   ;;  %v849_v14 = vld [vmem:[%s1178_s1 + $0x20] sm:$0xff]   ;;  %v852_v17 = vld [vmem:[%s1178_s1 + $0x28] sm:$0xff]  }
   0x7   :  { %727 = vmatpush3.bf16.msra.mxu0 %v840_v4  ;;  %v854_v18 = vld [vmem:[%s1178_s1 + $0x70] sm:$0xff]   ;;  %v857_v21 = vld [vmem:[%s1178_s1 + $0x78] sm:$0xff]   ;;  %v860_v26 = vld [vmem:[%s1179_s0] ss:$12 sps:$4 sm:$0xff]  }
   0x8   :  { %728 = vmatprep.subr.bf16.mxu0 %v842_v6  ;;  %v855_v19 = vld [vmem:[%s1178_s1 + $0x30] sm:$0xff]   ;;  %v859_v22 = vld [vmem:[%s1178_s1 + $0xb8] sm:$0xff]   ;;  %v864_v28 = vld [vmem:[%s1179_s0 + $0x20] ss:$12 sps:$4 sm:$0xff]  }
   0x9   :  { %807 = vmatpush3.bf16.msra.mxu1 %v841_v5  ;;  %v856_v20 = vld [vmem:[%s1178_s1 + $0xb0] sm:$0xff]   ;;  %v858_v25 = vld [vmem:[%s1178_s1 + $0x38] sm:$0xff]   ;;  %v880_v36 = vld [vmem:[%s1179_s0 + $0x80] ss:$12 sps:$4 sm:$0xff]  }
   0xa   :  { %808 = vmatprep.subr.bf16.mxu1 %v844_v8  ;;  %v862_v23 = vld [vmem:[%s1179_s0 + $0x4] ss:$12 sps:$4 sm:$0xff]   ;;  %v863_v24 = vld [vmem:[%s1179_s0 + $0x8] ss:$12 sps:$4 sm:$0xff]   ;;  %v873_v35 = vld [vmem:[%s1179_s0 + $0x4c] ss:$12 sps:$4 sm:$0xff]  }
   0xb   :  { %729 = vmatpush3.bf16.msra.mxu0 %v843_v7  ;;  %389 = vmatprep.mubr.bf16.mxu0 %v862_v23  ;;  %v865_v27 = vld [vmem:[%s1179_s0 + $0x1c] ss:$12 sps:$4 sm:$0xff]   ;;  %v871_v29 = vld [vmem:[%s1179_s0 + $0x38] ss:$12 sps:$4 sm:$0xff]   ;;  %v868_v31 = vld [vmem:[%s1179_s0 + $0x34] ss:$12 sps:$4 sm:$0xff]  }
   0xc   :  { %730 = vmatprep.subr.bf16.mxu0 %v845_v9  ;;  %820 = vmatprep.mubr.bf16.mxu1 %v863_v24  ;;  %v867_v30 = vld [vmem:[%s1179_s0 + $0x18] ss:$12 sps:$4 sm:$0xff]   ;;  %v872_v32 = vld [vmem:[%s1179_s0 + $0x50] ss:$12 sps:$4 sm:$0xff]   ;;  %v879_v33 = vld [vmem:[%s1179_s0 + $0x68] ss:$12 sps:$4 sm:$0xff]  }
   0xd   :  { %809 = vmatpush3.bf16.msra.mxu1 %v844_v8  ;;  %v870_v34 = vld [vmem:[%s1179_s0 + $0x30] ss:$12 sps:$4 sm:$0xff]   ;;  %v887_v37 = vld [vmem:[%s1179_s0 + $0x98] ss:$12 sps:$4 sm:$0xff]   ;;  %v875_v38 = vld [vmem:[%s1179_s0 + $0x48] ss:$12 sps:$4 sm:$0xff]  }
   0xe   :  { %810 = vmatprep.subr.bf16.mxu1 %v847_v11  ;;  %v876_v39 = vld [vmem:[%s1179_s0 + $0x64] ss:$12 sps:$4 sm:$0xff]   ;;  %v878_v41 = vld [vmem:[%s1179_s0 + $0x60] ss:$12 sps:$4 sm:$0xff]   ;;  %v881_v42 = vld [vmem:[%s1179_s0 + $0x7c] ss:$12 sps:$4 sm:$0xff]  }
   0xf   :  { %731 = vmatpush3.bf16.msra.mxu0 %v846_v10  ;;  %v888_v40 = vld [vmem:[%s1179_s0 + $0xb0] ss:$0 sps:$4 sm:$0xff]   ;;  %v883_v43 = vld [vmem:[%s1179_s0 + $0x78] ss:$12 sps:$4 sm:$0xff]   ;;  %v884_v44 = vld [vmem:[%s1179_s0 + $0x94] ss:$12 sps:$4 sm:$0xff]  }
  0x10   :  { %732 = vmatprep.subr.bf16.mxu0 %v848_v12  ;;  %v40_v45 = vld [vmem:[%s1179_s0 + $0xa8] sm:$0xff]  ;;  %v886_v46 = vld [vmem:[%s1179_s0 + $0x90] ss:$12 sps:$4 sm:$0xff]  }
  0x11   :  { %811 = vmatpush3.bf16.msra.mxu1 %v847_v11  ;;  %v698_v47 = vcombine.high %v40_v45, %v40_v45  ;;  %v697_v48 = vcombine.low %v40_v45, %v40_v45 }
  0x12   :  { %812 = vmatprep.subr.bf16.mxu1 %v850_v13 }
  0x13   :  { %733 = vmatpush3.bf16.msra.mxu0 %v849_v14 }
  0x14   :  { %734 = vmatprep.subr.bf16.mxu0 %v851_v15 }
  0x15   :  { %813 = vmatpush3.bf16.msra.mxu1 %v850_v13 }
  0x16   :  { %814 = vmatprep.subr.bf16.mxu1 %v853_v16 }
  0x17   :  { %735 = vmatpush3.bf16.msra.mxu0 %v852_v17 }
  0x18   :  { %736 = vmatprep.subr.bf16.mxu0 %v854_v18 }
  0x19   :  { %815 = vmatpush3.bf16.msra.mxu1 %v853_v16 }
  0x1a   :  { %816 = vmatprep.subr.bf16.mxu1 %v856_v20 }
  0x1b   :  { %737 = vmatpush3.bf16.msra.mxu0 %v855_v19 }
  0x1c   :  { %738 = vmatprep.subr.bf16.mxu0 %v857_v21 }
  0x1d   :  { %817 = vmatpush3.bf16.msra.mxu1 %v856_v20 }
  0x1e   :  { %818 = vmatprep.subr.bf16.mxu1 %v859_v22 }
  0x1f   :  { %739 = vmatpush3.bf16.msra.mxu0 %v858_v25 }
  0x21   :  { %819 = vmatpush3.bf16.msra.mxu1 %v859_v22 }
  0x22   :  { %390 = vmatmul.mubr.bf16.vlgmr.msra.gmra.mrb[0].mxu0 %v860_v26 }
  0x23   :  { %397 = vmatprep.mubr.bf16.mxu0 %v865_v27 }
  0x24   :  { %821 = vmatmul.mubr.bf16.vlgmr.msra.gmra.mrb[0].mxu1 %v864_v28 }
  0x25   :  { %824 = vmatprep.mubr.bf16.mxu1 %v871_v29 }
  0x2a   :  { %398 = vmatmul.mubr.bf16.gmra.mrb[4].mxu0 %v867_v30 }
  0x2b   :  { %405 = vmatprep.mubr.bf16.mxu0 %v868_v31 }
  0x2c   :  { %825 = vmatmul.mubr.bf16.gmra.mrb[4].mxu1 %v872_v32 }
  0x2d   :  { %828 = vmatprep.mubr.bf16.mxu1 %v879_v33 }
  0x32   :  { %406 = vmatmul.mubr.bf16.gmra.mrb[8].mxu0 %v870_v34 }
  0x33   :  { %413 = vmatprep.mubr.bf16.mxu0 %v873_v35 }
  0x34   :  { %829 = vmatmul.mubr.bf16.gmra.mrb[8].mxu1 %v880_v36 }
  0x35   :  { %832 = vmatprep.mubr.bf16.mxu1 %v887_v37 }
  0x3a   :  { %414 = vmatmul.mubr.bf16.gmra.mrb[12].mxu0 %v875_v38 }
  0x3b   :  { %421 = vmatprep.mubr.bf16.mxu0 %v876_v39 }
  0x3c   :  { %833 = vmatmul.mubr.bf16.gmra.mrb[12].mxu1 %v888_v40 }
  0x42   :  { %422 = vmatmul.mubr.bf16.gmra.mrb[16].mxu0 %v878_v41 }
  0x43   :  { %429 = vmatprep.mubr.bf16.mxu0 %v881_v42 }
  0x4a   :  { %430 = vmatmul.mubr.bf16.gmra.mrb[20].mxu0 %v883_v43 }
  0x4b   :  { %437 = vmatprep.mubr.bf16.mxu0 %v884_v44 }
  0x52   :  { %438 = vmatmul.mubr.bf16.gmra.mrb[24].mxu0 %v886_v46 }
  0x53   :  { %445 = vmatprep.mubr.bf16.mxu0 %v698_v47 }
  0x5a   :  { %446 = vmatmul.mubr.bf16.gmra.mrb[28].mxu0 %v697_v48 }
  0xf5   :  { %v740_v49 = vpop.f32.mrb[0].mxu0 }
  0xf6   :  { %v741_v50 = vpop.f32.mrb[1].mxu0 }
  0xf7   :  { %v742_v51 = vadd.f32 %v741_v50, %v740_v49  ;;  %v743_v52 = vpop.f32.mrb[2].mxu0  ;;  %v822_v53 = vpop.f32.mrb[0].mxu1 }
  0xf8   :  { %v744_v54 = vpop.f32.mrb[3].mxu0  ;;  %v487_v55 = vpop.f32.mrb[1].mxu1 }
  0xf9   :  { %v745_v56 = vadd.f32 %v744_v54, %v743_v52  ;;  %v1049_v57 = vadd.f32 %v742_v51, %v487_v55  ;;  %v823_v58 = vpop.f32.mrb[2].mxu1 }
  0xfa   :  { %v490_v59 = vpop.f32.mrb[3].mxu1 }
  0xfb   :  { %v1051_v60 = vadd.f32 %v745_v56, %v490_v59  ;;  %v569_v61 = vmul.f32 %v1049_v57, %v1049_v57 }
  0xfd   :  { %v549_v62 = vadd.f32 %v1051_v60, %v1049_v57  ;;  %v570_v63 = vmul.f32 %v1051_v60, %v1051_v60  ;;  %v746_v0 = vpop.f32.mrb[4].mxu0 }
  0xfe   :  { %v747_v1 = vpop.f32.mrb[5].mxu0 }
  0xff   :  { %v584_v2 = vadd.f32 %v570_v63, %v569_v61  ;;  %v748_v3 = vadd.f32 %v747_v1, %v746_v0  ;;  %v749_v4 = vpop.f32.mrb[6].mxu0  ;;  %v826_v5 = vpop.f32.mrb[4].mxu1 }
 0x100   :  { %v750_v6 = vpop.f32.mrb[7].mxu0  ;;  %v503_v7 = vpop.f32.mrb[5].mxu1 }
 0x101   :  { %v1059_v8 = vadd.f32 %v822_v53, %v748_v3  ;;  %v751_v9 = vadd.f32 %v750_v6, %v749_v4  ;;  %v827_v10 = vpop.f32.mrb[6].mxu1 }
 0x102   :  { %v506_v11 = vpop.f32.mrb[7].mxu1 }
 0x103   :  { %v550_v12 = vadd.f32 %v549_v62, %v1059_v8  ;;  %v571_v13 = vmul.f32 %v1059_v8, %v1059_v8  ;;  %v1064_v14 = vadd.f32 %v823_v58, %v751_v9 }
 0x105   :  { %v585_v15 = vadd.f32 %v584_v2, %v571_v13  ;;  %v572_v16 = vmul.f32 %v1064_v14, %v1064_v14  ;;  %v752_v17 = vpop.f32.mrb[8].mxu0  ;;  %v551_v18 = vadd.f32 %v550_v12, %v1064_v14 }
 0x106   :  { %v753_v19 = vpop.f32.mrb[9].mxu0 }
 0x107   :  { %v754_v20 = vadd.f32 %v753_v19, %v752_v17  ;;  %v755_v21 = vpop.f32.mrb[10].mxu0  ;;  %v586_v22 = vadd.f32 %v585_v15, %v572_v16  ;;  %v830_v23 = vpop.f32.mrb[8].mxu1 }
 0x108   :  { %v756_v24 = vpop.f32.mrb[11].mxu0  ;;  %v519_v25 = vpop.f32.mrb[9].mxu1 }
 0x109   :  { %v757_v26 = vadd.f32 %v756_v24, %v755_v21  ;;  %v1069_v27 = vadd.f32 %v754_v20, %v503_v7  ;;  %v831_v28 = vpop.f32.mrb[10].mxu1 }
 0x10a   :  { %v522_v29 = vpop.f32.mrb[11].mxu1 }
 0x10b   :  { %v552_v30 = vadd.f32 %v551_v18, %v1069_v27  ;;  %v573_v31 = vmul.f32 %v1069_v27, %v1069_v27  ;;  %v1074_v32 = vadd.f32 %v757_v26, %v506_v11 }
 0x10d   :  { %v587_v33 = vadd.f32 %v586_v22, %v573_v31  ;;  %v553_v34 = vadd.f32 %v552_v30, %v1074_v32  ;;  %v574_v35 = vmul.f32 %v1074_v32, %v1074_v32  ;;  %v758_v36 = vpop.f32.mrb[12].mxu0 }
 0x10e   :  { %v759_v37 = vpop.f32.mrb[13].mxu0 }
 0x10f   :  { %v588_v38 = vadd.f32 %v587_v33, %v574_v35  ;;  %v760_v39 = vadd.f32 %v759_v37, %v758_v36  ;;  %v761_v40 = vpop.f32.mrb[14].mxu0  ;;  %v834_v41 = vpop.f32.mrb[12].mxu1 }
 0x110   :  { %v762_v42 = vpop.f32.mrb[15].mxu0  ;;  %v535_v43 = vpop.f32.mrb[13].mxu1 }
 0x111   :  { %v1079_v44 = vadd.f32 %v826_v5, %v760_v39  ;;  %v763_v45 = vadd.f32 %v762_v42, %v761_v40  ;;  %v835_v46 = vpop.f32.mrb[14].mxu1 }
 0x112   :  { %v538_v47 = vpop.f32.mrb[15].mxu1 }
 0x113   :  { %v554_v48 = vadd.f32 %v553_v34, %v1079_v44  ;;  %v575_v49 = vmul.f32 %v1079_v44, %v1079_v44  ;;  %v1084_v50 = vadd.f32 %v827_v10, %v763_v45 }
 0x115   :  { %v589_v51 = vadd.f32 %v588_v38, %v575_v49  ;;  %v576_v52 = vmul.f32 %v1084_v50, %v1084_v50  ;;  %v764_v53 = vpop.f32.mrb[16].mxu0  ;;  %v555_v54 = vadd.f32 %v554_v48, %v1084_v50 }
 0x116   :  { %v765_v55 = vpop.f32.mrb[17].mxu0 }
 0x117   :  { %v766_v56 = vadd.f32 %v765_v55, %v764_v53  ;;  %v767_v58 = vpop.f32.mrb[18].mxu0  ;;  %v590_v59 = vadd.f32 %v589_v51, %v576_v52 }
 0x118   :  { %v768_v61 = vpop.f32.mrb[19].mxu0 }
 0x119   :  { %v769_v62 = vadd.f32 %v768_v61, %v767_v58  ;;  %v1089_v63 = vadd.f32 %v766_v56, %v519_v25 }
 0x11b   :  { %v556_v0 = vadd.f32 %v555_v54, %v1089_v63  ;;  %v577_v1 = vmul.f32 %v1089_v63, %v1089_v63  ;;  %v1094_v2 = vadd.f32 %v769_v62, %v522_v29 }
 0x11d   :  { %v591_v3 = vadd.f32 %v590_v59, %v577_v1  ;;  %v557_v4 = vadd.f32 %v556_v0, %v1094_v2  ;;  %v578_v5 = vmul.f32 %v1094_v2, %v1094_v2  ;;  %v770_v6 = vpop.f32.mrb[20].mxu0 }
 0x11e   :  { %v771_v7 = vpop.f32.mrb[21].mxu0 }
 0x11f   :  { %v592_v9 = vadd.f32 %v591_v3, %v578_v5  ;;  %v772_v10 = vadd.f32 %v771_v7, %v770_v6  ;;  %v773_v11 = vpop.f32.mrb[22].mxu0 }
 0x120   :  { %v774_v12 = vpop.f32.mrb[23].mxu0 }
 0x121   :  { %v1099_v13 = vadd.f32 %v830_v23, %v772_v10  ;;  %v775_v15 = vadd.f32 %v774_v12, %v773_v11 }
 0x123   :  { %v558_v16 = vadd.f32 %v557_v4, %v1099_v13  ;;  %v579_v17 = vmul.f32 %v1099_v13, %v1099_v13  ;;  %v1104_v18 = vadd.f32 %v831_v28, %v775_v15 }
 0x125   :  { %v593_v19 = vadd.f32 %v592_v9, %v579_v17  ;;  %v580_v20 = vmul.f32 %v1104_v18, %v1104_v18  ;;  %v776_v21 = vpop.f32.mrb[24].mxu0  ;;  %v559_v22 = vadd.f32 %v558_v16, %v1104_v18 }
 0x126   :  { %v777_v24 = vpop.f32.mrb[25].mxu0 }
 0x127   :  { %v778_v25 = vadd.f32 %v777_v24, %v776_v21  ;;  %v779_v26 = vpop.f32.mrb[26].mxu0  ;;  %v594_v23 = vadd.f32 %v593_v19, %v580_v20 }
 0x128   :  { %v780_v29 = vpop.f32.mrb[27].mxu0 }
 0x129   :  { %v781_v30 = vadd.f32 %v780_v29, %v779_v26  ;;  %v1109_v31 = vadd.f32 %v778_v25, %v535_v43 }
 0x12b   :  { %v560_v33 = vadd.f32 %v559_v22, %v1109_v31  ;;  %v581_v28 = vmul.f32 %v1109_v31, %v1109_v31  ;;  %v1114_v34 = vadd.f32 %v781_v30, %v538_v47 }
 0x12d   :  { %v595_v35 = vadd.f32 %v594_v23, %v581_v28  ;;  %v561_v36 = vadd.f32 %v560_v33, %v1114_v34  ;;  %v582_v37 = vmul.f32 %v1114_v34, %v1114_v34  ;;  %v782_v38 = vpop.f32.mrb[28].mxu0 }
 0x12e   :  { %v783_v39 = vpop.f32.mrb[29].mxu0 }
 0x12f   :  { %v596_v40 = vadd.f32 %v595_v35, %v582_v37  ;;  %v784_v42 = vadd.f32 %v783_v39, %v782_v38  ;;  %v785_v45 = vpop.f32.mrb[30].mxu0 }
 0x130   :  { %v786_v43 = vpop.f32.mrb[31].mxu0 }
 0x131   :  { %v544_v46 = vadd.f32 %v834_v41, %v784_v42 }
 0x133   :  { %v562_v48 = vadd.f32 %v561_v36, %v544_v46  ;;  %v583_v49 = vmul.f32 %v544_v46, %v544_v46 }
 0x135   :  { %v563_v51 = vrot.slane %v562_v48, 4  ;;  %v597_v52 = vadd.f32 %v596_v40, %v583_v49 }
 0x137   :  { %v564_v53 = vadd.f32 %v563_v51, %v562_v48  ;;  %v598_v47 = vrot.slane %v597_v52, 4 }
 0x139   :  { %v565_v54 = vrot.slane %v564_v53, 2  ;;  %v599_v55 = vadd.f32 %v598_v47, %v597_v52 }
 0x13b   :  { %v566_v56 = vadd.f32 %v565_v54, %v564_v53  ;;  %v600_v58 = vrot.slane %v599_v55, 2 }
 0x13d   :  { %v567_v59 = vrot.slane %v566_v56, 1  ;;  %v601_v61 = vadd.f32 %v600_v58, %v599_v55 }
 0x13f   :  { %v568_v62 = vadd.f32 %v567_v59, %v566_v56  ;;  %v602_v0 = vrot.slane %v601_v61, 1 }
 0x141   :  { %v603_v1 = vadd.f32 %v602_v0, %v601_v61  ;;  %v605_v3 = vmul.f32 0.008333334, %v568_v62 }
 0x143   :  { %v606_v4 = vmul.f32 0.008333334, %v603_v1  ;;  %v607_v5 = vmul.f32 %v605_v3, %v605_v3  ;;  %v612_v41 = vsub.f32 %v1049_v57, %v605_v3  ;;  %v613_v6 = vsub.f32 %v1051_v60, %v605_v3 }
 0x144   :  { %v614_v7 = vsub.f32 %v1059_v8, %v605_v3  ;;  %v615_v9 = vsub.f32 %v1064_v14, %v605_v3  ;;  %v616_v10 = vsub.f32 %v1069_v27, %v605_v3  ;;  %v617_v11 = vsub.f32 %v1074_v32, %v605_v3 }
 0x145   :  { %v608_v12 = vsub.f32 %v606_v4, %v607_v5  ;;  %v618_v15 = vsub.f32 %v1079_v44, %v605_v3  ;;  %v619_v16 = vsub.f32 %v1084_v50, %v605_v3  ;;  %v620_v17 = vsub.f32 %v1089_v63, %v605_v3 }
 0x146   :  { %v621_v19 = vsub.f32 %v1094_v2, %v605_v3  ;;  %v622_v57 = vsub.f32 %v1099_v13, %v605_v3  ;;  %v623_v60 = vsub.f32 %v1104_v18, %v605_v3  ;;  %v624_v8 = vsub.f32 %v1109_v31, %v605_v3 }
 0x147   :  { %v609_v14 = vmax.f32 %v608_v12, 0.0  ;;  %v625_v27 = vsub.f32 %v1114_v34, %v605_v3  ;;  %v626_v20 = vsub.f32 %v544_v46, %v605_v3 }
 0x149   :  { %v610_v32 = vadd.f32 1e-05, %v609_v14 }
 0x14b   :  { %891 = vrsqrt.f32 %v610_v32 }
 0x155   :  { %v892_v21 = vpop.eup %891 }
 0x156   :  { %v627_v44 = vmul.f32 %v892_v21, %v612_v41  ;;  %v628_v22 = vmul.f32 %v892_v21, %v613_v6  ;;  %v629_v50 = vmul.f32 %v892_v21, %v614_v7  ;;  %v630_v24 = vmul.f32 %v892_v21, %v615_v9 }
 0x157   :  { %v631_v63 = vmul.f32 %v892_v21, %v616_v10  ;;  %v632_v25 = vmul.f32 %v892_v21, %v617_v11  ;;  %v633_v2 = vmul.f32 %v892_v21, %v618_v15  ;;  %v634_v26 = vmul.f32 %v892_v21, %v619_v16 }
 0x158   :  { %v635_v13 = vmul.f32 %v892_v21, %v620_v17  ;;  %v636_v23 = vmul.f32 %v892_v21, %v621_v19  ;;  %v637_v18 = vmul.f32 %v892_v21, %v622_v57  ;;  %v638_v29 = vmul.f32 %v892_v21, %v623_v60 }
 0x159   :  { %v639_v30 = vmul.f32 %v892_v21, %v624_v8  ;;  %v640_v31 = vmul.f32 %v892_v21, %v625_v27  ;;  %v641_v33 = vmul.f32 %v892_v21, %v626_v20  ;;  %v642_v28 = vmax.f32 %v627_v44, 0.0 }
 0x15a   :  { %v643_v34 = vmax.f32 %v628_v22, 0.0  ;;  %v644_v35 = vmax.f32 %v629_v50, 0.0  ;;  %v645_v36 = vmax.f32 %v630_v24, 0.0  ;;  %v646_v37 = vmax.f32 %v631_v63, 0.0 }
 0x15b   :  { %v647_v38 = vmax.f32 %v632_v25, 0.0  ;;  %v648_v39 = vmax.f32 %v633_v2, 0.0  ;;  %v649_v40 = vmax.f32 %v634_v26, 0.0  ;;  %v650_v42 = vmax.f32 %v635_v13, 0.0  ;;  %657 = vst [vmem:[%s1180_s2] sm:$0xff] %v642_v28 }
 0x15c   :  { %v651_v45 = vmax.f32 %v636_v23, 0.0  ;;  %v652_v43 = vmax.f32 %v637_v18, 0.0  ;;  %v653_v46 = vmax.f32 %v638_v29, 0.0  ;;  %v654_v48 = vmax.f32 %v639_v30, 0.0  ;;  %658 = vst [vmem:[%s1180_s2 + $0x8] sm:$0xff] %v643_v34  ;;  %659 = vst [vmem:[%s1180_s2 + $0x10] sm:$0xff] %v644_v35 }
 0x15d   :  { %660 = vst [vmem:[%s1180_s2 + $0x18] sm:$0xff] %v645_v36  ;;  %661 = vst [vmem:[%s1180_s2 + $0x20] sm:$0xff] %v646_v37  ;;  %v655_v49 = vmax.f32 %v640_v31, 0.0  ;;  %v656_v51 = vmax.f32 %v641_v33, 0.0 }
 0x15e   :  { %662 = vst [vmem:[%s1180_s2 + $0x28] sm:$0xff] %v647_v38  ;;  %663 = vst [vmem:[%s1180_s2 + $0x30] sm:$0xff] %v648_v39 }
 0x15f   :  { %664 = vst [vmem:[%s1180_s2 + $0x38] sm:$0xff] %v649_v40  ;;  %665 = vst [vmem:[%s1180_s2 + $0x40] sm:$0xff] %v650_v42 }
 0x160   :  { %666 = vst [vmem:[%s1180_s2 + $0x48] sm:$0xff] %v651_v45  ;;  %667 = vst [vmem:[%s1180_s2 + $0x50] sm:$0xff] %v652_v43 }
 0x161   :  { %668 = vst [vmem:[%s1180_s2 + $0x58] sm:$0xff] %v653_v46  ;;  %669 = vst [vmem:[%s1180_s2 + $0x60] sm:$0xff] %v654_v48 }
 0x162   :  { %670 = vst [vmem:[%s1180_s2 + $0x68] sm:$0xff] %v655_v49  ;;  %671 = vst [vmem:[%s1180_s2 + $0x70] sm:$0xff] %v656_v51 }

// kernel: crn_forward.10
= control target key start
LH: loop header
LB: loop body
LE: loop exit
PB: predicated region body
PF: predicated region fallthrough
CT: control target
= control target key end

     0   :  { %vm39_vm0 = vcmask 130048   ;;  %v4272_v3 = vmov 0.0|0.0   ;;  %vm4273_vm1 = vmmov 0   ;;  %v4274_v4 = vmov 0.0   ;;  %s4275_s14 = smov 96   ;;  %s4277_s15 = smov 32   ;;  %s4841_s1 = inlined_call_operand.vmem [shape: f32[16,64], index: 1, kind: input, shape index: {}]   ;;  %s4842_s0 = inlined_call_operand.vmem [shape: f32[28,16], index: 0, kind: input, shape index: {}]   ;;  %s4843_s2 = inlined_call_operand.vmem [shape: f32[16,64], index: 2, kind: input, shape index: {}]   ;;  %s4844_s3 = inlined_call_operand.vmem [shape: f32[1,64], index: 3, kind: input, shape index: {}]   ;;  %s4845_s4 = inlined_call_operand.vmem [shape: f32[16,64], index: 4, kind: input, shape index: {}]   ;;  %s4846_s6 = inlined_call_operand.vmem [shape: f32[1,64], index: 6, kind: input, shape index: {}]   ;;  %s4847_s5 = inlined_call_operand.vmem [shape: f32[16,64], index: 5, kind: input, shape index: {}]   ;;  %s4848_s7 = inlined_call_operand.vmem [shape: f32[28,16], index: 7, kind: output, shape index: {}]  }
   0x1   :  { %v30_v0 = vld [vmem:[%s4841_s1] sm:$0xff]  ;;  %v31_v1 = vld [vmem:[%s4841_s1 + $0x8] sm:$0xff]  ;;  %3952 = vmatprep.subr.bf16.mxu1 %v4272_v3  ;;  %3746 = vmatprep.mubr.msk.f32.mxu1 %vm4273_vm1, %v4274_v4  ;;  %vm143_vm2 = vcmask 123904   ;;  %vm137_vm3 = vcmask 523264   ;;  %s4278_s16 = smov 112   ;;  %s4279_s17 = smov 80  }
   0x2   :  { %v26_v2 = vld [vmem:[%s4842_s0] sm:$0xff]  ;;  %v3948_v5 = vpack.c.bf16 %v31_v1, %v30_v0  ;;  %v149_v7 = vld [vmem:[%s4843_s2 + $0x8] sm:$0xff]  ;;  %144 = vst.msk [vmem:[#allocation4] sm:$0x3] %vm143_vm2, %v4274_v4  ;;  %145 = vst.msk [vmem:[#allocation5] sm:$0x3] %vm143_vm2, %v4274_v4 }
   0x3   :  { %3736 = vmatprep.mubr.msk.f32.mxu0 %vm39_vm0, %v26_v2  ;;  %v148_v6 = vld [vmem:[%s4843_s2] sm:$0xff]  ;;  %v27_v9 = vld [vmem:[%s4842_s0 + $0x8] sm:$0xff]  ;;  %v28_v55 = vld [vmem:[%s4842_s0 + $0x10] sm:$0xff]  ;;  %vm141_vm4 = vcmask 519168  }
   0x4   :  { %v4343_v8 = vpack.c.bf16 %v149_v7, %v148_v6  ;;  %3949 = vmatprep.subr.bf16.mxu0 %v3948_v5  ;;  %v4362_v11 = vld [vmem:[%s4844_s3] ss:$0 sm:$0xff]  ;;  %s4276_s3 = smov 16   ;;  %v29_v56 = vld [vmem:[%s4842_s0 + $0x18] sm:$0xf] }
   0x5   :  { %3951 = vmatpush3.bf16.msra.mxu0 %v3948_v5 }
   0x6   :  { %3954 = vmatpush3.bf16.msra.mxu1 %v4343_v8  ;;  %3958 = vmatprep.subr.bf16.mxu0 %v4272_v3 }
   0x7   :  { %3955 = vmatprep.subr.bf16.mxu1 %v4272_v3 }
   0x8   :  { %3737 = vmatmul.mubr.msk.f32.vlgmr.msra.gmra.mrb[0].mxu0 %vm39_vm0, %v27_v9 }
   0x9   :  { %v147_v10 = vld [vmem:[#allocation4] sm:$0x3]  ;;  %3960 = vmatpush3.bf16.msra.mxu0 %v4343_v8  ;;  %v231_v21 = vld [vmem:[#allocation5] sm:$0x3]  ;;  %3739 = vmatprep.mubr.msk.f32.mxu0 %vm39_vm0, %v28_v55 }
   0xa   :  { %3747 = vmatmul.mubr.msk.f32.vlgmr.msra.gmra.mrb[0].mxu1 %vm39_vm0, %v147_v10  ;;  %3964 = vmatprep.subr.bf16.mxu0 %v4272_v3 }
   0xb   :  { %3957 = vmatpush3.bf16.msra.mxu1 %v4343_v8  ;;  %3753 = vmatprep.mubr.msk.f32.mxu1 %vm4273_vm1, %v4274_v4 }
   0xc   :  { %3961 = vmatprep.subr.bf16.mxu1 %v4272_v3  ;;  %3740 = vmatmul.mubr.msk.f32.gmra.mrb[2].mxu0 %vm39_vm0, %v29_v56 }
   0xd   :  { %3760 = vmatprep.mubr.msk.f32.mxu0 %vm4273_vm1, %v4274_v4 }
  0xdb   :  { %v3738_v12 = vpop.f32.mrb[0].mxu0 }
  0xdc   :  { %v124_v13 = vadd.f32 %v3738_v12, %v4362_v11  ;;  %v118_v14 = vpop.f32.mrb[1].mxu0 }
  0xdd   :  { %v119_v15 = vadd.f32 %v4362_v11, %v118_v14  ;;  %v219_v16 = vpop.f32.mrb[0].mxu1 }
  0xde   :  { %139 = vst.msk [vmem:[#allocation3 + $0x8] sm:$0xff] %vm137_vm3, %v124_v13  ;;  %v3748_v17 = vpop.f32.mrb[1].mxu1 }
  0xdf   :  { %138 = vst.msk [vmem:[#allocation3] sm:$0xff] %vm137_vm3, %v119_v15  ;;  %v3741_v63 = vpop.f32.mrb[2].mxu0 }
  0xe0   :  { %v134_v0 = vadd.f32 %v3741_v63, %v4362_v11  ;;  %v128_v1 = vpop.f32.mrb[3].mxu0 }
  0xe1   :  { %v129_v2 = vadd.f32 %v4362_v11, %v128_v1 }
  0xe2   :  { %142 = vst.msk [vmem:[#allocation3 + $0x18] sm:$0xf] %vm141_vm4, %v134_v0 }
  0xe3   :  { %140 = vst.msk [vmem:[#allocation3 + $0x10] sm:$0xff] %vm137_vm3, %v129_v2 }
  0xe6   :  { %v146_v18 = vld [vmem:[#allocation3] sm:$0x3]  ;;  %v264_v39 = vld [vmem:[#allocation3 + $0x2] sm:$0x3]  ;;  %v382_v5 = vld [vmem:[#allocation3 + $0x4] sm:$0x3] }
  0xe7   :  { %v223_v19 = vadd.f32 %v219_v16, %v146_v18 }
  0xe9   :  { %4048 = vtanh.f32 %v223_v19  ;;  %v3576_v22 = vmul.f32 -1.442695, %v223_v19 }
  0xeb   :  { %4050 = vpow2.f32 %v3576_v22 }
  0xf3   :  { %v4049_v20 = vpop.eup %4048 }
  0xf4   :  { %238 = vrot.lane.b32.xlu0 %v4049_v20, %s4275_s14 }
  0xf5   :  { %v4051_v23 = vpop.eup %4050 }
  0xf6   :  { %v227_v24 = vadd.f32 1.0, %v4051_v23 }
  0xf8   :  { %233 = vrot.lane.b32.xlu0 %v231_v21, %s4276_s3  ;;  %4052 = vrcp.f32 %v227_v24 }
 0x102   :  { %v4053_v25 = vpop.eup %4052 }
 0x166   :  { %v239_v26 = vpop.permute.xlu0 %238 }
 0x167   :  { %v241_v27 = vmul.f32 %v4053_v25, %v239_v26 }
 0x169   :  { %243 = vrot.lane.b32.xlu1 %v241_v27, %s4276_s3 }
 0x16a   :  { %v234_v28 = vpop.permute.xlu0 %233 }
 0x16b   :  { %v236_v29 = vmul.f32 %v4053_v25, %v234_v28  ;;  %v500_v28 = vld [vmem:[#allocation3 + $0x6] sm:$0x3] }
 0x1db   :  { %v244_v30 = vpop.permute.xlu1 %243 }
 0x1dc   :  { %v246_v31 = vadd.f32 %v244_v30, %v236_v29 }
 0x1de   :  { %4054 = vtanh.f32 %v246_v31 }
 0x1e8   :  { %v4055_v32 = vpop.eup %4054 }
 0x1e9   :  { %249 = vrot.lane.b32.xlu1 %v4055_v32, %s4277_s15 }
 0x1ed   :  { %254 = vrot.lane.b32.xlu1 %v246_v31, %s4278_s16 }
 0x25b   :  { %v250_v33 = vpop.permute.xlu1 %249 }
 0x25c   :  { %v252_v34 = vmul.f32 %v4053_v25, %v250_v33 }
 0x25e   :  { %259 = vrot.lane.b32.xlu0 %v252_v34, %s4279_s17 }
 0x25f   :  { %v255_v35 = vpop.permute.xlu1 %254 }
 0x260   :  { %257 = vst.msk [vmem:[#allocation5] sm:$0x3] %vm143_vm2, %v255_v35 }
 0x267   :  { %v349_v36 = vld [vmem:[#allocation5] sm:$0x3] }
 0x268   :  { %351 = vrot.lane.b32.xlu1 %v349_v36, %s4276_s3 }
 0x2d0   :  { %v260_v37 = vpop.permute.xlu0 %259 }
 0x2d1   :  { %262 = vst.msk [vmem:[#allocation4] sm:$0x3] %vm143_vm2, %v260_v37  ;;  %263 = vst.msk [vmem:[#allocation2] sm:$0x3] %vm143_vm2, %v260_v37 }
 0x2d8   :  { %v265_v38 = vld [vmem:[#allocation4] sm:$0x3] }
 0x2d9   :  { %3754 = vmatmul.mubr.msk.f32.vlgmr.msra.gmra.mrb[2].mxu1 %vm39_vm0, %v265_v38 }
 0x2da   :  { %3963 = vmatpush3.bf16.msra.mxu1 %v4343_v8  ;;  %3767 = vmatprep.mubr.msk.f32.mxu1 %vm4273_vm1, %v4274_v4  ;;  %v352_v50 = vpop.permute.xlu1 %351 }
 0x2db   :  { %3967 = vmatprep.subr.bf16.mxu1 %v4272_v3 }
 0x3ac   :  { %v337_v40 = vpop.f32.mrb[2].mxu1 }
 0x3ad   :  { %v341_v41 = vadd.f32 %v337_v40, %v264_v39  ;;  %v3755_v42 = vpop.f32.mrb[3].mxu1 }
 0x3af   :  { %4056 = vtanh.f32 %v341_v41  ;;  %v3578_v44 = vmul.f32 -1.442695, %v341_v41 }
 0x3b1   :  { %4058 = vpow2.f32 %v3578_v44 }
 0x3b9   :  { %v4057_v43 = vpop.eup %4056 }
 0x3ba   :  { %356 = vrot.lane.b32.xlu0 %v4057_v43, %s4275_s14 }
 0x3bb   :  { %v4059_v45 = vpop.eup %4058 }
 0x3bc   :  { %v345_v46 = vadd.f32 1.0, %v4059_v45 }
 0x3be   :  { %4060 = vrcp.f32 %v345_v46 }
 0x3c8   :  { %v4061_v47 = vpop.eup %4060 }
 0x3c9   :  { %v354_v51 = vmul.f32 %v4061_v47, %v352_v50  ;;  %v618_v50 = vld [vmem:[#allocation3 + $0x8] sm:$0x3] }
 0x42c   :  { %v357_v48 = vpop.permute.xlu0 %356 }
 0x42d   :  { %v359_v49 = vmul.f32 %v4061_v47, %v357_v48 }
 0x42f   :  { %361 = vrot.lane.b32.xlu0 %v359_v49, %s4276_s3 }
 0x4a1   :  { %v362_v52 = vpop.permute.xlu0 %361 }
 0x4a2   :  { %v364_v53 = vadd.f32 %v362_v52, %v354_v51 }
 0x4a4   :  { %4062 = vtanh.f32 %v364_v53 }
 0x4ae   :  { %v4063_v54 = vpop.eup %4062 }
 0x4af   :  { %367 = vrot.lane.b32.xlu1 %v4063_v54, %s4277_s15 }
 0x4b3   :  { %372 = vrot.lane.b32.xlu1 %v364_v53, %s4278_s16 }
 0x521   :  { %v368_v57 = vpop.permute.xlu1 %367 }
 0x522   :  { %v370_v58 = vmul.f32 %v4061_v47, %v368_v57 }
 0x524   :  { %377 = vrot.lane.b32.xlu0 %v370_v58, %s4279_s17 }
 0x525   :  { %v373_v59 = vpop.permute.xlu1 %372 }
 0x526   :  { %375 = vst.msk [vmem:[#allocation5] sm:$0x3] %vm143_vm2, %v373_v59 }
 0x52d   :  { %v467_v60 = vld [vmem:[#allocation5] sm:$0x3] }
 0x52e   :  { %469 = vrot.lane.b32.xlu1 %v467_v60, %s4276_s3 }
 0x596   :  { %v378_v61 = vpop.permute.xlu0 %377 }
 0x597   :  { %380 = vst.msk [vmem:[#allocation4] sm:$0x3] %vm143_vm2, %v378_v61  ;;  %381 = vst.msk [vmem:[#allocation2 + $0x2] sm:$0x3] %vm143_vm2, %v378_v61 }
 0x59e   :  { %v383_v62 = vld [vmem:[#allocation4] sm:$0x3] }
 0x59f   :  { %3761 = vmatmul.mubr.msk.f32.vlgmr.msra.gmra.mrb[4].mxu0 %vm39_vm0, %v383_v62 }
 0x5a0   :  { %3966 = vmatpush3.bf16.msra.mxu0 %v4343_v8  ;;  %3774 = vmatprep.mubr.msk.f32.mxu0 %vm4273_vm1, %v4274_v4  ;;  %v470_v17 = vpop.permute.xlu1 %469 }
 0x5a1   :  { %3970 = vmatprep.subr.bf16.mxu0 %v4272_v3 }
 0x672   :  { %v455_v6 = vpop.f32.mrb[4].mxu0 }
 0x673   :  { %v459_v7 = vadd.f32 %v455_v6, %v382_v5  ;;  %v3762_v9 = vpop.f32.mrb[5].mxu0 }
 0x675   :  { %4064 = vtanh.f32 %v459_v7  ;;  %v3580_v12 = vmul.f32 -1.442695, %v459_v7 }
 0x677   :  { %4066 = vpow2.f32 %v3580_v12  ;;  %v736_v12 = vld [vmem:[#allocation3 + $0xa] sm:$0x3] }
 0x67f   :  { %v4065_v10 = vpop.eup %4064 }
 0x680   :  { %474 = vrot.lane.b32.xlu0 %v4065_v10, %s4275_s14 }
 0x681   :  { %v4067_v13 = vpop.eup %4066 }
 0x682   :  { %v463_v14 = vadd.f32 1.0, %v4067_v13 }
 0x684   :  { %4068 = vrcp.f32 %v463_v14 }
 0x68e   :  { %v4069_v15 = vpop.eup %4068 }
 0x68f   :  { %v472_v18 = vmul.f32 %v4069_v15, %v470_v17 }
 0x6f2   :  { %v475_v16 = vpop.permute.xlu0 %474 }
 0x6f3   :  { %v477_v11 = vmul.f32 %v4069_v15, %v475_v16 }
 0x6f5   :  { %479 = vrot.lane.b32.xlu0 %v477_v11, %s4276_s3 }
 0x767   :  { %v480_v19 = vpop.permute.xlu0 %479 }
 0x768   :  { %v482_v20 = vadd.f32 %v480_v19, %v472_v18 }
 0x76a   :  { %4070 = vtanh.f32 %v482_v20 }
 0x774   :  { %v4071_v21 = vpop.eup %4070 }
 0x775   :  { %485 = vrot.lane.b32.xlu1 %v4071_v21, %s4277_s15 }
 0x779   :  { %490 = vrot.lane.b32.xlu1 %v482_v20, %s4278_s16 }
 0x7e7   :  { %v486_v22 = vpop.permute.xlu1 %485 }
 0x7e8   :  { %v488_v23 = vmul.f32 %v4069_v15, %v486_v22 }
 0x7ea   :  { %495 = vrot.lane.b32.xlu0 %v488_v23, %s4279_s17 }
 0x7eb   :  { %v491_v24 = vpop.permute.xlu1 %490 }
 0x7ec   :  { %493 = vst.msk [vmem:[#allocation5] sm:$0x3] %vm143_vm2, %v491_v24 }
 0x7f3   :  { %v585_v25 = vld [vmem:[#allocation5] sm:$0x3] }
 0x7f4   :  { %587 = vrot.lane.b32.xlu1 %v585_v25, %s4276_s3 }
 0x85c   :  { %v496_v26 = vpop.permute.xlu0 %495 }
 0x85d   :  { %498 = vst.msk [vmem:[#allocation4] sm:$0x3] %vm143_vm2, %v496_v26  ;;  %499 = vst.msk [vmem:[#allocation2 + $0x4] sm:$0x3] %vm143_vm2, %v496_v26 }
 0x864   :  { %v501_v27 = vld [vmem:[#allocation4] sm:$0x3] }
 0x865   :  { %3768 = vmatmul.mubr.msk.f32.vlgmr.msra.gmra.mrb[4].mxu1 %vm39_vm0, %v501_v27 }
 0x866   :  { %3969 = vmatpush3.bf16.msra.mxu1 %v4343_v8  ;;  %3781 = vmatprep.mubr.msk.f32.mxu1 %vm4273_vm1, %v4274_v4  ;;  %v588_v39 = vpop.permute.xlu1 %587 }
 0x867   :  { %3973 = vmatprep.subr.bf16.mxu1 %v4272_v3 }
 0x938   :  { %v573_v29 = vpop.f32.mrb[4].mxu1 }
 0x939   :  { %v577_v30 = vadd.f32 %v573_v29, %v500_v28  ;;  %v3769_v31 = vpop.f32.mrb[5].mxu1 }
 0x93b   :  { %4072 = vtanh.f32 %v577_v30  ;;  %v3582_v33 = vmul.f32 -1.442695, %v577_v30 }
 0x93d   :  { %4074 = vpow2.f32 %v3582_v33  ;;  %v854_v33 = vld [vmem:[#allocation3 + $0xc] sm:$0x3] }
 0x945   :  { %v4073_v32 = vpop.eup %4072 }
 0x946   :  { %592 = vrot.lane.b32.xlu0 %v4073_v32, %s4275_s14 }
 0x947   :  { %v4075_v34 = vpop.eup %4074 }
 0x948   :  { %v581_v35 = vadd.f32 1.0, %v4075_v34 }
 0x94a   :  { %4076 = vrcp.f32 %v581_v35 }
 0x954   :  { %v4077_v36 = vpop.eup %4076 }
 0x955   :  { %v590_v40 = vmul.f32 %v4077_v36, %v588_v39 }
 0x9b8   :  { %v593_v37 = vpop.permute.xlu0 %592 }
 0x9b9   :  { %v595_v38 = vmul.f32 %v4077_v36, %v593_v37 }
 0x9bb   :  { %597 = vrot.lane.b32.xlu0 %v595_v38, %s4276_s3 }
 0xa2d   :  { %v598_v41 = vpop.permute.xlu0 %597 }
 0xa2e   :  { %v600_v42 = vadd.f32 %v598_v41, %v590_v40 }
 0xa30   :  { %4078 = vtanh.f32 %v600_v42 }
 0xa3a   :  { %v4079_v43 = vpop.eup %4078 }
 0xa3b   :  { %603 = vrot.lane.b32.xlu1 %v4079_v43, %s4277_s15 }
 0xa3f   :  { %608 = vrot.lane.b32.xlu1 %v600_v42, %s4278_s16 }
 0xaad   :  { %v604_v44 = vpop.permute.xlu1 %603 }
 0xaae   :  { %v606_v45 = vmul.f32 %v4077_v36, %v604_v44 }
 0xab0   :  { %613 = vrot.lane.b32.xlu0 %v606_v45, %s4279_s17 }
 0xab1   :  { %v609_v46 = vpop.permute.xlu1 %608 }
 0xab2   :  { %611 = vst.msk [vmem:[#allocation5] sm:$0x3] %vm143_vm2, %v609_v46 }
 0xab9   :  { %v703_v47 = vld [vmem:[#allocation5] sm:$0x3] }
 0xaba   :  { %705 = vrot.lane.b32.xlu1 %v703_v47, %s4276_s3 }
 0xb22   :  { %v614_v48 = vpop.permute.xlu0 %613 }
 0xb23   :  { %616 = vst.msk [vmem:[#allocation4] sm:$0x3] %vm143_vm2, %v614_v48  ;;  %617 = vst.msk [vmem:[#allocation2 + $0x6] sm:$0x3] %vm143_vm2, %v614_v48 }
 0xb2a   :  { %v619_v49 = vld [vmem:[#allocation4] sm:$0x3] }
 0xb2b   :  { %3775 = vmatmul.mubr.msk.f32.vlgmr.msra.gmra.mrb[6].mxu0 %vm39_vm0, %v619_v49 }
 0xb2c   :  { %3972 = vmatpush3.bf16.msra.mxu0 %v4343_v8  ;;  %3788 = vmatprep.mubr.msk.f32.mxu0 %vm4273_vm1, %v4274_v4  ;;  %v706_v61 = vpop.permute.xlu1 %705 }
 0xb2d   :  { %3976 = vmatprep.subr.bf16.mxu0 %v4272_v3 }
 0xbfe   :  { %v691_v51 = vpop.f32.mrb[6].mxu0 }
 0xbff   :  { %v695_v52 = vadd.f32 %v691_v51, %v618_v50  ;;  %v3776_v53 = vpop.f32.mrb[7].mxu0 }
 0xc01   :  { %4080 = vtanh.f32 %v695_v52  ;;  %v3584_v55 = vmul.f32 -1.442695, %v695_v52 }
 0xc03   :  { %4082 = vpow2.f32 %v3584_v55  ;;  %v972_v55 = vld [vmem:[#allocation3 + $0xe] sm:$0x3] }
 0xc0b   :  { %v4081_v54 = vpop.eup %4080 }
 0xc0c   :  { %710 = vrot.lane.b32.xlu0 %v4081_v54, %s4275_s14 }
 0xc0d   :  { %v4083_v56 = vpop.eup %4082 }
 0xc0e   :  { %v699_v57 = vadd.f32 1.0, %v4083_v56 }
 0xc10   :  { %4084 = vrcp.f32 %v699_v57 }
 0xc1a   :  { %v4085_v58 = vpop.eup %4084 }
 0xc1b   :  { %v708_v62 = vmul.f32 %v4085_v58, %v706_v61 }
 0xc7e   :  { %v711_v59 = vpop.permute.xlu0 %710 }
 0xc7f   :  { %v713_v60 = vmul.f32 %v4085_v58, %v711_v59 }
 0xc81   :  { %715 = vrot.lane.b32.xlu0 %v713_v60, %s4276_s3 }
 0xcf3   :  { %v716_v63 = vpop.permute.xlu0 %715 }
 0xcf4   :  { %v718_v0 = vadd.f32 %v716_v63, %v708_v62 }
 0xcf6   :  { %4086 = vtanh.f32 %v718_v0 }
 0xd00   :  { %v4087_v1 = vpop.eup %4086 }
 0xd01   :  { %721 = vrot.lane.b32.xlu1 %v4087_v1, %s4277_s15 }
 0xd05   :  { %726 = vrot.lane.b32.xlu1 %v718_v0, %s4278_s16 }
 0xd73   :  { %v722_v2 = vpop.permute.xlu1 %721 }
 0xd74   :  { %v724_v5 = vmul.f32 %v4085_v58, %v722_v2 }
 0xd76   :  { %731 = vrot.lane.b32.xlu0 %v724_v5, %s4279_s17 }
 0xd77   :  { %v727_v6 = vpop.permute.xlu1 %726 }
 0xd78   :  { %729 = vst.msk [vmem:[#allocation5] sm:$0x3] %vm143_vm2, %v727_v6 }
 0xd7f   :  { %v821_v7 = vld [vmem:[#allocation5] sm:$0x3] }
 0xd80   :  { %823 = vrot.lane.b32.xlu1 %v821_v7, %s4276_s3 }
 0xde8   :  { %v732_v9 = vpop.permute.xlu0 %731 }
 0xde9   :  { %734 = vst.msk [vmem:[#allocation4] sm:$0x3] %vm143_vm2, %v732_v9  ;;  %735 = vst.msk [vmem:[#allocation2 + $0x8] sm:$0x3] %vm143_vm2, %v732_v9 }
 0xdf0   :  { %v737_v10 = vld [vmem:[#allocation4] sm:$0x3] }
 0xdf1   :  { %3782 = vmatmul.mubr.msk.f32.vlgmr.msra.gmra.mrb[6].mxu1 %vm39_vm0, %v737_v10 }
 0xdf2   :  { %3975 = vmatpush3.bf16.msra.mxu1 %v4343_v8  ;;  %3795 = vmatprep.mubr.msk.f32.mxu1 %vm4273_vm1, %v4274_v4  ;;  %v824_v22 = vpop.permute.xlu1 %823 }
 0xdf3   :  { %3979 = vmatprep.subr.bf16.mxu1 %v4272_v3 }
 0xec4   :  { %v809_v13 = vpop.f32.mrb[6].mxu1 }
 0xec5   :  { %v813_v14 = vadd.f32 %v809_v13, %v736_v12  ;;  %v3783_v15 = vpop.f32.mrb[7].mxu1 }
 0xec7   :  { %4088 = vtanh.f32 %v813_v14  ;;  %v3586_v11 = vmul.f32 -1.442695, %v813_v14 }
 0xec9   :  { %4090 = vpow2.f32 %v3586_v11  ;;  %v1090_v11 = vld [vmem:[#allocation3 + $0x10] sm:$0x3] }
 0xed1   :  { %v4089_v16 = vpop.eup %4088 }
 0xed2   :  { %828 = vrot.lane.b32.xlu0 %v4089_v16, %s4275_s14 }
 0xed3   :  { %v4091_v17 = vpop.eup %4090 }
 0xed4   :  { %v817_v18 = vadd.f32 1.0, %v4091_v17 }
 0xed6   :  { %4092 = vrcp.f32 %v817_v18 }
 0xee0   :  { %v4093_v19 = vpop.eup %4092 }
 0xee1   :  { %v826_v23 = vmul.f32 %v4093_v19, %v824_v22 }
 0xf44   :  { %v829_v20 = vpop.permute.xlu0 %828 }
 0xf45   :  { %v831_v21 = vmul.f32 %v4093_v19, %v829_v20 }
 0xf47   :  { %833 = vrot.lane.b32.xlu0 %v831_v21, %s4276_s3 }
 0xfb9   :  { %v834_v24 = vpop.permute.xlu0 %833 }
 0xfba   :  { %v836_v25 = vadd.f32 %v834_v24, %v826_v23 }
 0xfbc   :  { %4094 = vtanh.f32 %v836_v25 }
 0xfc6   :  { %v4095_v26 = vpop.eup %4094 }
 0xfc7   :  { %839 = vrot.lane.b32.xlu1 %v4095_v26, %s4277_s15 }
 0xfcb   :  { %844 = vrot.lane.b32.xlu1 %v836_v25, %s4278_s16 }
0x1039   :  { %v840_v27 = vpop.permute.xlu1 %839 }
0x103a   :  { %v842_v28 = vmul.f32 %v4093_v19, %v840_v27 }
0x103c   :  { %849 = vrot.lane.b32.xlu0 %v842_v28, %s4279_s17 }
0x103d   :  { %v845_v29 = vpop.permute.xlu1 %844 }
0x103e   :  { %847 = vst.msk [vmem:[#allocation5] sm:$0x3] %vm143_vm2, %v845_v29 }
0x1045   :  { %v939_v30 = vld [vmem:[#allocation5] sm:$0x3] }
0x1046   :  { %941 = vrot.lane.b32.xlu1 %v939_v30, %s4276_s3 }
0x10ae   :  { %v850_v31 = vpop.permute.xlu0 %849 }
0x10af   :  { %852 = vst.msk [vmem:[#allocation4] sm:$0x3] %vm143_vm2, %v850_v31  ;;  %853 = vst.msk [vmem:[#allocation2 + $0xa] sm:$0x3] %vm143_vm2, %v850_v31 }
0x10b6   :  { %v855_v32 = vld [vmem:[#allocation4] sm:$0x3] }
0x10b7   :  { %3789 = vmatmul.mubr.msk.f32.vlgmr.msra.gmra.mrb[8].mxu0 %vm39_vm0, %v855_v32 }
0x10b8   :  { %3978 = vmatpush3.bf16.msra.mxu0 %v4343_v8  ;;  %3802 = vmatprep.mubr.msk.f32.mxu0 %vm4273_vm1, %v4274_v4  ;;  %v942_v44 = vpop.permute.xlu1 %941 }
0x10b9   :  { %3982 = vmatprep.subr.bf16.mxu0 %v4272_v3 }
0x118a   :  { %v927_v34 = vpop.f32.mrb[8].mxu0 }
0x118b   :  { %v931_v35 = vadd.f32 %v927_v34, %v854_v33  ;;  %v3790_v36 = vpop.f32.mrb[9].mxu0 }
0x118d   :  { %4096 = vtanh.f32 %v931_v35  ;;  %v3588_v38 = vmul.f32 -1.442695, %v931_v35 }
0x118f   :  { %4098 = vpow2.f32 %v3588_v38  ;;  %v1208_v38 = vld [vmem:[#allocation3 + $0x12] sm:$0x3] }
0x1197   :  { %v4097_v37 = vpop.eup %4096 }
0x1198   :  { %946 = vrot.lane.b32.xlu0 %v4097_v37, %s4275_s14 }
0x1199   :  { %v4099_v39 = vpop.eup %4098 }
0x119a   :  { %v935_v40 = vadd.f32 1.0, %v4099_v39 }
0x119c   :  { %4100 = vrcp.f32 %v935_v40 }
0x11a6   :  { %v4101_v41 = vpop.eup %4100 }
0x11a7   :  { %v944_v45 = vmul.f32 %v4101_v41, %v942_v44 }
0x120a   :  { %v947_v42 = vpop.permute.xlu0 %946 }
0x120b   :  { %v949_v43 = vmul.f32 %v4101_v41, %v947_v42 }
0x120d   :  { %951 = vrot.lane.b32.xlu0 %v949_v43, %s4276_s3 }
0x127f   :  { %v952_v46 = vpop.permute.xlu0 %951 }
0x1280   :  { %v954_v47 = vadd.f32 %v952_v46, %v944_v45 }
0x1282   :  { %4102 = vtanh.f32 %v954_v47 }
0x128c   :  { %v4103_v48 = vpop.eup %4102 }
0x128d   :  { %957 = vrot.lane.b32.xlu1 %v4103_v48, %s4277_s15 }
0x1291   :  { %962 = vrot.lane.b32.xlu1 %v954_v47, %s4278_s16 }
0x12ff   :  { %v958_v49 = vpop.permute.xlu1 %957 }
0x1300   :  { %v960_v50 = vmul.f32 %v4101_v41, %v958_v49 }
0x1302   :  { %967 = vrot.lane.b32.xlu0 %v960_v50, %s4279_s17 }
0x1303   :  { %v963_v51 = vpop.permute.xlu1 %962 }
0x1304   :  { %965 = vst.msk [vmem:[#allocation5] sm:$0x3] %vm143_vm2, %v963_v51 }
0x130b   :  { %v1057_v52 = vld [vmem:[#allocation5] sm:$0x3] }
0x130c   :  { %1059 = vrot.lane.b32.xlu1 %v1057_v52, %s4276_s3 }
0x1374   :  { %v968_v53 = vpop.permute.xlu0 %967 }
0x1375   :  { %970 = vst.msk [vmem:[#allocation4] sm:$0x3] %vm143_vm2, %v968_v53  ;;  %971 = vst.msk [vmem:[#allocation2 + $0xc] sm:$0x3] %vm143_vm2, %v968_v53 }
0x137c   :  { %v973_v54 = vld [vmem:[#allocation4] sm:$0x3] }
0x137d   :  { %3796 = vmatmul.mubr.msk.f32.vlgmr.msra.gmra.mrb[8].mxu1 %vm39_vm0, %v973_v54 }
0x137e   :  { %3981 = vmatpush3.bf16.msra.mxu1 %v4343_v8  ;;  %3809 = vmatprep.mubr.msk.f32.mxu1 %vm4273_vm1, %v4274_v4  ;;  %v1060_v2 = vpop.permute.xlu1 %1059 }
0x137f   :  { %3985 = vmatprep.subr.bf16.mxu1 %v4272_v3 }
0x1450   :  { %v1045_v56 = vpop.f32.mrb[8].mxu1 }
0x1451   :  { %v1049_v57 = vadd.f32 %v1045_v56, %v972_v55  ;;  %v3797_v58 = vpop.f32.mrb[9].mxu1 }
0x1453   :  { %4104 = vtanh.f32 %v1049_v57  ;;  %v3590_v60 = vmul.f32 -1.442695, %v1049_v57 }
0x1455   :  { %4106 = vpow2.f32 %v3590_v60  ;;  %v1326_v60 = vld [vmem:[#allocation3 + $0x14] sm:$0x3] }
0x145d   :  { %v4105_v59 = vpop.eup %4104 }
0x145e   :  { %1064 = vrot.lane.b32.xlu0 %v4105_v59, %s4275_s14 }
0x145f   :  { %v4107_v61 = vpop.eup %4106 }
0x1460   :  { %v1053_v62 = vadd.f32 1.0, %v4107_v61 }
0x1462   :  { %4108 = vrcp.f32 %v1053_v62 }
0x146c   :  { %v4109_v63 = vpop.eup %4108 }
0x146d   :  { %v1062_v5 = vmul.f32 %v4109_v63, %v1060_v2 }
0x14d0   :  { %v1065_v0 = vpop.permute.xlu0 %1064 }
0x14d1   :  { %v1067_v1 = vmul.f32 %v4109_v63, %v1065_v0 }
0x14d3   :  { %1069 = vrot.lane.b32.xlu0 %v1067_v1, %s4276_s3 }
0x1545   :  { %v1070_v6 = vpop.permute.xlu0 %1069 }
0x1546   :  { %v1072_v7 = vadd.f32 %v1070_v6, %v1062_v5 }
0x1548   :  { %4110 = vtanh.f32 %v1072_v7 }
0x1552   :  { %v4111_v9 = vpop.eup %4110 }
0x1553   :  { %1075 = vrot.lane.b32.xlu1 %v4111_v9, %s4277_s15 }
0x1557   :  { %1080 = vrot.lane.b32.xlu1 %v1072_v7, %s4278_s16 }
0x15c5   :  { %v1076_v10 = vpop.permute.xlu1 %1075 }
0x15c6   :  { %v1078_v12 = vmul.f32 %v4109_v63, %v1076_v10 }
0x15c8   :  { %1085 = vrot.lane.b32.xlu0 %v1078_v12, %s4279_s17 }
0x15c9   :  { %v1081_v13 = vpop.permute.xlu1 %1080 }
0x15ca   :  { %1083 = vst.msk [vmem:[#allocation5] sm:$0x3] %vm143_vm2, %v1081_v13 }
0x15d1   :  { %v1175_v14 = vld [vmem:[#allocation5] sm:$0x3] }
0x15d2   :  { %1177 = vrot.lane.b32.xlu1 %v1175_v14, %s4276_s3 }
0x163a   :  { %v1086_v15 = vpop.permute.xlu0 %1085 }
0x163b   :  { %1088 = vst.msk [vmem:[#allocation4] sm:$0x3] %vm143_vm2, %v1086_v15  ;;  %1089 = vst.msk [vmem:[#allocation2 + $0xe] sm:$0x3] %vm143_vm2, %v1086_v15 }
0x1642   :  { %v1091_v16 = vld [vmem:[#allocation4] sm:$0x3] }
0x1643   :  { %3803 = vmatmul.mubr.msk.f32.vlgmr.msra.gmra.mrb[10].mxu0 %vm39_vm0, %v1091_v16 }
0x1644   :  { %3984 = vmatpush3.bf16.msra.mxu0 %v4343_v8  ;;  %3816 = vmatprep.mubr.msk.f32.mxu0 %vm4273_vm1, %v4274_v4  ;;  %v1178_v27 = vpop.permute.xlu1 %1177 }
0x1645   :  { %3988 = vmatprep.subr.bf16.mxu0 %v4272_v3 }
0x1716   :  { %v1163_v17 = vpop.f32.mrb[10].mxu0 }
0x1717   :  { %v1167_v18 = vadd.f32 %v1163_v17, %v1090_v11  ;;  %v3804_v19 = vpop.f32.mrb[11].mxu0 }
0x1719   :  { %4112 = vtanh.f32 %v1167_v18  ;;  %v3592_v21 = vmul.f32 -1.442695, %v1167_v18 }
0x171b   :  { %4114 = vpow2.f32 %v3592_v21 }
0x1723   :  { %v4113_v20 = vpop.eup %4112 }
0x1724   :  { %1182 = vrot.lane.b32.xlu0 %v4113_v20, %s4275_s14  ;;  %v1444_v20 = vld [vmem:[#allocation3 + $0x16] sm:$0x3] }
0x1725   :  { %v4115_v22 = vpop.eup %4114 }
0x1726   :  { %v1171_v23 = vadd.f32 1.0, %v4115_v22 }
0x1728   :  { %4116 = vrcp.f32 %v1171_v23 }
0x1732   :  { %v4117_v24 = vpop.eup %4116 }
0x1733   :  { %v1180_v28 = vmul.f32 %v4117_v24, %v1178_v27 }
0x1796   :  { %v1183_v25 = vpop.permute.xlu0 %1182 }
0x1797   :  { %v1185_v26 = vmul.f32 %v4117_v24, %v1183_v25 }
0x1799   :  { %1187 = vrot.lane.b32.xlu0 %v1185_v26, %s4276_s3 }
0x180b   :  { %v1188_v29 = vpop.permute.xlu0 %1187 }
0x180c   :  { %v1190_v30 = vadd.f32 %v1188_v29, %v1180_v28 }
0x180e   :  { %4118 = vtanh.f32 %v1190_v30 }
0x1818   :  { %v4119_v31 = vpop.eup %4118 }
0x1819   :  { %1193 = vrot.lane.b32.xlu1 %v4119_v31, %s4277_s15 }
0x181d   :  { %1198 = vrot.lane.b32.xlu1 %v1190_v30, %s4278_s16 }
0x188b   :  { %v1194_v32 = vpop.permute.xlu1 %1193 }
0x188c   :  { %v1196_v33 = vmul.f32 %v4117_v24, %v1194_v32 }
0x188e   :  { %1203 = vrot.lane.b32.xlu0 %v1196_v33, %s4279_s17 }
0x188f   :  { %v1199_v34 = vpop.permute.xlu1 %1198 }
0x1890   :  { %1201 = vst.msk [vmem:[#allocation5] sm:$0x3] %vm143_vm2, %v1199_v34 }
0x1897   :  { %v1293_v35 = vld [vmem:[#allocation5] sm:$0x3] }
0x1898   :  { %1295 = vrot.lane.b32.xlu1 %v1293_v35, %s4276_s3 }
0x1900   :  { %v1204_v36 = vpop.permute.xlu0 %1203 }
0x1901   :  { %1206 = vst.msk [vmem:[#allocation4] sm:$0x3] %vm143_vm2, %v1204_v36  ;;  %1207 = vst.msk [vmem:[#allocation2 + $0x10] sm:$0x3] %vm143_vm2, %v1204_v36  ;;  %v1802_v36 = vld [vmem:[%s4845_s4] sm:$0xff] }
0x1908   :  { %v1209_v37 = vld [vmem:[#allocation4] sm:$0x3] }
0x1909   :  { %3810 = vmatmul.mubr.msk.f32.vlgmr.msra.gmra.mrb[10].mxu1 %vm39_vm0, %v1209_v37  ;;  %v1803_v37 = vld [vmem:[%s4845_s4 + $0x8] sm:$0xff] }
0x190a   :  { %3987 = vmatpush3.bf16.msra.mxu1 %v4343_v8  ;;  %3823 = vmatprep.mubr.msk.f32.mxu1 %vm4273_vm1, %v4274_v4  ;;  %v1296_v49 = vpop.permute.xlu1 %1295 }
0x190b   :  { %3991 = vmatprep.subr.bf16.mxu1 %v4272_v3 }
0x19dc   :  { %v1281_v39 = vpop.f32.mrb[10].mxu1 }
0x19dd   :  { %v1285_v40 = vadd.f32 %v1281_v39, %v1208_v38  ;;  %v3811_v41 = vpop.f32.mrb[11].mxu1  ;;  %v3994_v38 = vpack.c.bf16 %v1803_v37, %v1802_v36 }
0x19df   :  { %4120 = vtanh.f32 %v1285_v40  ;;  %v3594_v43 = vmul.f32 -1.442695, %v1285_v40 }
0x19e1   :  { %4122 = vpow2.f32 %v3594_v43 }
0x19e9   :  { %v4121_v42 = vpop.eup %4120 }
0x19ea   :  { %1300 = vrot.lane.b32.xlu0 %v4121_v42, %s4275_s14 }
0x19eb   :  { %v4123_v44 = vpop.eup %4122 }
0x19ec   :  { %v1289_v45 = vadd.f32 1.0, %v4123_v44 }
0x19ee   :  { %4124 = vrcp.f32 %v1289_v45  ;;  %v1798_v45 = vld [vmem:[#allocation2] sm:$0xff] }
0x19f8   :  { %v4125_v46 = vpop.eup %4124 }
0x19f9   :  { %v1298_v50 = vmul.f32 %v4125_v46, %v1296_v49 }
0x1a5c   :  { %v1301_v47 = vpop.permute.xlu0 %1300 }
0x1a5d   :  { %v1303_v48 = vmul.f32 %v4125_v46, %v1301_v47 }
0x1a5f   :  { %1305 = vrot.lane.b32.xlu0 %v1303_v48, %s4276_s3  ;;  %v1562_v48 = vld [vmem:[#allocation3 + $0x18] sm:$0x3] }
0x1ad1   :  { %v1306_v51 = vpop.permute.xlu0 %1305 }
0x1ad2   :  { %v1308_v52 = vadd.f32 %v1306_v51, %v1298_v50 }
0x1ad4   :  { %4126 = vtanh.f32 %v1308_v52 }
0x1ade   :  { %v4127_v53 = vpop.eup %4126 }
0x1adf   :  { %1311 = vrot.lane.b32.xlu1 %v4127_v53, %s4277_s15 }
0x1ae3   :  { %1316 = vrot.lane.b32.xlu1 %v1308_v52, %s4278_s16  ;;  %v4557_v52 = vld [vmem:[%s4846_s6] ss:$0 sm:$0xff] }
0x1b51   :  { %v1312_v54 = vpop.permute.xlu1 %1311 }
0x1b52   :  { %v1314_v55 = vmul.f32 %v4125_v46, %v1312_v54  ;;  %v1799_v46 = vld [vmem:[#allocation2 + $0x8] sm:$0xff] }
0x1b54   :  { %1321 = vrot.lane.b32.xlu0 %v1314_v55, %s4279_s17 }
0x1b55   :  { %v1317_v56 = vpop.permute.xlu1 %1316 }
0x1b56   :  { %1319 = vst.msk [vmem:[#allocation5] sm:$0x3] %vm143_vm2, %v1317_v56 }
0x1b5d   :  { %v1411_v57 = vld [vmem:[#allocation5] sm:$0x3] }
0x1b5e   :  { %1413 = vrot.lane.b32.xlu1 %v1411_v57, %s4276_s3 }
0x1bc6   :  { %v1322_v58 = vpop.permute.xlu0 %1321 }
0x1bc7   :  { %1324 = vst.msk [vmem:[#allocation4] sm:$0x3] %vm143_vm2, %v1322_v58  ;;  %1325 = vst.msk [vmem:[#allocation2 + $0x12] sm:$0x3] %vm143_vm2, %v1322_v58 }
0x1bce   :  { %v1327_v59 = vld [vmem:[#allocation4] sm:$0x3] }
0x1bcf   :  { %3817 = vmatmul.mubr.msk.f32.vlgmr.msra.gmra.mrb[12].mxu0 %vm39_vm0, %v1327_v59 }
0x1bd0   :  { %3990 = vmatpush3.bf16.msra.mxu0 %v4343_v8  ;;  %3830 = vmatprep.mubr.msk.f32.mxu0 %vm4273_vm1, %v4274_v4  ;;  %v1414_v8 = vpop.permute.xlu1 %1413 }
0x1bd1   :  { %3995 = vmatprep.subr.bf16.mxu0 %v3994_v38 }
0x1ca2   :  { %v1399_v61 = vpop.f32.mrb[12].mxu0 }
0x1ca3   :  { %v1403_v62 = vadd.f32 %v1399_v61, %v1326_v60  ;;  %v3818_v63 = vpop.f32.mrb[13].mxu0 }
0x1ca5   :  { %4128 = vtanh.f32 %v1403_v62  ;;  %v3596_v1 = vmul.f32 -1.442695, %v1403_v62 }
0x1ca7   :  { %4130 = vpow2.f32 %v3596_v1 }
0x1caf   :  { %v4129_v0 = vpop.eup %4128 }
0x1cb0   :  { %1418 = vrot.lane.b32.xlu0 %v4129_v0, %s4275_s14 }
0x1cb1   :  { %v4131_v2 = vpop.eup %4130 }
0x1cb2   :  { %v1407_v5 = vadd.f32 1.0, %v4131_v2 }
0x1cb4   :  { %4132 = vrcp.f32 %v1407_v5 }
0x1cbe   :  { %v4133_v6 = vpop.eup %4132 }
0x1cbf   :  { %v1416_v10 = vmul.f32 %v4133_v6, %v1414_v8 }
0x1d22   :  { %v1419_v7 = vpop.permute.xlu0 %1418 }
0x1d23   :  { %v1421_v9 = vmul.f32 %v4133_v6, %v1419_v7  ;;  %v1682_v7 = vld [vmem:[%s4843_s2] sm:$0xff] }
0x1d25   :  { %1423 = vrot.lane.b32.xlu0 %v1421_v9, %s4276_s3  ;;  %v1683_v9 = vld [vmem:[%s4843_s2 + $0x8] sm:$0xff] }
0x1d26   :  { %v3992_v8 = vpack.c.bf16 %v1683_v9, %v1682_v7 }
0x1d97   :  { %v1424_v12 = vpop.permute.xlu0 %1423 }
0x1d98   :  { %v1426_v13 = vadd.f32 %v1424_v12, %v1416_v10 }
0x1d9a   :  { %4134 = vtanh.f32 %v1426_v13 }
0x1da4   :  { %v4135_v14 = vpop.eup %4134 }
0x1da5   :  { %1429 = vrot.lane.b32.xlu1 %v4135_v14, %s4277_s15 }
0x1da9   :  { %1434 = vrot.lane.b32.xlu1 %v1426_v13, %s4278_s16 }
0x1e17   :  { %v1430_v15 = vpop.permute.xlu1 %1429 }
0x1e18   :  { %v1432_v16 = vmul.f32 %v4133_v6, %v1430_v15 }
0x1e1a   :  { %1439 = vrot.lane.b32.xlu0 %v1432_v16, %s4279_s17 }
0x1e1b   :  { %v1435_v11 = vpop.permute.xlu1 %1434 }
0x1e1c   :  { %1437 = vst.msk [vmem:[#allocation5] sm:$0x3] %vm143_vm2, %v1435_v11  ;;  %v1680_v11 = vld [vmem:[#allocation3 + $0x1a] sm:$0x3] }
0x1e23   :  { %v1529_v17 = vld [vmem:[#allocation5] sm:$0x3] }
0x1e24   :  { %1531 = vrot.lane.b32.xlu1 %v1529_v17, %s4276_s3 }
0x1e8c   :  { %v1440_v18 = vpop.permute.xlu0 %1439 }
0x1e8d   :  { %1442 = vst.msk [vmem:[#allocation4] sm:$0x3] %vm143_vm2, %v1440_v18  ;;  %1443 = vst.msk [vmem:[#allocation2 + $0x14] sm:$0x3] %vm143_vm2, %v1440_v18 }
0x1e94   :  { %v1445_v19 = vld [vmem:[#allocation4] sm:$0x3] }
0x1e95   :  { %3824 = vmatmul.mubr.msk.f32.vlgmr.msra.gmra.mrb[12].mxu1 %vm39_vm0, %v1445_v19 }
0x1e96   :  { %3837 = vmatprep.mubr.msk.f32.mxu1 %vm4273_vm1, %v4274_v4  ;;  %v1532_v31 = vpop.permute.xlu1 %1531  ;;  %3993 = vmatpush3.bf16.msra.mxu1 %v3992_v8 }
0x1e97   :  { %3998 = vmatprep.subr.bf16.mxu1 %v4272_v3 }
0x1f68   :  { %v1517_v21 = vpop.f32.mrb[12].mxu1 }
0x1f69   :  { %v1521_v22 = vadd.f32 %v1517_v21, %v1444_v20  ;;  %v3825_v23 = vpop.f32.mrb[13].mxu1 }
0x1f6b   :  { %4136 = vtanh.f32 %v1521_v22  ;;  %v3598_v25 = vmul.f32 -1.442695, %v1521_v22 }
0x1f6d   :  { %4138 = vpow2.f32 %v3598_v25 }
0x1f75   :  { %v4137_v24 = vpop.eup %4136 }
0x1f76   :  { %1536 = vrot.lane.b32.xlu0 %v4137_v24, %s4275_s14 }
0x1f77   :  { %v4139_v26 = vpop.eup %4138 }
0x1f78   :  { %v1525_v27 = vadd.f32 1.0, %v4139_v26 }
0x1f7a   :  { %4140 = vrcp.f32 %v1525_v27 }
0x1f84   :  { %v4141_v28 = vpop.eup %4140 }
0x1f85   :  { %v1534_v32 = vmul.f32 %v4141_v28, %v1532_v31 }
0x1fe8   :  { %v1537_v29 = vpop.permute.xlu0 %1536 }
0x1fe9   :  { %v1539_v30 = vmul.f32 %v4141_v28, %v1537_v29 }
0x1feb   :  { %1541 = vrot.lane.b32.xlu0 %v1539_v30, %s4276_s3 }
0x205d   :  { %v1542_v33 = vpop.permute.xlu0 %1541 }
0x205e   :  { %v1544_v34 = vadd.f32 %v1542_v33, %v1534_v32  ;;  %v1916_v32 = vld [vmem:[%s4847_s5] sm:$0xff]  ;;  %v1917_v33 = vld [vmem:[%s4847_s5 + $0x8] sm:$0xff] }
0x2060   :  { %4142 = vtanh.f32 %v1544_v34 }
0x206a   :  { %v4143_v35 = vpop.eup %4142 }
0x206b   :  { %1547 = vrot.lane.b32.xlu1 %v4143_v35, %s4277_s15 }
0x206f   :  { %1552 = vrot.lane.b32.xlu1 %v1544_v34, %s4278_s16  ;;  %v4592_v34 = vpack.c.bf16 %v1917_v33, %v1916_v32 }
0x20dd   :  { %v1548_v39 = vpop.permute.xlu1 %1547 }
0x20de   :  { %v1550_v40 = vmul.f32 %v4141_v28, %v1548_v39 }
0x20e0   :  { %1557 = vrot.lane.b32.xlu0 %v1550_v40, %s4279_s17 }
0x20e1   :  { %v1553_v41 = vpop.permute.xlu1 %1552 }
0x20e2   :  { %1555 = vst.msk [vmem:[#allocation5] sm:$0x3] %vm143_vm2, %v1553_v41 }
0x20e9   :  { %v1647_v42 = vld [vmem:[#allocation5] sm:$0x3] }
0x20ea   :  { %1649 = vrot.lane.b32.xlu1 %v1647_v42, %s4276_s3 }
0x2152   :  { %v1558_v43 = vpop.permute.xlu0 %1557 }
0x2153   :  { %1560 = vst.msk [vmem:[#allocation4] sm:$0x3] %vm143_vm2, %v1558_v43  ;;  %1561 = vst.msk [vmem:[#allocation2 + $0x16] sm:$0x3] %vm143_vm2, %v1558_v43 }
0x215a   :  { %v1563_v44 = vld [vmem:[#allocation4] sm:$0x3]  ;;  %v1800_v47 = vld [vmem:[#allocation2 + $0x10] sm:$0xff] }
0x215b   :  { %3831 = vmatmul.mubr.msk.f32.vlgmr.msra.gmra.mrb[14].mxu0 %vm39_vm0, %v1563_v44 }
0x215c   :  { %3997 = vmatpush3.bf16.msra.mxu0 %v3994_v38  ;;  %3844 = vmatprep.mubr.msk.f32.mxu0 %vm39_vm0, %v1798_v45  ;;  %v1650_v0 = vpop.permute.xlu1 %1649 }
0x215d   :  { %4004 = vmatprep.subr.bf16.mxu0 %v4272_v3 }
0x215f   :  { %3845 = vmatmul.mubr.msk.f32.vlgmr.msra.gmra.mrb[16].mxu0 %vm39_vm0, %v1799_v46 }
0x2160   :  { %3847 = vmatprep.mubr.msk.f32.mxu0 %vm39_vm0, %v1800_v47  ;;  %4006 = vmatpush3.bf16.msra.mxu0 %v4592_v34 }
0x2161   :  { %4010 = vmatprep.subr.bf16.mxu0 %v4272_v3 }
0x222e   :  { %v1635_v49 = vpop.f32.mrb[14].mxu0 }
0x222f   :  { %v1639_v50 = vadd.f32 %v1635_v49, %v1562_v48  ;;  %v3832_v51 = vpop.f32.mrb[15].mxu0 }
0x2231   :  { %4144 = vtanh.f32 %v1639_v50  ;;  %v3600_v58 = vmul.f32 -1.442695, %v1639_v50 }
0x2232   :  { %v3846_v53 = vpop.f32.mrb[16].mxu0 }
0x2233   :  { %v1895_v54 = vadd.f32 %v3846_v53, %v4557_v52  ;;  %v1889_v55 = vpop.f32.mrb[17].mxu0  ;;  %4146 = vpow2.f32 %v3600_v58 }
0x2234   :  { %v1890_v56 = vadd.f32 %v4557_v52, %v1889_v55 }
0x2235   :  { %1909 = vst.msk [vmem:[#allocation3 + $0x8] sm:$0xff] %vm137_vm3, %v1895_v54 }
0x2236   :  { %1908 = vst.msk [vmem:[#allocation3] sm:$0xff] %vm137_vm3, %v1890_v56 }
0x223b   :  { %v4145_v57 = vpop.eup %4144 }
0x223c   :  { %1654 = vrot.lane.b32.xlu0 %v4145_v57, %s4275_s14 }
0x223d   :  { %v4147_v59 = vpop.eup %4146  ;;  %v1914_v45 = vld [vmem:[#allocation3] sm:$0x3] }
0x223e   :  { %v1643_v60 = vadd.f32 1.0, %v4147_v59 }
0x2240   :  { %4148 = vrcp.f32 %v1643_v60 }
0x224a   :  { %v4149_v61 = vpop.eup %4148 }
0x224b   :  { %v1652_v1 = vmul.f32 %v4149_v61, %v1650_v0 }
0x22ae   :  { %v1655_v62 = vpop.permute.xlu0 %1654 }
0x22af   :  { %v1657_v63 = vmul.f32 %v4149_v61, %v1655_v62 }
0x22b1   :  { %1659 = vrot.lane.b32.xlu0 %v1657_v63, %s4276_s3 }
0x2323   :  { %v1660_v2 = vpop.permute.xlu0 %1659 }
0x2324   :  { %v1662_v5 = vadd.f32 %v1660_v2, %v1652_v1 }
0x2326   :  { %4150 = vtanh.f32 %v1662_v5 }
0x2330   :  { %v4151_v6 = vpop.eup %4150 }
0x2331   :  { %1665 = vrot.lane.b32.xlu1 %v4151_v6, %s4277_s15  ;;  %v2032_v6 = vld [vmem:[#allocation3 + $0x2] sm:$0x3] }
0x2335   :  { %1670 = vrot.lane.b32.xlu1 %v1662_v5, %s4278_s16 }
0x23a3   :  { %v1666_v10 = vpop.permute.xlu1 %1665 }
0x23a4   :  { %v1668_v12 = vmul.f32 %v4149_v61, %v1666_v10 }
0x23a6   :  { %1675 = vrot.lane.b32.xlu0 %v1668_v12, %s4279_s17 }
0x23a7   :  { %v1671_v13 = vpop.permute.xlu1 %1670 }
0x23a8   :  { %1673 = vst.msk [vmem:[#allocation5] sm:$0x3] %vm143_vm2, %v1671_v13 }
0x23af   :  { %v1765_v14 = vld [vmem:[#allocation5] sm:$0x3] }
0x23b0   :  { %1767 = vrot.lane.b32.xlu1 %v1765_v14, %s4276_s3 }
0x2418   :  { %v1676_v15 = vpop.permute.xlu0 %1675 }
0x2419   :  { %1678 = vst.msk [vmem:[#allocation4] sm:$0x3] %vm143_vm2, %v1676_v15  ;;  %1679 = vst.msk [vmem:[#allocation2 + $0x18] sm:$0x3] %vm143_vm2, %v1676_v15 }
0x2420   :  { %v1681_v16 = vld [vmem:[#allocation4] sm:$0x3] }
0x2421   :  { %3838 = vmatmul.mubr.msk.f32.vlgmr.msra.gmra.mrb[14].mxu1 %vm39_vm0, %v1681_v16 }
0x2422   :  { %3854 = vmatprep.mubr.msk.f32.mxu1 %vm4273_vm1, %v4274_v4  ;;  %v1768_v27 = vpop.permute.xlu1 %1767  ;;  %4000 = vmatpush3.bf16.msra.mxu1 %v4592_v34 }
0x2423   :  { %4001 = vmatprep.subr.bf16.mxu1 %v4272_v3 }
0x24f4   :  { %v1753_v17 = vpop.f32.mrb[14].mxu1 }
0x24f5   :  { %v1757_v18 = vadd.f32 %v1753_v17, %v1680_v11  ;;  %v3839_v19 = vpop.f32.mrb[15].mxu1 }
0x24f7   :  { %4152 = vtanh.f32 %v1757_v18  ;;  %v3602_v21 = vmul.f32 -1.442695, %v1757_v18 }
0x24f9   :  { %4154 = vpow2.f32 %v3602_v21 }
0x2501   :  { %v4153_v20 = vpop.eup %4152 }
0x2502   :  { %1772 = vrot.lane.b32.xlu0 %v4153_v20, %s4275_s14 }
0x2503   :  { %v4155_v22 = vpop.eup %4154 }
0x2504   :  { %v1761_v23 = vadd.f32 1.0, %v4155_v22 }
0x2506   :  { %4156 = vrcp.f32 %v1761_v23 }
0x2510   :  { %v4157_v24 = vpop.eup %4156 }
0x2511   :  { %v1770_v28 = vmul.f32 %v4157_v24, %v1768_v27 }
0x2574   :  { %v1773_v25 = vpop.permute.xlu0 %1772 }
0x2575   :  { %v1775_v26 = vmul.f32 %v4157_v24, %v1773_v25 }
0x2577   :  { %1777 = vrot.lane.b32.xlu0 %v1775_v26, %s4276_s3 }
0x25e9   :  { %v1778_v29 = vpop.permute.xlu0 %1777 }
0x25ea   :  { %v1780_v30 = vadd.f32 %v1778_v29, %v1770_v28  ;;  %v2150_v28 = vld [vmem:[#allocation3 + $0x4] sm:$0x3] }
0x25ec   :  { %4158 = vtanh.f32 %v1780_v30 }
0x25f6   :  { %v4159_v31 = vpop.eup %4158 }
0x25f7   :  { %1783 = vrot.lane.b32.xlu1 %v4159_v31, %s4277_s15 }
0x25fb   :  { %1788 = vrot.lane.b32.xlu1 %v1780_v30, %s4278_s16 }
0x2669   :  { %v1784_v35 = vpop.permute.xlu1 %1783 }
0x266a   :  { %v1786_v36 = vmul.f32 %v4157_v24, %v1784_v35 }
0x266c   :  { %1793 = vrot.lane.b32.xlu0 %v1786_v36, %s4279_s17 }
0x266d   :  { %v1789_v37 = vpop.permute.xlu1 %1788 }
0x266e   :  { %1791 = vst.msk [vmem:[#allocation5] sm:$0x3] %vm143_vm2, %v1789_v37 }
0x266f   :  { %1913 = vst.msk [vmem:[#allocation5] sm:$0x3] %vm143_vm2, %v4274_v4 }
0x2676   :  { %v1999_v38 = vld [vmem:[#allocation5] sm:$0x3] }
0x2677   :  { %2001 = vrot.lane.b32.xlu1 %v1999_v38, %s4276_s3 }
0x26de   :  { %v1794_v39 = vpop.permute.xlu0 %1793 }
0x26df   :  { %1796 = vst.msk [vmem:[#allocation4] sm:$0x3] %vm143_vm2, %v1794_v39  ;;  %1797 = vst.msk [vmem:[#allocation2 + $0x1a] sm:$0x3] %vm143_vm2, %v1794_v39 }
0x26e0   :  { %1912 = vst.msk [vmem:[#allocation4] sm:$0x3] %vm143_vm2, %v4274_v4 }
0x26e6   :  { %v1801_v40 = vld [vmem:[#allocation2 + $0x18] sm:$0xf] }
0x26e7   :  { %3848 = vmatmul.mubr.msk.f32.gmra.mrb[18].mxu0 %vm39_vm0, %v1801_v40  ;;  %v1915_v41 = vld [vmem:[#allocation4] sm:$0x3] }
0x26e8   :  { %3855 = vmatmul.mubr.msk.f32.vlgmr.msra.gmra.mrb[16].mxu1 %vm39_vm0, %v1915_v41  ;;  %3868 = vmatprep.mubr.msk.f32.mxu0 %vm4273_vm1, %v4274_v4 }
0x26e9   :  { %4003 = vmatpush3.bf16.msra.mxu1 %v4592_v34  ;;  %3861 = vmatprep.mubr.msk.f32.mxu1 %vm4273_vm1, %v4274_v4 }
0x26ea   :  { %4007 = vmatprep.subr.bf16.mxu1 %v4272_v3 }
0x27ba   :  { %v3849_v42 = vpop.f32.mrb[18].mxu0 }
0x27bb   :  { %v1905_v43 = vadd.f32 %v3849_v42, %v4557_v52  ;;  %v1899_v44 = vpop.f32.mrb[19].mxu0  ;;  %v1987_v46 = vpop.f32.mrb[16].mxu1 }
0x27bc   :  { %v1900_v47 = vadd.f32 %v4557_v52, %v1899_v44  ;;  %v1991_v48 = vadd.f32 %v1987_v46, %v1914_v45  ;;  %v3856_v49 = vpop.f32.mrb[17].mxu1  ;;  %v2002_v52 = vpop.permute.xlu1 %2001 }
0x27bd   :  { %1911 = vst.msk [vmem:[#allocation3 + $0x18] sm:$0xf] %vm141_vm4, %v1905_v43 }
0x27be   :  { %1910 = vst.msk [vmem:[#allocation3 + $0x10] sm:$0xff] %vm137_vm3, %v1900_v47  ;;  %4160 = vtanh.f32 %v1991_v48  ;;  %v3609_v51 = vmul.f32 -1.442695, %v1991_v48 }
0x27c0   :  { %4162 = vpow2.f32 %v3609_v51  ;;  %v2268_v51 = vld [vmem:[#allocation3 + $0x6] sm:$0x3] }
0x27c8   :  { %v4161_v50 = vpop.eup %4160 }
0x27c9   :  { %2006 = vrot.lane.b32.xlu0 %v4161_v50, %s4275_s14 }
0x27ca   :  { %v4163_v53 = vpop.eup %4162 }
0x27cb   :  { %v1995_v54 = vadd.f32 1.0, %v4163_v53 }
0x27cd   :  { %4164 = vrcp.f32 %v1995_v54 }
0x27d7   :  { %v4165_v55 = vpop.eup %4164 }
0x27d8   :  { %v2004_v58 = vmul.f32 %v4165_v55, %v2002_v52 }
0x283b   :  { %v2007_v56 = vpop.permute.xlu0 %2006 }
0x283c   :  { %v2009_v57 = vmul.f32 %v4165_v55, %v2007_v56 }
0x283e   :  { %2011 = vrot.lane.b32.xlu0 %v2009_v57, %s4276_s3 }
0x28b0   :  { %v2012_v59 = vpop.permute.xlu0 %2011 }
0x28b1   :  { %v2014_v60 = vadd.f32 %v2012_v59, %v2004_v58 }
0x28b3   :  { %4166 = vtanh.f32 %v2014_v60 }
0x28bd   :  { %v4167_v61 = vpop.eup %4166 }
0x28be   :  { %2017 = vrot.lane.b32.xlu1 %v4167_v61, %s4277_s15 }
0x28c2   :  { %2022 = vrot.lane.b32.xlu1 %v2014_v60, %s4278_s16 }
0x2930   :  { %v2018_v62 = vpop.permute.xlu1 %2017 }
0x2931   :  { %v2020_v63 = vmul.f32 %v4165_v55, %v2018_v62 }
0x2933   :  { %2027 = vrot.lane.b32.xlu0 %v2020_v63, %s4279_s17 }
0x2934   :  { %v2023_v0 = vpop.permute.xlu1 %2022 }
0x2935   :  { %2025 = vst.msk [vmem:[#allocation5] sm:$0x3] %vm143_vm2, %v2023_v0 }
0x293c   :  { %v2117_v1 = vld [vmem:[#allocation5] sm:$0x3] }
0x293d   :  { %2119 = vrot.lane.b32.xlu1 %v2117_v1, %s4276_s3 }
0x29a5   :  { %v2028_v2 = vpop.permute.xlu0 %2027 }
0x29a6   :  { %2031 = vst.msk [vmem:[%s4848_s7] sm:$0x3] %vm143_vm2, %v2028_v2  ;;  %2030 = vst.msk [vmem:[#allocation4] sm:$0x3] %vm143_vm2, %v2028_v2 }
0x29ad   :  { %v2033_v5 = vld [vmem:[#allocation4] sm:$0x3] }
0x29ae   :  { %3862 = vmatmul.mubr.msk.f32.vlgmr.msra.gmra.mrb[18].mxu1 %vm39_vm0, %v2033_v5 }
0x29af   :  { %4009 = vmatpush3.bf16.msra.mxu1 %v4592_v34  ;;  %3875 = vmatprep.mubr.msk.f32.mxu1 %vm4273_vm1, %v4274_v4  ;;  %v2120_v17 = vpop.permute.xlu1 %2119 }
0x29b0   :  { %4013 = vmatprep.subr.bf16.mxu1 %v4272_v3 }
0x2a81   :  { %v2105_v7 = vpop.f32.mrb[18].mxu1 }
0x2a82   :  { %v2109_v9 = vadd.f32 %v2105_v7, %v2032_v6  ;;  %v3863_v8 = vpop.f32.mrb[19].mxu1 }
0x2a84   :  { %4168 = vtanh.f32 %v2109_v9  ;;  %v3611_v12 = vmul.f32 -1.442695, %v2109_v9 }
0x2a86   :  { %4170 = vpow2.f32 %v3611_v12  ;;  %v2386_v12 = vld [vmem:[#allocation3 + $0x8] sm:$0x3] }
0x2a8e   :  { %v4169_v10 = vpop.eup %4168 }
0x2a8f   :  { %2124 = vrot.lane.b32.xlu0 %v4169_v10, %s4275_s14 }
0x2a90   :  { %v4171_v13 = vpop.eup %4170 }
0x2a91   :  { %v2113_v14 = vadd.f32 1.0, %v4171_v13 }
0x2a93   :  { %4172 = vrcp.f32 %v2113_v14 }
0x2a9d   :  { %v4173_v15 = vpop.eup %4172 }
0x2a9e   :  { %v2122_v18 = vmul.f32 %v4173_v15, %v2120_v17 }
0x2b01   :  { %v2125_v16 = vpop.permute.xlu0 %2124 }
0x2b02   :  { %v2127_v11 = vmul.f32 %v4173_v15, %v2125_v16 }
0x2b04   :  { %2129 = vrot.lane.b32.xlu0 %v2127_v11, %s4276_s3 }
0x2b76   :  { %v2130_v19 = vpop.permute.xlu0 %2129 }
0x2b77   :  { %v2132_v20 = vadd.f32 %v2130_v19, %v2122_v18 }
0x2b79   :  { %4174 = vtanh.f32 %v2132_v20 }
0x2b83   :  { %v4175_v21 = vpop.eup %4174 }
0x2b84   :  { %2135 = vrot.lane.b32.xlu1 %v4175_v21, %s4277_s15 }
0x2b88   :  { %2140 = vrot.lane.b32.xlu1 %v2132_v20, %s4278_s16 }
0x2bf6   :  { %v2136_v22 = vpop.permute.xlu1 %2135 }
0x2bf7   :  { %v2138_v23 = vmul.f32 %v4173_v15, %v2136_v22 }
0x2bf9   :  { %2145 = vrot.lane.b32.xlu0 %v2138_v23, %s4279_s17 }
0x2bfa   :  { %v2141_v24 = vpop.permute.xlu1 %2140 }
0x2bfb   :  { %2143 = vst.msk [vmem:[#allocation5] sm:$0x3] %vm143_vm2, %v2141_v24 }
0x2c02   :  { %v2235_v25 = vld [vmem:[#allocation5] sm:$0x3] }
0x2c03   :  { %2237 = vrot.lane.b32.xlu1 %v2235_v25, %s4276_s3 }
0x2c6b   :  { %v2146_v26 = vpop.permute.xlu0 %2145 }
0x2c6c   :  { %2149 = vst.msk [vmem:[%s4848_s7 + $0x2] sm:$0x3] %vm143_vm2, %v2146_v26  ;;  %2148 = vst.msk [vmem:[#allocation4] sm:$0x3] %vm143_vm2, %v2146_v26 }
0x2c73   :  { %v2151_v27 = vld [vmem:[#allocation4] sm:$0x3] }
0x2c74   :  { %3869 = vmatmul.mubr.msk.f32.vlgmr.msra.gmra.mrb[20].mxu0 %vm39_vm0, %v2151_v27 }
0x2c75   :  { %4012 = vmatpush3.bf16.msra.mxu0 %v4592_v34  ;;  %3882 = vmatprep.mubr.msk.f32.mxu0 %vm4273_vm1, %v4274_v4  ;;  %v2238_v40 = vpop.permute.xlu1 %2237 }
0x2c76   :  { %4016 = vmatprep.subr.bf16.mxu0 %v4272_v3 }
0x2d47   :  { %v2223_v29 = vpop.f32.mrb[20].mxu0 }
0x2d48   :  { %v2227_v30 = vadd.f32 %v2223_v29, %v2150_v28  ;;  %v3870_v31 = vpop.f32.mrb[21].mxu0 }
0x2d4a   :  { %4176 = vtanh.f32 %v2227_v30  ;;  %v3613_v33 = vmul.f32 -1.442695, %v2227_v30 }
0x2d4c   :  { %4178 = vpow2.f32 %v3613_v33  ;;  %v2504_v33 = vld [vmem:[#allocation3 + $0xa] sm:$0x3] }
0x2d54   :  { %v4177_v32 = vpop.eup %4176 }
0x2d55   :  { %2242 = vrot.lane.b32.xlu0 %v4177_v32, %s4275_s14 }
0x2d56   :  { %v4179_v35 = vpop.eup %4178 }
0x2d57   :  { %v2231_v36 = vadd.f32 1.0, %v4179_v35 }
0x2d59   :  { %4180 = vrcp.f32 %v2231_v36 }
0x2d63   :  { %v4181_v37 = vpop.eup %4180 }
0x2d64   :  { %v2240_v41 = vmul.f32 %v4181_v37, %v2238_v40 }
0x2dc7   :  { %v2243_v38 = vpop.permute.xlu0 %2242 }
0x2dc8   :  { %v2245_v39 = vmul.f32 %v4181_v37, %v2243_v38 }
0x2dca   :  { %2247 = vrot.lane.b32.xlu0 %v2245_v39, %s4276_s3 }
0x2e3c   :  { %v2248_v42 = vpop.permute.xlu0 %2247 }
0x2e3d   :  { %v2250_v43 = vadd.f32 %v2248_v42, %v2240_v41 }
0x2e3f   :  { %4182 = vtanh.f32 %v2250_v43 }
0x2e49   :  { %v4183_v44 = vpop.eup %4182 }
0x2e4a   :  { %2253 = vrot.lane.b32.xlu1 %v4183_v44, %s4277_s15 }
0x2e4e   :  { %2258 = vrot.lane.b32.xlu1 %v2250_v43, %s4278_s16 }
0x2ebc   :  { %v2254_v45 = vpop.permute.xlu1 %2253 }
0x2ebd   :  { %v2256_v46 = vmul.f32 %v4181_v37, %v2254_v45 }
0x2ebf   :  { %2263 = vrot.lane.b32.xlu0 %v2256_v46, %s4279_s17 }
0x2ec0   :  { %v2259_v47 = vpop.permute.xlu1 %2258 }
0x2ec1   :  { %2261 = vst.msk [vmem:[#allocation5] sm:$0x3] %vm143_vm2, %v2259_v47 }
0x2ec8   :  { %v2353_v48 = vld [vmem:[#allocation5] sm:$0x3] }
0x2ec9   :  { %2355 = vrot.lane.b32.xlu1 %v2353_v48, %s4276_s3 }
0x2f31   :  { %v2264_v49 = vpop.permute.xlu0 %2263 }
0x2f32   :  { %2267 = vst.msk [vmem:[%s4848_s7 + $0x4] sm:$0x3] %vm143_vm2, %v2264_v49  ;;  %2266 = vst.msk [vmem:[#allocation4] sm:$0x3] %vm143_vm2, %v2264_v49 }
0x2f39   :  { %v2269_v50 = vld [vmem:[#allocation4] sm:$0x3] }
0x2f3a   :  { %3876 = vmatmul.mubr.msk.f32.vlgmr.msra.gmra.mrb[20].mxu1 %vm39_vm0, %v2269_v50 }
0x2f3b   :  { %4015 = vmatpush3.bf16.msra.mxu1 %v4592_v34  ;;  %3889 = vmatprep.mubr.msk.f32.mxu1 %vm4273_vm1, %v4274_v4  ;;  %v2356_v62 = vpop.permute.xlu1 %2355 }
0x2f3c   :  { %4019 = vmatprep.subr.bf16.mxu1 %v4272_v3 }
0x300d   :  { %v2341_v53 = vpop.f32.mrb[20].mxu1 }
0x300e   :  { %v2345_v54 = vadd.f32 %v2341_v53, %v2268_v51  ;;  %v3877_v55 = vpop.f32.mrb[21].mxu1 }
0x3010   :  { %4184 = vtanh.f32 %v2345_v54  ;;  %v3615_v57 = vmul.f32 -1.442695, %v2345_v54 }
0x3012   :  { %4186 = vpow2.f32 %v3615_v57  ;;  %v2622_v57 = vld [vmem:[#allocation3 + $0xc] sm:$0x3] }
0x301a   :  { %v4185_v56 = vpop.eup %4184 }
0x301b   :  { %2360 = vrot.lane.b32.xlu0 %v4185_v56, %s4275_s14 }
0x301c   :  { %v4187_v52 = vpop.eup %4186 }
0x301d   :  { %v2349_v58 = vadd.f32 1.0, %v4187_v52 }
0x301f   :  { %4188 = vrcp.f32 %v2349_v58 }
0x3029   :  { %v4189_v59 = vpop.eup %4188 }
0x302a   :  { %v2358_v63 = vmul.f32 %v4189_v59, %v2356_v62 }
0x308d   :  { %v2361_v60 = vpop.permute.xlu0 %2360 }
0x308e   :  { %v2363_v61 = vmul.f32 %v4189_v59, %v2361_v60 }
0x3090   :  { %2365 = vrot.lane.b32.xlu0 %v2363_v61, %s4276_s3 }
0x3102   :  { %v2366_v0 = vpop.permute.xlu0 %2365 }
0x3103   :  { %v2368_v1 = vadd.f32 %v2366_v0, %v2358_v63 }
0x3105   :  { %4190 = vtanh.f32 %v2368_v1 }
0x310f   :  { %v4191_v2 = vpop.eup %4190 }
0x3110   :  { %2371 = vrot.lane.b32.xlu1 %v4191_v2, %s4277_s15 }
0x3114   :  { %2376 = vrot.lane.b32.xlu1 %v2368_v1, %s4278_s16 }
0x3182   :  { %v2372_v5 = vpop.permute.xlu1 %2371 }
0x3183   :  { %v2374_v6 = vmul.f32 %v4189_v59, %v2372_v5 }
0x3185   :  { %2381 = vrot.lane.b32.xlu0 %v2374_v6, %s4279_s17 }
0x3186   :  { %v2377_v7 = vpop.permute.xlu1 %2376 }
0x3187   :  { %2379 = vst.msk [vmem:[#allocation5] sm:$0x3] %vm143_vm2, %v2377_v7 }
0x318e   :  { %v2471_v9 = vld [vmem:[#allocation5] sm:$0x3] }
0x318f   :  { %2473 = vrot.lane.b32.xlu1 %v2471_v9, %s4276_s3 }
0x31f7   :  { %v2382_v8 = vpop.permute.xlu0 %2381 }
0x31f8   :  { %2385 = vst.msk [vmem:[%s4848_s7 + $0x6] sm:$0x3] %vm143_vm2, %v2382_v8  ;;  %2384 = vst.msk [vmem:[#allocation4] sm:$0x3] %vm143_vm2, %v2382_v8 }
0x31ff   :  { %v2387_v10 = vld [vmem:[#allocation4] sm:$0x3] }
0x3200   :  { %3883 = vmatmul.mubr.msk.f32.vlgmr.msra.gmra.mrb[22].mxu0 %vm39_vm0, %v2387_v10 }
0x3201   :  { %4018 = vmatpush3.bf16.msra.mxu0 %v4592_v34  ;;  %3896 = vmatprep.mubr.msk.f32.mxu0 %vm4273_vm1, %v4274_v4  ;;  %v2474_v22 = vpop.permute.xlu1 %2473 }
0x3202   :  { %4022 = vmatprep.subr.bf16.mxu0 %v4272_v3 }
0x32d3   :  { %v2459_v13 = vpop.f32.mrb[22].mxu0 }
0x32d4   :  { %v2463_v14 = vadd.f32 %v2459_v13, %v2386_v12  ;;  %v3884_v15 = vpop.f32.mrb[23].mxu0 }
0x32d6   :  { %4192 = vtanh.f32 %v2463_v14  ;;  %v3617_v11 = vmul.f32 -1.442695, %v2463_v14 }
0x32d8   :  { %4194 = vpow2.f32 %v3617_v11  ;;  %v2740_v11 = vld [vmem:[#allocation3 + $0xe] sm:$0x3] }
0x32e0   :  { %v4193_v16 = vpop.eup %4192 }
0x32e1   :  { %2478 = vrot.lane.b32.xlu0 %v4193_v16, %s4275_s14 }
0x32e2   :  { %v4195_v17 = vpop.eup %4194 }
0x32e3   :  { %v2467_v18 = vadd.f32 1.0, %v4195_v17 }
0x32e5   :  { %4196 = vrcp.f32 %v2467_v18 }
0x32ef   :  { %v4197_v19 = vpop.eup %4196 }
0x32f0   :  { %v2476_v23 = vmul.f32 %v4197_v19, %v2474_v22 }
0x3353   :  { %v2479_v20 = vpop.permute.xlu0 %2478 }
0x3354   :  { %v2481_v21 = vmul.f32 %v4197_v19, %v2479_v20 }
0x3356   :  { %2483 = vrot.lane.b32.xlu0 %v2481_v21, %s4276_s3 }
0x33c8   :  { %v2484_v24 = vpop.permute.xlu0 %2483 }
0x33c9   :  { %v2486_v25 = vadd.f32 %v2484_v24, %v2476_v23 }
0x33cb   :  { %4198 = vtanh.f32 %v2486_v25 }
0x33d5   :  { %v4199_v26 = vpop.eup %4198 }
0x33d6   :  { %2489 = vrot.lane.b32.xlu1 %v4199_v26, %s4277_s15 }
0x33da   :  { %2494 = vrot.lane.b32.xlu1 %v2486_v25, %s4278_s16 }
0x3448   :  { %v2490_v27 = vpop.permute.xlu1 %2489 }
0x3449   :  { %v2492_v28 = vmul.f32 %v4197_v19, %v2490_v27 }
0x344b   :  { %2499 = vrot.lane.b32.xlu0 %v2492_v28, %s4279_s17 }
0x344c   :  { %v2495_v29 = vpop.permute.xlu1 %2494 }
0x344d   :  { %2497 = vst.msk [vmem:[#allocation5] sm:$0x3] %vm143_vm2, %v2495_v29 }
0x3454   :  { %v2589_v30 = vld [vmem:[#allocation5] sm:$0x3] }
0x3455   :  { %2591 = vrot.lane.b32.xlu1 %v2589_v30, %s4276_s3 }
0x34bd   :  { %v2500_v31 = vpop.permute.xlu0 %2499 }
0x34be   :  { %2503 = vst.msk [vmem:[%s4848_s7 + $0x8] sm:$0x3] %vm143_vm2, %v2500_v31  ;;  %2502 = vst.msk [vmem:[#allocation4] sm:$0x3] %vm143_vm2, %v2500_v31 }
0x34c5   :  { %v2505_v32 = vld [vmem:[#allocation4] sm:$0x3] }
0x34c6   :  { %3890 = vmatmul.mubr.msk.f32.vlgmr.msra.gmra.mrb[22].mxu1 %vm39_vm0, %v2505_v32 }
0x34c7   :  { %4021 = vmatpush3.bf16.msra.mxu1 %v4592_v34  ;;  %3903 = vmatprep.mubr.msk.f32.mxu1 %vm4273_vm1, %v4274_v4  ;;  %v2592_v45 = vpop.permute.xlu1 %2591 }
0x34c8   :  { %4025 = vmatprep.subr.bf16.mxu1 %v4272_v3 }
0x3599   :  { %v2577_v35 = vpop.f32.mrb[22].mxu1 }
0x359a   :  { %v2581_v36 = vadd.f32 %v2577_v35, %v2504_v33  ;;  %v3891_v37 = vpop.f32.mrb[23].mxu1 }
0x359c   :  { %4200 = vtanh.f32 %v2581_v36  ;;  %v3619_v39 = vmul.f32 -1.442695, %v2581_v36 }
0x359e   :  { %4202 = vpow2.f32 %v3619_v39  ;;  %v2858_v39 = vld [vmem:[#allocation3 + $0x10] sm:$0x3] }
0x35a6   :  { %v4201_v38 = vpop.eup %4200 }
0x35a7   :  { %2596 = vrot.lane.b32.xlu0 %v4201_v38, %s4275_s14 }
0x35a8   :  { %v4203_v40 = vpop.eup %4202 }
0x35a9   :  { %v2585_v41 = vadd.f32 1.0, %v4203_v40 }
0x35ab   :  { %4204 = vrcp.f32 %v2585_v41 }
0x35b5   :  { %v4205_v42 = vpop.eup %4204 }
0x35b6   :  { %v2594_v46 = vmul.f32 %v4205_v42, %v2592_v45 }
0x3619   :  { %v2597_v43 = vpop.permute.xlu0 %2596 }
0x361a   :  { %v2599_v44 = vmul.f32 %v4205_v42, %v2597_v43 }
0x361c   :  { %2601 = vrot.lane.b32.xlu0 %v2599_v44, %s4276_s3 }
0x368e   :  { %v2602_v47 = vpop.permute.xlu0 %2601 }
0x368f   :  { %v2604_v48 = vadd.f32 %v2602_v47, %v2594_v46 }
0x3691   :  { %4206 = vtanh.f32 %v2604_v48 }
0x369b   :  { %v4207_v49 = vpop.eup %4206 }
0x369c   :  { %2607 = vrot.lane.b32.xlu1 %v4207_v49, %s4277_s15 }
0x36a0   :  { %2612 = vrot.lane.b32.xlu1 %v2604_v48, %s4278_s16 }
0x370e   :  { %v2608_v50 = vpop.permute.xlu1 %2607 }
0x370f   :  { %v2610_v51 = vmul.f32 %v4205_v42, %v2608_v50 }
0x3711   :  { %2617 = vrot.lane.b32.xlu0 %v2610_v51, %s4279_s17 }
0x3712   :  { %v2613_v53 = vpop.permute.xlu1 %2612 }
0x3713   :  { %2615 = vst.msk [vmem:[#allocation5] sm:$0x3] %vm143_vm2, %v2613_v53 }
0x371a   :  { %v2707_v54 = vld [vmem:[#allocation5] sm:$0x3] }
0x371b   :  { %2709 = vrot.lane.b32.xlu1 %v2707_v54, %s4276_s3 }
0x3783   :  { %v2618_v55 = vpop.permute.xlu0 %2617 }
0x3784   :  { %2621 = vst.msk [vmem:[%s4848_s7 + $0xa] sm:$0x3] %vm143_vm2, %v2618_v55  ;;  %2620 = vst.msk [vmem:[#allocation4] sm:$0x3] %vm143_vm2, %v2618_v55 }
0x378b   :  { %v2623_v56 = vld [vmem:[#allocation4] sm:$0x3] }
0x378c   :  { %3897 = vmatmul.mubr.msk.f32.vlgmr.msra.gmra.mrb[24].mxu0 %vm39_vm0, %v2623_v56 }
0x378d   :  { %4024 = vmatpush3.bf16.msra.mxu0 %v4592_v34  ;;  %3910 = vmatprep.mubr.msk.f32.mxu0 %vm4273_vm1, %v4274_v4  ;;  %v2710_v5 = vpop.permute.xlu1 %2709 }
0x378e   :  { %4028 = vmatprep.subr.bf16.mxu0 %v4272_v3 }
0x385f   :  { %v2695_v52 = vpop.f32.mrb[24].mxu0 }
0x3860   :  { %v2699_v58 = vadd.f32 %v2695_v52, %v2622_v57  ;;  %v3898_v59 = vpop.f32.mrb[25].mxu0 }
0x3862   :  { %4208 = vtanh.f32 %v2699_v58  ;;  %v3621_v61 = vmul.f32 -1.442695, %v2699_v58 }
0x3864   :  { %4210 = vpow2.f32 %v3621_v61  ;;  %v2976_v61 = vld [vmem:[#allocation3 + $0x12] sm:$0x3] }
0x386c   :  { %v4209_v60 = vpop.eup %4208 }
0x386d   :  { %2714 = vrot.lane.b32.xlu0 %v4209_v60, %s4275_s14 }
0x386e   :  { %v4211_v62 = vpop.eup %4210 }
0x386f   :  { %v2703_v63 = vadd.f32 1.0, %v4211_v62 }
0x3871   :  { %4212 = vrcp.f32 %v2703_v63 }
0x387b   :  { %v4213_v0 = vpop.eup %4212 }
0x387c   :  { %v2712_v6 = vmul.f32 %v4213_v0, %v2710_v5 }
0x38df   :  { %v2715_v1 = vpop.permute.xlu0 %2714 }
0x38e0   :  { %v2717_v2 = vmul.f32 %v4213_v0, %v2715_v1 }
0x38e2   :  { %2719 = vrot.lane.b32.xlu0 %v2717_v2, %s4276_s3 }
0x3954   :  { %v2720_v7 = vpop.permute.xlu0 %2719 }
0x3955   :  { %v2722_v9 = vadd.f32 %v2720_v7, %v2712_v6 }
0x3957   :  { %4214 = vtanh.f32 %v2722_v9 }
0x3961   :  { %v4215_v8 = vpop.eup %4214 }
0x3962   :  { %2725 = vrot.lane.b32.xlu1 %v4215_v8, %s4277_s15 }
0x3966   :  { %2730 = vrot.lane.b32.xlu1 %v2722_v9, %s4278_s16 }
0x39d4   :  { %v2726_v10 = vpop.permute.xlu1 %2725 }
0x39d5   :  { %v2728_v12 = vmul.f32 %v4213_v0, %v2726_v10 }
0x39d7   :  { %2735 = vrot.lane.b32.xlu0 %v2728_v12, %s4279_s17 }
0x39d8   :  { %v2731_v13 = vpop.permute.xlu1 %2730 }
0x39d9   :  { %2733 = vst.msk [vmem:[#allocation5] sm:$0x3] %vm143_vm2, %v2731_v13 }
0x39e0   :  { %v2825_v14 = vld [vmem:[#allocation5] sm:$0x3] }
0x39e1   :  { %2827 = vrot.lane.b32.xlu1 %v2825_v14, %s4276_s3 }
0x3a49   :  { %v2736_v15 = vpop.permute.xlu0 %2735 }
0x3a4a   :  { %2739 = vst.msk [vmem:[%s4848_s7 + $0xc] sm:$0x3] %vm143_vm2, %v2736_v15  ;;  %2738 = vst.msk [vmem:[#allocation4] sm:$0x3] %vm143_vm2, %v2736_v15 }
0x3a51   :  { %v2741_v16 = vld [vmem:[#allocation4] sm:$0x3] }
0x3a52   :  { %3904 = vmatmul.mubr.msk.f32.vlgmr.msra.gmra.mrb[24].mxu1 %vm39_vm0, %v2741_v16 }
0x3a53   :  { %4027 = vmatpush3.bf16.msra.mxu1 %v4592_v34  ;;  %3917 = vmatprep.mubr.msk.f32.mxu1 %vm4273_vm1, %v4274_v4  ;;  %v2828_v27 = vpop.permute.xlu1 %2827 }
0x3a54   :  { %4031 = vmatprep.subr.bf16.mxu1 %v4272_v3 }
0x3b25   :  { %v2813_v17 = vpop.f32.mrb[24].mxu1 }
0x3b26   :  { %v2817_v18 = vadd.f32 %v2813_v17, %v2740_v11  ;;  %v3905_v19 = vpop.f32.mrb[25].mxu1 }
0x3b28   :  { %4216 = vtanh.f32 %v2817_v18  ;;  %v3623_v21 = vmul.f32 -1.442695, %v2817_v18 }
0x3b2a   :  { %4218 = vpow2.f32 %v3623_v21 }
0x3b32   :  { %v4217_v20 = vpop.eup %4216 }
0x3b33   :  { %2832 = vrot.lane.b32.xlu0 %v4217_v20, %s4275_s14  ;;  %v3094_v20 = vld [vmem:[#allocation3 + $0x14] sm:$0x3] }
0x3b34   :  { %v4219_v22 = vpop.eup %4218 }
0x3b35   :  { %v2821_v23 = vadd.f32 1.0, %v4219_v22 }
0x3b37   :  { %4220 = vrcp.f32 %v2821_v23 }
0x3b41   :  { %v4221_v24 = vpop.eup %4220 }
0x3b42   :  { %v2830_v28 = vmul.f32 %v4221_v24, %v2828_v27 }
0x3ba5   :  { %v2833_v25 = vpop.permute.xlu0 %2832 }
0x3ba6   :  { %v2835_v26 = vmul.f32 %v4221_v24, %v2833_v25 }
0x3ba8   :  { %2837 = vrot.lane.b32.xlu0 %v2835_v26, %s4276_s3 }
0x3c1a   :  { %v2838_v29 = vpop.permute.xlu0 %2837 }
0x3c1b   :  { %v2840_v30 = vadd.f32 %v2838_v29, %v2830_v28 }
0x3c1d   :  { %4222 = vtanh.f32 %v2840_v30 }
0x3c27   :  { %v4223_v31 = vpop.eup %4222 }
0x3c28   :  { %2843 = vrot.lane.b32.xlu1 %v4223_v31, %s4277_s15 }
0x3c2c   :  { %2848 = vrot.lane.b32.xlu1 %v2840_v30, %s4278_s16 }
0x3c9a   :  { %v2844_v32 = vpop.permute.xlu1 %2843 }
0x3c9b   :  { %v2846_v33 = vmul.f32 %v4221_v24, %v2844_v32 }
0x3c9d   :  { %2853 = vrot.lane.b32.xlu0 %v2846_v33, %s4279_s17 }
0x3c9e   :  { %v2849_v35 = vpop.permute.xlu1 %2848 }
0x3c9f   :  { %2851 = vst.msk [vmem:[#allocation5] sm:$0x3] %vm143_vm2, %v2849_v35 }
0x3ca6   :  { %v2943_v36 = vld [vmem:[#allocation5] sm:$0x3] }
0x3ca7   :  { %2945 = vrot.lane.b32.xlu1 %v2943_v36, %s4276_s3 }
0x3d0f   :  { %v2854_v37 = vpop.permute.xlu0 %2853 }
0x3d10   :  { %2857 = vst.msk [vmem:[%s4848_s7 + $0xe] sm:$0x3] %vm143_vm2, %v2854_v37  ;;  %2856 = vst.msk [vmem:[#allocation4] sm:$0x3] %vm143_vm2, %v2854_v37 }
0x3d17   :  { %v2859_v38 = vld [vmem:[#allocation4] sm:$0x3] }
0x3d18   :  { %3911 = vmatmul.mubr.msk.f32.vlgmr.msra.gmra.mrb[26].mxu0 %vm39_vm0, %v2859_v38 }
0x3d19   :  { %4030 = vmatpush3.bf16.msra.mxu0 %v4592_v34  ;;  %3924 = vmatprep.mubr.msk.f32.mxu0 %vm4273_vm1, %v4274_v4  ;;  %v2946_v50 = vpop.permute.xlu1 %2945 }
0x3d1a   :  { %4034 = vmatprep.subr.bf16.mxu0 %v4272_v3 }
0x3deb   :  { %v2931_v40 = vpop.f32.mrb[26].mxu0 }
0x3dec   :  { %v2935_v41 = vadd.f32 %v2931_v40, %v2858_v39  ;;  %v3912_v42 = vpop.f32.mrb[27].mxu0 }
0x3dee   :  { %4224 = vtanh.f32 %v2935_v41  ;;  %v3625_v44 = vmul.f32 -1.442695, %v2935_v41 }
0x3df0   :  { %4226 = vpow2.f32 %v3625_v44 }
0x3df8   :  { %v4225_v43 = vpop.eup %4224 }
0x3df9   :  { %2950 = vrot.lane.b32.xlu0 %v4225_v43, %s4275_s14  ;;  %v3212_v43 = vld [vmem:[#allocation3 + $0x16] sm:$0x3] }
0x3dfa   :  { %v4227_v45 = vpop.eup %4226 }
0x3dfb   :  { %v2939_v46 = vadd.f32 1.0, %v4227_v45 }
0x3dfd   :  { %4228 = vrcp.f32 %v2939_v46 }
0x3e07   :  { %v4229_v47 = vpop.eup %4228 }
0x3e08   :  { %v2948_v51 = vmul.f32 %v4229_v47, %v2946_v50 }
0x3e6b   :  { %v2951_v48 = vpop.permute.xlu0 %2950 }
0x3e6c   :  { %v2953_v49 = vmul.f32 %v4229_v47, %v2951_v48 }
0x3e6e   :  { %2955 = vrot.lane.b32.xlu0 %v2953_v49, %s4276_s3 }
0x3ee0   :  { %v2956_v53 = vpop.permute.xlu0 %2955 }
0x3ee1   :  { %v2958_v54 = vadd.f32 %v2956_v53, %v2948_v51 }
0x3ee3   :  { %4230 = vtanh.f32 %v2958_v54 }
0x3eed   :  { %v4231_v55 = vpop.eup %4230 }
0x3eee   :  { %2961 = vrot.lane.b32.xlu1 %v4231_v55, %s4277_s15 }
0x3ef2   :  { %2966 = vrot.lane.b32.xlu1 %v2958_v54, %s4278_s16 }
0x3f60   :  { %v2962_v56 = vpop.permute.xlu1 %2961 }
0x3f61   :  { %v2964_v57 = vmul.f32 %v4229_v47, %v2962_v56 }
0x3f63   :  { %2971 = vrot.lane.b32.xlu0 %v2964_v57, %s4279_s17 }
0x3f64   :  { %v2967_v52 = vpop.permute.xlu1 %2966 }
0x3f65   :  { %2969 = vst.msk [vmem:[#allocation5] sm:$0x3] %vm143_vm2, %v2967_v52 }
0x3f6c   :  { %v3061_v58 = vld [vmem:[#allocation5] sm:$0x3] }
0x3f6d   :  { %3063 = vrot.lane.b32.xlu1 %v3061_v58, %s4276_s3 }
0x3fd5   :  { %v2972_v59 = vpop.permute.xlu0 %2971 }
0x3fd6   :  { %2975 = vst.msk [vmem:[%s4848_s7 + $0x10] sm:$0x3] %vm143_vm2, %v2972_v59  ;;  %2974 = vst.msk [vmem:[#allocation4] sm:$0x3] %vm143_vm2, %v2972_v59 }
0x3fdd   :  { %v2977_v60 = vld [vmem:[#allocation4] sm:$0x3] }
0x3fde   :  { %3918 = vmatmul.mubr.msk.f32.vlgmr.msra.gmra.mrb[26].mxu1 %vm39_vm0, %v2977_v60 }
0x3fdf   :  { %4033 = vmatpush3.bf16.msra.mxu1 %v4592_v34  ;;  %3931 = vmatprep.mubr.msk.f32.mxu1 %vm4273_vm1, %v4274_v4  ;;  %v3064_v10 = vpop.permute.xlu1 %3063 }
0x3fe0   :  { %4037 = vmatprep.subr.bf16.mxu1 %v4272_v3 }
0x40b1   :  { %v3049_v62 = vpop.f32.mrb[26].mxu1 }
0x40b2   :  { %v3053_v63 = vadd.f32 %v3049_v62, %v2976_v61  ;;  %v3919_v0 = vpop.f32.mrb[27].mxu1 }
0x40b4   :  { %4232 = vtanh.f32 %v3053_v63  ;;  %v3627_v2 = vmul.f32 -1.442695, %v3053_v63  ;;  %v3330_v63 = vld [vmem:[#allocation3 + $0x18] sm:$0x3] }
0x40b6   :  { %4234 = vpow2.f32 %v3627_v2 }
0x40be   :  { %v4233_v1 = vpop.eup %4232 }
0x40bf   :  { %3068 = vrot.lane.b32.xlu0 %v4233_v1, %s4275_s14 }
0x40c0   :  { %v4235_v5 = vpop.eup %4234 }
0x40c1   :  { %v3057_v6 = vadd.f32 1.0, %v4235_v5 }
0x40c3   :  { %4236 = vrcp.f32 %v3057_v6 }
0x40cd   :  { %v4237_v7 = vpop.eup %4236 }
0x40ce   :  { %v3066_v3 = vmul.f32 %v4237_v7, %v3064_v10 }
0x4131   :  { %v3069_v9 = vpop.permute.xlu0 %3068 }
0x4132   :  { %v3071_v8 = vmul.f32 %v4237_v7, %v3069_v9 }
0x4134   :  { %3073 = vrot.lane.b32.xlu0 %v3071_v8, %s4276_s3 }
0x41a6   :  { %v3074_v12 = vpop.permute.xlu0 %3073 }
0x41a7   :  { %v3076_v13 = vadd.f32 %v3074_v12, %v3066_v3 }
0x41a9   :  { %4238 = vtanh.f32 %v3076_v13 }
0x41b3   :  { %v4239_v14 = vpop.eup %4238 }
0x41b4   :  { %3079 = vrot.lane.b32.xlu1 %v4239_v14, %s4277_s15 }
0x41b8   :  { %3084 = vrot.lane.b32.xlu1 %v3076_v13, %s4278_s16 }
0x4226   :  { %v3080_v15 = vpop.permute.xlu1 %3079 }
0x4227   :  { %v3082_v16 = vmul.f32 %v4237_v7, %v3080_v15 }
0x4229   :  { %3089 = vrot.lane.b32.xlu0 %v3082_v16, %s4279_s17 }
0x422a   :  { %v3085_v11 = vpop.permute.xlu1 %3084 }
0x422b   :  { %3087 = vst.msk [vmem:[#allocation5] sm:$0x3] %vm143_vm2, %v3085_v11 }
0x4232   :  { %v3179_v17 = vld [vmem:[#allocation5] sm:$0x3] }
0x4233   :  { %3181 = vrot.lane.b32.xlu1 %v3179_v17, %s4276_s3 }
0x429b   :  { %v3090_v18 = vpop.permute.xlu0 %3089 }
0x429c   :  { %3093 = vst.msk [vmem:[%s4848_s7 + $0x12] sm:$0x3] %vm143_vm2, %v3090_v18  ;;  %3092 = vst.msk [vmem:[#allocation4] sm:$0x3] %vm143_vm2, %v3090_v18 }
0x42a3   :  { %v3095_v19 = vld [vmem:[#allocation4] sm:$0x3] }
0x42a4   :  { %3925 = vmatmul.mubr.msk.f32.vlgmr.msra.gmra.mrb[28].mxu0 %vm39_vm0, %v3095_v19 }
0x42a5   :  { %4036 = vmatpush3.bf16.msra.mxu0 %v4592_v34  ;;  %3938 = vmatprep.mubr.msk.f32.mxu0 %vm4273_vm1, %v4274_v4  ;;  %v3182_v31 = vpop.permute.xlu1 %3181 }
0x4377   :  { %v3167_v21 = vpop.f32.mrb[28].mxu0 }
0x4378   :  { %v3171_v22 = vadd.f32 %v3167_v21, %v3094_v20  ;;  %v3926_v23 = vpop.f32.mrb[29].mxu0 }
0x437a   :  { %4240 = vtanh.f32 %v3171_v22  ;;  %v3629_v25 = vmul.f32 -1.442695, %v3171_v22  ;;  %v3448_v22 = vld [vmem:[#allocation3 + $0x1a] sm:$0x3] }
0x437c   :  { %4242 = vpow2.f32 %v3629_v25 }
0x4384   :  { %v4241_v24 = vpop.eup %4240 }
0x4385   :  { %3186 = vrot.lane.b32.xlu0 %v4241_v24, %s4275_s14 }
0x4386   :  { %v4243_v26 = vpop.eup %4242 }
0x4387   :  { %v3175_v27 = vadd.f32 1.0, %v4243_v26 }
0x4389   :  { %4244 = vrcp.f32 %v3175_v27 }
0x4393   :  { %v4245_v28 = vpop.eup %4244 }
0x4394   :  { %v3184_v32 = vmul.f32 %v4245_v28, %v3182_v31 }
0x43f7   :  { %v3187_v29 = vpop.permute.xlu0 %3186 }
0x43f8   :  { %v3189_v30 = vmul.f32 %v4245_v28, %v3187_v29 }
0x43fa   :  { %3191 = vrot.lane.b32.xlu0 %v3189_v30, %s4276_s3 }
0x446c   :  { %v3192_v33 = vpop.permute.xlu0 %3191 }
0x446d   :  { %v3194_v35 = vadd.f32 %v3192_v33, %v3184_v32 }
0x446f   :  { %4246 = vtanh.f32 %v3194_v35 }
0x4479   :  { %v4247_v36 = vpop.eup %4246 }
0x447a   :  { %3197 = vrot.lane.b32.xlu1 %v4247_v36, %s4277_s15 }
0x447e   :  { %3202 = vrot.lane.b32.xlu1 %v3194_v35, %s4278_s16 }
0x44ec   :  { %v3198_v37 = vpop.permute.xlu1 %3197 }
0x44ed   :  { %v3200_v38 = vmul.f32 %v4245_v28, %v3198_v37 }
0x44ef   :  { %3207 = vrot.lane.b32.xlu0 %v3200_v38, %s4279_s17 }
0x44f0   :  { %v3203_v39 = vpop.permute.xlu1 %3202 }
0x44f1   :  { %3205 = vst.msk [vmem:[#allocation5] sm:$0x3] %vm143_vm2, %v3203_v39 }
0x44f8   :  { %v3297_v40 = vld [vmem:[#allocation5] sm:$0x3] }
0x44f9   :  { %3299 = vrot.lane.b32.xlu1 %v3297_v40, %s4276_s3 }
0x4561   :  { %v3208_v41 = vpop.permute.xlu0 %3207 }
0x4562   :  { %3211 = vst.msk [vmem:[%s4848_s7 + $0x14] sm:$0x3] %vm143_vm2, %v3208_v41  ;;  %3210 = vst.msk [vmem:[#allocation4] sm:$0x3] %vm143_vm2, %v3208_v41 }
0x4569   :  { %v3213_v42 = vld [vmem:[#allocation4] sm:$0x3] }
0x456a   :  { %3932 = vmatmul.mubr.msk.f32.vlgmr.msra.gmra.mrb[28].mxu1 %vm39_vm0, %v3213_v42 }
0x456b   :  { %4039 = vmatpush3.bf16.msra.mxu1 %v4592_v34  ;;  %3945 = vmatprep.mubr.msk.f32.mxu1 %vm4273_vm1, %v4274_v4  ;;  %v3300_v34 = vpop.permute.xlu1 %3299 }
0x463d   :  { %v3285_v44 = vpop.f32.mrb[28].mxu1 }
0x463e   :  { %v3289_v45 = vadd.f32 %v3285_v44, %v3212_v43  ;;  %v3933_v46 = vpop.f32.mrb[29].mxu1 }
0x4640   :  { %4248 = vtanh.f32 %v3289_v45  ;;  %v3631_v48 = vmul.f32 -1.442695, %v3289_v45 }
0x4642   :  { %4250 = vpow2.f32 %v3631_v48 }
0x464a   :  { %v4249_v47 = vpop.eup %4248 }
0x464b   :  { %3304 = vrot.lane.b32.xlu0 %v4249_v47, %s4275_s14 }
0x464c   :  { %v4251_v49 = vpop.eup %4250 }
0x464d   :  { %v3293_v50 = vadd.f32 1.0, %v4251_v49 }
0x464f   :  { %4252 = vrcp.f32 %v3293_v50 }
0x4659   :  { %v4253_v51 = vpop.eup %4252 }
0x465a   :  { %v3302_v4 = vmul.f32 %v4253_v51, %v3300_v34 }
0x46bd   :  { %v3305_v53 = vpop.permute.xlu0 %3304 }
0x46be   :  { %v3307_v54 = vmul.f32 %v4253_v51, %v3305_v53 }
0x46c0   :  { %3309 = vrot.lane.b32.xlu0 %v3307_v54, %s4276_s3 }
0x4732   :  { %v3310_v55 = vpop.permute.xlu0 %3309 }
0x4733   :  { %v3312_v56 = vadd.f32 %v3310_v55, %v3302_v4 }
0x4735   :  { %4254 = vtanh.f32 %v3312_v56 }
0x473f   :  { %v4255_v57 = vpop.eup %4254 }
0x4740   :  { %3315 = vrot.lane.b32.xlu1 %v4255_v57, %s4277_s15 }
0x4744   :  { %3320 = vrot.lane.b32.xlu1 %v3312_v56, %s4278_s16 }
0x47b2   :  { %v3316_v52 = vpop.permute.xlu1 %3315 }
0x47b3   :  { %v3318_v58 = vmul.f32 %v4253_v51, %v3316_v52 }
0x47b5   :  { %3325 = vrot.lane.b32.xlu0 %v3318_v58, %s4279_s17 }
0x47b6   :  { %v3321_v59 = vpop.permute.xlu1 %3320 }
0x47b7   :  { %3323 = vst.msk [vmem:[#allocation5] sm:$0x3] %vm143_vm2, %v3321_v59 }
0x47be   :  { %v3415_v60 = vld [vmem:[#allocation5] sm:$0x3] }
0x47bf   :  { %3417 = vrot.lane.b32.xlu1 %v3415_v60, %s4276_s3 }
0x4827   :  { %v3326_v61 = vpop.permute.xlu0 %3325 }
0x4828   :  { %3329 = vst.msk [vmem:[%s4848_s7 + $0x16] sm:$0x3] %vm143_vm2, %v3326_v61  ;;  %3328 = vst.msk [vmem:[#allocation4] sm:$0x3] %vm143_vm2, %v3326_v61 }
0x482f   :  { %v3331_v62 = vld [vmem:[#allocation4] sm:$0x3] }
0x4830   :  { %3939 = vmatmul.mubr.msk.f32.vlgmr.msra.gmra.mrb[30].mxu0 %vm39_vm0, %v3331_v62 }
0x4831   :  { %v3418_v12 = vpop.permute.xlu1 %3417 }
0x4903   :  { %v3403_v0 = vpop.f32.mrb[30].mxu0 }
0x4904   :  { %v3407_v1 = vadd.f32 %v3403_v0, %v3330_v63  ;;  %v3940_v2 = vpop.f32.mrb[31].mxu0 }
0x4906   :  { %4256 = vtanh.f32 %v3407_v1  ;;  %v3633_v6 = vmul.f32 -1.442695, %v3407_v1 }
0x4908   :  { %4258 = vpow2.f32 %v3633_v6 }
0x4910   :  { %v4257_v5 = vpop.eup %4256 }
0x4911   :  { %3422 = vrot.lane.b32.xlu0 %v4257_v5, %s4275_s14 }
0x4912   :  { %v4259_v7 = vpop.eup %4258 }
0x4913   :  { %v3411_v9 = vadd.f32 1.0, %v4259_v7 }
0x4915   :  { %4260 = vrcp.f32 %v3411_v9 }
0x491f   :  { %v4261_v8 = vpop.eup %4260 }
0x4920   :  { %v3420_v13 = vmul.f32 %v4261_v8, %v3418_v12 }
0x4983   :  { %v3423_v10 = vpop.permute.xlu0 %3422 }
0x4984   :  { %v3425_v3 = vmul.f32 %v4261_v8, %v3423_v10 }
0x4986   :  { %3427 = vrot.lane.b32.xlu0 %v3425_v3, %s4276_s3 }
0x49f8   :  { %v3428_v14 = vpop.permute.xlu0 %3427 }
0x49f9   :  { %v3430_v15 = vadd.f32 %v3428_v14, %v3420_v13 }
0x49fb   :  { %4262 = vtanh.f32 %v3430_v15 }
0x4a05   :  { %v4263_v16 = vpop.eup %4262 }
0x4a06   :  { %3433 = vrot.lane.b32.xlu1 %v4263_v16, %s4277_s15 }
0x4a0a   :  { %3438 = vrot.lane.b32.xlu1 %v3430_v15, %s4278_s16 }
0x4a78   :  { %v3434_v11 = vpop.permute.xlu1 %3433 }
0x4a79   :  { %v3436_v17 = vmul.f32 %v4261_v8, %v3434_v11 }
0x4a7b   :  { %3443 = vrot.lane.b32.xlu0 %v3436_v17, %s4279_s17 }
0x4a7c   :  { %v3439_v18 = vpop.permute.xlu1 %3438 }
0x4a7d   :  { %3441 = vst.msk [vmem:[#allocation5] sm:$0x3] %vm143_vm2, %v3439_v18 }
0x4a84   :  { %v3533_v19 = vld [vmem:[#allocation5] sm:$0x3] }
0x4a85   :  { %3535 = vrot.lane.b32.xlu1 %v3533_v19, %s4276_s3 }
0x4aed   :  { %v3444_v20 = vpop.permute.xlu0 %3443 }
0x4aee   :  { %3447 = vst.msk [vmem:[%s4848_s7 + $0x18] sm:$0x3] %vm143_vm2, %v3444_v20  ;;  %3446 = vst.msk [vmem:[#allocation4] sm:$0x3] %vm143_vm2, %v3444_v20 }
0x4af5   :  { %v3449_v21 = vld [vmem:[#allocation4] sm:$0x3] }
0x4af6   :  { %3946 = vmatmul.mubr.msk.f32.vlgmr.msra.gmra.mrb[30].mxu1 %vm39_vm0, %v3449_v21 }
0x4af7   :  { %v3536_v33 = vpop.permute.xlu1 %3535 }
0x4bc9   :  { %v3521_v23 = vpop.f32.mrb[30].mxu1 }
0x4bca   :  { %v3525_v24 = vadd.f32 %v3521_v23, %v3448_v22  ;;  %v3947_v25 = vpop.f32.mrb[31].mxu1 }
0x4bcc   :  { %4264 = vtanh.f32 %v3525_v24  ;;  %v3635_v27 = vmul.f32 -1.442695, %v3525_v24 }
0x4bce   :  { %4266 = vpow2.f32 %v3635_v27 }
0x4bd6   :  { %v4265_v26 = vpop.eup %4264 }
0x4bd7   :  { %3540 = vrot.lane.b32.xlu0 %v4265_v26, %s4275_s14 }
0x4bd8   :  { %v4267_v28 = vpop.eup %4266 }
0x4bd9   :  { %v3529_v29 = vadd.f32 1.0, %v4267_v28 }
0x4bdb   :  { %4268 = vrcp.f32 %v3529_v29 }
0x4be5   :  { %v4269_v30 = vpop.eup %4268 }
0x4be6   :  { %v3538_v35 = vmul.f32 %v4269_v30, %v3536_v33 }
0x4c49   :  { %v3541_v31 = vpop.permute.xlu0 %3540 }
0x4c4a   :  { %v3543_v32 = vmul.f32 %v4269_v30, %v3541_v31 }
0x4c4c   :  { %3545 = vrot.lane.b32.xlu0 %v3543_v32, %s4276_s3 }
0x4cbe   :  { %v3546_v36 = vpop.permute.xlu0 %3545 }
0x4cbf   :  { %v3548_v37 = vadd.f32 %v3546_v36, %v3538_v35 }
0x4cc1   :  { %4270 = vtanh.f32 %v3548_v37  ;;  %3556 = vrot.lane.b32.xlu0 %v3548_v37, %s4278_s16 }
0x4ccb   :  { %v4271_v38 = vpop.eup %4270 }
0x4ccc   :  { %3551 = vrot.lane.b32.xlu1 %v4271_v38, %s4277_s15 }
0x4d33   :  { %v3557_v39 = vpop.permute.xlu0 %3556 }
0x4d34   :  { %3559 = vst.msk [vmem:[#allocation5] sm:$0x3] %vm143_vm2, %v3557_v39 }
0x4d3e   :  { %v3552_v40 = vpop.permute.xlu1 %3551 }
0x4d3f   :  { %v3554_v41 = vmul.f32 %v4269_v30, %v3552_v40 }
0x4d41   :  { %3561 = vrot.lane.b32.xlu1 %v3554_v41, %s4279_s17 }
0x4db3   :  { %v3562_v42 = vpop.permute.xlu1 %3561 }
0x4db4   :  { %3564 = vst.msk [vmem:[#allocation4] sm:$0x3] %vm143_vm2, %v3562_v42  ;;  %3565 = vst.msk [vmem:[%s4848_s7 + $0x1a] sm:$0x3] %vm143_vm2, %v3562_v42 }

// kernel: crn_forward.12
= control target key start
LH: loop header
LB: loop body
LE: loop exit
PB: predicated region body
PF: predicated region fallthrough
CT: control target
= control target key end

     0   :  { %v1462_v0 = vmov 0   ;;  %s2170_s1 = inlined_call_operand.vmem [shape: bf16[384,128], index: 1, kind: input, shape index: {}]   ;;  %s2171_s0 = inlined_call_operand.vmem [shape: bf16[280,384], index: 0, kind: input, shape index: {}]   ;;  %s2172_s2 = inlined_call_operand.vmem [shape: f32[280,128], index: 2, kind: output, shape index: {}]  }
   0x1   :  { %557 = vmatprep.subr.bf16.mxu0 %v1462_v0  ;;  %1332 = vmatprep.subr.bf16.mxu1 %v1462_v0  ;;  %v1365_v1 = vld [vmem:[%s2170_s1] sm:$0xff]   ;;  %v1366_v2 = vld [vmem:[%s2170_s1 + $0x8] sm:$0xff]   ;;  %v1367_v3 = vld [vmem:[%s2170_s1 + $0x10] sm:$0xff]  }
   0x2   :  { %558 = vmatpush1.bf16.msra.mxu0 %v1365_v1  ;;  %1348 = vmatpush1.bf16.msra.mxu1 %v1365_v1  ;;  %v1368_v4 = vld [vmem:[%s2170_s1 + $0x18] sm:$0xff]   ;;  %v1369_v5 = vld [vmem:[%s2170_s1 + $0x20] sm:$0xff]   ;;  %v1370_v7 = vld [vmem:[%s2170_s1 + $0x28] sm:$0xff]  }
   0x3   :  { %559 = vmatprep.subr.bf16.mxu0 %v1462_v0  ;;  %1333 = vmatprep.subr.bf16.mxu1 %v1462_v0  ;;  %v1383_v6 = vld [vmem:[%s2171_s0 + $0x4] ss:$12 sps:$4 sm:$0xff]   ;;  %v1386_v8 = vld [vmem:[%s2171_s0 + $0x154] ss:$12 sps:$4 sm:$0xff]   ;;  %v1372_v10 = vld [vmem:[%s2170_s1 + $0x38] sm:$0xff]  }
   0x4   :  { %589 = vmatprep.mubr.bf16.mxu0 %v1383_v6  ;;  %701 = vmatprep.mubr.bf16.mxu1 %v1386_v8  ;;  %v1371_v9 = vld [vmem:[%s2170_s1 + $0x30] sm:$0xff]   ;;  %v1373_v11 = vld [vmem:[%s2170_s1 + $0x40] sm:$0xff]   ;;  %v1374_v12 = vld [vmem:[%s2170_s1 + $0x48] sm:$0xff]  }
   0x5   :  { %v1375_v13 = vld [vmem:[%s2170_s1 + $0x50] sm:$0xff]   ;;  %v1376_v14 = vld [vmem:[%s2170_s1 + $0x58] sm:$0xff]   ;;  %v1377_v15 = vld [vmem:[%s2170_s1 + $0x60] sm:$0xff]  }
   0x6   :  { %560 = vmatpush1.bf16.msra.mxu0 %v1366_v2  ;;  %1349 = vmatpush1.bf16.msra.mxu1 %v1366_v2  ;;  %v1378_v16 = vld [vmem:[%s2170_s1 + $0x68] sm:$0xff]   ;;  %v1379_v17 = vld [vmem:[%s2170_s1 + $0x70] sm:$0xff]   ;;  %v1380_v18 = vld [vmem:[%s2170_s1 + $0x78] sm:$0xff]  }
   0x7   :  { %561 = vmatprep.subr.bf16.mxu0 %v1462_v0  ;;  %1334 = vmatprep.subr.bf16.mxu1 %v1462_v0  ;;  %v1387_v19 = vld [vmem:[%s2170_s1 + $0x80] sm:$0xff]   ;;  %v1384_v21 = vld [vmem:[%s2171_s0 + $0x150] ss:$12 sps:$4 sm:$0xff]   ;;  %v1388_v22 = vld [vmem:[%s2170_s1 + $0x88] sm:$0xff]  }
   0x8   :  { %v1381_v20 = vld [vmem:[%s2171_s0] ss:$12 sps:$4 sm:$0xff]   ;;  %v1389_v23 = vld [vmem:[%s2171_s0 + $0x1c] ss:$12 sps:$4 sm:$0xff]   ;;  %v1395_v25 = vld [vmem:[%s2170_s1 + $0x90] sm:$0xff]  }
   0x9   :  { %v1391_v24 = vld [vmem:[%s2171_s0 + $0x16c] ss:$12 sps:$4 sm:$0xff]   ;;  %v1394_v27 = vld [vmem:[%s2171_s0 + $0x168] ss:$12 sps:$4 sm:$0xff]   ;;  %v1399_v30 = vld [vmem:[%s2171_s0 + $0x184] ss:$12 sps:$4 sm:$0xff]  }
   0xa   :  { %562 = vmatpush1.bf16.msra.mxu0 %v1367_v3  ;;  %1350 = vmatpush1.bf16.msra.mxu1 %v1367_v3  ;;  %v1393_v26 = vld [vmem:[%s2171_s0 + $0x18] ss:$12 sps:$4 sm:$0xff]   ;;  %v1397_v28 = vld [vmem:[%s2171_s0 + $0x34] ss:$12 sps:$4 sm:$0xff]   ;;  %v1401_v33 = vld [vmem:[%s2171_s0 + $0x30] ss:$12 sps:$4 sm:$0xff]  }
   0xb   :  { %563 = vmatprep.subr.bf16.mxu0 %v1462_v0  ;;  %1335 = vmatprep.subr.bf16.mxu1 %v1462_v0  ;;  %v1396_v29 = vld [vmem:[%s2170_s1 + $0x98] sm:$0xff]   ;;  %v1403_v31 = vld [vmem:[%s2170_s1 + $0xa0] sm:$0xff]   ;;  %v1404_v36 = vld [vmem:[%s2170_s1 + $0xa8] sm:$0xff]  }
   0xc   :  { %v80_v32 = vld [vmem:[%s2171_s0 + $0x198] sm:$0xff]  ;;  %v1402_v34 = vld [vmem:[%s2171_s0 + $0x180] ss:$12 sps:$4 sm:$0xff]   ;;  %v1410_v38 = vld [vmem:[%s2170_s1 + $0xb0] sm:$0xff]  }
   0xd   :  { %v1405_v35 = vld [vmem:[%s2171_s0 + $0x4c] ss:$12 sps:$4 sm:$0xff]   ;;  %v1228_v37 = vcombine.high %v80_v32, %v80_v32  ;;  %v1408_v39 = vld [vmem:[%s2171_s0 + $0x48] ss:$12 sps:$4 sm:$0xff]   ;;  %v1227_v40 = vcombine.low %v80_v32, %v80_v32  ;;  %v1412_v41 = vld [vmem:[%s2171_s0 + $0x64] ss:$12 sps:$4 sm:$0xff]  }
   0xe   :  { %564 = vmatpush1.bf16.msra.mxu0 %v1368_v4  ;;  %1351 = vmatpush1.bf16.msra.mxu1 %v1368_v4  ;;  %v1411_v42 = vld [vmem:[%s2170_s1 + $0xb8] sm:$0xff]   ;;  %v1414_v43 = vld [vmem:[%s2171_s0 + $0x8] ss:$12 sps:$4 sm:$0xff]   ;;  %v1415_v44 = vld [vmem:[%s2171_s0 + $0x60] ss:$12 sps:$4 sm:$0xff]  }
   0xf   :  { %565 = vmatprep.subr.bf16.mxu0 %v1462_v0  ;;  %1336 = vmatprep.subr.bf16.mxu1 %v1462_v0  ;;  %v1416_v45 = vld [vmem:[%s2171_s0 + $0x20] ss:$12 sps:$4 sm:$0xff]   ;;  %v1417_v46 = vld [vmem:[%s2171_s0 + $0x7c] ss:$12 sps:$4 sm:$0xff]   ;;  %v1419_v47 = vld [vmem:[%s2171_s0 + $0x38] ss:$12 sps:$4 sm:$0xff]  }
  0x10   :  { %v1420_v48 = vld [vmem:[%s2171_s0 + $0x78] ss:$12 sps:$4 sm:$0xff]   ;;  %v1421_v49 = vld [vmem:[%s2171_s0 + $0x50] ss:$12 sps:$4 sm:$0xff]   ;;  %v1422_v50 = vld [vmem:[%s2171_s0 + $0x94] ss:$12 sps:$4 sm:$0xff]  }
  0x11   :  { %v1424_v51 = vld [vmem:[%s2171_s0 + $0x68] ss:$12 sps:$4 sm:$0xff]   ;;  %v1425_v52 = vld [vmem:[%s2171_s0 + $0x90] ss:$12 sps:$4 sm:$0xff]   ;;  %v1426_v53 = vld [vmem:[%s2171_s0 + $0x80] ss:$12 sps:$4 sm:$0xff]  }
  0x12   :  { %566 = vmatpush1.bf16.msra.mxu0 %v1369_v5  ;;  %1352 = vmatpush1.bf16.msra.mxu1 %v1369_v5  ;;  %v1427_v54 = vld [vmem:[%s2171_s0 + $0xac] ss:$12 sps:$4 sm:$0xff]   ;;  %v1430_v56 = vld [vmem:[%s2171_s0 + $0xa8] ss:$12 sps:$4 sm:$0xff]   ;;  %v1431_v57 = vld [vmem:[%s2171_s0 + $0xb0] ss:$12 sps:$4 sm:$0xff]  }
  0x13   :  { %567 = vmatprep.subr.bf16.mxu0 %v1462_v0  ;;  %1337 = vmatprep.subr.bf16.mxu1 %v1462_v0  ;;  %v1429_v55 = vld [vmem:[%s2171_s0 + $0x98] ss:$12 sps:$4 sm:$0xff]   ;;  %v1434_v59 = vld [vmem:[%s2171_s0 + $0xc8] ss:$12 sps:$4 sm:$0xff]   ;;  %v1435_v60 = vld [vmem:[%s2171_s0 + $0xc0] ss:$12 sps:$4 sm:$0xff]  }
  0x14   :  { %v1432_v58 = vld [vmem:[%s2171_s0 + $0xc4] ss:$12 sps:$4 sm:$0xff]   ;;  %v1436_v61 = vld [vmem:[%s2171_s0 + $0xe0] ss:$12 sps:$4 sm:$0xff]   ;;  %v1437_v62 = vld [vmem:[%s2171_s0 + $0xdc] ss:$12 sps:$4 sm:$0xff]  }
  0x15   :  { %v1439_v63 = vld [vmem:[%s2171_s0 + $0xf8] ss:$12 sps:$4 sm:$0xff]   ;;  %v1441_v1 = vld [vmem:[%s2171_s0 + $0x110] ss:$12 sps:$4 sm:$0xff]   ;;  %v1442_v2 = vld [vmem:[%s2171_s0 + $0xf4] ss:$12 sps:$4 sm:$0xff]  }
  0x16   :  { %568 = vmatpush1.bf16.msra.mxu0 %v1370_v7  ;;  %1353 = vmatpush1.bf16.msra.mxu1 %v1370_v7  ;;  %v1444_v3 = vld [vmem:[%s2171_s0 + $0x128] ss:$12 sps:$4 sm:$0xff]   ;;  %v1445_v4 = vld [vmem:[%s2171_s0 + $0xf0] ss:$12 sps:$4 sm:$0xff]   ;;  %v1446_v5 = vld [vmem:[%s2171_s0 + $0x140] ss:$12 sps:$4 sm:$0xff]  }
  0x17   :  { %569 = vmatprep.subr.bf16.mxu0 %v1462_v0  ;;  %1338 = vmatprep.subr.bf16.mxu1 %v1462_v0  ;;  %v1447_v6 = vld [vmem:[%s2171_s0 + $0x10c] ss:$12 sps:$4 sm:$0xff]   ;;  %v1450_v8 = vld [vmem:[%s2171_s0 + $0x108] ss:$12 sps:$4 sm:$0xff]  }
  0x18   :  { %v1449_v7 = vld [vmem:[%s2171_s0 + $0x158] ss:$12 sps:$4 sm:$0xff]  }
  0x1a   :  { %570 = vmatpush1.bf16.msra.mxu0 %v1371_v9  ;;  %1354 = vmatpush1.bf16.msra.mxu1 %v1371_v9  ;;  %v1451_v9 = vld [vmem:[%s2171_s0 + $0x170] ss:$12 sps:$4 sm:$0xff]  }
  0x1b   :  { %571 = vmatprep.subr.bf16.mxu0 %v1462_v0  ;;  %1339 = vmatprep.subr.bf16.mxu1 %v1462_v0 }
  0x1e   :  { %572 = vmatpush1.bf16.msra.mxu0 %v1372_v10  ;;  %1355 = vmatpush1.bf16.msra.mxu1 %v1372_v10  ;;  %v1452_v10 = vld [vmem:[%s2171_s0 + $0x124] ss:$12 sps:$4 sm:$0xff]  }
  0x1f   :  { %573 = vmatprep.subr.bf16.mxu0 %v1462_v0  ;;  %1340 = vmatprep.subr.bf16.mxu1 %v1462_v0 }
  0x22   :  { %574 = vmatpush1.bf16.msra.mxu0 %v1373_v11  ;;  %1356 = vmatpush1.bf16.msra.mxu1 %v1373_v11  ;;  %v1454_v11 = vld [vmem:[%s2171_s0 + $0x188] ss:$12 sps:$4 sm:$0xff]  }
  0x23   :  { %575 = vmatprep.subr.bf16.mxu0 %v1462_v0  ;;  %1341 = vmatprep.subr.bf16.mxu1 %v1462_v0 }
  0x26   :  { %576 = vmatpush1.bf16.msra.mxu0 %v1374_v12  ;;  %1357 = vmatpush1.bf16.msra.mxu1 %v1374_v12  ;;  %v1455_v12 = vld [vmem:[%s2171_s0 + $0x120] ss:$12 sps:$4 sm:$0xff]  }
  0x27   :  { %577 = vmatprep.subr.bf16.mxu0 %v1462_v0  ;;  %1342 = vmatprep.subr.bf16.mxu1 %v1462_v0 }
  0x2a   :  { %578 = vmatpush1.bf16.msra.mxu0 %v1375_v13  ;;  %1358 = vmatpush1.bf16.msra.mxu1 %v1375_v13  ;;  %v1456_v13 = vld [vmem:[%s2171_s0 + $0x1a0] ss:$0 sps:$4 sm:$0xff]  }
  0x2b   :  { %579 = vmatprep.subr.bf16.mxu0 %v1462_v0  ;;  %1343 = vmatprep.subr.bf16.mxu1 %v1462_v0 }
  0x2e   :  { %580 = vmatpush1.bf16.msra.mxu0 %v1376_v14  ;;  %1359 = vmatpush1.bf16.msra.mxu1 %v1376_v14  ;;  %v1457_v14 = vld [vmem:[%s2171_s0 + $0x13c] ss:$12 sps:$4 sm:$0xff]  }
  0x2f   :  { %581 = vmatprep.subr.bf16.mxu0 %v1462_v0  ;;  %1344 = vmatprep.subr.bf16.mxu1 %v1462_v0 }
  0x32   :  { %582 = vmatpush1.bf16.msra.mxu0 %v1377_v15  ;;  %1360 = vmatpush1.bf16.msra.mxu1 %v1377_v15  ;;  %v1459_v15 = vld [vmem:[%s2171_s0 + $0x138] ss:$12 sps:$4 sm:$0xff]  }
  0x33   :  { %583 = vmatprep.subr.bf16.mxu0 %v1462_v0  ;;  %1345 = vmatprep.subr.bf16.mxu1 %v1462_v0 }
  0x36   :  { %584 = vmatpush1.bf16.msra.mxu0 %v1378_v16  ;;  %1361 = vmatpush1.bf16.msra.mxu1 %v1378_v16 }
  0x37   :  { %585 = vmatprep.subr.bf16.mxu0 %v1462_v0  ;;  %1346 = vmatprep.subr.bf16.mxu1 %v1462_v0 }
  0x3a   :  { %586 = vmatpush1.bf16.msra.mxu0 %v1379_v17  ;;  %1362 = vmatpush1.bf16.msra.mxu1 %v1379_v17 }
  0x3b   :  { %587 = vmatprep.subr.bf16.mxu0 %v1462_v0  ;;  %1347 = vmatprep.subr.bf16.mxu1 %v1462_v0  ;;  %v1440_v0 = vld [vmem:[%s2171_s0 + $0xd8] ss:$12 sps:$4 sm:$0xff]  }
  0x3e   :  { %588 = vmatpush1.bf16.msra.mxu0 %v1380_v18  ;;  %1363 = vmatpush1.bf16.msra.mxu1 %v1380_v18 }
  0x3f   :  { %1280 = vmatprep.subr.bf16.mxu1 %v1387_v19 }
  0x41   :  { %590 = vmatmul.mubr.bf16.vlgmr.msra.gmra.mrb[0].mxu0 %v1381_v20  ;;  %702 = vmatmul.mubr.bf16.vlgmr.msra.gmra.mrb[0].mxu1 %v1384_v21 }
  0x42   :  { %1281 = vmatpush3.bf16.msra.mxu1 %v1387_v19  ;;  %597 = vmatprep.mubr.bf16.mxu0 %v1389_v23 }
  0x43   :  { %1282 = vmatprep.subr.bf16.mxu1 %v1388_v22  ;;  %709 = vmatprep.mubr.bf16.mxu1 %v1391_v24 }
  0x46   :  { %1283 = vmatpush3.bf16.msra.mxu1 %v1388_v22 }
  0x47   :  { %1284 = vmatprep.subr.bf16.mxu1 %v1395_v25 }
  0x49   :  { %598 = vmatmul.mubr.bf16.gmra.mrb[4].mxu0 %v1393_v26  ;;  %710 = vmatmul.mubr.bf16.gmra.mrb[4].mxu1 %v1394_v27 }
  0x4a   :  { %1285 = vmatpush3.bf16.msra.mxu1 %v1395_v25  ;;  %605 = vmatprep.mubr.bf16.mxu0 %v1397_v28 }
  0x4b   :  { %1286 = vmatprep.subr.bf16.mxu1 %v1396_v29  ;;  %717 = vmatprep.mubr.bf16.mxu1 %v1399_v30 }
  0x4e   :  { %1287 = vmatpush3.bf16.msra.mxu1 %v1396_v29 }
  0x4f   :  { %1288 = vmatprep.subr.bf16.mxu1 %v1403_v31 }
  0x51   :  { %606 = vmatmul.mubr.bf16.gmra.mrb[8].mxu0 %v1401_v33  ;;  %718 = vmatmul.mubr.bf16.gmra.mrb[8].mxu1 %v1402_v34 }
  0x52   :  { %1289 = vmatpush3.bf16.msra.mxu1 %v1403_v31  ;;  %613 = vmatprep.mubr.bf16.mxu0 %v1405_v35 }
  0x53   :  { %1290 = vmatprep.subr.bf16.mxu1 %v1404_v36  ;;  %725 = vmatprep.mubr.bf16.mxu1 %v1228_v37 }
  0x56   :  { %1291 = vmatpush3.bf16.msra.mxu1 %v1404_v36 }
  0x57   :  { %1292 = vmatprep.subr.bf16.mxu1 %v1410_v38 }
  0x59   :  { %614 = vmatmul.mubr.bf16.gmra.mrb[12].mxu0 %v1408_v39  ;;  %726 = vmatmul.mubr.bf16.gmra.mrb[12].mxu1 %v1227_v40 }
  0x5a   :  { %1293 = vmatpush3.bf16.msra.mxu1 %v1410_v38  ;;  %621 = vmatprep.mubr.bf16.mxu0 %v1412_v41 }
  0x5b   :  { %1294 = vmatprep.subr.bf16.mxu1 %v1411_v42  ;;  %1296 = vmatprep.mubr.bf16.mxu1 %v1414_v43 }
  0x5e   :  { %1295 = vmatpush3.bf16.msra.mxu1 %v1411_v42 }
  0x61   :  { %622 = vmatmul.mubr.bf16.gmra.mrb[16].mxu0 %v1415_v44  ;;  %1297 = vmatmul.mubr.bf16.vlgmr.msra.gmra.mrb[16].mxu1 %v1416_v45 }
  0x62   :  { %629 = vmatprep.mubr.bf16.mxu0 %v1417_v46  ;;  %1300 = vmatprep.mubr.bf16.mxu1 %v1419_v47 }
  0x69   :  { %630 = vmatmul.mubr.bf16.gmra.mrb[20].mxu0 %v1420_v48  ;;  %1301 = vmatmul.mubr.bf16.gmra.mrb[20].mxu1 %v1421_v49 }
  0x6a   :  { %637 = vmatprep.mubr.bf16.mxu0 %v1422_v50  ;;  %1304 = vmatprep.mubr.bf16.mxu1 %v1424_v51 }
  0x71   :  { %638 = vmatmul.mubr.bf16.gmra.mrb[24].mxu0 %v1425_v52  ;;  %1305 = vmatmul.mubr.bf16.gmra.mrb[24].mxu1 %v1426_v53 }
  0x72   :  { %645 = vmatprep.mubr.bf16.mxu0 %v1427_v54  ;;  %1308 = vmatprep.mubr.bf16.mxu1 %v1429_v55 }
  0x79   :  { %646 = vmatmul.mubr.bf16.gmra.mrb[28].mxu0 %v1430_v56  ;;  %1309 = vmatmul.mubr.bf16.gmra.mrb[28].mxu1 %v1431_v57 }
  0x7a   :  { %653 = vmatprep.mubr.bf16.mxu0 %v1432_v58  ;;  %1312 = vmatprep.mubr.bf16.mxu1 %v1434_v59 }
  0x81   :  { %654 = vmatmul.mubr.bf16.gmra.mrb[32].mxu0 %v1435_v60  ;;  %1313 = vmatmul.mubr.bf16.gmra.mrb[32].mxu1 %v1436_v61 }
  0x82   :  { %661 = vmatprep.mubr.bf16.mxu0 %v1437_v62  ;;  %1316 = vmatprep.mubr.bf16.mxu1 %v1439_v63 }
  0x89   :  { %662 = vmatmul.mubr.bf16.gmra.mrb[36].mxu0 %v1440_v0  ;;  %1317 = vmatmul.mubr.bf16.gmra.mrb[36].mxu1 %v1441_v1 }
  0x8a   :  { %669 = vmatprep.mubr.bf16.mxu0 %v1442_v2  ;;  %1320 = vmatprep.mubr.bf16.mxu1 %v1444_v3 }
  0x91   :  { %670 = vmatmul.mubr.bf16.gmra.mrb[40].mxu0 %v1445_v4  ;;  %1321 = vmatmul.mubr.bf16.gmra.mrb[40].mxu1 %v1446_v5 }
  0x92   :  { %677 = vmatprep.mubr.bf16.mxu0 %v1447_v6  ;;  %1324 = vmatprep.mubr.bf16.mxu1 %v1449_v7 }
  0x99   :  { %678 = vmatmul.mubr.bf16.gmra.mrb[44].mxu0 %v1450_v8  ;;  %1325 = vmatmul.mubr.bf16.gmra.mrb[44].mxu1 %v1451_v9 }
  0x9a   :  { %685 = vmatprep.mubr.bf16.mxu0 %v1452_v10  ;;  %1328 = vmatprep.mubr.bf16.mxu1 %v1454_v11 }
  0xa1   :  { %686 = vmatmul.mubr.bf16.gmra.mrb[48].mxu0 %v1455_v12  ;;  %1329 = vmatmul.mubr.bf16.gmra.mrb[48].mxu1 %v1456_v13 }
  0xa2   :  { %693 = vmatprep.mubr.bf16.mxu0 %v1457_v14 }
  0xa9   :  { %694 = vmatmul.mubr.bf16.gmra.mrb[52].mxu0 %v1459_v15 }
 0x114   :  { %v591_v16 = vpop.f32.mrb[0].mxu0  ;;  %v1741_v17 = vpop.f32.mrb[0].mxu1 }
 0x115   :  { %v593_v18 = vpop.f32.mrb[1].mxu0  ;;  %v705_v19 = vpop.f32.mrb[1].mxu1 }
 0x116   :  { %v594_v20 = vpop.f32.mrb[2].mxu0  ;;  %v1743_v21 = vpop.f32.mrb[2].mxu1 }
 0x117   :  { %v596_v22 = vpop.f32.mrb[3].mxu0  ;;  %v708_v23 = vpop.f32.mrb[3].mxu1 }
 0x11c   :  { %v599_v24 = vpop.f32.mrb[4].mxu0  ;;  %v1745_v25 = vpop.f32.mrb[4].mxu1 }
 0x11d   :  { %v601_v26 = vpop.f32.mrb[5].mxu0  ;;  %v713_v27 = vpop.f32.mrb[5].mxu1 }
 0x11e   :  { %v602_v28 = vpop.f32.mrb[6].mxu0  ;;  %v1747_v29 = vpop.f32.mrb[6].mxu1 }
 0x11f   :  { %v604_v30 = vpop.f32.mrb[7].mxu0  ;;  %v716_v31 = vpop.f32.mrb[7].mxu1 }
 0x124   :  { %v607_v32 = vpop.f32.mrb[8].mxu0  ;;  %v1749_v33 = vpop.f32.mrb[8].mxu1 }
 0x125   :  { %v609_v34 = vpop.f32.mrb[9].mxu0  ;;  %v721_v35 = vpop.f32.mrb[9].mxu1 }
 0x126   :  { %v610_v36 = vpop.f32.mrb[10].mxu0  ;;  %v1751_v37 = vpop.f32.mrb[10].mxu1 }
 0x127   :  { %v612_v38 = vpop.f32.mrb[11].mxu0  ;;  %v724_v39 = vpop.f32.mrb[11].mxu1 }
 0x12c   :  { %v615_v40 = vpop.f32.mrb[12].mxu0  ;;  %v1753_v41 = vpop.f32.mrb[12].mxu1 }
 0x12d   :  { %v617_v42 = vpop.f32.mrb[13].mxu0  ;;  %v729_v43 = vpop.f32.mrb[13].mxu1 }
 0x12e   :  { %v618_v44 = vpop.f32.mrb[14].mxu0  ;;  %v730_v45 = vpop.f32.mrb[14].mxu1 }
 0x12f   :  { %v620_v46 = vpop.f32.mrb[15].mxu0  ;;  %v731_v47 = vpop.f32.mrb[15].mxu1 }
 0x134   :  { %v623_v48 = vpop.f32.mrb[16].mxu0  ;;  %v1298_v49 = vpop.f32.mrb[16].mxu1 }
 0x135   :  { %v1755_v50 = vadd.f32 %v1298_v49, %v599_v24  ;;  %v625_v51 = vpop.f32.mrb[17].mxu0  ;;  %v767_v52 = vpop.f32.mrb[17].mxu1 }
 0x136   :  { %v1757_v53 = vadd.f32 %v767_v52, %v591_v16  ;;  %v626_v54 = vpop.f32.mrb[18].mxu0  ;;  %v1299_v55 = vpop.f32.mrb[18].mxu1 }
 0x137   :  { %v1759_v56 = vadd.f32 %v1299_v55, %v602_v28  ;;  %v628_v57 = vpop.f32.mrb[19].mxu0  ;;  %v770_v58 = vpop.f32.mrb[19].mxu1  ;;  %v951_v63 = vmul.f32 %v1755_v50, %v1755_v50 }
 0x138   :  { %v1761_v59 = vadd.f32 %v770_v58, %v594_v20  ;;  %v949_v60 = vmul.f32 %v1757_v53, %v1757_v53 }
 0x139   :  { %v952_v7 = vmul.f32 %v1759_v56, %v1759_v56 }
 0x13a   :  { %v909_v61 = vadd.f32 %v1761_v59, %v1757_v53  ;;  %v950_v62 = vmul.f32 %v1761_v59, %v1761_v59 }
 0x13c   :  { %v910_v0 = vadd.f32 %v909_v61, %v1755_v50  ;;  %v984_v1 = vadd.f32 %v950_v62, %v949_v60  ;;  %v631_v2 = vpop.f32.mrb[20].mxu0  ;;  %v1302_v3 = vpop.f32.mrb[20].mxu1 }
 0x13d   :  { %v1772_v4 = vadd.f32 %v1302_v3, %v615_v40  ;;  %v633_v5 = vpop.f32.mrb[21].mxu0  ;;  %v783_v6 = vpop.f32.mrb[21].mxu1 }
 0x13e   :  { %v985_v8 = vadd.f32 %v984_v1, %v951_v63  ;;  %v1776_v9 = vadd.f32 %v783_v6, %v607_v32  ;;  %v911_v10 = vadd.f32 %v910_v0, %v1759_v56  ;;  %v634_v11 = vpop.f32.mrb[22].mxu0  ;;  %v1303_v12 = vpop.f32.mrb[22].mxu1 }
 0x13f   :  { %v1779_v13 = vadd.f32 %v1303_v12, %v618_v44  ;;  %v636_v14 = vpop.f32.mrb[23].mxu0  ;;  %v786_v15 = vpop.f32.mrb[23].mxu1  ;;  %v955_v26 = vmul.f32 %v1772_v4, %v1772_v4 }
 0x140   :  { %v912_v16 = vadd.f32 %v911_v10, %v1776_v9  ;;  %v953_v18 = vmul.f32 %v1776_v9, %v1776_v9  ;;  %v986_v19 = vadd.f32 %v985_v8, %v952_v7  ;;  %v1784_v20 = vadd.f32 %v786_v15, %v610_v36 }
 0x141   :  { %v956_v36 = vmul.f32 %v1779_v13, %v1779_v13 }
 0x142   :  { %v987_v22 = vadd.f32 %v986_v19, %v953_v18  ;;  %v913_v23 = vadd.f32 %v912_v16, %v1784_v20  ;;  %v954_v24 = vmul.f32 %v1784_v20, %v1784_v20 }
 0x144   :  { %v914_v27 = vadd.f32 %v913_v23, %v1772_v4  ;;  %v988_v28 = vadd.f32 %v987_v22, %v954_v24  ;;  %v639_v30 = vpop.f32.mrb[24].mxu0  ;;  %v1306_v31 = vpop.f32.mrb[24].mxu1 }
 0x145   :  { %v1792_v32 = vadd.f32 %v1306_v31, %v631_v2  ;;  %v641_v34 = vpop.f32.mrb[25].mxu0  ;;  %v799_v35 = vpop.f32.mrb[25].mxu1 }
 0x146   :  { %v989_v38 = vadd.f32 %v988_v28, %v955_v26  ;;  %v1796_v39 = vadd.f32 %v799_v35, %v623_v48  ;;  %v915_v40 = vadd.f32 %v914_v27, %v1779_v13  ;;  %v642_v42 = vpop.f32.mrb[26].mxu0  ;;  %v1307_v43 = vpop.f32.mrb[26].mxu1 }
 0x147   :  { %v1799_v44 = vadd.f32 %v1307_v43, %v634_v11  ;;  %v644_v45 = vpop.f32.mrb[27].mxu0  ;;  %v802_v46 = vpop.f32.mrb[27].mxu1  ;;  %v959_v58 = vmul.f32 %v1792_v32, %v1792_v32 }
 0x148   :  { %v916_v47 = vadd.f32 %v915_v40, %v1796_v39  ;;  %v957_v49 = vmul.f32 %v1796_v39, %v1796_v39  ;;  %v990_v51 = vadd.f32 %v989_v38, %v956_v36  ;;  %v1804_v52 = vadd.f32 %v802_v46, %v626_v54 }
 0x149   :  { %v960_v54 = vmul.f32 %v1799_v44, %v1799_v44 }
 0x14a   :  { %v991_v55 = vadd.f32 %v990_v51, %v957_v49  ;;  %v917_v48 = vadd.f32 %v916_v47, %v1804_v52  ;;  %v958_v57 = vmul.f32 %v1804_v52, %v1804_v52 }
 0x14c   :  { %v918_v60 = vadd.f32 %v917_v48, %v1792_v32  ;;  %v992_v61 = vadd.f32 %v991_v55, %v958_v57  ;;  %v647_v62 = vpop.f32.mrb[28].mxu0  ;;  %v1310_v63 = vpop.f32.mrb[28].mxu1 }
 0x14d   :  { %v1812_v0 = vadd.f32 %v1310_v63, %v647_v62  ;;  %v649_v1 = vpop.f32.mrb[29].mxu0  ;;  %v815_v2 = vpop.f32.mrb[29].mxu1 }
 0x14e   :  { %v993_v3 = vadd.f32 %v992_v61, %v959_v58  ;;  %v1816_v5 = vadd.f32 %v815_v2, %v639_v30  ;;  %v919_v6 = vadd.f32 %v918_v60, %v1799_v44  ;;  %v650_v7 = vpop.f32.mrb[30].mxu0  ;;  %v1311_v8 = vpop.f32.mrb[30].mxu1 }
 0x14f   :  { %v1819_v10 = vadd.f32 %v1311_v8, %v650_v7  ;;  %v652_v11 = vpop.f32.mrb[31].mxu0  ;;  %v818_v12 = vpop.f32.mrb[31].mxu1  ;;  %v963_v24 = vmul.f32 %v1812_v0, %v1812_v0 }
 0x150   :  { %v920_v14 = vadd.f32 %v919_v6, %v1816_v5  ;;  %v961_v15 = vmul.f32 %v1816_v5, %v1816_v5  ;;  %v994_v16 = vadd.f32 %v993_v3, %v960_v54  ;;  %v1824_v18 = vadd.f32 %v818_v12, %v642_v42 }
 0x151   :  { %v964_v42 = vmul.f32 %v1819_v10, %v1819_v10 }
 0x152   :  { %v995_v19 = vadd.f32 %v994_v16, %v961_v15  ;;  %v921_v22 = vadd.f32 %v920_v14, %v1824_v18  ;;  %v962_v23 = vmul.f32 %v1824_v18, %v1824_v18 }
 0x154   :  { %v922_v26 = vadd.f32 %v921_v22, %v1812_v0  ;;  %v996_v27 = vadd.f32 %v995_v19, %v962_v23  ;;  %v655_v28 = vpop.f32.mrb[32].mxu0  ;;  %v1314_v30 = vpop.f32.mrb[32].mxu1 }
 0x155   :  { %v657_v31 = vpop.f32.mrb[33].mxu0  ;;  %v831_v34 = vpop.f32.mrb[33].mxu1 }
 0x156   :  { %v997_v35 = vadd.f32 %v996_v27, %v963_v24  ;;  %v1832_v36 = vadd.f32 %v831_v34, %v655_v28  ;;  %v658_v38 = vpop.f32.mrb[34].mxu0  ;;  %v1315_v40 = vpop.f32.mrb[34].mxu1  ;;  %v923_v43 = vadd.f32 %v922_v26, %v1819_v10 }
 0x157   :  { %v660_v45 = vpop.f32.mrb[35].mxu0  ;;  %v834_v46 = vpop.f32.mrb[35].mxu1 }
 0x158   :  { %v1837_v47 = vadd.f32 %v834_v46, %v658_v38  ;;  %v965_v49 = vmul.f32 %v1832_v36, %v1832_v36  ;;  %v998_v51 = vadd.f32 %v997_v35, %v964_v42  ;;  %v924_v55 = vadd.f32 %v923_v43, %v1832_v36 }
 0x15a   :  { %v999_v58 = vadd.f32 %v998_v51, %v965_v49  ;;  %v966_v60 = vmul.f32 %v1837_v47, %v1837_v47  ;;  %v925_v54 = vadd.f32 %v924_v55, %v1837_v47 }
 0x15c   :  { %v663_v48 = vpop.f32.mrb[36].mxu0  ;;  %v1318_v57 = vpop.f32.mrb[36].mxu1  ;;  %v1000_v11 = vadd.f32 %v999_v58, %v966_v60 }
 0x15d   :  { %v1844_v61 = vadd.f32 %v1314_v30, %v663_v48  ;;  %v665_v62 = vpop.f32.mrb[37].mxu0  ;;  %v847_v63 = vpop.f32.mrb[37].mxu1 }
 0x15e   :  { %v666_v1 = vpop.f32.mrb[38].mxu0  ;;  %v1319_v2 = vpop.f32.mrb[38].mxu1 }
 0x15f   :  { %v967_v3 = vmul.f32 %v1844_v61, %v1844_v61  ;;  %v1849_v6 = vadd.f32 %v1315_v40, %v666_v1  ;;  %v668_v7 = vpop.f32.mrb[39].mxu0  ;;  %v850_v8 = vpop.f32.mrb[39].mxu1  ;;  %v926_v12 = vadd.f32 %v925_v54, %v1844_v61 }
 0x161   :  { %v1001_v14 = vadd.f32 %v1000_v11, %v967_v3  ;;  %v968_v15 = vmul.f32 %v1849_v6, %v1849_v6  ;;  %v927_v22 = vadd.f32 %v926_v12, %v1849_v6 }
 0x163   :  { %v1002_v30 = vadd.f32 %v1001_v14, %v968_v15 }
 0x164   :  { %v671_v16 = vpop.f32.mrb[40].mxu0  ;;  %v1322_v19 = vpop.f32.mrb[40].mxu1 }
 0x165   :  { %v1855_v23 = vadd.f32 %v847_v63, %v671_v16  ;;  %v673_v24 = vpop.f32.mrb[41].mxu0  ;;  %v863_v26 = vpop.f32.mrb[41].mxu1 }
 0x166   :  { %v674_v27 = vpop.f32.mrb[42].mxu0  ;;  %v1323_v28 = vpop.f32.mrb[42].mxu1 }
 0x167   :  { %v928_v31 = vadd.f32 %v927_v22, %v1855_v23  ;;  %v969_v34 = vmul.f32 %v1855_v23, %v1855_v23  ;;  %v1860_v35 = vadd.f32 %v850_v8, %v674_v27  ;;  %v676_v38 = vpop.f32.mrb[43].mxu0  ;;  %v866_v40 = vpop.f32.mrb[43].mxu1 }
 0x169   :  { %v1003_v42 = vadd.f32 %v1002_v30, %v969_v34  ;;  %v929_v43 = vadd.f32 %v928_v31, %v1860_v35  ;;  %v970_v45 = vmul.f32 %v1860_v35, %v1860_v35 }
 0x16b   :  { %v1004_v46 = vadd.f32 %v1003_v42, %v970_v45 }
 0x16c   :  { %v679_v49 = vpop.f32.mrb[44].mxu0  ;;  %v1326_v51 = vpop.f32.mrb[44].mxu1 }
 0x16d   :  { %v1865_v55 = vadd.f32 %v1318_v57, %v679_v49  ;;  %v1868_v48 = vadd.f32 %v1326_v51, %v1745_v25  ;;  %v681_v58 = vpop.f32.mrb[45].mxu0  ;;  %v879_v60 = vpop.f32.mrb[45].mxu1 }
 0x16e   :  { %v1871_v62 = vadd.f32 %v879_v60, %v1741_v17  ;;  %v682_v63 = vpop.f32.mrb[46].mxu0  ;;  %v1327_v1 = vpop.f32.mrb[46].mxu1 }
 0x16f   :  { %v930_v54 = vadd.f32 %v929_v43, %v1865_v55  ;;  %v971_v3 = vmul.f32 %v1865_v55, %v1865_v55  ;;  %v1876_v7 = vadd.f32 %v1319_v2, %v682_v63  ;;  %v684_v8 = vpop.f32.mrb[47].mxu0  ;;  %v882_v57 = vpop.f32.mrb[47].mxu1  ;;  %v1879_v11 = vadd.f32 %v1327_v1, %v1747_v29 }
 0x170   :  { %v1882_v25 = vadd.f32 %v882_v57, %v1743_v21 }
 0x171   :  { %v1005_v12 = vadd.f32 %v1004_v46, %v971_v3  ;;  %v931_v17 = vadd.f32 %v930_v54, %v1876_v7  ;;  %v972_v14 = vmul.f32 %v1876_v7, %v1876_v7 }
 0x173   :  { %v1006_v15 = vadd.f32 %v1005_v12, %v972_v14  ;;  %v978_v14 = vmul.f32 %v1882_v25, %v1882_v25 }
 0x174   :  { %v687_v16 = vpop.f32.mrb[48].mxu0  ;;  %v1330_v22 = vpop.f32.mrb[48].mxu1 }
 0x175   :  { %v1887_v24 = vadd.f32 %v863_v26, %v687_v16  ;;  %v1890_v2 = vadd.f32 %v1330_v22, %v1753_v41  ;;  %v689_v27 = vpop.f32.mrb[49].mxu0  ;;  %v895_v29 = vpop.f32.mrb[49].mxu1  ;;  %v979_v16 = vmul.f32 %v1868_v48, %v1868_v48 }
 0x176   :  { %v1893_v30 = vadd.f32 %v895_v29, %v1749_v33  ;;  %v690_v21 = vpop.f32.mrb[50].mxu0  ;;  %v1331_v31 = vpop.f32.mrb[50].mxu1  ;;  %v980_v29 = vmul.f32 %v1879_v11, %v1879_v11 }
 0x177   :  { %v932_v34 = vadd.f32 %v931_v17, %v1887_v24  ;;  %v973_v38 = vmul.f32 %v1887_v24, %v1887_v24  ;;  %v1898_v42 = vadd.f32 %v866_v40, %v690_v21  ;;  %v692_v43 = vpop.f32.mrb[51].mxu0  ;;  %v898_v26 = vpop.f32.mrb[51].mxu1 }
 0x178   :  { %v1901_v45 = vadd.f32 %v898_v26, %v1751_v37 }
 0x179   :  { %v1007_v41 = vadd.f32 %v1006_v15, %v973_v38  ;;  %v933_v46 = vadd.f32 %v932_v34, %v1898_v42  ;;  %v974_v33 = vmul.f32 %v1898_v42, %v1898_v42  ;;  %v981_v34 = vmul.f32 %v1893_v30, %v1893_v30 }
 0x17a   :  { %v982_v26 = vmul.f32 %v1901_v45, %v1901_v45 }
 0x17b   :  { %v1008_v49 = vadd.f32 %v1007_v41, %v974_v33  ;;  %v983_v33 = vmul.f32 %v1890_v2, %v1890_v2 }
 0x17c   :  { %v695_v51 = vpop.f32.mrb[52].mxu0 }
 0x17d   :  { %v1906_v58 = vadd.f32 %v1322_v19, %v695_v51  ;;  %v697_v60 = vpop.f32.mrb[53].mxu0  ;;  %v977_v19 = vmul.f32 %v1871_v62, %v1871_v62 }
 0x17e   :  { %v698_v63 = vpop.f32.mrb[54].mxu0 }
 0x17f   :  { %v934_v40 = vadd.f32 %v933_v46, %v1906_v58  ;;  %v975_v1 = vmul.f32 %v1906_v58, %v1906_v58  ;;  %v1911_v54 = vadd.f32 %v1323_v28, %v698_v63  ;;  %v700_v37 = vpop.f32.mrb[55].mxu0 }
 0x181   :  { %v1009_v3 = vadd.f32 %v1008_v49, %v975_v1  ;;  %v935_v8 = vadd.f32 %v934_v40, %v1911_v54  ;;  %v976_v57 = vmul.f32 %v1911_v54, %v1911_v54 }
 0x183   :  { %v936_v12 = vadd.f32 %v935_v8, %v1871_v62  ;;  %v1010_v17 = vadd.f32 %v1009_v3, %v976_v57 }
 0x185   :  { %v937_v15 = vadd.f32 %v936_v12, %v1882_v25  ;;  %v1011_v28 = vadd.f32 %v1010_v17, %v977_v19 }
 0x187   :  { %v938_v22 = vadd.f32 %v937_v15, %v1868_v48  ;;  %v1012_v27 = vadd.f32 %v1011_v28, %v978_v14 }
 0x189   :  { %v939_v21 = vadd.f32 %v938_v22, %v1879_v11  ;;  %v1013_v31 = vadd.f32 %v1012_v27, %v979_v16 }
 0x18b   :  { %v940_v38 = vadd.f32 %v939_v21, %v1893_v30  ;;  %v1014_v43 = vadd.f32 %v1013_v31, %v980_v29 }
 0x18d   :  { %v941_v41 = vadd.f32 %v940_v38, %v1901_v45  ;;  %v1015_v46 = vadd.f32 %v1014_v43, %v981_v34 }
 0x18f   :  { %v942_v49 = vadd.f32 %v941_v41, %v1890_v2  ;;  %v1016_v51 = vadd.f32 %v1015_v46, %v982_v26 }
 0x191   :  { %v943_v60 = vrot.slane %v942_v49, 4  ;;  %v1017_v63 = vadd.f32 %v1016_v51, %v983_v33 }
 0x193   :  { %v944_v40 = vadd.f32 %v943_v60, %v942_v49  ;;  %v1018_v1 = vrot.slane %v1017_v63, 4 }
 0x195   :  { %v945_v37 = vrot.slane %v944_v40, 2  ;;  %v1019_v3 = vadd.f32 %v1018_v1, %v1017_v63 }
 0x197   :  { %v946_v8 = vadd.f32 %v945_v37, %v944_v40  ;;  %v1020_v57 = vrot.slane %v1019_v3, 2 }
 0x199   :  { %v947_v19 = vrot.slane %v946_v8, 1  ;;  %v1021_v12 = vadd.f32 %v1020_v57, %v1019_v3 }
 0x19b   :  { %v948_v17 = vadd.f32 %v947_v19, %v946_v8  ;;  %v1022_v14 = vrot.slane %v1021_v12, 1 }
 0x19d   :  { %v1023_v15 = vadd.f32 %v1022_v14, %v1021_v12  ;;  %v1937_v28 = vmul.f32 0.0035714286, %v948_v17 }
 0x19f   :  { %v1026_v16 = vmul.f32 0.0035714286, %v1023_v15  ;;  %v1027_v22 = vmul.f32 %v1937_v28, %v1937_v28  ;;  %v1052_v31 = vsub.f32 %v1855_v23, %v1937_v28  ;;  %v1053_v34 = vsub.f32 %v1860_v35, %v1937_v28 }
 0x1a0   :  { %v1054_v38 = vsub.f32 %v1865_v55, %v1937_v28  ;;  %v1055_v43 = vsub.f32 %v1876_v7, %v1937_v28  ;;  %v1056_v26 = vsub.f32 %v1887_v24, %v1937_v28  ;;  %v1057_v41 = vsub.f32 %v1898_v42, %v1937_v28 }
 0x1a1   :  { %v1028_v27 = vsub.f32 %v1026_v16, %v1027_v22  ;;  %v1058_v46 = vsub.f32 %v1906_v58, %v1937_v28  ;;  %v1059_v23 = vsub.f32 %v1911_v54, %v1937_v28  ;;  %v1060_v35 = vsub.f32 %v1871_v62, %v1937_v28 }
 0x1a2   :  { %v1061_v55 = vsub.f32 %v1882_v25, %v1937_v28  ;;  %v1062_v7 = vsub.f32 %v1868_v48, %v1937_v28  ;;  %v1063_v24 = vsub.f32 %v1879_v11, %v1937_v28  ;;  %v1064_v42 = vsub.f32 %v1893_v30, %v1937_v28 }
 0x1a3   :  { %v1029_v29 = vmax.f32 %v1028_v27, 0.0  ;;  %v1065_v58 = vsub.f32 %v1901_v45, %v1937_v28  ;;  %v1066_v54 = vsub.f32 %v1890_v2, %v1937_v28  ;;  %v1032_v62 = vsub.f32 %v1757_v53, %v1937_v28 }
 0x1a4   :  { %v1033_v25 = vsub.f32 %v1761_v59, %v1937_v28  ;;  %v1034_v48 = vsub.f32 %v1755_v50, %v1937_v28  ;;  %v1035_v11 = vsub.f32 %v1759_v56, %v1937_v28  ;;  %v1036_v30 = vsub.f32 %v1776_v9, %v1937_v28 }
 0x1a5   :  { %v1030_v21 = vadd.f32 1e-05, %v1029_v29  ;;  %v1037_v45 = vsub.f32 %v1784_v20, %v1937_v28  ;;  %v1038_v2 = vsub.f32 %v1772_v4, %v1937_v28  ;;  %v1039_v53 = vsub.f32 %v1779_v13, %v1937_v28 }
 0x1a6   :  { %v1040_v59 = vsub.f32 %v1796_v39, %v1937_v28  ;;  %v1041_v50 = vsub.f32 %v1804_v52, %v1937_v28  ;;  %v1042_v56 = vsub.f32 %v1792_v32, %v1937_v28  ;;  %v1043_v9 = vsub.f32 %v1799_v44, %v1937_v28 }
 0x1a7   :  { %1460 = vrsqrt.f32 %v1030_v21  ;;  %v1044_v20 = vsub.f32 %v1816_v5, %v1937_v28  ;;  %v1045_v4 = vsub.f32 %v1824_v18, %v1937_v28  ;;  %v1046_v13 = vsub.f32 %v1812_v0, %v1937_v28 }
 0x1a8   :  { %v1047_v39 = vsub.f32 %v1819_v10, %v1937_v28  ;;  %v1048_v52 = vsub.f32 %v1832_v36, %v1937_v28  ;;  %v1049_v32 = vsub.f32 %v1837_v47, %v1937_v28  ;;  %v1050_v44 = vsub.f32 %v1844_v61, %v1937_v28 }
 0x1a9   :  { %v1051_v5 = vsub.f32 %v1849_v6, %v1937_v28 }
 0x1b1   :  { %v1461_v33 = vpop.eup %1460 }
 0x1b2   :  { %v1067_v18 = vmul.f32 %v1461_v33, %v1032_v62  ;;  %v1068_v49 = vmul.f32 %v1461_v33, %v1033_v25  ;;  %v1069_v51 = vmul.f32 %v1461_v33, %v1034_v48  ;;  %v1070_v0 = vmul.f32 %v1461_v33, %v1035_v11 }
 0x1b3   :  { %v1071_v60 = vmul.f32 %v1461_v33, %v1036_v30  ;;  %v1072_v63 = vmul.f32 %v1461_v33, %v1037_v45  ;;  %v1073_v10 = vmul.f32 %v1461_v33, %v1038_v2  ;;  %v1074_v40 = vmul.f32 %v1461_v33, %v1039_v53 }
 0x1b4   :  { %v1075_v1 = vmul.f32 %v1461_v33, %v1040_v59  ;;  %v1076_v37 = vmul.f32 %v1461_v33, %v1041_v50  ;;  %v1077_v36 = vmul.f32 %v1461_v33, %v1042_v56  ;;  %v1078_v3 = vmul.f32 %v1461_v33, %v1043_v9 }
 0x1b5   :  { %v1079_v8 = vmul.f32 %v1461_v33, %v1044_v20  ;;  %v1080_v47 = vmul.f32 %v1461_v33, %v1045_v4  ;;  %v1081_v57 = vmul.f32 %v1461_v33, %v1046_v13  ;;  %v1082_v19 = vmul.f32 %v1461_v33, %v1047_v39 }
 0x1b6   :  { %v1083_v61 = vmul.f32 %v1461_v33, %v1048_v52  ;;  %v2011_v12 = vmul.f32 %v1461_v33, %v1049_v32  ;;  %v2013_v6 = vmul.f32 %v1461_v33, %v1050_v44  ;;  %v2015_v17 = vmul.f32 %v1461_v33, %v1051_v5 }
 0x1b7   :  { %v2017_v14 = vmul.f32 %v1461_v33, %v1052_v31  ;;  %v2019_v15 = vmul.f32 %v1461_v33, %v1053_v34  ;;  %v2021_v28 = vmul.f32 %v1461_v33, %v1054_v38  ;;  %v2023_v16 = vmul.f32 %v1461_v33, %v1055_v43 }
 0x1b8   :  { %v2025_v22 = vmul.f32 %v1461_v33, %v1056_v26  ;;  %v2027_v27 = vmul.f32 %v1461_v33, %v1057_v41  ;;  %v2029_v29 = vmul.f32 %v1461_v33, %v1058_v46  ;;  %v2031_v21 = vmul.f32 %v1461_v33, %v1059_v23 }
 0x1b9   :  { %v2033_v62 = vmul.f32 %v1461_v33, %v1060_v35  ;;  %v2035_v25 = vmul.f32 %v1461_v33, %v1061_v55  ;;  %v2037_v31 = vmul.f32 %v1461_v33, %v1062_v7  ;;  %v2039_v34 = vmul.f32 %v1461_v33, %v1063_v24 }
 0x1ba   :  { %v2041_v38 = vmul.f32 %v1461_v33, %v1064_v42  ;;  %v2043_v43 = vmul.f32 %v1461_v33, %v1065_v58  ;;  %v2045_v26 = vmul.f32 %v1461_v33, %v1066_v54  ;;  %v1102_v41 = vmax.f32 %v1067_v18, 0.0 }
 0x1bb   :  { %v1103_v48 = vmax.f32 %v1068_v49, 0.0  ;;  %v1104_v46 = vmax.f32 %v1069_v51, 0.0  ;;  %v1105_v11 = vmax.f32 %v1070_v0, 0.0  ;;  %v1106_v23 = vmax.f32 %v1071_v60, 0.0 }
 0x1bc   :  { %v1107_v30 = vmax.f32 %v1072_v63, 0.0  ;;  %v1108_v35 = vmax.f32 %v1073_v10, 0.0  ;;  %v1109_v45 = vmax.f32 %v1074_v40, 0.0  ;;  %v1110_v55 = vmax.f32 %v1075_v1, 0.0  ;;  %1137 = vst [vmem:[%s2172_s2] sm:$0xff] %v1102_v41 }
 0x1bd   :  { %v1111_v7 = vmax.f32 %v1076_v37, 0.0  ;;  %v1112_v24 = vmax.f32 %v1077_v36, 0.0  ;;  %v1113_v42 = vmax.f32 %v1078_v3, 0.0  ;;  %v1114_v58 = vmax.f32 %v1079_v8, 0.0  ;;  %1138 = vst [vmem:[%s2172_s2 + $0x8] sm:$0xff] %v1103_v48  ;;  %1139 = vst [vmem:[%s2172_s2 + $0x10] sm:$0xff] %v1104_v46 }
 0x1be   :  { %1140 = vst [vmem:[%s2172_s2 + $0x18] sm:$0xff] %v1105_v11  ;;  %1141 = vst [vmem:[%s2172_s2 + $0x20] sm:$0xff] %v1106_v23  ;;  %v1115_v54 = vmax.f32 %v1080_v47, 0.0  ;;  %v1116_v2 = vmax.f32 %v1081_v57, 0.0  ;;  %v1117_v53 = vmax.f32 %v1082_v19, 0.0  ;;  %v1118_v59 = vmax.f32 %v1083_v61, 0.0 }
 0x1bf   :  { %1142 = vst [vmem:[%s2172_s2 + $0x28] sm:$0xff] %v1107_v30  ;;  %1143 = vst [vmem:[%s2172_s2 + $0x30] sm:$0xff] %v1108_v35  ;;  %v1119_v50 = vmax.f32 %v2011_v12, 0.0  ;;  %v1120_v56 = vmax.f32 %v2013_v6, 0.0  ;;  %v1121_v9 = vmax.f32 %v2015_v17, 0.0  ;;  %v1122_v20 = vmax.f32 %v2017_v14, 0.0 }
 0x1c0   :  { %1144 = vst [vmem:[%s2172_s2 + $0x38] sm:$0xff] %v1109_v45  ;;  %1145 = vst [vmem:[%s2172_s2 + $0x40] sm:$0xff] %v1110_v55  ;;  %v1123_v4 = vmax.f32 %v2019_v15, 0.0  ;;  %v1124_v13 = vmax.f32 %v2021_v28, 0.0  ;;  %v1125_v39 = vmax.f32 %v2023_v16, 0.0  ;;  %v1126_v33 = vmax.f32 %v2025_v22, 0.0 }
 0x1c1   :  { %1146 = vst [vmem:[%s2172_s2 + $0x48] sm:$0xff] %v1111_v7  ;;  %1147 = vst [vmem:[%s2172_s2 + $0x50] sm:$0xff] %v1112_v24  ;;  %v1127_v52 = vmax.f32 %v2027_v27, 0.0  ;;  %v1128_v32 = vmax.f32 %v2029_v29, 0.0  ;;  %v1129_v44 = vmax.f32 %v2031_v21, 0.0  ;;  %v1130_v5 = vmax.f32 %v2033_v62, 0.0 }
 0x1c2   :  { %1148 = vst [vmem:[%s2172_s2 + $0x58] sm:$0xff] %v1113_v42  ;;  %1149 = vst [vmem:[%s2172_s2 + $0x60] sm:$0xff] %v1114_v58  ;;  %v1131_v18 = vmax.f32 %v2035_v25, 0.0  ;;  %v1132_v49 = vmax.f32 %v2037_v31, 0.0  ;;  %v1133_v51 = vmax.f32 %v2039_v34, 0.0  ;;  %v1134_v0 = vmax.f32 %v2041_v38, 0.0 }
 0x1c3   :  { %1150 = vst [vmem:[%s2172_s2 + $0x68] sm:$0xff] %v1115_v54  ;;  %1151 = vst [vmem:[%s2172_s2 + $0x70] sm:$0xff] %v1116_v2  ;;  %v1135_v60 = vmax.f32 %v2043_v43, 0.0  ;;  %v1136_v63 = vmax.f32 %v2045_v26, 0.0 }
 0x1c4   :  { %1152 = vst [vmem:[%s2172_s2 + $0x78] sm:$0xff] %v1117_v53  ;;  %1153 = vst [vmem:[%s2172_s2 + $0x80] sm:$0xff] %v1118_v59 }
 0x1c5   :  { %1154 = vst [vmem:[%s2172_s2 + $0x88] sm:$0xff] %v1119_v50  ;;  %1155 = vst [vmem:[%s2172_s2 + $0x90] sm:$0xff] %v1120_v56 }
 0x1c6   :  { %1156 = vst [vmem:[%s2172_s2 + $0x98] sm:$0xff] %v1121_v9  ;;  %1157 = vst [vmem:[%s2172_s2 + $0xa0] sm:$0xff] %v1122_v20 }
 0x1c7   :  { %1158 = vst [vmem:[%s2172_s2 + $0xa8] sm:$0xff] %v1123_v4  ;;  %1159 = vst [vmem:[%s2172_s2 + $0xb0] sm:$0xff] %v1124_v13 }
 0x1c8   :  { %1160 = vst [vmem:[%s2172_s2 + $0xb8] sm:$0xff] %v1125_v39  ;;  %1161 = vst [vmem:[%s2172_s2 + $0xc0] sm:$0xff] %v1126_v33 }
 0x1c9   :  { %1162 = vst [vmem:[%s2172_s2 + $0xc8] sm:$0xff] %v1127_v52  ;;  %1163 = vst [vmem:[%s2172_s2 + $0xd0] sm:$0xff] %v1128_v32 }
 0x1ca   :  { %1164 = vst [vmem:[%s2172_s2 + $0xd8] sm:$0xff] %v1129_v44  ;;  %1165 = vst [vmem:[%s2172_s2 + $0xe0] sm:$0xff] %v1130_v5 }
 0x1cb   :  { %1166 = vst [vmem:[%s2172_s2 + $0xe8] sm:$0xff] %v1131_v18  ;;  %1167 = vst [vmem:[%s2172_s2 + $0xf0] sm:$0xff] %v1132_v49 }
 0x1cc   :  { %1168 = vst [vmem:[%s2172_s2 + $0xf8] sm:$0xff] %v1133_v51  ;;  %1169 = vst [vmem:[%s2172_s2 + $0x100] sm:$0xff] %v1134_v0 }
 0x1cd   :  { %1170 = vst [vmem:[%s2172_s2 + $0x108] sm:$0xff] %v1135_v60  ;;  %1171 = vst [vmem:[%s2172_s2 + $0x110] sm:$0xff] %v1136_v63 }

// kernel: crn_forward.13
= control target key start
LH: loop header
LB: loop body
LE: loop exit
PB: predicated region body
PF: predicated region fallthrough
CT: control target
= control target key end

     0   :  { %v1510_v0 = vmov 0   ;;  %s2892_s1 = inlined_call_operand.vmem [shape: bf16[256,128], index: 1, kind: input, shape index: {}]   ;;  %s2893_s0 = inlined_call_operand.vmem [shape: bf16[512,256], index: 0, kind: input, shape index: {}]   ;;  %s2894_s2 = inlined_call_operand.vmem [shape: f32[512,128], index: 2, kind: output, shape index: {}]  }
   0x1   :  { %524 = vmatprep.subr.bf16.mxu0 %v1510_v0  ;;  %v1396_v1 = vld [vmem:[%s2892_s1] sm:$0xff]   ;;  %1363 = vmatprep.subr.bf16.mxu1 %v1510_v0  ;;  %v1397_v2 = vld [vmem:[%s2892_s1 + $0x8] sm:$0xff]   ;;  %v1398_v3 = vld [vmem:[%s2892_s1 + $0x10] sm:$0xff]  }
   0x2   :  { %525 = vmatpush1.bf16.msra.mxu0 %v1396_v1  ;;  %1379 = vmatpush1.bf16.msra.mxu1 %v1396_v1  ;;  %v1399_v4 = vld [vmem:[%s2892_s1 + $0x18] sm:$0xff]   ;;  %v1400_v5 = vld [vmem:[%s2892_s1 + $0x20] sm:$0xff]   ;;  %v1401_v7 = vld [vmem:[%s2892_s1 + $0x28] sm:$0xff]  }
   0x3   :  { %526 = vmatprep.subr.bf16.mxu0 %v1510_v0  ;;  %1364 = vmatprep.subr.bf16.mxu1 %v1510_v0  ;;  %v1414_v6 = vld [vmem:[%s2893_s0 + $0x4] ss:$8 sps:$4 sm:$0xff]   ;;  %v1402_v8 = vld [vmem:[%s2892_s1 + $0x30] sm:$0xff]   ;;  %v1403_v9 = vld [vmem:[%s2892_s1 + $0x38] sm:$0xff]  }
   0x4   :  { %556 = vmatprep.mubr.bf16.mxu0 %v1414_v6  ;;  %v1438_v10 = vld [vmem:[%s2893_s0 + $0x104] ss:$8 sps:$4 sm:$0xff]   ;;  %v1406_v13 = vld [vmem:[%s2892_s1 + $0x50] sm:$0xff]   ;;  %v1407_v14 = vld [vmem:[%s2892_s1 + $0x58] sm:$0xff]  }
   0x5   :  { %684 = vmatprep.mubr.bf16.mxu1 %v1438_v10  ;;  %v1404_v11 = vld [vmem:[%s2892_s1 + $0x40] sm:$0xff]   ;;  %v1405_v12 = vld [vmem:[%s2892_s1 + $0x48] sm:$0xff]   ;;  %v1410_v17 = vld [vmem:[%s2892_s1 + $0x70] sm:$0xff]  }
   0x6   :  { %527 = vmatpush1.bf16.msra.mxu0 %v1397_v2  ;;  %1380 = vmatpush1.bf16.msra.mxu1 %v1397_v2  ;;  %v1408_v15 = vld [vmem:[%s2892_s1 + $0x60] sm:$0xff]   ;;  %v1409_v16 = vld [vmem:[%s2892_s1 + $0x68] sm:$0xff]   ;;  %v1411_v18 = vld [vmem:[%s2892_s1 + $0x78] sm:$0xff]  }
   0x7   :  { %528 = vmatprep.subr.bf16.mxu0 %v1510_v0  ;;  %1365 = vmatprep.subr.bf16.mxu1 %v1510_v0  ;;  %v1412_v19 = vld [vmem:[%s2893_s0] ss:$8 sps:$4 sm:$0xff]   ;;  %v1415_v21 = vld [vmem:[%s2893_s0 + $0x14] ss:$8 sps:$4 sm:$0xff]   ;;  %v1417_v23 = vld [vmem:[%s2893_s0 + $0x10] ss:$8 sps:$4 sm:$0xff]  }
   0x8   :  { %v1436_v20 = vld [vmem:[%s2893_s0 + $0x100] ss:$8 sps:$4 sm:$0xff]   ;;  %v1442_v22 = vld [vmem:[%s2893_s0 + $0x114] ss:$8 sps:$4 sm:$0xff]   ;;  %v1444_v24 = vld [vmem:[%s2893_s0 + $0x110] ss:$8 sps:$4 sm:$0xff]  }
   0x9   :  { %v1418_v25 = vld [vmem:[%s2893_s0 + $0x24] ss:$8 sps:$4 sm:$0xff]   ;;  %v1420_v27 = vld [vmem:[%s2893_s0 + $0x20] ss:$8 sps:$4 sm:$0xff]   ;;  %v1421_v29 = vld [vmem:[%s2893_s0 + $0x34] ss:$8 sps:$4 sm:$0xff]  }
   0xa   :  { %529 = vmatpush1.bf16.msra.mxu0 %v1398_v3  ;;  %1381 = vmatpush1.bf16.msra.mxu1 %v1398_v3  ;;  %v1448_v26 = vld [vmem:[%s2893_s0 + $0x124] ss:$8 sps:$4 sm:$0xff]   ;;  %v1450_v28 = vld [vmem:[%s2893_s0 + $0x120] ss:$8 sps:$4 sm:$0xff]   ;;  %v1454_v30 = vld [vmem:[%s2893_s0 + $0x134] ss:$8 sps:$4 sm:$0xff]  }
   0xb   :  { %530 = vmatprep.subr.bf16.mxu0 %v1510_v0  ;;  %1366 = vmatprep.subr.bf16.mxu1 %v1510_v0  ;;  %v1423_v31 = vld [vmem:[%s2893_s0 + $0x30] ss:$8 sps:$4 sm:$0xff]   ;;  %v1424_v33 = vld [vmem:[%s2893_s0 + $0x44] ss:$8 sps:$4 sm:$0xff]   ;;  %v1426_v35 = vld [vmem:[%s2893_s0 + $0x40] ss:$8 sps:$4 sm:$0xff]  }
   0xc   :  { %v1456_v32 = vld [vmem:[%s2893_s0 + $0x130] ss:$8 sps:$4 sm:$0xff]   ;;  %v1460_v34 = vld [vmem:[%s2893_s0 + $0x144] ss:$8 sps:$4 sm:$0xff]   ;;  %v1462_v36 = vld [vmem:[%s2893_s0 + $0x140] ss:$8 sps:$4 sm:$0xff]  }
   0xd   :  { %v1427_v37 = vld [vmem:[%s2893_s0 + $0x54] ss:$8 sps:$4 sm:$0xff]   ;;  %v1429_v39 = vld [vmem:[%s2893_s0 + $0x50] ss:$8 sps:$4 sm:$0xff]   ;;  %v1430_v41 = vld [vmem:[%s2893_s0 + $0x64] ss:$8 sps:$4 sm:$0xff]  }
   0xe   :  { %531 = vmatpush1.bf16.msra.mxu0 %v1399_v4  ;;  %1382 = vmatpush1.bf16.msra.mxu1 %v1399_v4  ;;  %v1466_v38 = vld [vmem:[%s2893_s0 + $0x154] ss:$8 sps:$4 sm:$0xff]   ;;  %v1468_v40 = vld [vmem:[%s2893_s0 + $0x150] ss:$8 sps:$4 sm:$0xff]   ;;  %v1472_v42 = vld [vmem:[%s2893_s0 + $0x164] ss:$8 sps:$4 sm:$0xff]  }
   0xf   :  { %532 = vmatprep.subr.bf16.mxu0 %v1510_v0  ;;  %1367 = vmatprep.subr.bf16.mxu1 %v1510_v0  ;;  %v1432_v43 = vld [vmem:[%s2893_s0 + $0x60] ss:$8 sps:$4 sm:$0xff]   ;;  %v1433_v45 = vld [vmem:[%s2893_s0 + $0x74] ss:$8 sps:$4 sm:$0xff]   ;;  %v1435_v47 = vld [vmem:[%s2893_s0 + $0x70] ss:$8 sps:$4 sm:$0xff]  }
  0x10   :  { %v1474_v44 = vld [vmem:[%s2893_s0 + $0x160] ss:$8 sps:$4 sm:$0xff]   ;;  %v1478_v46 = vld [vmem:[%s2893_s0 + $0x174] ss:$8 sps:$4 sm:$0xff]   ;;  %v1480_v48 = vld [vmem:[%s2893_s0 + $0x170] ss:$8 sps:$4 sm:$0xff]  }
  0x11   :  { %v1439_v49 = vld [vmem:[%s2893_s0 + $0x84] ss:$8 sps:$4 sm:$0xff]   ;;  %v1441_v51 = vld [vmem:[%s2893_s0 + $0x80] ss:$8 sps:$4 sm:$0xff]   ;;  %v1445_v53 = vld [vmem:[%s2893_s0 + $0x94] ss:$8 sps:$4 sm:$0xff]  }
  0x12   :  { %533 = vmatpush1.bf16.msra.mxu0 %v1400_v5  ;;  %1383 = vmatpush1.bf16.msra.mxu1 %v1400_v5  ;;  %v1484_v50 = vld [vmem:[%s2893_s0 + $0x184] ss:$8 sps:$4 sm:$0xff]   ;;  %v1486_v52 = vld [vmem:[%s2893_s0 + $0x180] ss:$8 sps:$4 sm:$0xff]   ;;  %v1487_v54 = vld [vmem:[%s2893_s0 + $0x194] ss:$8 sps:$4 sm:$0xff]  }
  0x13   :  { %534 = vmatprep.subr.bf16.mxu0 %v1510_v0  ;;  %1368 = vmatprep.subr.bf16.mxu1 %v1510_v0  ;;  %v1447_v55 = vld [vmem:[%s2893_s0 + $0x90] ss:$8 sps:$4 sm:$0xff]   ;;  %v1451_v57 = vld [vmem:[%s2893_s0 + $0xa4] ss:$8 sps:$4 sm:$0xff]   ;;  %v1453_v59 = vld [vmem:[%s2893_s0 + $0xa0] ss:$8 sps:$4 sm:$0xff]  }
  0x14   :  { %v1489_v56 = vld [vmem:[%s2893_s0 + $0x190] ss:$8 sps:$4 sm:$0xff]   ;;  %v1490_v58 = vld [vmem:[%s2893_s0 + $0x1a4] ss:$8 sps:$4 sm:$0xff]   ;;  %v1492_v60 = vld [vmem:[%s2893_s0 + $0x1a0] ss:$8 sps:$4 sm:$0xff]  }
  0x15   :  { %v1457_v61 = vld [vmem:[%s2893_s0 + $0xb4] ss:$8 sps:$4 sm:$0xff]   ;;  %v1459_v63 = vld [vmem:[%s2893_s0 + $0xb0] ss:$8 sps:$4 sm:$0xff]   ;;  %v1463_v1 = vld [vmem:[%s2893_s0 + $0xc4] ss:$8 sps:$4 sm:$0xff]  }
  0x16   :  { %535 = vmatpush1.bf16.msra.mxu0 %v1401_v7  ;;  %1384 = vmatpush1.bf16.msra.mxu1 %v1401_v7  ;;  %v1493_v62 = vld [vmem:[%s2893_s0 + $0x1b4] ss:$8 sps:$4 sm:$0xff]   ;;  %v1496_v2 = vld [vmem:[%s2893_s0 + $0x1c4] ss:$8 sps:$4 sm:$0xff]   ;;  %v1465_v3 = vld [vmem:[%s2893_s0 + $0xc0] ss:$8 sps:$4 sm:$0xff]  }
  0x17   :  { %536 = vmatprep.subr.bf16.mxu0 %v1510_v0  ;;  %1369 = vmatprep.subr.bf16.mxu1 %v1510_v0  ;;  %v1498_v4 = vld [vmem:[%s2893_s0 + $0x1c0] ss:$8 sps:$4 sm:$0xff]   ;;  %v1469_v5 = vld [vmem:[%s2893_s0 + $0xd4] ss:$8 sps:$4 sm:$0xff]   ;;  %v1471_v7 = vld [vmem:[%s2893_s0 + $0xd0] ss:$8 sps:$4 sm:$0xff]  }
  0x18   :  { %v1499_v6 = vld [vmem:[%s2893_s0 + $0x1d4] ss:$8 sps:$4 sm:$0xff]   ;;  %v1502_v10 = vld [vmem:[%s2893_s0 + $0x1e4] ss:$8 sps:$4 sm:$0xff]  }
  0x1a   :  { %537 = vmatpush1.bf16.msra.mxu0 %v1402_v8  ;;  %1385 = vmatpush1.bf16.msra.mxu1 %v1402_v8  ;;  %v1501_v8 = vld [vmem:[%s2893_s0 + $0x1d0] ss:$8 sps:$4 sm:$0xff]  }
  0x1b   :  { %538 = vmatprep.subr.bf16.mxu0 %v1510_v0  ;;  %1370 = vmatprep.subr.bf16.mxu1 %v1510_v0 }
  0x1e   :  { %539 = vmatpush1.bf16.msra.mxu0 %v1403_v9  ;;  %1386 = vmatpush1.bf16.msra.mxu1 %v1403_v9  ;;  %v1475_v9 = vld [vmem:[%s2893_s0 + $0xe4] ss:$8 sps:$4 sm:$0xff]  }
  0x1f   :  { %540 = vmatprep.subr.bf16.mxu0 %v1510_v0  ;;  %1371 = vmatprep.subr.bf16.mxu1 %v1510_v0 }
  0x22   :  { %541 = vmatpush1.bf16.msra.mxu0 %v1404_v11  ;;  %1387 = vmatpush1.bf16.msra.mxu1 %v1404_v11  ;;  %v1477_v11 = vld [vmem:[%s2893_s0 + $0xe0] ss:$8 sps:$4 sm:$0xff]  }
  0x23   :  { %542 = vmatprep.subr.bf16.mxu0 %v1510_v0  ;;  %1372 = vmatprep.subr.bf16.mxu1 %v1510_v0 }
  0x26   :  { %543 = vmatpush1.bf16.msra.mxu0 %v1405_v12  ;;  %1388 = vmatpush1.bf16.msra.mxu1 %v1405_v12  ;;  %v1504_v12 = vld [vmem:[%s2893_s0 + $0x1e0] ss:$8 sps:$4 sm:$0xff]  }
  0x27   :  { %544 = vmatprep.subr.bf16.mxu0 %v1510_v0  ;;  %1373 = vmatprep.subr.bf16.mxu1 %v1510_v0 }
  0x2a   :  { %545 = vmatpush1.bf16.msra.mxu0 %v1406_v13  ;;  %1389 = vmatpush1.bf16.msra.mxu1 %v1406_v13  ;;  %v1481_v13 = vld [vmem:[%s2893_s0 + $0xf4] ss:$8 sps:$4 sm:$0xff]  }
  0x2b   :  { %546 = vmatprep.subr.bf16.mxu0 %v1510_v0  ;;  %1374 = vmatprep.subr.bf16.mxu1 %v1510_v0 }
  0x2e   :  { %547 = vmatpush1.bf16.msra.mxu0 %v1407_v14  ;;  %1390 = vmatpush1.bf16.msra.mxu1 %v1407_v14  ;;  %v1505_v14 = vld [vmem:[%s2893_s0 + $0x1f4] ss:$8 sps:$4 sm:$0xff]  }
  0x2f   :  { %548 = vmatprep.subr.bf16.mxu0 %v1510_v0  ;;  %1375 = vmatprep.subr.bf16.mxu1 %v1510_v0 }
  0x32   :  { %549 = vmatpush1.bf16.msra.mxu0 %v1408_v15  ;;  %1391 = vmatpush1.bf16.msra.mxu1 %v1408_v15  ;;  %v1483_v15 = vld [vmem:[%s2893_s0 + $0xf0] ss:$8 sps:$4 sm:$0xff]  }
  0x33   :  { %550 = vmatprep.subr.bf16.mxu0 %v1510_v0  ;;  %1376 = vmatprep.subr.bf16.mxu1 %v1510_v0 }
  0x36   :  { %551 = vmatpush1.bf16.msra.mxu0 %v1409_v16  ;;  %1392 = vmatpush1.bf16.msra.mxu1 %v1409_v16  ;;  %v1507_v16 = vld [vmem:[%s2893_s0 + $0x1f0] ss:$8 sps:$4 sm:$0xff]  }
  0x37   :  { %552 = vmatprep.subr.bf16.mxu0 %v1510_v0  ;;  %1377 = vmatprep.subr.bf16.mxu1 %v1510_v0 }
  0x3a   :  { %553 = vmatpush1.bf16.msra.mxu0 %v1410_v17  ;;  %1393 = vmatpush1.bf16.msra.mxu1 %v1410_v17 }
  0x3b   :  { %554 = vmatprep.subr.bf16.mxu0 %v1510_v0  ;;  %1378 = vmatprep.subr.bf16.mxu1 %v1510_v0  ;;  %v1495_v0 = vld [vmem:[%s2893_s0 + $0x1b0] ss:$8 sps:$4 sm:$0xff]  }
  0x3e   :  { %555 = vmatpush1.bf16.msra.mxu0 %v1411_v18  ;;  %1394 = vmatpush1.bf16.msra.mxu1 %v1411_v18 }
  0x41   :  { %557 = vmatmul.mubr.bf16.vlgmr.msra.gmra.mrb[0].mxu0 %v1412_v19  ;;  %685 = vmatmul.mubr.bf16.vlgmr.msra.gmra.mrb[0].mxu1 %v1436_v20 }
  0x42   :  { %564 = vmatprep.mubr.bf16.mxu0 %v1415_v21  ;;  %692 = vmatprep.mubr.bf16.mxu1 %v1442_v22 }
  0x49   :  { %565 = vmatmul.mubr.bf16.gmra.mrb[4].mxu0 %v1417_v23  ;;  %693 = vmatmul.mubr.bf16.gmra.mrb[4].mxu1 %v1444_v24 }
  0x4a   :  { %572 = vmatprep.mubr.bf16.mxu0 %v1418_v25  ;;  %700 = vmatprep.mubr.bf16.mxu1 %v1448_v26 }
  0x51   :  { %573 = vmatmul.mubr.bf16.gmra.mrb[8].mxu0 %v1420_v27  ;;  %701 = vmatmul.mubr.bf16.gmra.mrb[8].mxu1 %v1450_v28 }
  0x52   :  { %580 = vmatprep.mubr.bf16.mxu0 %v1421_v29  ;;  %708 = vmatprep.mubr.bf16.mxu1 %v1454_v30 }
  0x59   :  { %581 = vmatmul.mubr.bf16.gmra.mrb[12].mxu0 %v1423_v31  ;;  %709 = vmatmul.mubr.bf16.gmra.mrb[12].mxu1 %v1456_v32 }
  0x5a   :  { %588 = vmatprep.mubr.bf16.mxu0 %v1424_v33  ;;  %716 = vmatprep.mubr.bf16.mxu1 %v1460_v34 }
  0x61   :  { %589 = vmatmul.mubr.bf16.gmra.mrb[16].mxu0 %v1426_v35  ;;  %717 = vmatmul.mubr.bf16.gmra.mrb[16].mxu1 %v1462_v36 }
  0x62   :  { %596 = vmatprep.mubr.bf16.mxu0 %v1427_v37  ;;  %724 = vmatprep.mubr.bf16.mxu1 %v1466_v38 }
  0x69   :  { %597 = vmatmul.mubr.bf16.gmra.mrb[20].mxu0 %v1429_v39  ;;  %725 = vmatmul.mubr.bf16.gmra.mrb[20].mxu1 %v1468_v40 }
  0x6a   :  { %604 = vmatprep.mubr.bf16.mxu0 %v1430_v41  ;;  %732 = vmatprep.mubr.bf16.mxu1 %v1472_v42 }
  0x71   :  { %605 = vmatmul.mubr.bf16.gmra.mrb[24].mxu0 %v1432_v43  ;;  %733 = vmatmul.mubr.bf16.gmra.mrb[24].mxu1 %v1474_v44 }
  0x72   :  { %612 = vmatprep.mubr.bf16.mxu0 %v1433_v45  ;;  %740 = vmatprep.mubr.bf16.mxu1 %v1478_v46 }
  0x79   :  { %613 = vmatmul.mubr.bf16.gmra.mrb[28].mxu0 %v1435_v47  ;;  %741 = vmatmul.mubr.bf16.gmra.mrb[28].mxu1 %v1480_v48 }
  0x7a   :  { %620 = vmatprep.mubr.bf16.mxu0 %v1439_v49  ;;  %748 = vmatprep.mubr.bf16.mxu1 %v1484_v50 }
  0x81   :  { %621 = vmatmul.mubr.bf16.gmra.mrb[32].mxu0 %v1441_v51  ;;  %749 = vmatmul.mubr.bf16.gmra.mrb[32].mxu1 %v1486_v52 }
  0x82   :  { %628 = vmatprep.mubr.bf16.mxu0 %v1445_v53  ;;  %756 = vmatprep.mubr.bf16.mxu1 %v1487_v54 }
  0x89   :  { %629 = vmatmul.mubr.bf16.gmra.mrb[36].mxu0 %v1447_v55  ;;  %757 = vmatmul.mubr.bf16.gmra.mrb[36].mxu1 %v1489_v56 }
  0x8a   :  { %636 = vmatprep.mubr.bf16.mxu0 %v1451_v57  ;;  %764 = vmatprep.mubr.bf16.mxu1 %v1490_v58 }
  0x91   :  { %637 = vmatmul.mubr.bf16.gmra.mrb[40].mxu0 %v1453_v59  ;;  %765 = vmatmul.mubr.bf16.gmra.mrb[40].mxu1 %v1492_v60 }
  0x92   :  { %644 = vmatprep.mubr.bf16.mxu0 %v1457_v61  ;;  %772 = vmatprep.mubr.bf16.mxu1 %v1493_v62 }
  0x99   :  { %645 = vmatmul.mubr.bf16.gmra.mrb[44].mxu0 %v1459_v63  ;;  %773 = vmatmul.mubr.bf16.gmra.mrb[44].mxu1 %v1495_v0 }
  0x9a   :  { %652 = vmatprep.mubr.bf16.mxu0 %v1463_v1  ;;  %780 = vmatprep.mubr.bf16.mxu1 %v1496_v2 }
  0xa1   :  { %653 = vmatmul.mubr.bf16.gmra.mrb[48].mxu0 %v1465_v3  ;;  %781 = vmatmul.mubr.bf16.gmra.mrb[48].mxu1 %v1498_v4 }
  0xa2   :  { %660 = vmatprep.mubr.bf16.mxu0 %v1469_v5  ;;  %788 = vmatprep.mubr.bf16.mxu1 %v1499_v6 }
  0xa9   :  { %661 = vmatmul.mubr.bf16.gmra.mrb[52].mxu0 %v1471_v7  ;;  %789 = vmatmul.mubr.bf16.gmra.mrb[52].mxu1 %v1501_v8 }
  0xaa   :  { %668 = vmatprep.mubr.bf16.mxu0 %v1475_v9  ;;  %796 = vmatprep.mubr.bf16.mxu1 %v1502_v10 }
  0xb1   :  { %669 = vmatmul.mubr.bf16.gmra.mrb[56].mxu0 %v1477_v11  ;;  %797 = vmatmul.mubr.bf16.gmra.mrb[56].mxu1 %v1504_v12 }
  0xb2   :  { %676 = vmatprep.mubr.bf16.mxu0 %v1481_v13  ;;  %804 = vmatprep.mubr.bf16.mxu1 %v1505_v14 }
  0xb9   :  { %677 = vmatmul.mubr.bf16.gmra.mrb[60].mxu0 %v1483_v15  ;;  %805 = vmatmul.mubr.bf16.gmra.mrb[60].mxu1 %v1507_v16 }
 0x114   :  { %v1798_v17 = vpop.f32.mrb[0].mxu0  ;;  %v1800_v18 = vpop.f32.mrb[0].mxu1 }
 0x115   :  { %v560_v19 = vpop.f32.mrb[1].mxu0  ;;  %v688_v20 = vpop.f32.mrb[1].mxu1  ;;  %v882_v23 = vmul.f32 %v1798_v17, %v1798_v17 }
 0x116   :  { %v1802_v21 = vpop.f32.mrb[2].mxu0  ;;  %v1804_v22 = vpop.f32.mrb[2].mxu1 }
 0x117   :  { %v813_v24 = vadd.f32 %v1802_v21, %v1798_v17  ;;  %v883_v25 = vmul.f32 %v1802_v21, %v1802_v21  ;;  %v563_v26 = vpop.f32.mrb[3].mxu0  ;;  %v691_v27 = vpop.f32.mrb[3].mxu1 }
 0x119   :  { %v946_v28 = vadd.f32 %v883_v25, %v882_v23 }
 0x11c   :  { %v1812_v29 = vpop.f32.mrb[4].mxu0  ;;  %v1814_v30 = vpop.f32.mrb[4].mxu1 }
 0x11d   :  { %v814_v31 = vadd.f32 %v813_v24, %v1812_v29  ;;  %v884_v32 = vmul.f32 %v1812_v29, %v1812_v29  ;;  %v568_v33 = vpop.f32.mrb[5].mxu0  ;;  %v696_v34 = vpop.f32.mrb[5].mxu1 }
 0x11e   :  { %v1819_v35 = vpop.f32.mrb[6].mxu0  ;;  %v1821_v36 = vpop.f32.mrb[6].mxu1 }
 0x11f   :  { %v947_v37 = vadd.f32 %v946_v28, %v884_v32  ;;  %v815_v38 = vadd.f32 %v814_v31, %v1819_v35  ;;  %v885_v39 = vmul.f32 %v1819_v35, %v1819_v35  ;;  %v571_v40 = vpop.f32.mrb[7].mxu0  ;;  %v699_v41 = vpop.f32.mrb[7].mxu1 }
 0x121   :  { %v948_v42 = vadd.f32 %v947_v37, %v885_v39 }
 0x124   :  { %v1826_v43 = vpop.f32.mrb[8].mxu0  ;;  %v1828_v44 = vpop.f32.mrb[8].mxu1 }
 0x125   :  { %v816_v45 = vadd.f32 %v815_v38, %v1826_v43  ;;  %v886_v46 = vmul.f32 %v1826_v43, %v1826_v43  ;;  %v576_v47 = vpop.f32.mrb[9].mxu0  ;;  %v704_v48 = vpop.f32.mrb[9].mxu1 }
 0x126   :  { %v1833_v49 = vpop.f32.mrb[10].mxu0  ;;  %v1835_v50 = vpop.f32.mrb[10].mxu1 }
 0x127   :  { %v949_v51 = vadd.f32 %v948_v42, %v886_v46  ;;  %v817_v52 = vadd.f32 %v816_v45, %v1833_v49  ;;  %v887_v53 = vmul.f32 %v1833_v49, %v1833_v49  ;;  %v579_v54 = vpop.f32.mrb[11].mxu0  ;;  %v707_v55 = vpop.f32.mrb[11].mxu1 }
 0x129   :  { %v950_v56 = vadd.f32 %v949_v51, %v887_v53 }
 0x12c   :  { %v1840_v57 = vpop.f32.mrb[12].mxu0  ;;  %v1842_v58 = vpop.f32.mrb[12].mxu1 }
 0x12d   :  { %v818_v59 = vadd.f32 %v817_v52, %v1840_v57  ;;  %v888_v60 = vmul.f32 %v1840_v57, %v1840_v57  ;;  %v584_v61 = vpop.f32.mrb[13].mxu0  ;;  %v712_v62 = vpop.f32.mrb[13].mxu1 }
 0x12e   :  { %v1847_v63 = vpop.f32.mrb[14].mxu0  ;;  %v1849_v0 = vpop.f32.mrb[14].mxu1 }
 0x12f   :  { %v951_v1 = vadd.f32 %v950_v56, %v888_v60  ;;  %v819_v2 = vadd.f32 %v818_v59, %v1847_v63  ;;  %v889_v3 = vmul.f32 %v1847_v63, %v1847_v63  ;;  %v587_v4 = vpop.f32.mrb[15].mxu0  ;;  %v715_v5 = vpop.f32.mrb[15].mxu1 }
 0x131   :  { %v952_v6 = vadd.f32 %v951_v1, %v889_v3 }
 0x134   :  { %v1854_v7 = vpop.f32.mrb[16].mxu0  ;;  %v1856_v8 = vpop.f32.mrb[16].mxu1 }
 0x135   :  { %v820_v9 = vadd.f32 %v819_v2, %v1854_v7  ;;  %v890_v10 = vmul.f32 %v1854_v7, %v1854_v7  ;;  %v592_v11 = vpop.f32.mrb[17].mxu0  ;;  %v720_v12 = vpop.f32.mrb[17].mxu1 }
 0x136   :  { %v1861_v13 = vpop.f32.mrb[18].mxu0  ;;  %v1863_v14 = vpop.f32.mrb[18].mxu1 }
 0x137   :  { %v953_v15 = vadd.f32 %v952_v6, %v890_v10  ;;  %v821_v16 = vadd.f32 %v820_v9, %v1861_v13  ;;  %v891_v19 = vmul.f32 %v1861_v13, %v1861_v13  ;;  %v595_v20 = vpop.f32.mrb[19].mxu0  ;;  %v723_v23 = vpop.f32.mrb[19].mxu1 }
 0x139   :  { %v954_v24 = vadd.f32 %v953_v15, %v891_v19 }
 0x13c   :  { %v1868_v25 = vpop.f32.mrb[20].mxu0  ;;  %v1870_v26 = vpop.f32.mrb[20].mxu1 }
 0x13d   :  { %v822_v27 = vadd.f32 %v821_v16, %v1868_v25  ;;  %v892_v28 = vmul.f32 %v1868_v25, %v1868_v25  ;;  %v600_v31 = vpop.f32.mrb[21].mxu0  ;;  %v728_v32 = vpop.f32.mrb[21].mxu1 }
 0x13e   :  { %v1875_v33 = vpop.f32.mrb[22].mxu0  ;;  %v1877_v34 = vpop.f32.mrb[22].mxu1 }
 0x13f   :  { %v955_v37 = vadd.f32 %v954_v24, %v892_v28  ;;  %v823_v38 = vadd.f32 %v822_v27, %v1875_v33  ;;  %v893_v39 = vmul.f32 %v1875_v33, %v1875_v33  ;;  %v603_v40 = vpop.f32.mrb[23].mxu0  ;;  %v731_v41 = vpop.f32.mrb[23].mxu1 }
 0x141   :  { %v956_v42 = vadd.f32 %v955_v37, %v893_v39 }
 0x144   :  { %v1882_v45 = vpop.f32.mrb[24].mxu0  ;;  %v1884_v46 = vpop.f32.mrb[24].mxu1 }
 0x145   :  { %v824_v47 = vadd.f32 %v823_v38, %v1882_v45  ;;  %v894_v48 = vmul.f32 %v1882_v45, %v1882_v45  ;;  %v608_v51 = vpop.f32.mrb[25].mxu0  ;;  %v736_v52 = vpop.f32.mrb[25].mxu1 }
 0x146   :  { %v1889_v53 = vpop.f32.mrb[26].mxu0  ;;  %v1891_v54 = vpop.f32.mrb[26].mxu1 }
 0x147   :  { %v957_v55 = vadd.f32 %v956_v42, %v894_v48  ;;  %v825_v56 = vadd.f32 %v824_v47, %v1889_v53  ;;  %v895_v59 = vmul.f32 %v1889_v53, %v1889_v53  ;;  %v611_v60 = vpop.f32.mrb[27].mxu0  ;;  %v739_v61 = vpop.f32.mrb[27].mxu1 }
 0x149   :  { %v958_v62 = vadd.f32 %v957_v55, %v895_v59 }
 0x14c   :  { %v1896_v1 = vpop.f32.mrb[28].mxu0  ;;  %v1898_v2 = vpop.f32.mrb[28].mxu1 }
 0x14d   :  { %v826_v3 = vadd.f32 %v825_v56, %v1896_v1  ;;  %v896_v4 = vmul.f32 %v1896_v1, %v1896_v1  ;;  %v616_v5 = vpop.f32.mrb[29].mxu0  ;;  %v744_v6 = vpop.f32.mrb[29].mxu1 }
 0x14e   :  { %v1903_v9 = vpop.f32.mrb[30].mxu0  ;;  %v1905_v10 = vpop.f32.mrb[30].mxu1 }
 0x14f   :  { %v959_v11 = vadd.f32 %v958_v62, %v896_v4  ;;  %v827_v12 = vadd.f32 %v826_v3, %v1903_v9  ;;  %v897_v15 = vmul.f32 %v1903_v9, %v1903_v9  ;;  %v619_v16 = vpop.f32.mrb[31].mxu0  ;;  %v747_v19 = vpop.f32.mrb[31].mxu1 }
 0x151   :  { %v960_v20 = vadd.f32 %v959_v11, %v897_v15 }
 0x154   :  { %v1910_v23 = vpop.f32.mrb[32].mxu0  ;;  %v1912_v24 = vpop.f32.mrb[32].mxu1 }
 0x155   :  { %v828_v27 = vadd.f32 %v827_v12, %v1910_v23  ;;  %v898_v28 = vmul.f32 %v1910_v23, %v1910_v23  ;;  %v624_v31 = vpop.f32.mrb[33].mxu0  ;;  %v752_v32 = vpop.f32.mrb[33].mxu1 }
 0x156   :  { %v1917_v37 = vpop.f32.mrb[34].mxu0  ;;  %v1919_v38 = vpop.f32.mrb[34].mxu1 }
 0x157   :  { %2940 = vst [vmem:[#allocation2_spill] sm:$0xff] %v1917_v37  ;;  %v961_v39 = vadd.f32 %v960_v20, %v898_v28  ;;  %v829_v40 = vadd.f32 %v828_v27, %v1917_v37  ;;  %v899_v41 = vmul.f32 %v1917_v37, %v1917_v37  ;;  %v627_v42 = vpop.f32.mrb[35].mxu0  ;;  %v755_v47 = vpop.f32.mrb[35].mxu1 }
 0x159   :  { %v962_v48 = vadd.f32 %v961_v39, %v899_v41 }
 0x15c   :  { %v1924_v51 = vpop.f32.mrb[36].mxu0  ;;  %v1926_v52 = vpop.f32.mrb[36].mxu1 }
 0x15d   :  { %2941 = vst [vmem:[#allocation3_spill] sm:$0xff] %v1924_v51  ;;  %v830_v55 = vadd.f32 %v829_v40, %v1924_v51  ;;  %v900_v56 = vmul.f32 %v1924_v51, %v1924_v51  ;;  %v632_v59 = vpop.f32.mrb[37].mxu0  ;;  %v760_v60 = vpop.f32.mrb[37].mxu1 }
 0x15e   :  { %v1931_v61 = vpop.f32.mrb[38].mxu0  ;;  %v1933_v62 = vpop.f32.mrb[38].mxu1 }
 0x15f   :  { %2942 = vst [vmem:[#allocation4_spill] sm:$0xff] %v1931_v61  ;;  %2943 = vst [vmem:[#allocation5_spill] sm:$0xff] %v1933_v62  ;;  %v963_v3 = vadd.f32 %v962_v48, %v900_v56  ;;  %v831_v4 = vadd.f32 %v830_v55, %v1931_v61  ;;  %v901_v5 = vmul.f32 %v1931_v61, %v1931_v61  ;;  %v635_v6 = vpop.f32.mrb[39].mxu0  ;;  %v763_v11 = vpop.f32.mrb[39].mxu1 }
 0x161   :  { %v964_v12 = vadd.f32 %v963_v3, %v901_v5 }
 0x164   :  { %v1938_v15 = vpop.f32.mrb[40].mxu0  ;;  %v1940_v16 = vpop.f32.mrb[40].mxu1 }
 0x165   :  { %2944 = vst [vmem:[#allocation6_spill] sm:$0xff] %v1938_v15  ;;  %2945 = vst [vmem:[#allocation7_spill] sm:$0xff] %v1940_v16  ;;  %v832_v19 = vadd.f32 %v831_v4, %v1938_v15  ;;  %v902_v20 = vmul.f32 %v1938_v15, %v1938_v15  ;;  %v640_v27 = vpop.f32.mrb[41].mxu0  ;;  %v768_v28 = vpop.f32.mrb[41].mxu1 }
 0x166   :  { %v1945_v31 = vpop.f32.mrb[42].mxu0  ;;  %v1947_v32 = vpop.f32.mrb[42].mxu1 }
 0x167   :  { %2946 = vst [vmem:[#allocation8_spill] sm:$0xff] %v1945_v31  ;;  %2947 = vst [vmem:[#allocation9_spill] sm:$0xff] %v1947_v32  ;;  %v965_v39 = vadd.f32 %v964_v12, %v902_v20  ;;  %v833_v40 = vadd.f32 %v832_v19, %v1945_v31  ;;  %v903_v41 = vmul.f32 %v1945_v31, %v1945_v31  ;;  %v643_v42 = vpop.f32.mrb[43].mxu0  ;;  %v771_v47 = vpop.f32.mrb[43].mxu1 }
 0x169   :  { %v966_v48 = vadd.f32 %v965_v39, %v903_v41 }
 0x16c   :  { %v1952_v55 = vpop.f32.mrb[44].mxu0  ;;  %v1954_v56 = vpop.f32.mrb[44].mxu1 }
 0x16d   :  { %2948 = vst [vmem:[#allocation10_spill] sm:$0xff] %v1952_v55  ;;  %2949 = vst [vmem:[#allocation11_spill] sm:$0xff] %v1954_v56  ;;  %v834_v59 = vadd.f32 %v833_v40, %v1952_v55  ;;  %v904_v60 = vmul.f32 %v1952_v55, %v1952_v55  ;;  %v648_v3 = vpop.f32.mrb[45].mxu0  ;;  %v776_v4 = vpop.f32.mrb[45].mxu1 }
 0x16e   :  { %v1959_v5 = vpop.f32.mrb[46].mxu0  ;;  %v1961_v6 = vpop.f32.mrb[46].mxu1 }
 0x16f   :  { %2950 = vst [vmem:[#allocation12_spill] sm:$0xff] %v1959_v5  ;;  %v967_v11 = vadd.f32 %v966_v48, %v904_v60  ;;  %v835_v12 = vadd.f32 %v834_v59, %v1959_v5  ;;  %v905_v19 = vmul.f32 %v1959_v5, %v1959_v5  ;;  %v651_v20 = vpop.f32.mrb[47].mxu0  ;;  %v779_v27 = vpop.f32.mrb[47].mxu1 }
 0x171   :  { %v968_v28 = vadd.f32 %v967_v11, %v905_v19 }
 0x174   :  { %v1966_v39 = vpop.f32.mrb[48].mxu0  ;;  %v1968_v40 = vpop.f32.mrb[48].mxu1 }
 0x175   :  { %2951 = vst [vmem:[#allocation13_spill] sm:$0xff] %v1966_v39  ;;  %2952 = vst [vmem:[#allocation14_spill] sm:$0xff] %v1968_v40  ;;  %v836_v41 = vadd.f32 %v835_v12, %v1966_v39  ;;  %v906_v42 = vmul.f32 %v1966_v39, %v1966_v39  ;;  %v656_v47 = vpop.f32.mrb[49].mxu0  ;;  %v784_v3 = vpop.f32.mrb[49].mxu1 }
 0x176   :  { %v1973_v48 = vpop.f32.mrb[50].mxu0  ;;  %v1975_v59 = vpop.f32.mrb[50].mxu1 }
 0x177   :  { %2953 = vst [vmem:[#allocation15_spill] sm:$0xff] %v1973_v48  ;;  %2954 = vst [vmem:[#allocation16_spill] sm:$0xff] %v1975_v59  ;;  %v969_v60 = vadd.f32 %v968_v28, %v906_v42  ;;  %v837_v4 = vadd.f32 %v836_v41, %v1973_v48  ;;  %v907_v11 = vmul.f32 %v1973_v48, %v1973_v48  ;;  %v659_v19 = vpop.f32.mrb[51].mxu0  ;;  %v787_v20 = vpop.f32.mrb[51].mxu1 }
 0x179   :  { %v970_v27 = vadd.f32 %v969_v60, %v907_v11 }
 0x17c   :  { %v1980_v5 = vpop.f32.mrb[52].mxu0  ;;  %v1982_v12 = vpop.f32.mrb[52].mxu1 }
 0x17d   :  { %2955 = vst [vmem:[#allocation17_spill] sm:$0xff] %v1980_v5  ;;  %2956 = vst [vmem:[#allocation18_spill] sm:$0xff] %v1982_v12  ;;  %v838_v47 = vadd.f32 %v837_v4, %v1980_v5  ;;  %v908_v3 = vmul.f32 %v1980_v5, %v1980_v5  ;;  %v664_v39 = vpop.f32.mrb[53].mxu0  ;;  %v792_v55 = vpop.f32.mrb[53].mxu1 }
 0x17e   :  { %v1987_v28 = vpop.f32.mrb[54].mxu0  ;;  %v1989_v41 = vpop.f32.mrb[54].mxu1 }
 0x17f   :  { %2957 = vst [vmem:[#allocation19_spill] sm:$0xff] %v1987_v28  ;;  %2958 = vst [vmem:[#allocation20_spill] sm:$0xff] %v1989_v41  ;;  %v971_v42 = vadd.f32 %v970_v27, %v908_v3  ;;  %v839_v19 = vadd.f32 %v838_v47, %v1987_v28  ;;  %v909_v60 = vmul.f32 %v1987_v28, %v1987_v28  ;;  %v667_v11 = vpop.f32.mrb[55].mxu0  ;;  %v795_v20 = vpop.f32.mrb[55].mxu1 }
 0x181   :  { %v972_v48 = vadd.f32 %v971_v42, %v909_v60 }
 0x184   :  { %v1994_v31 = vpop.f32.mrb[56].mxu0  ;;  %v1996_v4 = vpop.f32.mrb[56].mxu1 }
 0x185   :  { %2959 = vst [vmem:[#allocation21_spill] sm:$0xff] %v1994_v31  ;;  %2960 = vst [vmem:[#allocation22_spill] sm:$0xff] %v1996_v4  ;;  %v840_v39 = vadd.f32 %v839_v19, %v1994_v31  ;;  %v910_v55 = vmul.f32 %v1994_v31, %v1994_v31  ;;  %v672_v5 = vpop.f32.mrb[57].mxu0  ;;  %v800_v15 = vpop.f32.mrb[57].mxu1 }
 0x186   :  { %v2001_v27 = vpop.f32.mrb[58].mxu0  ;;  %v2003_v47 = vpop.f32.mrb[58].mxu1 }
 0x187   :  { %2961 = vst [vmem:[#allocation23_spill] sm:$0xff] %v2001_v27  ;;  %2962 = vst [vmem:[#allocation24_spill] sm:$0xff] %v2003_v47  ;;  %v973_v3 = vadd.f32 %v972_v48, %v910_v55  ;;  %v841_v11 = vadd.f32 %v840_v39, %v2001_v27  ;;  %v911_v42 = vmul.f32 %v2001_v27, %v2001_v27  ;;  %v675_v60 = vpop.f32.mrb[59].mxu0  ;;  %v803_v20 = vpop.f32.mrb[59].mxu1 }
 0x189   :  { %v974_v28 = vadd.f32 %v973_v3, %v911_v42 }
 0x18c   :  { %v2008_v61 = vpop.f32.mrb[60].mxu0  ;;  %v2010_v19 = vpop.f32.mrb[60].mxu1 }
 0x18d   :  { %2963 = vst [vmem:[#allocation25_spill] sm:$0xff] %v2008_v61  ;;  %v842_v5 = vadd.f32 %v841_v11, %v2008_v61  ;;  %v912_v15 = vmul.f32 %v2008_v61, %v2008_v61  ;;  %v680_v31 = vpop.f32.mrb[61].mxu0  ;;  %v808_v51 = vpop.f32.mrb[61].mxu1  ;;  %v914_v11 = vmul.f32 %v1800_v18, %v1800_v18 }
 0x18e   :  { %v2015_v48 = vpop.f32.mrb[62].mxu0  ;;  %v2017_v39 = vpop.f32.mrb[62].mxu1  ;;  %v915_v51 = vmul.f32 %v1804_v22, %v1804_v22 }
 0x18f   :  { %2964 = vst [vmem:[#allocation26_spill] sm:$0xff] %v2015_v48  ;;  %v975_v55 = vadd.f32 %v974_v28, %v912_v15  ;;  %v843_v60 = vadd.f32 %v842_v5, %v2015_v48  ;;  %v913_v3 = vmul.f32 %v2015_v48, %v2015_v48  ;;  %v683_v42 = vpop.f32.mrb[63].mxu0  ;;  %v811_v20 = vpop.f32.mrb[63].mxu1  ;;  %v916_v28 = vmul.f32 %v1814_v30, %v1814_v30 }
 0x190   :  { %v917_v42 = vmul.f32 %v1821_v36, %v1821_v36 }
 0x191   :  { %v844_v27 = vadd.f32 %v843_v60, %v1800_v18  ;;  %v976_v61 = vadd.f32 %v975_v55, %v913_v3  ;;  %v918_v55 = vmul.f32 %v1828_v44, %v1828_v44 }
 0x193   :  { %v845_v31 = vadd.f32 %v844_v27, %v1804_v22  ;;  %v977_v37 = vadd.f32 %v976_v61, %v914_v11  ;;  %v919_v61 = vmul.f32 %v1835_v50, %v1835_v50 }
 0x195   :  { %v846_v5 = vadd.f32 %v845_v31, %v1814_v30  ;;  %v978_v15 = vadd.f32 %v977_v37, %v915_v51  ;;  %v920_v37 = vmul.f32 %v1842_v58, %v1842_v58 }
 0x197   :  { %v847_v20 = vadd.f32 %v846_v5, %v1821_v36  ;;  %v979_v48 = vadd.f32 %v978_v15, %v916_v28  ;;  %v921_v28 = vmul.f32 %v1849_v0, %v1849_v0 }
 0x199   :  { %v848_v60 = vadd.f32 %v847_v20, %v1828_v44  ;;  %v980_v3 = vadd.f32 %v979_v48, %v917_v42  ;;  %v922_v48 = vmul.f32 %v1856_v8, %v1856_v8 }
 0x19b   :  { %v849_v27 = vadd.f32 %v848_v60, %v1835_v50  ;;  %v981_v11 = vadd.f32 %v980_v3, %v918_v55  ;;  %v923_v55 = vmul.f32 %v1863_v14, %v1863_v14 }
 0x19d   :  { %v850_v51 = vadd.f32 %v849_v27, %v1842_v58  ;;  %v982_v31 = vadd.f32 %v981_v11, %v919_v61  ;;  %v924_v61 = vmul.f32 %v1870_v26, %v1870_v26 }
 0x19f   :  { %v851_v5 = vadd.f32 %v850_v51, %v1849_v0  ;;  %v983_v15 = vadd.f32 %v982_v31, %v920_v37  ;;  %v925_v37 = vmul.f32 %v1877_v34, %v1877_v34 }
 0x1a1   :  { %v984_v42 = vadd.f32 %v983_v15, %v921_v28  ;;  %v852_v20 = vadd.f32 %v851_v5, %v1856_v8  ;;  %v926_v28 = vmul.f32 %v1884_v46, %v1884_v46 }
 0x1a3   :  { %v853_v60 = vadd.f32 %v852_v20, %v1863_v14  ;;  %v985_v3 = vadd.f32 %v984_v42, %v922_v48  ;;  %v927_v48 = vmul.f32 %v1891_v54, %v1891_v54 }
 0x1a5   :  { %v854_v27 = vadd.f32 %v853_v60, %v1870_v26  ;;  %v986_v11 = vadd.f32 %v985_v3, %v923_v55  ;;  %v928_v55 = vmul.f32 %v1898_v2, %v1898_v2 }
 0x1a7   :  { %v855_v51 = vadd.f32 %v854_v27, %v1877_v34  ;;  %v987_v31 = vadd.f32 %v986_v11, %v924_v61  ;;  %v929_v61 = vmul.f32 %v1905_v10, %v1905_v10 }
 0x1a9   :  { %v856_v5 = vadd.f32 %v855_v51, %v1884_v46  ;;  %v988_v15 = vadd.f32 %v987_v31, %v925_v37  ;;  %v930_v51 = vmul.f32 %v1912_v24, %v1912_v24 }
 0x1ab   :  { %v857_v42 = vadd.f32 %v856_v5, %v1891_v54  ;;  %v989_v20 = vadd.f32 %v988_v15, %v926_v28  ;;  %v931_v15 = vmul.f32 %v1919_v38, %v1919_v38 }
 0x1ad   :  { %v858_v60 = vadd.f32 %v857_v42, %v1898_v2  ;;  %v990_v3 = vadd.f32 %v989_v20, %v927_v48  ;;  %v932_v20 = vmul.f32 %v1926_v52, %v1926_v52 }
 0x1af   :  { %v859_v27 = vadd.f32 %v858_v60, %v1905_v10  ;;  %v991_v11 = vadd.f32 %v990_v3, %v928_v55  ;;  %v933_v3 = vmul.f32 %v1933_v62, %v1933_v62 }
 0x1b1   :  { %v860_v37 = vadd.f32 %v859_v27, %v1912_v24  ;;  %v992_v31 = vadd.f32 %v991_v11, %v929_v61  ;;  %v934_v11 = vmul.f32 %v1940_v16, %v1940_v16 }
 0x1b3   :  { %v993_v5 = vadd.f32 %v992_v31, %v930_v51  ;;  %v861_v28 = vadd.f32 %v860_v37, %v1919_v38  ;;  %v935_v31 = vmul.f32 %v1947_v32, %v1947_v32 }
 0x1b5   :  { %v994_v42 = vadd.f32 %v993_v5, %v931_v15  ;;  %v862_v48 = vadd.f32 %v861_v28, %v1926_v52  ;;  %v936_v15 = vmul.f32 %v1954_v56, %v1954_v56 }
 0x1b7   :  { %v995_v60 = vadd.f32 %v994_v42, %v932_v20  ;;  %v863_v55 = vadd.f32 %v862_v48, %v1933_v62  ;;  %v937_v20 = vmul.f32 %v1961_v6, %v1961_v6 }
 0x1b9   :  { %v996_v27 = vadd.f32 %v995_v60, %v933_v3  ;;  %v864_v61 = vadd.f32 %v863_v55, %v1940_v16  ;;  %v938_v3 = vmul.f32 %v1968_v40, %v1968_v40 }
 0x1bb   :  { %v997_v37 = vadd.f32 %v996_v27, %v934_v11  ;;  %v865_v51 = vadd.f32 %v864_v61, %v1947_v32  ;;  %v939_v11 = vmul.f32 %v1975_v59, %v1975_v59 }
 0x1bd   :  { %v998_v5 = vadd.f32 %v997_v37, %v935_v31  ;;  %v866_v28 = vadd.f32 %v865_v51, %v1954_v56  ;;  %v940_v31 = vmul.f32 %v1982_v12, %v1982_v12 }
 0x1bf   :  { %v999_v42 = vadd.f32 %v998_v5, %v936_v15  ;;  %v867_v48 = vadd.f32 %v866_v28, %v1961_v6  ;;  %v941_v15 = vmul.f32 %v1989_v41, %v1989_v41 }
 0x1c1   :  { %v1000_v60 = vadd.f32 %v999_v42, %v937_v20  ;;  %v868_v55 = vadd.f32 %v867_v48, %v1968_v40  ;;  %v942_v20 = vmul.f32 %v1996_v4, %v1996_v4 }
 0x1c3   :  { %v1001_v27 = vadd.f32 %v1000_v60, %v938_v3  ;;  %v869_v61 = vadd.f32 %v868_v55, %v1975_v59  ;;  %v943_v3 = vmul.f32 %v2003_v47, %v2003_v47 }
 0x1c5   :  { %v1002_v37 = vadd.f32 %v1001_v27, %v939_v11  ;;  %v870_v51 = vadd.f32 %v869_v61, %v1982_v12  ;;  %v944_v27 = vmul.f32 %v2010_v19, %v2010_v19 }
 0x1c7   :  { %v1003_v5 = vadd.f32 %v1002_v37, %v940_v31  ;;  %v871_v28 = vadd.f32 %v870_v51, %v1989_v41  ;;  %v945_v31 = vmul.f32 %v2017_v39, %v2017_v39 }
 0x1c9   :  { %v1004_v42 = vadd.f32 %v1003_v5, %v941_v15  ;;  %v872_v48 = vadd.f32 %v871_v28, %v1996_v4 }
 0x1cb   :  { %v1005_v60 = vadd.f32 %v1004_v42, %v942_v20  ;;  %v873_v55 = vadd.f32 %v872_v48, %v2003_v47 }
 0x1cd   :  { %v1006_v61 = vadd.f32 %v1005_v60, %v943_v3  ;;  %v874_v11 = vadd.f32 %v873_v55, %v2010_v19 }
 0x1cf   :  { %v1007_v37 = vadd.f32 %v1006_v61, %v944_v27  ;;  %v875_v51 = vadd.f32 %v874_v11, %v2017_v39 }
 0x1d1   :  { %v876_v5 = vrot.slane %v875_v51, 4  ;;  %v1008_v28 = vadd.f32 %v1007_v37, %v945_v31  ;;  %v2983_v37 = vld [vmem:[#allocation22_spill] sm:$0xff] }
 0x1d3   :  { %v877_v15 = vadd.f32 %v876_v5, %v875_v51  ;;  %v1009_v42 = vrot.slane %v1008_v28, 4  ;;  %v2973_v5 = vld [vmem:[#allocation15_spill] sm:$0xff]  ;;  %v2979_v51 = vld [vmem:[#allocation26_spill] sm:$0xff] }
 0x1d5   :  { %v878_v48 = vrot.slane %v877_v15, 2  ;;  %v1010_v20 = vadd.f32 %v1009_v42, %v1008_v28  ;;  %v2966_v42 = vld [vmem:[#allocation3_spill] sm:$0xff]  ;;  %v2982_v28 = vld [vmem:[#allocation20_spill] sm:$0xff] }
 0x1d7   :  { %v879_v4 = vadd.f32 %v878_v48, %v877_v15  ;;  %v1011_v47 = vrot.slane %v1010_v20, 2  ;;  %v2965_v15 = vld [vmem:[#allocation2_spill] sm:$0xff] }
 0x1d9   :  { %v880_v41 = vrot.slane %v879_v4, 1  ;;  %v1012_v12 = vadd.f32 %v1011_v47, %v1010_v20  ;;  %v2975_v47 = vld [vmem:[#allocation19_spill] sm:$0xff] }
 0x1db   :  { %v881_v59 = vadd.f32 %v880_v41, %v879_v4  ;;  %v1013_v60 = vrot.slane %v1012_v12, 1  ;;  %v2978_v41 = vld [vmem:[#allocation25_spill] sm:$0xff] }
 0x1dd   :  { %v1014_v3 = vadd.f32 %v1013_v60, %v1012_v12  ;;  %v2118_v55 = vmul.f32 0.001953125, %v881_v59  ;;  %v2968_v60 = vld [vmem:[#allocation6_spill] sm:$0xff]  ;;  %v2976_v12 = vld [vmem:[#allocation21_spill] sm:$0xff]  ;;  %v2977_v59 = vld [vmem:[#allocation23_spill] sm:$0xff] }
 0x1df   :  { %v1017_v27 = vmul.f32 0.001953125, %v1014_v3  ;;  %v1018_v61 = vmul.f32 %v2118_v55, %v2118_v55  ;;  %v2985_v62 = vsub.f32 %v1798_v17, %v2118_v55  ;;  %v2986_v32 = vsub.f32 %v1802_v21, %v2118_v55 }
 0x1e0   :  { %v2987_v11 = vsub.f32 %v1812_v29, %v2118_v55  ;;  %v2988_v3 = vsub.f32 %v1819_v35, %v2118_v55 }
 0x1e1   :  { %v1019_v4 = vsub.f32 %v1017_v27, %v1018_v61  ;;  %v2980_v27 = vld [vmem:[#allocation16_spill] sm:$0xff]  ;;  %v2981_v61 = vld [vmem:[#allocation18_spill] sm:$0xff] }
 0x1e3   :  { %v1020_v20 = vmax.f32 %v1019_v4, 0.0  ;;  %v2967_v4 = vld [vmem:[#allocation4_spill] sm:$0xff] }
 0x1e5   :  { %v1021_v31 = vadd.f32 1e-05, %v1020_v20  ;;  %v2974_v20 = vld [vmem:[#allocation17_spill] sm:$0xff] }
 0x1e7   :  { %1508 = vrsqrt.f32 %v1021_v31  ;;  %v2984_v31 = vld [vmem:[#allocation24_spill] sm:$0xff] }
 0x1f1   :  { %v2250_v40 = vpop.eup %1508 }
 0x1f2   :  { %v2256_v48 = vmul.f32 %v2250_v40, %v2985_v62  ;;  %v2262_v16 = vmul.f32 %v2250_v40, %v2986_v32  ;;  %v2268_v56 = vmul.f32 %v2250_v40, %v2987_v11  ;;  %v2274_v17 = vmul.f32 %v2250_v40, %v2988_v3 }
 0x1f3   :  { %v2989_v62 = vsub.f32 %v1826_v43, %v2118_v55  ;;  %v2990_v32 = vsub.f32 %v1833_v49, %v2118_v55  ;;  %v2991_v11 = vsub.f32 %v1840_v57, %v2118_v55  ;;  %v2992_v3 = vsub.f32 %v1847_v63, %v2118_v55 }
 0x1f5   :  { %v2280_v21 = vmul.f32 %v2250_v40, %v2989_v62  ;;  %v2286_v29 = vmul.f32 %v2250_v40, %v2990_v32  ;;  %v2292_v35 = vmul.f32 %v2250_v40, %v2991_v11  ;;  %v2298_v43 = vmul.f32 %v2250_v40, %v2992_v3 }
 0x1f6   :  { %v2993_v62 = vsub.f32 %v1854_v7, %v2118_v55  ;;  %v2994_v32 = vsub.f32 %v1861_v13, %v2118_v55  ;;  %v2995_v11 = vsub.f32 %v1868_v25, %v2118_v55  ;;  %v2996_v3 = vsub.f32 %v1875_v33, %v2118_v55 }
 0x1f8   :  { %v2304_v49 = vmul.f32 %v2250_v40, %v2993_v62  ;;  %v2310_v57 = vmul.f32 %v2250_v40, %v2994_v32  ;;  %v2316_v63 = vmul.f32 %v2250_v40, %v2995_v11  ;;  %v2322_v7 = vmul.f32 %v2250_v40, %v2996_v3 }
 0x1f9   :  { %v2997_v62 = vsub.f32 %v1882_v45, %v2118_v55  ;;  %v2998_v32 = vsub.f32 %v1889_v53, %v2118_v55  ;;  %v2999_v11 = vsub.f32 %v1896_v1, %v2118_v55  ;;  %v3000_v3 = vsub.f32 %v1903_v9, %v2118_v55 }
 0x1fb   :  { %v2328_v13 = vmul.f32 %v2250_v40, %v2997_v62  ;;  %v2334_v25 = vmul.f32 %v2250_v40, %v2998_v32  ;;  %v2340_v33 = vmul.f32 %v2250_v40, %v2999_v11  ;;  %v2346_v45 = vmul.f32 %v2250_v40, %v3000_v3 }
 0x1fc   :  { %v3001_v62 = vsub.f32 %v1910_v23, %v2118_v55  ;;  %v3002_v32 = vsub.f32 %v2965_v15, %v2118_v55  ;;  %v3004_v11 = vsub.f32 %v2966_v42, %v2118_v55  ;;  %v3006_v3 = vsub.f32 %v2967_v4, %v2118_v55 }
 0x1fe   :  { %v2352_v53 = vmul.f32 %v2250_v40, %v3001_v62  ;;  %v2358_v1 = vmul.f32 %v2250_v40, %v3002_v32  ;;  %v2364_v9 = vmul.f32 %v2250_v40, %v3004_v11  ;;  %v2370_v23 = vmul.f32 %v2250_v40, %v3006_v3  ;;  %v3010_v32 = vld [vmem:[#allocation8_spill] sm:$0xff]  ;;  %v3012_v11 = vld [vmem:[#allocation10_spill] sm:$0xff] }
 0x1ff   :  { %v3008_v62 = vsub.f32 %v2968_v60, %v2118_v55  ;;  %v3014_v3 = vld [vmem:[#allocation12_spill] sm:$0xff] }
 0x200   :  { %3003 = vst [vmem:[#allocation2_spill] sm:$0xff] %v2358_v1  ;;  %3005 = vst [vmem:[#allocation3_spill] sm:$0xff] %v2364_v9  ;;  %v3011_v1 = vsub.f32 %v3010_v32, %v2118_v55  ;;  %v3013_v9 = vsub.f32 %v3012_v11, %v2118_v55 }
 0x201   :  { %3007 = vst [vmem:[#allocation4_spill] sm:$0xff] %v2370_v23  ;;  %v2376_v15 = vmul.f32 %v2250_v40, %v3008_v62  ;;  %v3015_v23 = vsub.f32 %v3014_v3, %v2118_v55  ;;  %v3016_v62 = vld [vmem:[#allocation13_spill] sm:$0xff] }
 0x202   :  { %v2382_v42 = vmul.f32 %v2250_v40, %v3011_v1  ;;  %v2388_v4 = vmul.f32 %v2250_v40, %v3013_v9  ;;  %v3018_v1 = vsub.f32 %v2973_v5, %v2118_v55  ;;  %v3019_v9 = vsub.f32 %v2974_v20, %v2118_v55 }
 0x203   :  { %3009 = vst [vmem:[#allocation6_spill] sm:$0xff] %v2376_v15  ;;  %v2394_v60 = vmul.f32 %v2250_v40, %v3015_v23  ;;  %v3017_v15 = vsub.f32 %v3016_v62, %v2118_v55  ;;  %v3020_v23 = vsub.f32 %v2975_v47, %v2118_v55 }
 0x204   :  { %v2406_v11 = vmul.f32 %v2250_v40, %v3018_v1  ;;  %v2412_v3 = vmul.f32 %v2250_v40, %v3019_v9  ;;  %v3022_v1 = vsub.f32 %v2977_v59, %v2118_v55  ;;  %v3023_v9 = vsub.f32 %v2978_v41, %v2118_v55 }
 0x205   :  { %v2400_v32 = vmul.f32 %v2250_v40, %v3017_v15  ;;  %v2418_v62 = vmul.f32 %v2250_v40, %v3020_v23  ;;  %v3021_v15 = vsub.f32 %v2976_v12, %v2118_v55  ;;  %v3024_v23 = vsub.f32 %v2979_v51, %v2118_v55 }
 0x206   :  { %v2430_v20 = vmul.f32 %v2250_v40, %v3022_v1  ;;  %v2436_v47 = vmul.f32 %v2250_v40, %v3023_v9  ;;  %v3026_v1 = vsub.f32 %v1804_v22, %v2118_v55  ;;  %v3027_v9 = vsub.f32 %v1814_v30, %v2118_v55 }
 0x207   :  { %v2424_v5 = vmul.f32 %v2250_v40, %v3021_v15  ;;  %v2442_v12 = vmul.f32 %v2250_v40, %v3024_v23  ;;  %v3025_v15 = vsub.f32 %v1800_v18, %v2118_v55  ;;  %v3028_v23 = vsub.f32 %v1821_v36, %v2118_v55 }
 0x208   :  { %v2454_v41 = vmul.f32 %v2250_v40, %v3026_v1  ;;  %v2460_v51 = vmul.f32 %v2250_v40, %v3027_v9  ;;  %v3030_v1 = vsub.f32 %v1835_v50, %v2118_v55  ;;  %v3031_v9 = vsub.f32 %v1842_v58, %v2118_v55 }
 0x209   :  { %v2448_v59 = vmul.f32 %v2250_v40, %v3025_v15  ;;  %v2466_v18 = vmul.f32 %v2250_v40, %v3028_v23  ;;  %v3029_v15 = vsub.f32 %v1828_v44, %v2118_v55  ;;  %v3032_v23 = vsub.f32 %v1849_v0, %v2118_v55 }
 0x20a   :  { %v2478_v30 = vmul.f32 %v2250_v40, %v3030_v1  ;;  %v2484_v36 = vmul.f32 %v2250_v40, %v3031_v9  ;;  %v3034_v1 = vsub.f32 %v1863_v14, %v2118_v55  ;;  %v3035_v9 = vsub.f32 %v1870_v26, %v2118_v55 }
 0x20b   :  { %v2472_v22 = vmul.f32 %v2250_v40, %v3029_v15  ;;  %v2490_v44 = vmul.f32 %v2250_v40, %v3032_v23  ;;  %v3033_v15 = vsub.f32 %v1856_v8, %v2118_v55  ;;  %v3036_v23 = vsub.f32 %v1877_v34, %v2118_v55 }
 0x20c   :  { %v2502_v58 = vmul.f32 %v2250_v40, %v3034_v1  ;;  %v2508_v0 = vmul.f32 %v2250_v40, %v3035_v9  ;;  %v3038_v1 = vsub.f32 %v1891_v54, %v2118_v55  ;;  %v3039_v9 = vsub.f32 %v1898_v2, %v2118_v55 }
 0x20d   :  { %v2496_v50 = vmul.f32 %v2250_v40, %v3033_v15  ;;  %v2514_v8 = vmul.f32 %v2250_v40, %v3036_v23  ;;  %v3037_v15 = vsub.f32 %v1884_v46, %v2118_v55  ;;  %v3040_v23 = vsub.f32 %v1905_v10, %v2118_v55 }
 0x20e   :  { %v2526_v26 = vmul.f32 %v2250_v40, %v3038_v1  ;;  %v2532_v34 = vmul.f32 %v2250_v40, %v3039_v9  ;;  %v3044_v1 = vsub.f32 %v1919_v38, %v2118_v55  ;;  %v3046_v9 = vsub.f32 %v1926_v52, %v2118_v55 }
 0x20f   :  { %v2520_v14 = vmul.f32 %v2250_v40, %v3037_v15  ;;  %v2538_v46 = vmul.f32 %v2250_v40, %v3040_v23  ;;  %v3042_v15 = vsub.f32 %v1912_v24, %v2118_v55  ;;  %v3048_v23 = vld [vmem:[#allocation5_spill] sm:$0xff] }
 0x210   :  { %v2550_v2 = vmul.f32 %v2250_v40, %v3044_v1  ;;  %v2556_v10 = vmul.f32 %v2250_v40, %v3046_v9  ;;  %v3053_v1 = vld [vmem:[#allocation9_spill] sm:$0xff]  ;;  %v3055_v9 = vld [vmem:[#allocation11_spill] sm:$0xff] }
 0x211   :  { %3041 = vst [vmem:[#allocation15_spill] sm:$0xff] %v2538_v46  ;;  %v2544_v54 = vmul.f32 %v2250_v40, %v3042_v15  ;;  %v3049_v46 = vsub.f32 %v3048_v23, %v2118_v55  ;;  %v3050_v15 = vld [vmem:[#allocation7_spill] sm:$0xff] }
 0x212   :  { %3045 = vst [vmem:[#allocation19_spill] sm:$0xff] %v2550_v2  ;;  %3047 = vst [vmem:[#allocation21_spill] sm:$0xff] %v2556_v10  ;;  %v3054_v2 = vsub.f32 %v3053_v1, %v2118_v55  ;;  %v3056_v10 = vsub.f32 %v3055_v9, %v2118_v55 }
 0x213   :  { %3043 = vst [vmem:[#allocation17_spill] sm:$0xff] %v2544_v54  ;;  %v2562_v24 = vmul.f32 %v2250_v40, %v3049_v46  ;;  %v3051_v54 = vsub.f32 %v3050_v15, %v2118_v55  ;;  %v3057_v46 = vsub.f32 %v1961_v6, %v2118_v55 }
 0x214   :  { %v2574_v52 = vmul.f32 %v2250_v40, %v3054_v2  ;;  %v2580_v23 = vmul.f32 %v2250_v40, %v3056_v10  ;;  %v3060_v2 = vsub.f32 %v2980_v27, %v2118_v55  ;;  %v3061_v10 = vsub.f32 %v2981_v61, %v2118_v55 }
 0x215   :  { %v2568_v38 = vmul.f32 %v2250_v40, %v3051_v54  ;;  %v2586_v15 = vmul.f32 %v2250_v40, %v3057_v46  ;;  %v3058_v54 = vld [vmem:[#allocation14_spill] sm:$0xff]  ;;  %v3062_v46 = vsub.f32 %v2982_v28, %v2118_v55 }
 0x216   :  { %v2598_v9 = vmul.f32 %v2250_v40, %v3060_v2  ;;  %v2604_v6 = vmul.f32 %v2250_v40, %v3061_v10  ;;  %v3065_v2 = vsub.f32 %v2984_v31, %v2118_v55  ;;  %v3067_v10 = vsub.f32 %v2010_v19, %v2118_v55 }
 0x217   :  { %3052 = vst [vmem:[#allocation23_spill] sm:$0xff] %v2568_v38  ;;  %v3059_v38 = vsub.f32 %v3058_v54, %v2118_v55  ;;  %v2610_v54 = vmul.f32 %v2250_v40, %v3062_v46  ;;  %v3069_v46 = vsub.f32 %v2017_v39, %v2118_v55  ;;  %v1153_v31 = vmax.f32 %v2268_v56, 0.0 }
 0x218   :  { %v2622_v61 = vmul.f32 %v2250_v40, %v3065_v2  ;;  %v2628_v28 = vmul.f32 %v2250_v40, %v3067_v10  ;;  %v1154_v2 = vmax.f32 %v2274_v17, 0.0  ;;  %v1156_v19 = vmax.f32 %v2286_v29, 0.0 }
 0x219   :  { %v2592_v1 = vmul.f32 %v2250_v40, %v3059_v38  ;;  %v3063_v38 = vsub.f32 %v2983_v37, %v2118_v55  ;;  %v2634_v37 = vmul.f32 %v2250_v40, %v3069_v46  ;;  %v1157_v10 = vmax.f32 %v2292_v35, 0.0  ;;  %1217 = vst [vmem:[%s2894_s2 + $0x10] sm:$0xff] %v1153_v31  ;;  %v3070_v35 = vld [vmem:[#allocation2_spill] sm:$0xff]  ;;  %v3077_v46 = vld [vmem:[#allocation21_spill] sm:$0xff] }
 0x21a   :  { %3066 = vst [vmem:[#allocation26_spill] sm:$0xff] %v2622_v61  ;;  %3068 = vst [vmem:[#allocation16_spill] sm:$0xff] %v2628_v28  ;;  %v1155_v61 = vmax.f32 %v2280_v21, 0.0  ;;  %v1158_v28 = vmax.f32 %v2298_v43, 0.0  ;;  %v1159_v39 = vmax.f32 %v2304_v49, 0.0  ;;  %v1161_v55 = vmax.f32 %v2316_v63, 0.0 }
 0x21b   :  { %v2616_v27 = vmul.f32 %v2250_v40, %v3063_v38  ;;  %v1151_v38 = vmax.f32 %v2256_v48, 0.0  ;;  %v1160_v40 = vmax.f32 %v2310_v57, 0.0  ;;  %1218 = vst [vmem:[%s2894_s2 + $0x18] sm:$0xff] %v1154_v2  ;;  %v1163_v56 = vmax.f32 %v2328_v13, 0.0  ;;  %1220 = vst [vmem:[%s2894_s2 + $0x28] sm:$0xff] %v1156_v19  ;;  %v3071_v49 = vld [vmem:[#allocation3_spill] sm:$0xff] }
 0x21c   :  { %v1164_v48 = vmax.f32 %v2334_v25, 0.0  ;;  %v1165_v17 = vmax.f32 %v2340_v33, 0.0  ;;  %v1166_v21 = vmax.f32 %v2346_v45, 0.0  ;;  %1219 = vst [vmem:[%s2894_s2 + $0x20] sm:$0xff] %v1155_v61  ;;  %1221 = vst [vmem:[%s2894_s2 + $0x30] sm:$0xff] %v1157_v10  ;;  %v1167_v29 = vmax.f32 %v2352_v53, 0.0 }
 0x21d   :  { %3064 = vst [vmem:[#allocation25_spill] sm:$0xff] %v2616_v27  ;;  %v1152_v27 = vmax.f32 %v2262_v16, 0.0  ;;  %v1162_v16 = vmax.f32 %v2322_v7, 0.0  ;;  %1215 = vst [vmem:[%s2894_s2] sm:$0xff] %v1151_v38  ;;  %v1168_v43 = vmax.f32 %v3070_v35, 0.0  ;;  %v1169_v57 = vmax.f32 %v3071_v49, 0.0  ;;  %v3072_v63 = vld [vmem:[#allocation4_spill] sm:$0xff] }
 0x21e   :  { %1222 = vst [vmem:[%s2894_s2 + $0x38] sm:$0xff] %v1158_v28  ;;  %v1170_v7 = vmax.f32 %v3072_v63, 0.0  ;;  %1223 = vst [vmem:[%s2894_s2 + $0x40] sm:$0xff] %v1159_v39  ;;  %v3073_v13 = vld [vmem:[#allocation6_spill] sm:$0xff]  ;;  %v1172_v33 = vmax.f32 %v2382_v42, 0.0  ;;  %v1173_v45 = vmax.f32 %v2388_v4, 0.0 }
 0x21f   :  { %1216 = vst [vmem:[%s2894_s2 + $0x8] sm:$0xff] %v1152_v27  ;;  %1224 = vst [vmem:[%s2894_s2 + $0x48] sm:$0xff] %v1160_v40  ;;  %v1171_v25 = vmax.f32 %v3073_v13, 0.0  ;;  %v1174_v53 = vmax.f32 %v2394_v60, 0.0  ;;  %v1175_v42 = vmax.f32 %v2400_v32, 0.0  ;;  %v1176_v4 = vmax.f32 %v2406_v11, 0.0 }
 0x220   :  { %1225 = vst [vmem:[%s2894_s2 + $0x50] sm:$0xff] %v1161_v55  ;;  %1226 = vst [vmem:[%s2894_s2 + $0x58] sm:$0xff] %v1162_v16  ;;  %v1177_v60 = vmax.f32 %v2412_v3, 0.0  ;;  %v1178_v27 = vmax.f32 %v2418_v62, 0.0  ;;  %v1179_v32 = vmax.f32 %v2424_v5, 0.0  ;;  %v1180_v11 = vmax.f32 %v2430_v20, 0.0 }
 0x221   :  { %1227 = vst [vmem:[%s2894_s2 + $0x60] sm:$0xff] %v1163_v56  ;;  %1228 = vst [vmem:[%s2894_s2 + $0x68] sm:$0xff] %v1164_v48  ;;  %v1181_v3 = vmax.f32 %v2436_v47, 0.0  ;;  %v1182_v62 = vmax.f32 %v2442_v12, 0.0  ;;  %v1183_v5 = vmax.f32 %v2448_v59, 0.0  ;;  %v1184_v20 = vmax.f32 %v2454_v41, 0.0 }
 0x222   :  { %1229 = vst [vmem:[%s2894_s2 + $0x70] sm:$0xff] %v1165_v17  ;;  %1230 = vst [vmem:[%s2894_s2 + $0x78] sm:$0xff] %v1166_v21  ;;  %v1185_v47 = vmax.f32 %v2460_v51, 0.0  ;;  %v1186_v12 = vmax.f32 %v2466_v18, 0.0  ;;  %v1187_v59 = vmax.f32 %v2472_v22, 0.0  ;;  %v1188_v41 = vmax.f32 %v2478_v30, 0.0 }
 0x223   :  { %1231 = vst [vmem:[%s2894_s2 + $0x80] sm:$0xff] %v1167_v29  ;;  %1232 = vst [vmem:[%s2894_s2 + $0x88] sm:$0xff] %v1168_v43  ;;  %v1189_v51 = vmax.f32 %v2484_v36, 0.0  ;;  %v1190_v18 = vmax.f32 %v2490_v44, 0.0  ;;  %v1191_v22 = vmax.f32 %v2496_v50, 0.0  ;;  %v1192_v30 = vmax.f32 %v2502_v58, 0.0 }
 0x224   :  { %1233 = vst [vmem:[%s2894_s2 + $0x90] sm:$0xff] %v1169_v57  ;;  %1234 = vst [vmem:[%s2894_s2 + $0x98] sm:$0xff] %v1170_v7  ;;  %v1193_v36 = vmax.f32 %v2508_v0, 0.0  ;;  %v1194_v44 = vmax.f32 %v2514_v8, 0.0  ;;  %v1195_v50 = vmax.f32 %v2520_v14, 0.0  ;;  %v1196_v58 = vmax.f32 %v2526_v26, 0.0 }
 0x225   :  { %1235 = vst [vmem:[%s2894_s2 + $0xa0] sm:$0xff] %v1171_v25  ;;  %1236 = vst [vmem:[%s2894_s2 + $0xa8] sm:$0xff] %v1172_v33  ;;  %v1197_v0 = vmax.f32 %v2532_v34, 0.0  ;;  %v3074_v8 = vld [vmem:[#allocation15_spill] sm:$0xff]  ;;  %v3075_v14 = vld [vmem:[#allocation17_spill] sm:$0xff]  ;;  %v1201_v38 = vmax.f32 %v3077_v46, 0.0 }
 0x226   :  { %1237 = vst [vmem:[%s2894_s2 + $0xb0] sm:$0xff] %v1173_v45  ;;  %1238 = vst [vmem:[%s2894_s2 + $0xb8] sm:$0xff] %v1174_v53  ;;  %v1198_v61 = vmax.f32 %v3074_v8, 0.0  ;;  %v1199_v26 = vmax.f32 %v3075_v14, 0.0  ;;  %v3076_v34 = vld [vmem:[#allocation19_spill] sm:$0xff]  ;;  %v1202_v31 = vmax.f32 %v2562_v24, 0.0 }
 0x227   :  { %1239 = vst [vmem:[%s2894_s2 + $0xc0] sm:$0xff] %v1175_v42  ;;  %1240 = vst [vmem:[%s2894_s2 + $0xc8] sm:$0xff] %v1176_v4  ;;  %v1200_v28 = vmax.f32 %v3076_v34, 0.0  ;;  %v3078_v2 = vld [vmem:[#allocation23_spill] sm:$0xff]  ;;  %v1204_v24 = vmax.f32 %v2574_v52, 0.0  ;;  %v1205_v10 = vmax.f32 %v2580_v23, 0.0 }
 0x228   :  { %1241 = vst [vmem:[%s2894_s2 + $0xd0] sm:$0xff] %v1177_v60  ;;  %1242 = vst [vmem:[%s2894_s2 + $0xd8] sm:$0xff] %v1178_v27  ;;  %v1203_v19 = vmax.f32 %v3078_v2, 0.0  ;;  %v1206_v39 = vmax.f32 %v2586_v15, 0.0  ;;  %v1207_v52 = vmax.f32 %v2592_v1, 0.0  ;;  %v1208_v23 = vmax.f32 %v2598_v9, 0.0 }
 0x229   :  { %1243 = vst [vmem:[%s2894_s2 + $0xe0] sm:$0xff] %v1179_v32  ;;  %1244 = vst [vmem:[%s2894_s2 + $0xe8] sm:$0xff] %v1180_v11  ;;  %v1209_v15 = vmax.f32 %v2604_v6, 0.0  ;;  %v1210_v40 = vmax.f32 %v2610_v54, 0.0  ;;  %v3079_v1 = vld [vmem:[#allocation25_spill] sm:$0xff]  ;;  %v3080_v6 = vld [vmem:[#allocation26_spill] sm:$0xff] }
 0x22a   :  { %1245 = vst [vmem:[%s2894_s2 + $0xf0] sm:$0xff] %v1181_v3  ;;  %1246 = vst [vmem:[%s2894_s2 + $0xf8] sm:$0xff] %v1182_v62  ;;  %v1211_v9 = vmax.f32 %v3079_v1, 0.0  ;;  %v1212_v54 = vmax.f32 %v3080_v6, 0.0  ;;  %v3081_v55 = vld [vmem:[#allocation16_spill] sm:$0xff]  ;;  %v1214_v56 = vmax.f32 %v2634_v37, 0.0 }
 0x22b   :  { %1247 = vst [vmem:[%s2894_s2 + $0x100] sm:$0xff] %v1183_v5  ;;  %1248 = vst [vmem:[%s2894_s2 + $0x108] sm:$0xff] %v1184_v20  ;;  %v1213_v16 = vmax.f32 %v3081_v55, 0.0 }
 0x22c   :  { %1249 = vst [vmem:[%s2894_s2 + $0x110] sm:$0xff] %v1185_v47  ;;  %1250 = vst [vmem:[%s2894_s2 + $0x118] sm:$0xff] %v1186_v12 }
 0x22d   :  { %1251 = vst [vmem:[%s2894_s2 + $0x120] sm:$0xff] %v1187_v59  ;;  %1252 = vst [vmem:[%s2894_s2 + $0x128] sm:$0xff] %v1188_v41 }
 0x22e   :  { %1253 = vst [vmem:[%s2894_s2 + $0x130] sm:$0xff] %v1189_v51  ;;  %1254 = vst [vmem:[%s2894_s2 + $0x138] sm:$0xff] %v1190_v18 }
 0x22f   :  { %1255 = vst [vmem:[%s2894_s2 + $0x140] sm:$0xff] %v1191_v22  ;;  %1256 = vst [vmem:[%s2894_s2 + $0x148] sm:$0xff] %v1192_v30 }
 0x230   :  { %1257 = vst [vmem:[%s2894_s2 + $0x150] sm:$0xff] %v1193_v36  ;;  %1258 = vst [vmem:[%s2894_s2 + $0x158] sm:$0xff] %v1194_v44 }
 0x231   :  { %1259 = vst [vmem:[%s2894_s2 + $0x160] sm:$0xff] %v1195_v50  ;;  %1260 = vst [vmem:[%s2894_s2 + $0x168] sm:$0xff] %v1196_v58 }
 0x232   :  { %1261 = vst [vmem:[%s2894_s2 + $0x170] sm:$0xff] %v1197_v0  ;;  %1262 = vst [vmem:[%s2894_s2 + $0x178] sm:$0xff] %v1198_v61 }
 0x233   :  { %1263 = vst [vmem:[%s2894_s2 + $0x180] sm:$0xff] %v1199_v26  ;;  %1264 = vst [vmem:[%s2894_s2 + $0x188] sm:$0xff] %v1200_v28 }
 0x234   :  { %1265 = vst [vmem:[%s2894_s2 + $0x190] sm:$0xff] %v1201_v38  ;;  %1266 = vst [vmem:[%s2894_s2 + $0x198] sm:$0xff] %v1202_v31 }
 0x235   :  { %1267 = vst [vmem:[%s2894_s2 + $0x1a0] sm:$0xff] %v1203_v19  ;;  %1268 = vst [vmem:[%s2894_s2 + $0x1a8] sm:$0xff] %v1204_v24 }
 0x236   :  { %1269 = vst [vmem:[%s2894_s2 + $0x1b0] sm:$0xff] %v1205_v10  ;;  %1270 = vst [vmem:[%s2894_s2 + $0x1b8] sm:$0xff] %v1206_v39 }
 0x237   :  { %1271 = vst [vmem:[%s2894_s2 + $0x1c0] sm:$0xff] %v1207_v52  ;;  %1272 = vst [vmem:[%s2894_s2 + $0x1c8] sm:$0xff] %v1208_v23 }
 0x238   :  { %1273 = vst [vmem:[%s2894_s2 + $0x1d0] sm:$0xff] %v1209_v15  ;;  %1274 = vst [vmem:[%s2894_s2 + $0x1d8] sm:$0xff] %v1210_v40 }
 0x239   :  { %1275 = vst [vmem:[%s2894_s2 + $0x1e0] sm:$0xff] %v1211_v9  ;;  %1276 = vst [vmem:[%s2894_s2 + $0x1e8] sm:$0xff] %v1212_v54 }
 0x23a   :  { %1277 = vst [vmem:[%s2894_s2 + $0x1f0] sm:$0xff] %v1213_v16  ;;  %1278 = vst [vmem:[%s2894_s2 + $0x1f8] sm:$0xff] %v1214_v56 }

</bundles_post_ra>
